<compile_context>
chip_gen: v6e
topology: v6e:2x2x1
jax: 0.10.0
libtpu: 0.0.40
codegen_flags: <defaults>
</compile_context>

<pallas_src>
import functools

import jax
import jax.numpy as jnp
from jax.experimental import pallas as pl
from jax.experimental.pallas import tpu as pltpu


def _round_up(x, m):
    return (x + m - 1) // m * m


def _cdiv(a, b):
    return -(-a // b)


def _pick_tile_m(mp, halo, cin_pad, cout_pad, budget_bytes=12 * 1024 * 1024):
    """Lane-dense M tile: multiple of 128, >=512 where possible, large enough
    to amortize the halo re-read, bounded by a VMEM budget that stays safe on
    v7x (64 MiB physical / 32 MiB scoped default)."""
    # slab (bf16) + f32 accumulator + double-buffered bf16 y out + mask.
    per_elem = 2 * cin_pad + 4 * cout_pad + 4 * cout_pad + 8
    t_budget = (budget_bytes - 2 * cin_pad * halo) // per_elem
    t_budget = max(512, (t_budget // 128) * 128)
    target = min(t_budget, max(2048, _round_up(halo, 128)))
    if mp <= target:
        return _round_up(mp, 128)
    n_tiles = _cdiv(mp, target)
    return max(128, min(t_budget, _round_up(_cdiv(mp, n_tiles), 128)))


# -----------------------------------------------------------------------------
# Pallas kernel 1: fused (im2col-free) conv + bias + masked InstanceNorm stats
# -----------------------------------------------------------------------------
def _conv_kernel(w_ref, b_ref, mask_ref, x_hbm, y_ref, sum_ref, ssq_ref,
                 slab_ref, acc_ref, sem, *, shifts, tile_m):
    n_idx = pl.program_id(0)
    j = pl.program_id(1)
    slab_len = slab_ref.shape[1]

    # DMA the halo'd flat-M window of the padded input for this tile.
    m0 = pl.multiple_of(j * tile_m, 128)
    cp = pltpu.make_async_copy(
        x_hbm.at[n_idx, :, pl.ds(m0, slab_len)], slab_ref, sem.at[0])
    cp.start()
    cp.wait()

    # 27 statically shifted accumulating dots (fused im2col).
    acc_ref[...] = jnp.zeros_like(acc_ref)
    for t, s in enumerate(shifts):
        acc_ref[...] += jnp.dot(w_ref[t], slab_ref[:, s:s + tile_m],
                                preferred_element_type=jnp.float32)

    y = acc_ref[...] + b_ref[...]                      # (Cout_pad, tile_m) f32
    y_ref[0] = y.astype(y_ref.dtype)                   # bf16, lane-dense store

    # Masked per-channel statistics (exclude padded-grid / lane-pad columns).
    ym = y * mask_ref[...]
    s1 = jnp.sum(ym, axis=-1, keepdims=True)           # (Cout_pad, 1)
    s2 = jnp.sum(ym * y, axis=-1, keepdims=True)

    @pl.when(j == 0)
    def _():
        sum_ref[0] = s1
        ssq_ref[0] = s2

    @pl.when(j > 0)
    def _():
        sum_ref[0] += s1
        ssq_ref[0] += s2


def _conv3d_stats(x_flat, w_taps, b_col, mask, *, shifts, tile_m, mp_pad):
    n, cin_pad, mx = x_flat.shape
    nt, cout_pad, _ = w_taps.shape
    slab_len = tile_m + (mx - mp_pad)
    grid = (n, mp_pad // tile_m)
    kernel = functools.partial(_conv_kernel, shifts=shifts, tile_m=tile_m)
    return pl.pallas_call(
        kernel,
        out_shape=(
            jax.ShapeDtypeStruct((n, cout_pad, mp_pad), jnp.bfloat16),
            jax.ShapeDtypeStruct((n, cout_pad, 1), jnp.float32),
            jax.ShapeDtypeStruct((n, cout_pad, 1), jnp.float32),
        ),
        grid_spec=pltpu.PrefetchScalarGridSpec(
            num_scalar_prefetch=0,
            grid=grid,
            in_specs=[
                pl.BlockSpec((nt, cout_pad, cin_pad), lambda i, j: (0, 0, 0)),
                pl.BlockSpec((cout_pad, 1), lambda i, j: (0, 0)),
                pl.BlockSpec((1, tile_m), lambda i, j: (0, j)),
                pl.BlockSpec(memory_space=pl.ANY),       # x stays in HBM
            ],
            out_specs=(
                pl.BlockSpec((1, cout_pad, tile_m), lambda i, j: (i, 0, j)),
                pl.BlockSpec((1, cout_pad, 1), lambda i, j: (i, 0, 0)),
                pl.BlockSpec((1, cout_pad, 1), lambda i, j: (i, 0, 0)),
            ),
            scratch_shapes=[
                pltpu.VMEM((cin_pad, slab_len), jnp.bfloat16),
                pltpu.VMEM((cout_pad, tile_m), jnp.float32),
                pltpu.SemaphoreType.DMA((1,)),
            ],
        ),
        compiler_params=pltpu.CompilerParams(
            dimension_semantics=("parallel", "arbitrary"),
            vmem_limit_bytes=32 * 1024 * 1024),
    )(w_taps, b_col, mask, x_flat)


# -----------------------------------------------------------------------------
# Pallas kernel 2: apply InstanceNorm (precomputed stats) + LeakyReLU, M-tiled
# -----------------------------------------------------------------------------
def _norm_apply_kernel(y_ref, sum_ref, ssq_ref, o_ref, *, inv_count, eps, alpha):
    y = y_ref[0].astype(jnp.float32)                   # (Cout_pad, tile_m)
    mean = sum_ref[0] * inv_count                      # (Cout_pad, 1)
    var = ssq_ref[0] * inv_count - mean * mean         # biased variance
    inv = jax.lax.rsqrt(jnp.maximum(var, 0.0) + eps)
    z = (y - mean) * inv
    o_ref[0] = jnp.where(z >= 0, z, alpha * z).astype(o_ref.dtype)


def _norm_lrelu_apply(y, ysum, ysq, *, count, eps, alpha, tile_m):
    n, cout_pad, mp_pad = y.shape
    grid = (n, mp_pad // tile_m)
    kernel = functools.partial(_norm_apply_kernel, inv_count=1.0 / float(count),
                               eps=float(eps), alpha=float(alpha))
    return pl.pallas_call(
        kernel,
        out_shape=jax.ShapeDtypeStruct((n, cout_pad, mp_pad), jnp.float32),
        grid_spec=pltpu.PrefetchScalarGridSpec(
            num_scalar_prefetch=0,
            grid=grid,
            in_specs=[
                pl.BlockSpec((1, cout_pad, tile_m), lambda i, j: (i, 0, j)),
                pl.BlockSpec((1, cout_pad, 1), lambda i, j: (i, 0, 0)),
                pl.BlockSpec((1, cout_pad, 1), lambda i, j: (i, 0, 0)),
            ],
            out_specs=pl.BlockSpec((1, cout_pad, tile_m), lambda i, j: (i, 0, j)),
        ),
        compiler_params=pltpu.CompilerParams(
            dimension_semantics=("parallel", "parallel"),
            vmem_limit_bytes=32 * 1024 * 1024),
    )(y, ysum, ysq)


# -----------------------------------------------------------------------------
# Parameter preparation (hoisted out of the forward path)
# -----------------------------------------------------------------------------
def prepare_conv_params(w, b):
    """w: (Cout, Cin, kd, kh, kw), b: (Cout,) ->
       per-tap bf16 weights (kd*kh*kw, Cout_pad, Cin_pad), f32 bias column."""
    cout, cin, kd, kh, kw = w.shape
    cout_pad = _round_up(cout, 8)
    cin_pad = _round_up(cin, 8)
    w_t = jnp.transpose(w, (2, 3, 4, 0, 1)).reshape(kd * kh * kw, cout, cin)
    w_t = jnp.pad(w_t, ((0, 0), (0, cout_pad - cout), (0, cin_pad - cin)))
    b_col = jnp.pad(b, (0, cout_pad - cout)).astype(jnp.float32).reshape(cout_pad, 1)
    return w_t.astype(jnp.bfloat16), b_col


# -----------------------------------------------------------------------------
# ConvInsBlock forward
# -----------------------------------------------------------------------------
def conv_ins_block_apply(x, w_taps, b_col, *, cout, kernel_size=3, stride=1,
                         padding=1, alpha=0.1, eps=1e-5):
    assert kernel_size == 3 and stride == 1 and padding == 1, (
        "fused kernel is specialized to ConvInsBlock's k=3, s=1, p=1 config")
    n, cin, d, h, w = x.shape
    nt, cout_pad, cin_pad = w_taps.shape
    kd = kh = kw = kernel_size
    assert nt == kd * kh * kw

    dp, hp, wp = d + 2 * padding, h + 2 * padding, w + 2 * padding
    mp = dp * hp * wp                 # flat padded-grid length
    msp = d * h * w                   # number of real output voxels

    s_max = (kd - 1) * hp * wp + (kh - 1) * wp + (kw - 1)
    halo = _round_up(s_max, 128)
    tile_m = _pick_tile_m(mp, halo, cin_pad, cout_pad)
    n_mtiles = _cdiv(mp, tile_m)
    mp_pad = n_mtiles * tile_m
    mx = mp_pad + halo

    # Zero-padded, channel-padded, flattened bf16 input (cast before padding).
    xb = x.astype(jnp.bfloat16)
    xpad = jnp.pad(xb, ((0, 0), (0, cin_pad - cin),
                        (padding, padding), (padding, padding), (padding, padding)))
    x_flat = xpad.reshape(n, cin_pad, mp)
    x_flat = jnp.pad(x_flat, ((0, 0), (0, 0), (0, mx - mp)))

    # Validity mask over the padded flat grid (1.0 = real output voxel).
    vd = (jnp.arange(dp) < d)[:, None, None]
    vh = (jnp.arange(hp) < h)[None, :, None]
    vw = (jnp.arange(wp) < w)[None, None, :]
    mask = (vd & vh & vw).reshape(1, mp).astype(jnp.float32)
    mask = jnp.pad(mask, ((0, 0), (0, mp_pad - mp)))

    # Static flat-index shifts for the 27 taps (dz-major, dx-minor — matches
    # the weight flattening in prepare_conv_params).
    shifts = tuple(dz * hp * wp + dy * wp + dx
                   for dz in range(kd) for dy in range(kh) for dx in range(kw))

    y, ysum, ysq = _conv3d_stats(x_flat, w_taps, b_col, mask,
                                 shifts=shifts, tile_m=tile_m, mp_pad=mp_pad)
    out_pad = _norm_lrelu_apply(y, ysum, ysq, count=msp, eps=eps, alpha=alpha,
                                tile_m=tile_m)
    # Single final extraction of the valid region (padded-grid layout -> dense).
    out = out_pad[:, :cout, :mp].reshape(n, cout, dp, hp, wp)[:, :, :d, :h, :w]
    return out


# -----------------------------------------------------------------------------
# Plain-JAX reference (matches PyTorch Conv3d + InstanceNorm3d + LeakyReLU)
# -----------------------------------------------------------------------------
def reference_forward(x, w, b, *, stride=1, padding=1, alpha=0.1, eps=1e-5):
    y = jax.lax.conv_general_dilated(
        x, w,
        window_strides=(stride, stride, stride),
        padding=[(padding, padding)] * 3,
        dimension_numbers=("NCDHW", "OIDHW", "NCDHW"))
    y = y + b.reshape(1, -1, 1, 1, 1)
    mean = y.mean(axis=(2, 3, 4), keepdims=True)
    var = jnp.mean((y - mean) ** 2, axis=(2, 3, 4), keepdims=True)
    y = (y - mean) * jax.lax.rsqrt(var + eps)
    return jnp.where(y >= 0, y, alpha * y)


if __name__ == "__main__":
    key = jax.random.PRNGKey(0)
    kx, kw_, kb = jax.random.split(key, 3)

    n, cin, cout = 2, 4, 8
    d = h = w = 16
    alpha = 0.1

    x = jax.random.normal(kx, (n, cin, d, h, w), jnp.float32)
    fan_in = cin * 3 ** 3
    weight = jax.random.normal(kw_, (cout, cin, 3, 3, 3), jnp.float32) / jnp.sqrt(float(fan_in))
    bias = 0.1 * jax.random.normal(kb, (cout,), jnp.float32)

    w_taps, b_col = prepare_conv_params(weight, bias)

    fwd = jax.jit(functools.partial(conv_ins_block_apply, cout=cout, alpha=alpha))
    out = jax.block_until_ready(fwd(x, w_taps, b_col))

    assert out.shape == (n, cout, d, h, w)
    assert bool(jnp.isfinite(out).all())

    ref = reference_forward(x, weight, bias, alpha=alpha)
    err = float(jnp.max(jnp.abs(out - ref)))
    assert err < 5e-2, f"max abs err vs reference: {err}"

    print("KERNEL_OK")
</pallas_src>

<mosaic_0001>
module attributes {stable_mosaic.version = 11 : i64} {
  func.func @_conv_kernel(%arg0: i32, %arg1: i32, %arg2: memref<27x8x8xbf16, #tpu.memory_space<vmem>>, %arg3: memref<8x1xf32, #tpu.memory_space<vmem>>, %arg4: memref<1x2048xf32, #tpu.memory_space<vmem>>, %arg5: memref<2x8x6912xbf16, #tpu.memory_space<any>>, %arg6: memref<1x8x2048xbf16, #tpu.memory_space<vmem>>, %arg7: memref<1x8x1xf32, #tpu.memory_space<vmem>>, %arg8: memref<1x8x1xf32, #tpu.memory_space<vmem>>, %arg9: memref<8x2816xbf16, #tpu.memory_space<vmem>>, %arg10: memref<8x2048xf32, #tpu.memory_space<vmem>>, %arg11: memref<1x!tpu.dma_semaphore, #tpu.memory_space<semaphore_mem>>) attributes {dimension_semantics = [#tpu.dimension_semantics<parallel>, #tpu.dimension_semantics<arbitrary>], iteration_bounds = array<i64: 2, 3>, scalar_prefetch = 0 : i64, scratch_operands = 3 : i64, tpu.core_type = #tpu.core_type<tc>, window_params = [{pipeline_mode = #tpu.pipeline_mode<synchronous>, transform_indices = @transform_0, window_bounds = array<i64: 27, 8, 8>}, {pipeline_mode = #tpu.pipeline_mode<synchronous>, transform_indices = @transform_1, window_bounds = array<i64: 8, 1>}, {transform_indices = @transform_2, window_bounds = array<i64: 1, 2048>}, {}, {transform_indices = @transform_4, window_bounds = array<i64: 1, 8, 2048>}, {transform_indices = @transform_5, window_bounds = array<i64: 1, 8, 1>}, {transform_indices = @transform_6, window_bounds = array<i64: 1, 8, 1>}]} {
    %c2048_i32 = arith.constant 2048 : i32
    %0 = arith.muli %arg1, %c2048_i32 : i32
    %1 = tpu.assume_multiple %0, 128 : i32
    %c0_i32 = arith.constant 0 : i32
    %c0_i32_0 = arith.constant 0 : i32
    %2 = tpu.memref_slice %arg5[%arg0, %c0_i32_0, %1] : memref<2x8x6912xbf16, #tpu.memory_space<any>> -> memref<1x8x2816xbf16, #tpu.memory_space<any>>
    %3 = tpu.memref_squeeze %2 : memref<1x8x2816xbf16, #tpu.memory_space<any>> -> memref<8x2816xbf16, #tpu.memory_space<any>>
    %4 = tpu.memref_slice %arg11[%c0_i32] : memref<1x!tpu.dma_semaphore, #tpu.memory_space<semaphore_mem>> -> memref<1x!tpu.dma_semaphore, #tpu.memory_space<semaphore_mem>>
    %5 = tpu.memref_squeeze %4 : memref<1x!tpu.dma_semaphore, #tpu.memory_space<semaphore_mem>> -> memref<!tpu.dma_semaphore, #tpu.memory_space<semaphore_mem>>
    tpu.enqueue_dma source(%3 : memref<8x2816xbf16, #tpu.memory_space<any>>) target(%arg9 : memref<8x2816xbf16, #tpu.memory_space<vmem>>) target_semaphore(%5 : memref<!tpu.dma_semaphore, #tpu.memory_space<semaphore_mem>>)
    %c0_i32_1 = arith.constant 0 : i32
    %c0_i32_2 = arith.constant 0 : i32
    %6 = tpu.memref_slice %arg5[%arg0, %c0_i32_2, %1] : memref<2x8x6912xbf16, #tpu.memory_space<any>> -> memref<1x8x2816xbf16, #tpu.memory_space<any>>
    %7 = tpu.memref_squeeze %6 : memref<1x8x2816xbf16, #tpu.memory_space<any>> -> memref<8x2816xbf16, #tpu.memory_space<any>>
    %8 = tpu.memref_slice %arg11[%c0_i32_1] : memref<1x!tpu.dma_semaphore, #tpu.memory_space<semaphore_mem>> -> memref<1x!tpu.dma_semaphore, #tpu.memory_space<semaphore_mem>>
    %9 = tpu.memref_squeeze %8 : memref<1x!tpu.dma_semaphore, #tpu.memory_space<semaphore_mem>> -> memref<!tpu.dma_semaphore, #tpu.memory_space<semaphore_mem>>
    tpu.wait_dma2 semaphore(%9 : memref<!tpu.dma_semaphore, #tpu.memory_space<semaphore_mem>>) src(%7 : memref<8x2816xbf16, #tpu.memory_space<any>>) dst(%arg9 : memref<8x2816xbf16, #tpu.memory_space<vmem>>)
    %cst = arith.constant 0.000000e+00 : f32
    %10 = vector.broadcast %cst : f32 to vector<8x2048xf32>
    %c0 = arith.constant 0 : index
    %c0_3 = arith.constant 0 : index
    %11 = vector.load %arg10[%c0, %c0_3] : memref<8x2048xf32, #tpu.memory_space<vmem>>, vector<8x2048xf32>
    tpu.vector_store %arg10[%c0, %c0_3], %10 {strides = array<i32>} : memref<8x2048xf32, #tpu.memory_space<vmem>>, vector<8x2048xf32>,
    %c0_4 = arith.constant 0 : index
    %c0_5 = arith.constant 0 : index
    %12 = vector.load %arg10[%c0_4, %c0_5] : memref<8x2048xf32, #tpu.memory_space<vmem>>, vector<8x2048xf32>
    %c0_6 = arith.constant 0 : index
    %c0_7 = arith.constant 0 : index
    %c0_8 = arith.constant 0 : index
    %13 = vector.load %arg2[%c0_6, %c0_7, %c0_8] : memref<27x8x8xbf16, #tpu.memory_space<vmem>>, vector<1x8x8xbf16>
    %14 = vector.shape_cast %13 : vector<1x8x8xbf16> to vector<8x8xbf16>
    %c0_9 = arith.constant 0 : index
    %c0_10 = arith.constant 0 : index
    %15 = vector.load %arg9[%c0_9, %c0_10] : memref<8x2816xbf16, #tpu.memory_space<vmem>>, vector<8x2048xbf16>
    %cst_11 = arith.constant dense<0.000000e+00> : vector<8x2048xf32>
    %16 = tpu.matmul %14, %15, %cst_11 {dimension_numbers = #tpu.dot_dimension_numbers<[1], [0], [0], [1], [0, 0, 1, 1], [], []>} : vector<8x8xbf16>, vector<8x2048xbf16>, vector<8x2048xf32> -> vector<8x2048xf32>
    %17 = arith.addf %12, %16 : vector<8x2048xf32>
    %c0_12 = arith.constant 0 : index
    %c0_13 = arith.constant 0 : index
    %18 = vector.load %arg10[%c0_12, %c0_13] : memref<8x2048xf32, #tpu.memory_space<vmem>>, vector<8x2048xf32>
    tpu.vector_store %arg10[%c0_12, %c0_13], %17 {strides = array<i32>} : memref<8x2048xf32, #tpu.memory_space<vmem>>, vector<8x2048xf32>,
    %c0_14 = arith.constant 0 : index
    %c0_15 = arith.constant 0 : index
    %19 = vector.load %arg10[%c0_14, %c0_15] : memref<8x2048xf32, #tpu.memory_space<vmem>>, vector<8x2048xf32>
    %c1 = arith.constant 1 : index
    %c0_16 = arith.constant 0 : index
    %c0_17 = arith.constant 0 : index
    %20 = vector.load %arg2[%c1, %c0_16, %c0_17] : memref<27x8x8xbf16, #tpu.memory_space<vmem>>, vector<1x8x8xbf16>
    %21 = vector.shape_cast %20 : vector<1x8x8xbf16> to vector<8x8xbf16>
    %c0_18 = arith.constant 0 : index
    %c1_19 = arith.constant 1 : index
    %22 = vector.load %arg9[%c0_18, %c1_19] : memref<8x2816xbf16, #tpu.memory_space<vmem>>, vector<8x2048xbf16>
    %cst_20 = arith.constant dense<0.000000e+00> : vector<8x2048xf32>
    %23 = tpu.matmul %21, %22, %cst_20 {dimension_numbers = #tpu.dot_dimension_numbers<[1], [0], [0], [1], [0, 0, 1, 1], [], []>} : vector<8x8xbf16>, vector<8x2048xbf16>, vector<8x2048xf32> -> vector<8x2048xf32>
    %24 = arith.addf %19, %23 : vector<8x2048xf32>
    %c0_21 = arith.constant 0 : index
    %c0_22 = arith.constant 0 : index
    %25 = vector.load %arg10[%c0_21, %c0_22] : memref<8x2048xf32, #tpu.memory_space<vmem>>, vector<8x2048xf32>
    tpu.vector_store %arg10[%c0_21, %c0_22], %24 {strides = array<i32>} : memref<8x2048xf32, #tpu.memory_space<vmem>>, vector<8x2048xf32>,
    %c0_23 = arith.constant 0 : index
    %c0_24 = arith.constant 0 : index
    %26 = vector.load %arg10[%c0_23, %c0_24] : memref<8x2048xf32, #tpu.memory_space<vmem>>, vector<8x2048xf32>
    %c2 = arith.constant 2 : index
    %c0_25 = arith.constant 0 : index
    %c0_26 = arith.constant 0 : index
    %27 = vector.load %arg2[%c2, %c0_25, %c0_26] : memref<27x8x8xbf16, #tpu.memory_space<vmem>>, vector<1x8x8xbf16>
    %28 = vector.shape_cast %27 : vector<1x8x8xbf16> to vector<8x8xbf16>
    %c0_27 = arith.constant 0 : index
    %c2_28 = arith.constant 2 : index
    %29 = vector.load %arg9[%c0_27, %c2_28] : memref<8x2816xbf16, #tpu.memory_space<vmem>>, vector<8x2048xbf16>
    %cst_29 = arith.constant dense<0.000000e+00> : vector<8x2048xf32>
    %30 = tpu.matmul %28, %29, %cst_29 {dimension_numbers = #tpu.dot_dimension_numbers<[1], [0], [0], [1], [0, 0, 1, 1], [], []>} : vector<8x8xbf16>, vector<8x2048xbf16>, vector<8x2048xf32> -> vector<8x2048xf32>
    %31 = arith.addf %26, %30 : vector<8x2048xf32>
    %c0_30 = arith.constant 0 : index
    %c0_31 = arith.constant 0 : index
    %32 = vector.load %arg10[%c0_30, %c0_31] : memref<8x2048xf32, #tpu.memory_space<vmem>>, vector<8x2048xf32>
    tpu.vector_store %arg10[%c0_30, %c0_31], %31 {strides = array<i32>} : memref<8x2048xf32, #tpu.memory_space<vmem>>, vector<8x2048xf32>,
    %c0_32 = arith.constant 0 : index
    %c0_33 = arith.constant 0 : index
    %33 = vector.load %arg10[%c0_32, %c0_33] : memref<8x2048xf32, #tpu.memory_space<vmem>>, vector<8x2048xf32>
    %c3 = arith.constant 3 : index
    %c0_34 = arith.constant 0 : index
    %c0_35 = arith.constant 0 : index
    %34 = vector.load %arg2[%c3, %c0_34, %c0_35] : memref<27x8x8xbf16, #tpu.memory_space<vmem>>, vector<1x8x8xbf16>
    %35 = vector.shape_cast %34 : vector<1x8x8xbf16> to vector<8x8xbf16>
    %c0_36 = arith.constant 0 : index
    %c18 = arith.constant 18 : index
    %36 = vector.load %arg9[%c0_36, %c18] : memref<8x2816xbf16, #tpu.memory_space<vmem>>, vector<8x2048xbf16>
    %cst_37 = arith.constant dense<0.000000e+00> : vector<8x2048xf32>
    %37 = tpu.matmul %35, %36, %cst_37 {dimension_numbers = #tpu.dot_dimension_numbers<[1], [0], [0], [1], [0, 0, 1, 1], [], []>} : vector<8x8xbf16>, vector<8x2048xbf16>, vector<8x2048xf32> -> vector<8x2048xf32>
    %38 = arith.addf %33, %37 : vector<8x2048xf32>
    %c0_38 = arith.constant 0 : index
    %c0_39 = arith.constant 0 : index
    %39 = vector.load %arg10[%c0_38, %c0_39] : memref<8x2048xf32, #tpu.memory_space<vmem>>, vector<8x2048xf32>
    tpu.vector_store %arg10[%c0_38, %c0_39], %38 {strides = array<i32>} : memref<8x2048xf32, #tpu.memory_space<vmem>>, vector<8x2048xf32>,
    %c0_40 = arith.constant 0 : index
    %c0_41 = arith.constant 0 : index
    %40 = vector.load %arg10[%c0_40, %c0_41] : memref<8x2048xf32, #tpu.memory_space<vmem>>, vector<8x2048xf32>
    %c4 = arith.constant 4 : index
    %c0_42 = arith.constant 0 : index
    %c0_43 = arith.constant 0 : index
    %41 = vector.load %arg2[%c4, %c0_42, %c0_43] : memref<27x8x8xbf16, #tpu.memory_space<vmem>>, vector<1x8x8xbf16>
    %42 = vector.shape_cast %41 : vector<1x8x8xbf16> to vector<8x8xbf16>
    %c0_44 = arith.constant 0 : index
    %c19 = arith.constant 19 : index
    %43 = vector.load %arg9[%c0_44, %c19] : memref<8x2816xbf16, #tpu.memory_space<vmem>>, vector<8x2048xbf16>
    %cst_45 = arith.constant dense<0.000000e+00> : vector<8x2048xf32>
    %44 = tpu.matmul %42, %43, %cst_45 {dimension_numbers = #tpu.dot_dimension_numbers<[1], [0], [0], [1], [0, 0, 1, 1], [], []>} : vector<8x8xbf16>, vector<8x2048xbf16>, vector<8x2048xf32> -> vector<8x2048xf32>
    %45 = arith.addf %40, %44 : vector<8x2048xf32>
    %c0_46 = arith.constant 0 : index
    %c0_47 = arith.constant 0 : index
    %46 = vector.load %arg10[%c0_46, %c0_47] : memref<8x2048xf32, #tpu.memory_space<vmem>>, vector<8x2048xf32>
    tpu.vector_store %arg10[%c0_46, %c0_47], %45 {strides = array<i32>} : memref<8x2048xf32, #tpu.memory_space<vmem>>, vector<8x2048xf32>,
    %c0_48 = arith.constant 0 : index
    %c0_49 = arith.constant 0 : index
    %47 = vector.load %arg10[%c0_48, %c0_49] : memref<8x2048xf32, #tpu.memory_space<vmem>>, vector<8x2048xf32>
    %c5 = arith.constant 5 : index
    %c0_50 = arith.constant 0 : index
    %c0_51 = arith.constant 0 : index
    %48 = vector.load %arg2[%c5, %c0_50, %c0_51] : memref<27x8x8xbf16, #tpu.memory_space<vmem>>, vector<1x8x8xbf16>
    %49 = vector.shape_cast %48 : vector<1x8x8xbf16> to vector<8x8xbf16>
    %c0_52 = arith.constant 0 : index
    %c20 = arith.constant 20 : index
    %50 = vector.load %arg9[%c0_52, %c20] : memref<8x2816xbf16, #tpu.memory_space<vmem>>, vector<8x2048xbf16>
    %cst_53 = arith.constant dense<0.000000e+00> : vector<8x2048xf32>
    %51 = tpu.matmul %49, %50, %cst_53 {dimension_numbers = #tpu.dot_dimension_numbers<[1], [0], [0], [1], [0, 0, 1, 1], [], []>} : vector<8x8xbf16>, vector<8x2048xbf16>, vector<8x2048xf32> -> vector<8x2048xf32>
    %52 = arith.addf %47, %51 : vector<8x2048xf32>
    %c0_54 = arith.constant 0 : index
    %c0_55 = arith.constant 0 : index
    %53 = vector.load %arg10[%c0_54, %c0_55] : memref<8x2048xf32, #tpu.memory_space<vmem>>, vector<8x2048xf32>
    tpu.vector_store %arg10[%c0_54, %c0_55], %52 {strides = array<i32>} : memref<8x2048xf32, #tpu.memory_space<vmem>>, vector<8x2048xf32>,
    %c0_56 = arith.constant 0 : index
    %c0_57 = arith.constant 0 : index
    %54 = vector.load %arg10[%c0_56, %c0_57] : memref<8x2048xf32, #tpu.memory_space<vmem>>, vector<8x2048xf32>
    %c6 = arith.constant 6 : index
    %c0_58 = arith.constant 0 : index
    %c0_59 = arith.constant 0 : index
    %55 = vector.load %arg2[%c6, %c0_58, %c0_59] : memref<27x8x8xbf16, #tpu.memory_space<vmem>>, vector<1x8x8xbf16>
    %56 = vector.shape_cast %55 : vector<1x8x8xbf16> to vector<8x8xbf16>
    %c0_60 = arith.constant 0 : index
    %c36 = arith.constant 36 : index
    %57 = vector.load %arg9[%c0_60, %c36] : memref<8x2816xbf16, #tpu.memory_space<vmem>>, vector<8x2048xbf16>
    %cst_61 = arith.constant dense<0.000000e+00> : vector<8x2048xf32>
    %58 = tpu.matmul %56, %57, %cst_61 {dimension_numbers = #tpu.dot_dimension_numbers<[1], [0], [0], [1], [0, 0, 1, 1], [], []>} : vector<8x8xbf16>, vector<8x2048xbf16>, vector<8x2048xf32> -> vector<8x2048xf32>
    %59 = arith.addf %54, %58 : vector<8x2048xf32>
    %c0_62 = arith.constant 0 : index
    %c0_63 = arith.constant 0 : index
    %60 = vector.load %arg10[%c0_62, %c0_63] : memref<8x2048xf32, #tpu.memory_space<vmem>>, vector<8x2048xf32>
    tpu.vector_store %arg10[%c0_62, %c0_63], %59 {strides = array<i32>} : memref<8x2048xf32, #tpu.memory_space<vmem>>, vector<8x2048xf32>,
    %c0_64 = arith.constant 0 : index
    %c0_65 = arith.constant 0 : index
    %61 = vector.load %arg10[%c0_64, %c0_65] : memref<8x2048xf32, #tpu.memory_space<vmem>>, vector<8x2048xf32>
    %c7 = arith.constant 7 : index
    %c0_66 = arith.constant 0 : index
    %c0_67 = arith.constant 0 : index
    %62 = vector.load %arg2[%c7, %c0_66, %c0_67] : memref<27x8x8xbf16, #tpu.memory_space<vmem>>, vector<1x8x8xbf16>
    %63 = vector.shape_cast %62 : vector<1x8x8xbf16> to vector<8x8xbf16>
    %c0_68 = arith.constant 0 : index
    %c37 = arith.constant 37 : index
    %64 = vector.load %arg9[%c0_68, %c37] : memref<8x2816xbf16, #tpu.memory_space<vmem>>, vector<8x2048xbf16>
    %cst_69 = arith.constant dense<0.000000e+00> : vector<8x2048xf32>
    %65 = tpu.matmul %63, %64, %cst_69 {dimension_numbers = #tpu.dot_dimension_numbers<[1], [0], [0], [1], [0, 0, 1, 1], [], []>} : vector<8x8xbf16>, vector<8x2048xbf16>, vector<8x2048xf32> -> vector<8x2048xf32>
    %66 = arith.addf %61, %65 : vector<8x2048xf32>
    %c0_70 = arith.constant 0 : index
    %c0_71 = arith.constant 0 : index
    %67 = vector.load %arg10[%c0_70, %c0_71] : memref<8x2048xf32, #tpu.memory_space<vmem>>, vector<8x2048xf32>
    tpu.vector_store %arg10[%c0_70, %c0_71], %66 {strides = array<i32>} : memref<8x2048xf32, #tpu.memory_space<vmem>>, vector<8x2048xf32>,
    %c0_72 = arith.constant 0 : index
    %c0_73 = arith.constant 0 : index
    %68 = vector.load %arg10[%c0_72, %c0_73] : memref<8x2048xf32, #tpu.memory_space<vmem>>, vector<8x2048xf32>
    %c8 = arith.constant 8 : index
    %c0_74 = arith.constant 0 : index
    %c0_75 = arith.constant 0 : index
    %69 = vector.load %arg2[%c8, %c0_74, %c0_75] : memref<27x8x8xbf16, #tpu.memory_space<vmem>>, vector<1x8x8xbf16>
    %70 = vector.shape_cast %69 : vector<1x8x8xbf16> to vector<8x8xbf16>
    %c0_76 = arith.constant 0 : index
    %c38 = arith.constant 38 : index
    %71 = vector.load %arg9[%c0_76, %c38] : memref<8x2816xbf16, #tpu.memory_space<vmem>>, vector<8x2048xbf16>
    %cst_77 = arith.constant dense<0.000000e+00> : vector<8x2048xf32>
    %72 = tpu.matmul %70, %71, %cst_77 {dimension_numbers = #tpu.dot_dimension_numbers<[1], [0], [0], [1], [0, 0, 1, 1], [], []>} : vector<8x8xbf16>, vector<8x2048xbf16>, vector<8x2048xf32> -> vector<8x2048xf32>
    %73 = arith.addf %68, %72 : vector<8x2048xf32>
    %c0_78 = arith.constant 0 : index
    %c0_79 = arith.constant 0 : index
    %74 = vector.load %arg10[%c0_78, %c0_79] : memref<8x2048xf32, #tpu.memory_space<vmem>>, vector<8x2048xf32>
    tpu.vector_store %arg10[%c0_78, %c0_79], %73 {strides = array<i32>} : memref<8x2048xf32, #tpu.memory_space<vmem>>, vector<8x2048xf32>,
    %c0_80 = arith.constant 0 : index
    %c0_81 = arith.constant 0 : index
    %75 = vector.load %arg10[%c0_80, %c0_81] : memref<8x2048xf32, #tpu.memory_space<vmem>>, vector<8x2048xf32>
    %c9 = arith.constant 9 : index
    %c0_82 = arith.constant 0 : index
    %c0_83 = arith.constant 0 : index
    %76 = vector.load %arg2[%c9, %c0_82, %c0_83] : memref<27x8x8xbf16, #tpu.memory_space<vmem>>, vector<1x8x8xbf16>
    %77 = vector.shape_cast %76 : vector<1x8x8xbf16> to vector<8x8xbf16>
    %c0_84 = arith.constant 0 : index
    %c324 = arith.constant 324 : index
    %78 = vector.load %arg9[%c0_84, %c324] : memref<8x2816xbf16, #tpu.memory_space<vmem>>, vector<8x2048xbf16>
    %cst_85 = arith.constant dense<0.000000e+00> : vector<8x2048xf32>
    %79 = tpu.matmul %77, %78, %cst_85 {dimension_numbers = #tpu.dot_dimension_numbers<[1], [0], [0], [1], [0, 0, 1, 1], [], []>} : vector<8x8xbf16>, vector<8x2048xbf16>, vector<8x2048xf32> -> vector<8x2048xf32>
    %80 = arith.addf %75, %79 : vector<8x2048xf32>
    %c0_86 = arith.constant 0 : index
    %c0_87 = arith.constant 0 : index
    %81 = vector.load %arg10[%c0_86, %c0_87] : memref<8x2048xf32, #tpu.memory_space<vmem>>, vector<8x2048xf32>
    tpu.vector_store %arg10[%c0_86, %c0_87], %80 {strides = array<i32>} : memref<8x2048xf32, #tpu.memory_space<vmem>>, vector<8x2048xf32>,
    %c0_88 = arith.constant 0 : index
    %c0_89 = arith.constant 0 : index
    %82 = vector.load %arg10[%c0_88, %c0_89] : memref<8x2048xf32, #tpu.memory_space<vmem>>, vector<8x2048xf32>
    %c10 = arith.constant 10 : index
    %c0_90 = arith.constant 0 : index
    %c0_91 = arith.constant 0 : index
    %83 = vector.load %arg2[%c10, %c0_90, %c0_91] : memref<27x8x8xbf16, #tpu.memory_space<vmem>>, vector<1x8x8xbf16>
    %84 = vector.shape_cast %83 : vector<1x8x8xbf16> to vector<8x8xbf16>
    %c0_92 = arith.constant 0 : index
    %c325 = arith.constant 325 : index
    %85 = vector.load %arg9[%c0_92, %c325] : memref<8x2816xbf16, #tpu.memory_space<vmem>>, vector<8x2048xbf16>
    %cst_93 = arith.constant dense<0.000000e+00> : vector<8x2048xf32>
    %86 = tpu.matmul %84, %85, %cst_93 {dimension_numbers = #tpu.dot_dimension_numbers<[1], [0], [0], [1], [0, 0, 1, 1], [], []>} : vector<8x8xbf16>, vector<8x2048xbf16>, vector<8x2048xf32> -> vector<8x2048xf32>
    %87 = arith.addf %82, %86 : vector<8x2048xf32>
    %c0_94 = arith.constant 0 : index
    %c0_95 = arith.constant 0 : index
    %88 = vector.load %arg10[%c0_94, %c0_95] : memref<8x2048xf32, #tpu.memory_space<vmem>>, vector<8x2048xf32>
    tpu.vector_store %arg10[%c0_94, %c0_95], %87 {strides = array<i32>} : memref<8x2048xf32, #tpu.memory_space<vmem>>, vector<8x2048xf32>,
    %c0_96 = arith.constant 0 : index
    %c0_97 = arith.constant 0 : index
    %89 = vector.load %arg10[%c0_96, %c0_97] : memref<8x2048xf32, #tpu.memory_space<vmem>>, vector<8x2048xf32>
    %c11 = arith.constant 11 : index
    %c0_98 = arith.constant 0 : index
    %c0_99 = arith.constant 0 : index
    %90 = vector.load %arg2[%c11, %c0_98, %c0_99] : memref<27x8x8xbf16, #tpu.memory_space<vmem>>, vector<1x8x8xbf16>
    %91 = vector.shape_cast %90 : vector<1x8x8xbf16> to vector<8x8xbf16>
    %c0_100 = arith.constant 0 : index
    %c326 = arith.constant 326 : index
    %92 = vector.load %arg9[%c0_100, %c326] : memref<8x2816xbf16, #tpu.memory_space<vmem>>, vector<8x2048xbf16>
    %cst_101 = arith.constant dense<0.000000e+00> : vector<8x2048xf32>
    %93 = tpu.matmul %91, %92, %cst_101 {dimension_numbers = #tpu.dot_dimension_numbers<[1], [0], [0], [1], [0, 0, 1, 1], [], []>} : vector<8x8xbf16>, vector<8x2048xbf16>, vector<8x2048xf32> -> vector<8x2048xf32>
    %94 = arith.addf %89, %93 : vector<8x2048xf32>
    %c0_102 = arith.constant 0 : index
    %c0_103 = arith.constant 0 : index
    %95 = vector.load %arg10[%c0_102, %c0_103] : memref<8x2048xf32, #tpu.memory_space<vmem>>, vector<8x2048xf32>
    tpu.vector_store %arg10[%c0_102, %c0_103], %94 {strides = array<i32>} : memref<8x2048xf32, #tpu.memory_space<vmem>>, vector<8x2048xf32>,
    %c0_104 = arith.constant 0 : index
    %c0_105 = arith.constant 0 : index
    %96 = vector.load %arg10[%c0_104, %c0_105] : memref<8x2048xf32, #tpu.memory_space<vmem>>, vector<8x2048xf32>
    %c12 = arith.constant 12 : index
    %c0_106 = arith.constant 0 : index
    %c0_107 = arith.constant 0 : index
    %97 = vector.load %arg2[%c12, %c0_106, %c0_107] : memref<27x8x8xbf16, #tpu.memory_space<vmem>>, vector<1x8x8xbf16>
    %98 = vector.shape_cast %97 : vector<1x8x8xbf16> to vector<8x8xbf16>
    %c0_108 = arith.constant 0 : index
    %c342 = arith.constant 342 : index
    %99 = vector.load %arg9[%c0_108, %c342] : memref<8x2816xbf16, #tpu.memory_space<vmem>>, vector<8x2048xbf16>
    %cst_109 = arith.constant dense<0.000000e+00> : vector<8x2048xf32>
    %100 = tpu.matmul %98, %99, %cst_109 {dimension_numbers = #tpu.dot_dimension_numbers<[1], [0], [0], [1], [0, 0, 1, 1], [], []>} : vector<8x8xbf16>, vector<8x2048xbf16>, vector<8x2048xf32> -> vector<8x2048xf32>
    %101 = arith.addf %96, %100 : vector<8x2048xf32>
    %c0_110 = arith.constant 0 : index
    %c0_111 = arith.constant 0 : index
    %102 = vector.load %arg10[%c0_110, %c0_111] : memref<8x2048xf32, #tpu.memory_space<vmem>>, vector<8x2048xf32>
    tpu.vector_store %arg10[%c0_110, %c0_111], %101 {strides = array<i32>} : memref<8x2048xf32, #tpu.memory_space<vmem>>, vector<8x2048xf32>,
    %c0_112 = arith.constant 0 : index
    %c0_113 = arith.constant 0 : index
    %103 = vector.load %arg10[%c0_112, %c0_113] : memref<8x2048xf32, #tpu.memory_space<vmem>>, vector<8x2048xf32>
    %c13 = arith.constant 13 : index
    %c0_114 = arith.constant 0 : index
    %c0_115 = arith.constant 0 : index
    %104 = vector.load %arg2[%c13, %c0_114, %c0_115] : memref<27x8x8xbf16, #tpu.memory_space<vmem>>, vector<1x8x8xbf16>
    %105 = vector.shape_cast %104 : vector<1x8x8xbf16> to vector<8x8xbf16>
    %c0_116 = arith.constant 0 : index
    %c343 = arith.constant 343 : index
    %106 = vector.load %arg9[%c0_116, %c343] : memref<8x2816xbf16, #tpu.memory_space<vmem>>, vector<8x2048xbf16>
    %cst_117 = arith.constant dense<0.000000e+00> : vector<8x2048xf32>
    %107 = tpu.matmul %105, %106, %cst_117 {dimension_numbers = #tpu.dot_dimension_numbers<[1], [0], [0], [1], [0, 0, 1, 1], [], []>} : vector<8x8xbf16>, vector<8x2048xbf16>, vector<8x2048xf32> -> vector<8x2048xf32>
    %108 = arith.addf %103, %107 : vector<8x2048xf32>
    %c0_118 = arith.constant 0 : index
    %c0_119 = arith.constant 0 : index
    %109 = vector.load %arg10[%c0_118, %c0_119] : memref<8x2048xf32, #tpu.memory_space<vmem>>, vector<8x2048xf32>
    tpu.vector_store %arg10[%c0_118, %c0_119], %108 {strides = array<i32>} : memref<8x2048xf32, #tpu.memory_space<vmem>>, vector<8x2048xf32>,
    %c0_120 = arith.constant 0 : index
    %c0_121 = arith.constant 0 : index
    %110 = vector.load %arg10[%c0_120, %c0_121] : memref<8x2048xf32, #tpu.memory_space<vmem>>, vector<8x2048xf32>
    %c14 = arith.constant 14 : index
    %c0_122 = arith.constant 0 : index
    %c0_123 = arith.constant 0 : index
    %111 = vector.load %arg2[%c14, %c0_122, %c0_123] : memref<27x8x8xbf16, #tpu.memory_space<vmem>>, vector<1x8x8xbf16>
    %112 = vector.shape_cast %111 : vector<1x8x8xbf16> to vector<8x8xbf16>
    %c0_124 = arith.constant 0 : index
    %c344 = arith.constant 344 : index
    %113 = vector.load %arg9[%c0_124, %c344] : memref<8x2816xbf16, #tpu.memory_space<vmem>>, vector<8x2048xbf16>
    %cst_125 = arith.constant dense<0.000000e+00> : vector<8x2048xf32>
    %114 = tpu.matmul %112, %113, %cst_125 {dimension_numbers = #tpu.dot_dimension_numbers<[1], [0], [0], [1], [0, 0, 1, 1], [], []>} : vector<8x8xbf16>, vector<8x2048xbf16>, vector<8x2048xf32> -> vector<8x2048xf32>
    %115 = arith.addf %110, %114 : vector<8x2048xf32>
    %c0_126 = arith.constant 0 : index
    %c0_127 = arith.constant 0 : index
    %116 = vector.load %arg10[%c0_126, %c0_127] : memref<8x2048xf32, #tpu.memory_space<vmem>>, vector<8x2048xf32>
    tpu.vector_store %arg10[%c0_126, %c0_127], %115 {strides = array<i32>} : memref<8x2048xf32, #tpu.memory_space<vmem>>, vector<8x2048xf32>,
    %c0_128 = arith.constant 0 : index
    %c0_129 = arith.constant 0 : index
    %117 = vector.load %arg10[%c0_128, %c0_129] : memref<8x2048xf32, #tpu.memory_space<vmem>>, vector<8x2048xf32>
    %c15 = arith.constant 15 : index
    %c0_130 = arith.constant 0 : index
    %c0_131 = arith.constant 0 : index
    %118 = vector.load %arg2[%c15, %c0_130, %c0_131] : memref<27x8x8xbf16, #tpu.memory_space<vmem>>, vector<1x8x8xbf16>
    %119 = vector.shape_cast %118 : vector<1x8x8xbf16> to vector<8x8xbf16>
    %c0_132 = arith.constant 0 : index
    %c360 = arith.constant 360 : index
    %120 = vector.load %arg9[%c0_132, %c360] : memref<8x2816xbf16, #tpu.memory_space<vmem>>, vector<8x2048xbf16>
    %cst_133 = arith.constant dense<0.000000e+00> : vector<8x2048xf32>
    %121 = tpu.matmul %119, %120, %cst_133 {dimension_numbers = #tpu.dot_dimension_numbers<[1], [0], [0], [1], [0, 0, 1, 1], [], []>} : vector<8x8xbf16>, vector<8x2048xbf16>, vector<8x2048xf32> -> vector<8x2048xf32>
    %122 = arith.addf %117, %121 : vector<8x2048xf32>
    %c0_134 = arith.constant 0 : index
    %c0_135 = arith.constant 0 : index
    %123 = vector.load %arg10[%c0_134, %c0_135] : memref<8x2048xf32, #tpu.memory_space<vmem>>, vector<8x2048xf32>
    tpu.vector_store %arg10[%c0_134, %c0_135], %122 {strides = array<i32>} : memref<8x2048xf32, #tpu.memory_space<vmem>>, vector<8x2048xf32>,
    %c0_136 = arith.constant 0 : index
    %c0_137 = arith.constant 0 : index
    %124 = vector.load %arg10[%c0_136, %c0_137] : memref<8x2048xf32, #tpu.memory_space<vmem>>, vector<8x2048xf32>
    %c16 = arith.constant 16 : index
    %c0_138 = arith.constant 0 : index
    %c0_139 = arith.constant 0 : index
    %125 = vector.load %arg2[%c16, %c0_138, %c0_139] : memref<27x8x8xbf16, #tpu.memory_space<vmem>>, vector<1x8x8xbf16>
    %126 = vector.shape_cast %125 : vector<1x8x8xbf16> to vector<8x8xbf16>
    %c0_140 = arith.constant 0 : index
    %c361 = arith.constant 361 : index
    %127 = vector.load %arg9[%c0_140, %c361] : memref<8x2816xbf16, #tpu.memory_space<vmem>>, vector<8x2048xbf16>
    %cst_141 = arith.constant dense<0.000000e+00> : vector<8x2048xf32>
    %128 = tpu.matmul %126, %127, %cst_141 {dimension_numbers = #tpu.dot_dimension_numbers<[1], [0], [0], [1], [0, 0, 1, 1], [], []>} : vector<8x8xbf16>, vector<8x2048xbf16>, vector<8x2048xf32> -> vector<8x2048xf32>
    %129 = arith.addf %124, %128 : vector<8x2048xf32>
    %c0_142 = arith.constant 0 : index
    %c0_143 = arith.constant 0 : index
    %130 = vector.load %arg10[%c0_142, %c0_143] : memref<8x2048xf32, #tpu.memory_space<vmem>>, vector<8x2048xf32>
    tpu.vector_store %arg10[%c0_142, %c0_143], %129 {strides = array<i32>} : memref<8x2048xf32, #tpu.memory_space<vmem>>, vector<8x2048xf32>,
    %c0_144 = arith.constant 0 : index
    %c0_145 = arith.constant 0 : index
    %131 = vector.load %arg10[%c0_144, %c0_145] : memref<8x2048xf32, #tpu.memory_space<vmem>>, vector<8x2048xf32>
    %c17 = arith.constant 17 : index
    %c0_146 = arith.constant 0 : index
    %c0_147 = arith.constant 0 : index
    %132 = vector.load %arg2[%c17, %c0_146, %c0_147] : memref<27x8x8xbf16, #tpu.memory_space<vmem>>, vector<1x8x8xbf16>
    %133 = vector.shape_cast %132 : vector<1x8x8xbf16> to vector<8x8xbf16>
    %c0_148 = arith.constant 0 : index
    %c362 = arith.constant 362 : index
    %134 = vector.load %arg9[%c0_148, %c362] : memref<8x2816xbf16, #tpu.memory_space<vmem>>, vector<8x2048xbf16>
    %cst_149 = arith.constant dense<0.000000e+00> : vector<8x2048xf32>
    %135 = tpu.matmul %133, %134, %cst_149 {dimension_numbers = #tpu.dot_dimension_numbers<[1], [0], [0], [1], [0, 0, 1, 1], [], []>} : vector<8x8xbf16>, vector<8x2048xbf16>, vector<8x2048xf32> -> vector<8x2048xf32>
    %136 = arith.addf %131, %135 : vector<8x2048xf32>
    %c0_150 = arith.constant 0 : index
    %c0_151 = arith.constant 0 : index
    %137 = vector.load %arg10[%c0_150, %c0_151] : memref<8x2048xf32, #tpu.memory_space<vmem>>, vector<8x2048xf32>
    tpu.vector_store %arg10[%c0_150, %c0_151], %136 {strides = array<i32>} : memref<8x2048xf32, #tpu.memory_space<vmem>>, vector<8x2048xf32>,
    %c0_152 = arith.constant 0 : index
    %c0_153 = arith.constant 0 : index
    %138 = vector.load %arg10[%c0_152, %c0_153] : memref<8x2048xf32, #tpu.memory_space<vmem>>, vector<8x2048xf32>
    %c18_154 = arith.constant 18 : index
    %c0_155 = arith.constant 0 : index
    %c0_156 = arith.constant 0 : index
    %139 = vector.load %arg2[%c18_154, %c0_155, %c0_156] : memref<27x8x8xbf16, #tpu.memory_space<vmem>>, vector<1x8x8xbf16>
    %140 = vector.shape_cast %139 : vector<1x8x8xbf16> to vector<8x8xbf16>
    %c0_157 = arith.constant 0 : index
    %c648 = arith.constant 648 : index
    %141 = vector.load %arg9[%c0_157, %c648] : memref<8x2816xbf16, #tpu.memory_space<vmem>>, vector<8x2048xbf16>
    %cst_158 = arith.constant dense<0.000000e+00> : vector<8x2048xf32>
    %142 = tpu.matmul %140, %141, %cst_158 {dimension_numbers = #tpu.dot_dimension_numbers<[1], [0], [0], [1], [0, 0, 1, 1], [], []>} : vector<8x8xbf16>, vector<8x2048xbf16>, vector<8x2048xf32> -> vector<8x2048xf32>
    %143 = arith.addf %138, %142 : vector<8x2048xf32>
    %c0_159 = arith.constant 0 : index
    %c0_160 = arith.constant 0 : index
    %144 = vector.load %arg10[%c0_159, %c0_160] : memref<8x2048xf32, #tpu.memory_space<vmem>>, vector<8x2048xf32>
    tpu.vector_store %arg10[%c0_159, %c0_160], %143 {strides = array<i32>} : memref<8x2048xf32, #tpu.memory_space<vmem>>, vector<8x2048xf32>,
    %c0_161 = arith.constant 0 : index
    %c0_162 = arith.constant 0 : index
    %145 = vector.load %arg10[%c0_161, %c0_162] : memref<8x2048xf32, #tpu.memory_space<vmem>>, vector<8x2048xf32>
    %c19_163 = arith.constant 19 : index
    %c0_164 = arith.constant 0 : index
    %c0_165 = arith.constant 0 : index
    %146 = vector.load %arg2[%c19_163, %c0_164, %c0_165] : memref<27x8x8xbf16, #tpu.memory_space<vmem>>, vector<1x8x8xbf16>
    %147 = vector.shape_cast %146 : vector<1x8x8xbf16> to vector<8x8xbf16>
    %c0_166 = arith.constant 0 : index
    %c649 = arith.constant 649 : index
    %148 = vector.load %arg9[%c0_166, %c649] : memref<8x2816xbf16, #tpu.memory_space<vmem>>, vector<8x2048xbf16>
    %cst_167 = arith.constant dense<0.000000e+00> : vector<8x2048xf32>
    %149 = tpu.matmul %147, %148, %cst_167 {dimension_numbers = #tpu.dot_dimension_numbers<[1], [0], [0], [1], [0, 0, 1, 1], [], []>} : vector<8x8xbf16>, vector<8x2048xbf16>, vector<8x2048xf32> -> vector<8x2048xf32>
    %150 = arith.addf %145, %149 : vector<8x2048xf32>
    %c0_168 = arith.constant 0 : index
    %c0_169 = arith.constant 0 : index
    %151 = vector.load %arg10[%c0_168, %c0_169] : memref<8x2048xf32, #tpu.memory_space<vmem>>, vector<8x2048xf32>
    tpu.vector_store %arg10[%c0_168, %c0_169], %150 {strides = array<i32>} : memref<8x2048xf32, #tpu.memory_space<vmem>>, vector<8x2048xf32>,
    %c0_170 = arith.constant 0 : index
    %c0_171 = arith.constant 0 : index
    %152 = vector.load %arg10[%c0_170, %c0_171] : memref<8x2048xf32, #tpu.memory_space<vmem>>, vector<8x2048xf32>
    %c20_172 = arith.constant 20 : index
    %c0_173 = arith.constant 0 : index
    %c0_174 = arith.constant 0 : index
    %153 = vector.load %arg2[%c20_172, %c0_173, %c0_174] : memref<27x8x8xbf16, #tpu.memory_space<vmem>>, vector<1x8x8xbf16>
    %154 = vector.shape_cast %153 : vector<1x8x8xbf16> to vector<8x8xbf16>
    %c0_175 = arith.constant 0 : index
    %c650 = arith.constant 650 : index
    %155 = vector.load %arg9[%c0_175, %c650] : memref<8x2816xbf16, #tpu.memory_space<vmem>>, vector<8x2048xbf16>
    %cst_176 = arith.constant dense<0.000000e+00> : vector<8x2048xf32>
    %156 = tpu.matmul %154, %155, %cst_176 {dimension_numbers = #tpu.dot_dimension_numbers<[1], [0], [0], [1], [0, 0, 1, 1], [], []>} : vector<8x8xbf16>, vector<8x2048xbf16>, vector<8x2048xf32> -> vector<8x2048xf32>
    %157 = arith.addf %152, %156 : vector<8x2048xf32>
    %c0_177 = arith.constant 0 : index
    %c0_178 = arith.constant 0 : index
    %158 = vector.load %arg10[%c0_177, %c0_178] : memref<8x2048xf32, #tpu.memory_space<vmem>>, vector<8x2048xf32>
    tpu.vector_store %arg10[%c0_177, %c0_178], %157 {strides = array<i32>} : memref<8x2048xf32, #tpu.memory_space<vmem>>, vector<8x2048xf32>,
    %c0_179 = arith.constant 0 : index
    %c0_180 = arith.constant 0 : index
    %159 = vector.load %arg10[%c0_179, %c0_180] : memref<8x2048xf32, #tpu.memory_space<vmem>>, vector<8x2048xf32>
    %c21 = arith.constant 21 : index
    %c0_181 = arith.constant 0 : index
    %c0_182 = arith.constant 0 : index
    %160 = vector.load %arg2[%c21, %c0_181, %c0_182] : memref<27x8x8xbf16, #tpu.memory_space<vmem>>, vector<1x8x8xbf16>
    %161 = vector.shape_cast %160 : vector<1x8x8xbf16> to vector<8x8xbf16>
    %c0_183 = arith.constant 0 : index
    %c666 = arith.constant 666 : index
    %162 = vector.load %arg9[%c0_183, %c666] : memref<8x2816xbf16, #tpu.memory_space<vmem>>, vector<8x2048xbf16>
    %cst_184 = arith.constant dense<0.000000e+00> : vector<8x2048xf32>
    %163 = tpu.matmul %161, %162, %cst_184 {dimension_numbers = #tpu.dot_dimension_numbers<[1], [0], [0], [1], [0, 0, 1, 1], [], []>} : vector<8x8xbf16>, vector<8x2048xbf16>, vector<8x2048xf32> -> vector<8x2048xf32>
    %164 = arith.addf %159, %163 : vector<8x2048xf32>
    %c0_185 = arith.constant 0 : index
    %c0_186 = arith.constant 0 : index
    %165 = vector.load %arg10[%c0_185, %c0_186] : memref<8x2048xf32, #tpu.memory_space<vmem>>, vector<8x2048xf32>
    tpu.vector_store %arg10[%c0_185, %c0_186], %164 {strides = array<i32>} : memref<8x2048xf32, #tpu.memory_space<vmem>>, vector<8x2048xf32>,
    %c0_187 = arith.constant 0 : index
    %c0_188 = arith.constant 0 : index
    %166 = vector.load %arg10[%c0_187, %c0_188] : memref<8x2048xf32, #tpu.memory_space<vmem>>, vector<8x2048xf32>
    %c22 = arith.constant 22 : index
    %c0_189 = arith.constant 0 : index
    %c0_190 = arith.constant 0 : index
    %167 = vector.load %arg2[%c22, %c0_189, %c0_190] : memref<27x8x8xbf16, #tpu.memory_space<vmem>>, vector<1x8x8xbf16>
    %168 = vector.shape_cast %167 : vector<1x8x8xbf16> to vector<8x8xbf16>
    %c0_191 = arith.constant 0 : index
    %c667 = arith.constant 667 : index
    %169 = vector.load %arg9[%c0_191, %c667] : memref<8x2816xbf16, #tpu.memory_space<vmem>>, vector<8x2048xbf16>
    %cst_192 = arith.constant dense<0.000000e+00> : vector<8x2048xf32>
    %170 = tpu.matmul %168, %169, %cst_192 {dimension_numbers = #tpu.dot_dimension_numbers<[1], [0], [0], [1], [0, 0, 1, 1], [], []>} : vector<8x8xbf16>, vector<8x2048xbf16>, vector<8x2048xf32> -> vector<8x2048xf32>
    %171 = arith.addf %166, %170 : vector<8x2048xf32>
    %c0_193 = arith.constant 0 : index
    %c0_194 = arith.constant 0 : index
    %172 = vector.load %arg10[%c0_193, %c0_194] : memref<8x2048xf32, #tpu.memory_space<vmem>>, vector<8x2048xf32>
    tpu.vector_store %arg10[%c0_193, %c0_194], %171 {strides = array<i32>} : memref<8x2048xf32, #tpu.memory_space<vmem>>, vector<8x2048xf32>,
    %c0_195 = arith.constant 0 : index
    %c0_196 = arith.constant 0 : index
    %173 = vector.load %arg10[%c0_195, %c0_196] : memref<8x2048xf32, #tpu.memory_space<vmem>>, vector<8x2048xf32>
    %c23 = arith.constant 23 : index
    %c0_197 = arith.constant 0 : index
    %c0_198 = arith.constant 0 : index
    %174 = vector.load %arg2[%c23, %c0_197, %c0_198] : memref<27x8x8xbf16, #tpu.memory_space<vmem>>, vector<1x8x8xbf16>
    %175 = vector.shape_cast %174 : vector<1x8x8xbf16> to vector<8x8xbf16>
    %c0_199 = arith.constant 0 : index
    %c668 = arith.constant 668 : index
    %176 = vector.load %arg9[%c0_199, %c668] : memref<8x2816xbf16, #tpu.memory_space<vmem>>, vector<8x2048xbf16>
    %cst_200 = arith.constant dense<0.000000e+00> : vector<8x2048xf32>
    %177 = tpu.matmul %175, %176, %cst_200 {dimension_numbers = #tpu.dot_dimension_numbers<[1], [0], [0], [1], [0, 0, 1, 1], [], []>} : vector<8x8xbf16>, vector<8x2048xbf16>, vector<8x2048xf32> -> vector<8x2048xf32>
    %178 = arith.addf %173, %177 : vector<8x2048xf32>
    %c0_201 = arith.constant 0 : index
    %c0_202 = arith.constant 0 : index
    %179 = vector.load %arg10[%c0_201, %c0_202] : memref<8x2048xf32, #tpu.memory_space<vmem>>, vector<8x2048xf32>
    tpu.vector_store %arg10[%c0_201, %c0_202], %178 {strides = array<i32>} : memref<8x2048xf32, #tpu.memory_space<vmem>>, vector<8x2048xf32>,
    %c0_203 = arith.constant 0 : index
    %c0_204 = arith.constant 0 : index
    %180 = vector.load %arg10[%c0_203, %c0_204] : memref<8x2048xf32, #tpu.memory_space<vmem>>, vector<8x2048xf32>
    %c24 = arith.constant 24 : index
    %c0_205 = arith.constant 0 : index
    %c0_206 = arith.constant 0 : index
    %181 = vector.load %arg2[%c24, %c0_205, %c0_206] : memref<27x8x8xbf16, #tpu.memory_space<vmem>>, vector<1x8x8xbf16>
    %182 = vector.shape_cast %181 : vector<1x8x8xbf16> to vector<8x8xbf16>
    %c0_207 = arith.constant 0 : index
    %c684 = arith.constant 684 : index
    %183 = vector.load %arg9[%c0_207, %c684] : memref<8x2816xbf16, #tpu.memory_space<vmem>>, vector<8x2048xbf16>
    %cst_208 = arith.constant dense<0.000000e+00> : vector<8x2048xf32>
    %184 = tpu.matmul %182, %183, %cst_208 {dimension_numbers = #tpu.dot_dimension_numbers<[1], [0], [0], [1], [0, 0, 1, 1], [], []>} : vector<8x8xbf16>, vector<8x2048xbf16>, vector<8x2048xf32> -> vector<8x2048xf32>
    %185 = arith.addf %180, %184 : vector<8x2048xf32>
    %c0_209 = arith.constant 0 : index
    %c0_210 = arith.constant 0 : index
    %186 = vector.load %arg10[%c0_209, %c0_210] : memref<8x2048xf32, #tpu.memory_space<vmem>>, vector<8x2048xf32>
    tpu.vector_store %arg10[%c0_209, %c0_210], %185 {strides = array<i32>} : memref<8x2048xf32, #tpu.memory_space<vmem>>, vector<8x2048xf32>,
    %c0_211 = arith.constant 0 : index
    %c0_212 = arith.constant 0 : index
    %187 = vector.load %arg10[%c0_211, %c0_212] : memref<8x2048xf32, #tpu.memory_space<vmem>>, vector<8x2048xf32>
    %c25 = arith.constant 25 : index
    %c0_213 = arith.constant 0 : index
    %c0_214 = arith.constant 0 : index
    %188 = vector.load %arg2[%c25, %c0_213, %c0_214] : memref<27x8x8xbf16, #tpu.memory_space<vmem>>, vector<1x8x8xbf16>
    %189 = vector.shape_cast %188 : vector<1x8x8xbf16> to vector<8x8xbf16>
    %c0_215 = arith.constant 0 : index
    %c685 = arith.constant 685 : index
    %190 = vector.load %arg9[%c0_215, %c685] : memref<8x2816xbf16, #tpu.memory_space<vmem>>, vector<8x2048xbf16>
    %cst_216 = arith.constant dense<0.000000e+00> : vector<8x2048xf32>
    %191 = tpu.matmul %189, %190, %cst_216 {dimension_numbers = #tpu.dot_dimension_numbers<[1], [0], [0], [1], [0, 0, 1, 1], [], []>} : vector<8x8xbf16>, vector<8x2048xbf16>, vector<8x2048xf32> -> vector<8x2048xf32>
    %192 = arith.addf %187, %191 : vector<8x2048xf32>
    %c0_217 = arith.constant 0 : index
    %c0_218 = arith.constant 0 : index
    %193 = vector.load %arg10[%c0_217, %c0_218] : memref<8x2048xf32, #tpu.memory_space<vmem>>, vector<8x2048xf32>
    tpu.vector_store %arg10[%c0_217, %c0_218], %192 {strides = array<i32>} : memref<8x2048xf32, #tpu.memory_space<vmem>>, vector<8x2048xf32>,
    %c0_219 = arith.constant 0 : index
    %c0_220 = arith.constant 0 : index
    %194 = vector.load %arg10[%c0_219, %c0_220] : memref<8x2048xf32, #tpu.memory_space<vmem>>, vector<8x2048xf32>
    %c26 = arith.constant 26 : index
    %c0_221 = arith.constant 0 : index
    %c0_222 = arith.constant 0 : index
    %195 = vector.load %arg2[%c26, %c0_221, %c0_222] : memref<27x8x8xbf16, #tpu.memory_space<vmem>>, vector<1x8x8xbf16>
    %196 = vector.shape_cast %195 : vector<1x8x8xbf16> to vector<8x8xbf16>
    %c0_223 = arith.constant 0 : index
    %c686 = arith.constant 686 : index
    %197 = vector.load %arg9[%c0_223, %c686] : memref<8x2816xbf16, #tpu.memory_space<vmem>>, vector<8x2048xbf16>
    %cst_224 = arith.constant dense<0.000000e+00> : vector<8x2048xf32>
    %198 = tpu.matmul %196, %197, %cst_224 {dimension_numbers = #tpu.dot_dimension_numbers<[1], [0], [0], [1], [0, 0, 1, 1], [], []>} : vector<8x8xbf16>, vector<8x2048xbf16>, vector<8x2048xf32> -> vector<8x2048xf32>
    %199 = arith.addf %194, %198 : vector<8x2048xf32>
    %c0_225 = arith.constant 0 : index
    %c0_226 = arith.constant 0 : index
    %200 = vector.load %arg10[%c0_225, %c0_226] : memref<8x2048xf32, #tpu.memory_space<vmem>>, vector<8x2048xf32>
    tpu.vector_store %arg10[%c0_225, %c0_226], %199 {strides = array<i32>} : memref<8x2048xf32, #tpu.memory_space<vmem>>, vector<8x2048xf32>,
    %c0_227 = arith.constant 0 : index
    %c0_228 = arith.constant 0 : index
    %201 = vector.load %arg10[%c0_227, %c0_228] : memref<8x2048xf32, #tpu.memory_space<vmem>>, vector<8x2048xf32>
    %c0_229 = arith.constant 0 : index
    %c0_230 = arith.constant 0 : index
    %202 = vector.load %arg3[%c0_229, %c0_230] : memref<8x1xf32, #tpu.memory_space<vmem>>, vector<8x1xf32>
    %203 = vector.broadcast %202 : vector<8x1xf32> to vector<8x2048xf32>
    %204 = arith.addf %201, %203 : vector<8x2048xf32>
    %205 = arith.truncf %204 : vector<8x2048xf32> to vector<8x2048xbf16>
    %c0_231 = arith.constant 0 : index
    %c0_232 = arith.constant 0 : index
    %c0_233 = arith.constant 0 : index
    %206 = vector.load %arg6[%c0_231, %c0_232, %c0_233] : memref<1x8x2048xbf16, #tpu.memory_space<vmem>>, vector<1x8x2048xbf16>
    %207 = vector.shape_cast %206 : vector<1x8x2048xbf16> to vector<8x2048xbf16>
    %208 = vector.shape_cast %205 : vector<8x2048xbf16> to vector<1x8x2048xbf16>
    tpu.vector_store %arg6[%c0_231, %c0_232, %c0_233], %208 {strides = array<i32>} : memref<1x8x2048xbf16, #tpu.memory_space<vmem>>, vector<1x8x2048xbf16>,
    %c0_234 = arith.constant 0 : index
    %c0_235 = arith.constant 0 : index
    %209 = vector.load %arg4[%c0_234, %c0_235] : memref<1x2048xf32, #tpu.memory_space<vmem>>, vector<1x2048xf32>
    %210 = vector.broadcast %209 : vector<1x2048xf32> to vector<8x2048xf32>
    %211 = arith.mulf %204, %210 : vector<8x2048xf32>
    %cst_236 = arith.constant dense<0.000000e+00> : vector<8xf32>
    %212 = vector.multi_reduction <add>, %211, %cst_236 [1] : vector<8x2048xf32> to vector<8xf32>
    %213 = vector.shape_cast %212 : vector<8xf32> to vector<8x1xf32>
    %214 = arith.mulf %211, %204 : vector<8x2048xf32>
    %cst_237 = arith.constant dense<0.000000e+00> : vector<8xf32>
    %215 = vector.multi_reduction <add>, %214, %cst_237 [1] : vector<8x2048xf32> to vector<8xf32>
    %216 = vector.shape_cast %215 : vector<8xf32> to vector<8x1xf32>
    %c0_i32_238 = arith.constant 0 : i32
    %217 = arith.cmpi eq, %arg1, %c0_i32_238 : i32
    %218 = arith.extui %217 : i1 to i32
    %c0_i32_239 = arith.constant 0 : i32
    %219 = arith.cmpi ne, %218, %c0_i32_239 : i32
    scf.if %219 {
      %c0_242 = arith.constant 0 : index
      %c0_243 = arith.constant 0 : index
      %c0_244 = arith.constant 0 : index
      %223 = vector.load %arg7[%c0_242, %c0_243, %c0_244] : memref<1x8x1xf32, #tpu.memory_space<vmem>>, vector<1x8x1xf32>
      %224 = vector.shape_cast %223 : vector<1x8x1xf32> to vector<8x1xf32>
      %225 = vector.shape_cast %213 : vector<8x1xf32> to vector<1x8x1xf32>
      tpu.vector_store %arg7[%c0_242, %c0_243, %c0_244], %225 {strides = array<i32>} : memref<1x8x1xf32, #tpu.memory_space<vmem>>, vector<1x8x1xf32>,
      %c0_245 = arith.constant 0 : index
      %c0_246 = arith.constant 0 : index
      %c0_247 = arith.constant 0 : index
      %226 = vector.load %arg8[%c0_245, %c0_246, %c0_247] : memref<1x8x1xf32, #tpu.memory_space<vmem>>, vector<1x8x1xf32>
      %227 = vector.shape_cast %226 : vector<1x8x1xf32> to vector<8x1xf32>
      %228 = vector.shape_cast %216 : vector<8x1xf32> to vector<1x8x1xf32>
      tpu.vector_store %arg8[%c0_245, %c0_246, %c0_247], %228 {strides = array<i32>} : memref<1x8x1xf32, #tpu.memory_space<vmem>>, vector<1x8x1xf32>,
    } else {
    }
    %c0_i32_240 = arith.constant 0 : i32
    %220 = arith.cmpi sgt, %arg1, %c0_i32_240 : i32
    %221 = arith.extui %220 : i1 to i32
    %c0_i32_241 = arith.constant 0 : i32
    %222 = arith.cmpi ne, %221, %c0_i32_241 : i32
    scf.if %222 {
      %c0_242 = arith.constant 0 : index
      %c0_243 = arith.constant 0 : index
      %c0_244 = arith.constant 0 : index
      %223 = vector.load %arg7[%c0_242, %c0_243, %c0_244] : memref<1x8x1xf32, #tpu.memory_space<vmem>>, vector<1x8x1xf32>
      %224 = vector.shape_cast %223 : vector<1x8x1xf32> to vector<8x1xf32>
      %225 = arith.addf %224, %213 : vector<8x1xf32>
      %c0_245 = arith.constant 0 : index
      %c0_246 = arith.constant 0 : index
      %c0_247 = arith.constant 0 : index
      %226 = vector.load %arg7[%c0_245, %c0_246, %c0_247] : memref<1x8x1xf32, #tpu.memory_space<vmem>>, vector<1x8x1xf32>
      %227 = vector.shape_cast %226 : vector<1x8x1xf32> to vector<8x1xf32>
      %228 = vector.shape_cast %225 : vector<8x1xf32> to vector<1x8x1xf32>
      tpu.vector_store %arg7[%c0_245, %c0_246, %c0_247], %228 {strides = array<i32>} : memref<1x8x1xf32, #tpu.memory_space<vmem>>, vector<1x8x1xf32>,
      %c0_248 = arith.constant 0 : index
      %c0_249 = arith.constant 0 : index
      %c0_250 = arith.constant 0 : index
      %229 = vector.load %arg8[%c0_248, %c0_249, %c0_250] : memref<1x8x1xf32, #tpu.memory_space<vmem>>, vector<1x8x1xf32>
      %230 = vector.shape_cast %229 : vector<1x8x1xf32> to vector<8x1xf32>
      %231 = arith.addf %230, %216 : vector<8x1xf32>
      %c0_251 = arith.constant 0 : index
      %c0_252 = arith.constant 0 : index
      %c0_253 = arith.constant 0 : index
      %232 = vector.load %arg8[%c0_251, %c0_252, %c0_253] : memref<1x8x1xf32, #tpu.memory_space<vmem>>, vector<1x8x1xf32>
      %233 = vector.shape_cast %232 : vector<1x8x1xf32> to vector<8x1xf32>
      %234 = vector.shape_cast %231 : vector<8x1xf32> to vector<1x8x1xf32>
      tpu.vector_store %arg8[%c0_251, %c0_252, %c0_253], %234 {strides = array<i32>} : memref<1x8x1xf32, #tpu.memory_space<vmem>>, vector<1x8x1xf32>,
    } else {
    }
    return
  }
  func.func @transform_0(%arg0: i32, %arg1: i32) -> (i32, i32, i32) {
    %c0_i32 = arith.constant 0 : i32
    %c0_i32_0 = arith.constant 0 : i32
    %c0_i32_1 = arith.constant 0 : i32
    %c0_i32_2 = arith.constant 0 : i32
    return %c0_i32, %c0_i32_0, %c0_i32_1 : i32, i32, i32
  }
  func.func @transform_1(%arg0: i32, %arg1: i32) -> (i32, i32) {
    %c0_i32 = arith.constant 0 : i32
    %c0_i32_0 = arith.constant 0 : i32
    %c0_i32_1 = arith.constant 0 : i32
    return %c0_i32, %c0_i32_0 : i32, i32
  }
  func.func @transform_2(%arg0: i32, %arg1: i32) -> (i32, i32) {
    %c0_i32 = arith.constant 0 : i32
    %c0_i32_0 = arith.constant 0 : i32
    return %c0_i32, %arg1 : i32, i32
  }
  func.func @transform_4(%arg0: i32, %arg1: i32) -> (i32, i32, i32) {
    %c0_i32 = arith.constant 0 : i32
    %c0_i32_0 = arith.constant 0 : i32
    return %arg0, %c0_i32, %arg1 : i32, i32, i32
  }
  func.func @transform_5(%arg0: i32, %arg1: i32) -> (i32, i32, i32) {
    %c0_i32 = arith.constant 0 : i32
    %c0_i32_0 = arith.constant 0 : i32
    %c0_i32_1 = arith.constant 0 : i32
    return %arg0, %c0_i32, %c0_i32_0 : i32, i32, i32
  }
  func.func @transform_6(%arg0: i32, %arg1: i32) -> (i32, i32, i32) {
    %c0_i32 = arith.constant 0 : i32
    %c0_i32_0 = arith.constant 0 : i32
    %c0_i32_1 = arith.constant 0 : i32
    return %arg0, %c0_i32, %c0_i32_0 : i32, i32, i32
  }
}

module attributes {stable_mosaic.version = 11 : i64} {
  func.func @_norm_apply_kernel(%arg0: i32, %arg1: i32, %arg2: memref<1x8x2048xbf16, #tpu.memory_space<vmem>>, %arg3: memref<1x8x1xf32, #tpu.memory_space<vmem>>, %arg4: memref<1x8x1xf32, #tpu.memory_space<vmem>>, %arg5: memref<1x8x2048xf32, #tpu.memory_space<vmem>>) attributes {dimension_semantics = [#tpu.dimension_semantics<parallel>, #tpu.dimension_semantics<parallel>], iteration_bounds = array<i64: 2, 3>, scalar_prefetch = 0 : i64, scratch_operands = 0 : i64, tpu.core_type = #tpu.core_type<tc>, window_params = [{transform_indices = @transform_0, window_bounds = array<i64: 1, 8, 2048>}, {transform_indices = @transform_1, window_bounds = array<i64: 1, 8, 1>}, {transform_indices = @transform_2, window_bounds = array<i64: 1, 8, 1>}, {transform_indices = @transform_3, window_bounds = array<i64: 1, 8, 2048>}]} {
    %c0 = arith.constant 0 : index
    %c0_0 = arith.constant 0 : index
    %c0_1 = arith.constant 0 : index
    %0 = vector.load %arg2[%c0, %c0_0, %c0_1] : memref<1x8x2048xbf16, #tpu.memory_space<vmem>>, vector<1x8x2048xbf16>
    %1 = vector.shape_cast %0 : vector<1x8x2048xbf16> to vector<8x2048xbf16>
    %2 = arith.extf %1 : vector<8x2048xbf16> to vector<8x2048xf32>
    %c0_2 = arith.constant 0 : index
    %c0_3 = arith.constant 0 : index
    %c0_4 = arith.constant 0 : index
    %3 = vector.load %arg3[%c0_2, %c0_3, %c0_4] : memref<1x8x1xf32, #tpu.memory_space<vmem>>, vector<1x8x1xf32>
    %4 = vector.shape_cast %3 : vector<1x8x1xf32> to vector<8x1xf32>
    %cst = arith.constant 2.44140625E-4 : f32
    %5 = vector.broadcast %cst : f32 to vector<8x1xf32>
    %6 = arith.mulf %4, %5 : vector<8x1xf32>
    %c0_5 = arith.constant 0 : index
    %c0_6 = arith.constant 0 : index
    %c0_7 = arith.constant 0 : index
    %7 = vector.load %arg4[%c0_5, %c0_6, %c0_7] : memref<1x8x1xf32, #tpu.memory_space<vmem>>, vector<1x8x1xf32>
    %8 = vector.shape_cast %7 : vector<1x8x1xf32> to vector<8x1xf32>
    %cst_8 = arith.constant 2.44140625E-4 : f32
    %9 = vector.broadcast %cst_8 : f32 to vector<8x1xf32>
    %10 = arith.mulf %8, %9 : vector<8x1xf32>
    %11 = arith.mulf %6, %6 : vector<8x1xf32>
    %12 = arith.subf %10, %11 : vector<8x1xf32>
    %cst_9 = arith.constant 0.000000e+00 : f32
    %13 = vector.broadcast %cst_9 : f32 to vector<8x1xf32>
    %14 = arith.maximumf %12, %13 : vector<8x1xf32>
    %cst_10 = arith.constant 9.99999974E-6 : f32
    %15 = vector.broadcast %cst_10 : f32 to vector<8x1xf32>
    %16 = arith.addf %14, %15 : vector<8x1xf32>
    %17 = math.rsqrt %16 : vector<8x1xf32>
    %18 = vector.broadcast %6 : vector<8x1xf32> to vector<8x2048xf32>
    %19 = arith.subf %2, %18 : vector<8x2048xf32>
    %20 = vector.broadcast %17 : vector<8x1xf32> to vector<8x2048xf32>
    %21 = arith.mulf %19, %20 : vector<8x2048xf32>
    %cst_11 = arith.constant 0.000000e+00 : f32
    %22 = vector.broadcast %cst_11 : f32 to vector<8x2048xf32>
    %23 = arith.cmpf oge, %21, %22 : vector<8x2048xf32>
    %cst_12 = arith.constant 1.000000e-01 : f32
    %24 = vector.broadcast %cst_12 : f32 to vector<8x2048xf32>
    %25 = arith.mulf %24, %21 : vector<8x2048xf32>
    %26 = arith.select %23, %21, %25 : vector<8x2048xi1>, vector<8x2048xf32>
    %c0_13 = arith.constant 0 : index
    %c0_14 = arith.constant 0 : index
    %c0_15 = arith.constant 0 : index
    %27 = vector.load %arg5[%c0_13, %c0_14, %c0_15] : memref<1x8x2048xf32, #tpu.memory_space<vmem>>, vector<1x8x2048xf32>
    %28 = vector.shape_cast %27 : vector<1x8x2048xf32> to vector<8x2048xf32>
    %29 = vector.shape_cast %26 : vector<8x2048xf32> to vector<1x8x2048xf32>
    tpu.vector_store %arg5[%c0_13, %c0_14, %c0_15], %29 {strides = array<i32>} : memref<1x8x2048xf32, #tpu.memory_space<vmem>>, vector<1x8x2048xf32>,
    return
  }
  func.func @transform_0(%arg0: i32, %arg1: i32) -> (i32, i32, i32) {
    %c0_i32 = arith.constant 0 : i32
    %c0_i32_0 = arith.constant 0 : i32
    return %arg0, %c0_i32, %arg1 : i32, i32, i32
  }
  func.func @transform_1(%arg0: i32, %arg1: i32) -> (i32, i32, i32) {
    %c0_i32 = arith.constant 0 : i32
    %c0_i32_0 = arith.constant 0 : i32
    %c0_i32_1 = arith.constant 0 : i32
    return %arg0, %c0_i32, %c0_i32_0 : i32, i32, i32
  }
  func.func @transform_2(%arg0: i32, %arg1: i32) -> (i32, i32, i32) {
    %c0_i32 = arith.constant 0 : i32
    %c0_i32_0 = arith.constant 0 : i32
    %c0_i32_1 = arith.constant 0 : i32
    return %arg0, %c0_i32, %c0_i32_0 : i32, i32, i32
  }
  func.func @transform_3(%arg0: i32, %arg1: i32) -> (i32, i32, i32) {
    %c0_i32 = arith.constant 0 : i32
    %c0_i32_0 = arith.constant 0 : i32
    return %arg0, %c0_i32, %arg1 : i32, i32, i32
  }
}

</mosaic_0001>

<bundles_post_ra>
// kernel: conv_ins_block_apply.3
= control target key start
LH: loop header
LB: loop body
LE: loop exit
PB: predicated region body
PF: predicated region fallthrough
CT: control target
= control target key end

     0   :  { %s616_s12 = smov 0   ;;  %s618_s13 = smov 0   ;;  %s714_s0 = inlined_call_operand.vmem [shape: bf16[2,8,6144], index: 0, kind: input, shape index: {}]   ;;  %s715_s1 = inlined_call_operand.vmem [shape: f32[2,8,1], index: 1, kind: input, shape index: {}]   ;;  %s716_s2 = inlined_call_operand.vmem [shape: f32[2,8,1], index: 2, kind: input, shape index: {}]   ;;  %s717_s3 = inlined_call_operand.vmem [shape: f32[2,8,6144], index: 3, kind: output, shape index: {}]  }
   0x1   :  { %s620_s14 = smov 0   ;;  %s622_s15 = smov 0  }
   0x2   :  { %s624_s16 = smov 0  }
   0x3 LB: > { %s22_s17 = sadd.s32 1, %s585_s14  ;;  %s25_s18 = sadd.s32 1, %s589_s15  ;;  %s593_s16 = sphi %s624_s16, %s13_s16   ;;  %s589_s15 = sphi %s622_s15, %s721_s15   ;;  %s585_s14 = sphi %s620_s14, %s720_s14   ;;  %s581_s13 = sphi %s618_s13, %s719_s13   ;;  %s577_s12 = sphi %s616_s12, %s718_s12  }
   0x4   : > { %p23_p0 = scmp.ge.s32.totalorder %s22_s17, 3  ;;  %p501_p1 = scmp.ge.s32.totalorder %s593_s16, 1 }
   0x5   : > { %p176_p2 = scmp.lt.s32.totalorder %s593_s16, 7 }
   0x6   : > { %s723_s17 = smov (%p23_p0, %s22_s17), 0  ;;  %s725_s18 = smov (!%p23_p0, %s25_s18), %s589_s15 }
   0x7   : > { %p177_p3 = pnand %p501_p1, %p176_p2  ;;  %p27_p4 = scmp.ge.s32.totalorder %s725_s18, 2 }
   0x8   : > { %p217_p5 = scmp.lt.s32.totalorder (!%p177_p3), %s581_s13, 1  ;;  %s502_s26 = sshll.u32 (!%p177_p3), %s577_s12, 4 }
   0x9   : > { %s727_s18 = smov (%p27_p4, %s725_s18), 0  ;;  %180 = sbr.rel (%p177_p3) target bundleno = 187 (0xbb), region = 32 }
   0xa   : > { %p219_p6 = scmp.lt.s32.totalorder (!%p177_p3), %s502_s26, 47 }
   0xe   : > { %v595_v0 = vmov 0   ;;  %s729_s13 = smov (!%p217_p5, %s581_s13), 1  ;;  %s731_s26 = smov (!%p219_p6, %s502_s26), 47 }
   0xf   : > { %552 = vset.pattern.permute.xlu0 %v595_v0  ;;  %s504_s19 = sshll.u32 %s729_s13, 3  ;;  %s510_s27 = smul.u32 48, %s729_s13 }
  0x10   : > { %s229_s22 = scalar_lea.vmem %s715_s1, %s504_s19  ;;  %s233_s25 = scalar_lea.vmem %s716_s2, %s504_s19 }
  0x11   : > { %v268_v1 = vld [vmem:[%s229_s22] sm:$0xff]  ;;  %s655_s28 = sadd.s32 %s510_s27, %s731_s26 }
  0x12   : > { %v269_v2 = vmul.f32 0.00024414063, %v268_v1  ;;  %v270_v3 = vld [vmem:[%s233_s25] sm:$0xff]  ;;  %s503_s29 = sshll.u32 %s655_s28, 2  ;;  %s507_s6 = sshll.u32 %s655_s28, 3 }
  0x13   : > { %v271_v4 = vmul.f32 0.00024414063, %v270_v3  ;;  %s224_s5 = scalar_lea.vmem %s714_s0, %s503_s29  ;;  %s665_s9 = scalar_lea.vmem %s717_s3, %s507_s6 }
  0x14   : > { %279 = vperm.xlu0 %552, %v269_v2   ;;  %v272_v5 = vmul.f32 %v269_v2, %v269_v2  ;;  %v244_v10 = vld [vmem:[%s224_s5] sm:$0xff]  ;;  %v245_v11 = vld [vmem:[%s224_s5 + $0x8] sm:$0xff]  ;;  %v246_v12 = vld [vmem:[%s224_s5 + $0x10] sm:$0xff] }
  0x15   : > { %v247_v13 = vld [vmem:[%s224_s5 + $0x18] sm:$0xff]  ;;  %v248_v14 = vld [vmem:[%s224_s5 + $0x20] sm:$0xff]  ;;  %v249_v15 = vld [vmem:[%s224_s5 + $0x28] sm:$0xff]  ;;  %v252_v18 = vunpack.c.l.bf16 %v244_v10  ;;  %v253_v19 = vunpack.c.h.bf16 %v244_v10  ;;  %v254_v20 = vunpack.c.l.bf16 %v245_v11  ;;  %v255_v21 = vunpack.c.h.bf16 %v245_v11 }
  0x16   : > { %v273_v6 = vsub.f32 %v271_v4, %v272_v5  ;;  %v250_v16 = vld [vmem:[%s224_s5 + $0x30] sm:$0xff]  ;;  %v251_v17 = vld [vmem:[%s224_s5 + $0x38] sm:$0xff]  ;;  %v256_v22 = vunpack.c.l.bf16 %v246_v12  ;;  %v257_v23 = vunpack.c.h.bf16 %v246_v12  ;;  %v258_v24 = vunpack.c.l.bf16 %v247_v13 }
  0x17   : > { %v259_v25 = vunpack.c.h.bf16 %v247_v13  ;;  %v260_v27 = vunpack.c.l.bf16 %v248_v14  ;;  %v261_v28 = vunpack.c.h.bf16 %v248_v14  ;;  %v262_v29 = vunpack.c.l.bf16 %v249_v15 }
  0x18   : > { %v274_v7 = vmax.f32 %v273_v6, 0.0  ;;  %v263_v30 = vunpack.c.h.bf16 %v249_v15  ;;  %v264_v31 = vunpack.c.l.bf16 %v250_v16  ;;  %v265_v32 = vunpack.c.h.bf16 %v250_v16 }
  0x19   : > { %v266_v33 = vunpack.c.l.bf16 %v251_v17  ;;  %v267_v34 = vunpack.c.h.bf16 %v251_v17 }
  0x1a   : > { %v275_v8 = vadd.f32 1e-05, %v274_v7 }
  0x1c   : > { %553 = vrsqrt.f32 %v275_v8 }
  0x29   : > { %v554_v9 = vpop.eup %553 }
  0x2a   : > { %300 = vperm.xlu0 %552, %v554_v9  }
  0x8f   : > { %v280_v26 = vpop.permute.xlu0 %279 }
  0x90   : > { %v282_v35 = vsub.f32 %v252_v18, %v280_v26  ;;  %v283_v36 = vsub.f32 %v253_v19, %v280_v26  ;;  %v284_v37 = vsub.f32 %v254_v20, %v280_v26  ;;  %v285_v38 = vsub.f32 %v255_v21, %v280_v26 }
  0x91   : > { %v286_v39 = vsub.f32 %v256_v22, %v280_v26  ;;  %v287_v40 = vsub.f32 %v257_v23, %v280_v26  ;;  %v288_v41 = vsub.f32 %v258_v24, %v280_v26  ;;  %v289_v42 = vsub.f32 %v259_v25, %v280_v26 }
  0x92   : > { %v290_v43 = vsub.f32 %v260_v27, %v280_v26  ;;  %v291_v44 = vsub.f32 %v261_v28, %v280_v26  ;;  %v292_v45 = vsub.f32 %v262_v29, %v280_v26  ;;  %v293_v46 = vsub.f32 %v263_v30, %v280_v26 }
  0x93   : > { %v294_v48 = vsub.f32 %v264_v31, %v280_v26  ;;  %v295_v49 = vsub.f32 %v265_v32, %v280_v26  ;;  %v296_v50 = vsub.f32 %v266_v33, %v280_v26  ;;  %v297_v51 = vsub.f32 %v267_v34, %v280_v26 }
  0xa5   : > { %v301_v47 = vpop.permute.xlu0 %300 }
  0xa6   : > { %v303_v52 = vmul.f32 %v301_v47, %v282_v35  ;;  %v304_v53 = vmul.f32 %v301_v47, %v283_v36  ;;  %v305_v54 = vmul.f32 %v301_v47, %v284_v37  ;;  %v306_v55 = vmul.f32 %v301_v47, %v285_v38 }
  0xa7   : > { %v307_v56 = vmul.f32 %v301_v47, %v286_v39  ;;  %v308_v57 = vmul.f32 %v301_v47, %v287_v40  ;;  %v309_v58 = vmul.f32 %v301_v47, %v288_v41  ;;  %v310_v59 = vmul.f32 %v301_v47, %v289_v42 }
  0xa8   : > { %v311_v60 = vmul.f32 %v301_v47, %v290_v43  ;;  %v312_v61 = vmul.f32 %v301_v47, %v291_v44  ;;  %v313_v62 = vmul.f32 %v301_v47, %v292_v45  ;;  %v314_v63 = vmul.f32 %v301_v47, %v293_v46 }
  0xa9   : > { %v315_v0 = vmul.f32 %v301_v47, %v294_v48  ;;  %v316_v1 = vmul.f32 %v301_v47, %v295_v49  ;;  %v317_v2 = vmul.f32 %v301_v47, %v296_v50  ;;  %v318_v3 = vmul.f32 %v301_v47, %v297_v51 }
  0xaa   : > { %vm319_vm0 = vcmp.ge.f32.partialorder %v303_v52, 0.0  ;;  %vm320_vm1 = vcmp.ge.f32.partialorder %v304_v53, 0.0  ;;  %vm321_vm2 = vcmp.ge.f32.partialorder %v305_v54, 0.0  ;;  %vm322_vm3 = vcmp.ge.f32.partialorder %v306_v55, 0.0 }
  0xab   : > { %vm323_vm4 = vcmp.ge.f32.partialorder %v307_v56, 0.0  ;;  %vm324_vm5 = vcmp.ge.f32.partialorder %v308_v57, 0.0  ;;  %vm325_vm6 = vcmp.ge.f32.partialorder %v309_v58, 0.0  ;;  %vm326_vm7 = vcmp.ge.f32.partialorder %v310_v59, 0.0 }
  0xac   : > { %vm327_vm8 = vcmp.ge.f32.partialorder %v311_v60, 0.0  ;;  %vm328_vm9 = vcmp.ge.f32.partialorder %v312_v61, 0.0  ;;  %vm329_vm10 = vcmp.ge.f32.partialorder %v313_v62, 0.0  ;;  %vm330_vm11 = vcmp.ge.f32.partialorder %v314_v63, 0.0 }
  0xad   : > { %vm331_vm12 = vcmp.ge.f32.partialorder %v315_v0, 0.0  ;;  %vm332_vm13 = vcmp.ge.f32.partialorder %v316_v1, 0.0  ;;  %vm333_vm14 = vcmp.ge.f32.partialorder %v317_v2, 0.0  ;;  %vm334_vm15 = vcmp.ge.f32.partialorder %v318_v3, 0.0 }
  0xae   : > { %v335_v4 = vmul.f32 0.1, %v303_v52  ;;  %v336_v5 = vmul.f32 0.1, %v304_v53  ;;  %v337_v6 = vmul.f32 0.1, %v305_v54 }
  0xaf   : > { %v338_v7 = vmul.f32 0.1, %v306_v55  ;;  %v339_v8 = vmul.f32 0.1, %v307_v56  ;;  %v340_v9 = vmul.f32 0.1, %v308_v57 }
  0xb0   : > { %v341_v10 = vmul.f32 0.1, %v309_v58  ;;  %v342_v11 = vmul.f32 0.1, %v310_v59  ;;  %v343_v12 = vmul.f32 0.1, %v311_v60  ;;  %v351_v13 = vsel %vm319_vm0, %v303_v52, %v335_v4 }
  0xb1   : > { %v344_v14 = vmul.f32 0.1, %v312_v61  ;;  %v345_v15 = vmul.f32 0.1, %v313_v62  ;;  %v346_v16 = vmul.f32 0.1, %v314_v63  ;;  %v352_v17 = vsel %vm320_vm1, %v304_v53, %v336_v5  ;;  %367 = vst [vmem:[%s665_s9] sm:$0xff] %v351_v13 }
  0xb2   : > { %v347_v18 = vmul.f32 0.1, %v315_v0  ;;  %v348_v19 = vmul.f32 0.1, %v316_v1  ;;  %v349_v20 = vmul.f32 0.1, %v317_v2  ;;  %v353_v21 = vsel %vm321_vm2, %v305_v54, %v337_v6 }
  0xb3   : > { %368 = vst [vmem:[%s665_s9 + $0x8] sm:$0xff] %v352_v17  ;;  %v350_v22 = vmul.f32 0.1, %v318_v3  ;;  %v354_v23 = vsel %vm322_vm3, %v306_v55, %v338_v7  ;;  %v355_v24 = vsel %vm323_vm4, %v307_v56, %v339_v8  ;;  %v356_v25 = vsel %vm324_vm5, %v308_v57, %v340_v9  ;;  %369 = vst [vmem:[%s665_s9 + $0x10] sm:$0xff] %v353_v21 }
  0xb4   : > { %v357_v26 = vsel %vm325_vm6, %v309_v58, %v341_v10  ;;  %v358_v27 = vsel %vm326_vm7, %v310_v59, %v342_v11  ;;  %v359_v28 = vsel %vm327_vm8, %v311_v60, %v343_v12  ;;  %v360_v29 = vsel %vm328_vm9, %v312_v61, %v344_v14  ;;  %370 = vst [vmem:[%s665_s9 + $0x18] sm:$0xff] %v354_v23 }
  0xb5   : > { %371 = vst [vmem:[%s665_s9 + $0x20] sm:$0xff] %v355_v24  ;;  %372 = vst [vmem:[%s665_s9 + $0x28] sm:$0xff] %v356_v25  ;;  %v361_v30 = vsel %vm329_vm10, %v313_v62, %v345_v15  ;;  %v362_v31 = vsel %vm330_vm11, %v314_v63, %v346_v16  ;;  %v363_v32 = vsel %vm331_vm12, %v315_v0, %v347_v18 }
  0xb6   : > { %v364_v33 = vsel %vm332_vm13, %v316_v1, %v348_v19  ;;  %373 = vst [vmem:[%s665_s9 + $0x30] sm:$0xff] %v357_v26  ;;  %374 = vst [vmem:[%s665_s9 + $0x38] sm:$0xff] %v358_v27  ;;  %v365_v34 = vsel %vm333_vm14, %v317_v2, %v349_v20  ;;  %v366_v35 = vsel %vm334_vm15, %v318_v3, %v350_v22 }
  0xb7   : > { %375 = vst [vmem:[%s665_s9 + $0x40] sm:$0xff] %v359_v28  ;;  %376 = vst [vmem:[%s665_s9 + $0x48] sm:$0xff] %v360_v29 }
  0xb8   : > { %377 = vst [vmem:[%s665_s9 + $0x50] sm:$0xff] %v361_v30  ;;  %378 = vst [vmem:[%s665_s9 + $0x58] sm:$0xff] %v362_v31 }
  0xb9   : > { %379 = vst [vmem:[%s665_s9 + $0x60] sm:$0xff] %v363_v32  ;;  %380 = vst [vmem:[%s665_s9 + $0x68] sm:$0xff] %v364_v33 }
  0xba   : > { %381 = vst [vmem:[%s665_s9 + $0x70] sm:$0xff] %v365_v34  ;;  %382 = vst [vmem:[%s665_s9 + $0x78] sm:$0xff] %v366_v35 }
  0xbb PF: > { %s13_s16 = sadd.s32 1, %s593_s16   ;;  %s718_s12 = smov %s585_s14 }
  0xbc   : > { %p10_p7 = scmp.ge.s32.totalorder %s13_s16, 8   ;;  %s719_s13 = smov %s589_s15 }
  0xbd   : > { %s720_s14 = smov %s723_s17  ;;  %s721_s15 = smov %s727_s18 }
  0xbe   :  { %12 = sbr.rel (!%p10_p7) target bundleno = 3 (0x3), region = 68 }

// kernel: conv_ins_block_apply.2
= control target key start
LH: loop header
LB: loop body
LE: loop exit
PB: predicated region body
PF: predicated region fallthrough
CT: control target
= control target key end

     0   :  { %s16378_s21 = smov 0   ;;  %s16380_s22 = smov 0   ;;  %s20299_s0 = inlined_call_operand.vmem [shape: bf16[27,8,8], index: 0, kind: input, shape index: {}]   ;;  %s20300_s1 = inlined_call_operand.vmem [shape: f32[8,1], index: 1, kind: input, shape index: {}]   ;;  %s20301_s2 = inlined_call_operand.vmem [shape: f32[1,6144], index: 2, kind: input, shape index: {}]   ;;  %s20302_s3 = inlined_call_operand.vmem [shape: bf16[2,8,6912], index: 3, kind: input, shape index: {}]   ;;  %s20303_s4 = inlined_call_operand.vmem [shape: bf16[2,8,6144], index: 4, kind: output, shape index: {0}]   ;;  %s20304_s5 = inlined_call_operand.vmem [shape: f32[2,8,1], index: 5, kind: output, shape index: {1}]   ;;  %s20305_s6 = inlined_call_operand.vmem [shape: f32[2,8,1], index: 6, kind: output, shape index: {2}]  }
   0x1   :  { %20308 = sst [smem:[#allocation10_spill]] %s20301_s2  ;;  %s16382_s23 = smov 0  }
   0x2   :  { %s16384_s24 = smov 0   ;;  %s16386_s25 = smov 0  }
   0x3 LB: > { %20309 = sst [smem:[#allocation7_spill]] %s16310_s24  ;;  %s26_s26 = sadd.s32 1, %s16306_s23  ;;  %s16314_s25 = sphi %s16386_s25, %s17_s25   ;;  %s16310_s24 = sphi %s16384_s24, %s20316_s24   ;;  %s16306_s23 = sphi %s16382_s23, %s20318_s23   ;;  %s16302_s22 = sphi %s16380_s22, %s20314_s22   ;;  %s16298_s21 = sphi %s16378_s21, %s20317_s21  }
   0x4   : > { %s29_s27 = sadd.s32 1, %s16310_s24  ;;  %p27_p0 = scmp.ge.s32.totalorder %s26_s26, 3 }
   0x5   : > { %p15113_p1 = scmp.ge.s32.totalorder %s16314_s25, 1  ;;  %p207_p2 = scmp.lt.s32.totalorder %s16314_s25, 7 }
   0x6   : > { %s20320_s26 = smov (%p27_p0, %s26_s26), 0  ;;  %s20322_s27 = smov (!%p27_p0, %s29_s27), %s16310_s24 }
   0x7   : > { %20310 = sst [smem:[#allocation8_spill]] %s20320_s26  ;;  %p208_p3 = pnand %p15113_p1, %p207_p2 }
   0x8   : > { %p31_p4 = scmp.ge.s32.totalorder %s20322_s27, 2  ;;  %s15114_s28 = sshll.u32 (!%p208_p3), %s16298_s21, 4 }
   0x9   : > { %211 = sbr.rel (%p208_p3) target bundleno = 1391 (0x56f), region = 32  ;;  %p252_p5 = scmp.lt.s32.totalorder (!%p208_p3), %s16302_s22, 1 }
   0xa   : > { %s20324_s27 = smov (%p31_p4, %s20322_s27), 0  ;;  %p247_p6 = scmp.lt.s32.totalorder (!%p208_p3), %s15114_s28, 47 }
   0xb   : > { %20311 = sst [smem:[#allocation9_spill]] %s20324_s27  ;;  %s15119_s29 = sshll.u32 (!%p208_p3), %s16298_s21, 11 }
   0xc   : > { %s20312_s2 = sld [smem:[#allocation10_spill]] (!%p208_p3)  ;;  %s271_s20 = sshra.s32 (!%p208_p3), %s15119_s29, 7 }
   0xd   : > { %s273_s9 = smul.u32 (!%p208_p3), 54, %s16302_s22 }
   0xe   : > { %s253_s30 = scalar_select %p252_p5, %s16302_s22, 1 }
   0xf   : > { %s20326_s28 = smov (!%p247_p6, %s15114_s28), 47  ;;  %s274_s10 = sadd.s32 %s273_s9, %s271_s20 }
  0x10   : > { %s16058_s7 = smul.u32 48, %s253_s30  ;;  %s15117_s8 = sshll.u32 %s253_s30, 3 }
  0x11   : > { %s16424_s14 = scalar_lea.vmem %s20304_s5, %s15117_s8  ;;  %s16429_s18 = scalar_lea.vmem %s20305_s6, %s15117_s8 }
  0x12   : > { %s16419_s11 = scalar_lea.vmem %s20312_s2, %s20326_s28  ;;  %s257_s15 = sadd.s32 %s16058_s7, %s20326_s28 }
  0x13   : > { %s15116_s19 = sshll.u32 %s257_s15, 2  ;;  %s15120_s2 = sshll.u32 %s274_s10, 2 }
  0x14   : > { %s16434_s26 = scalar_lea.vmem %s20303_s4, %s15116_s19  ;;  %s276_s13 = scalar_lea.vmem %s20302_s3, %s15120_s2 }
  0x15   : > { %v310_v0 = vld [vmem:[%s276_s13] sm:$0xff]  ;;  %v312_v1 = vld [vmem:[%s276_s13 + $0x8] sm:$0xff]  ;;  %v314_v2 = vld [vmem:[%s276_s13 + $0x10] sm:$0xff] }
  0x16   : > { %311 = vst [vmem:[#allocation2] sm:$0xff] %v310_v0  ;;  %313 = vst [vmem:[#allocation2 + $0x8] sm:$0xff] %v312_v1  ;;  %v316_v3 = vld [vmem:[%s276_s13 + $0x18] sm:$0xff]  ;;  %v318_v4 = vld [vmem:[%s276_s13 + $0x20] sm:$0xff] }
  0x17   : > { %315 = vst [vmem:[#allocation2 + $0x10] sm:$0xff] %v314_v2  ;;  %v320_v5 = vld [vmem:[%s276_s13 + $0x28] sm:$0xff]  ;;  %317 = vst [vmem:[#allocation2 + $0x18] sm:$0xff] %v316_v3  ;;  %v322_v6 = vld [vmem:[%s276_s13 + $0x30] sm:$0xff] }
  0x18   : > { %319 = vst [vmem:[#allocation2 + $0x20] sm:$0xff] %v318_v4  ;;  %321 = vst [vmem:[#allocation2 + $0x28] sm:$0xff] %v320_v5  ;;  %v324_v7 = vld [vmem:[%s276_s13 + $0x38] sm:$0xff]  ;;  %v326_v8 = vld [vmem:[%s276_s13 + $0x40] sm:$0xff] }
  0x19   : > { %323 = vst [vmem:[#allocation2 + $0x30] sm:$0xff] %v322_v6  ;;  %325 = vst [vmem:[#allocation2 + $0x38] sm:$0xff] %v324_v7  ;;  %v328_v9 = vld [vmem:[%s276_s13 + $0x48] sm:$0xff]  ;;  %v330_v10 = vld [vmem:[%s276_s13 + $0x50] sm:$0xff] }
  0x1a   : > { %327 = vst [vmem:[#allocation2 + $0x40] sm:$0xff] %v326_v8  ;;  %329 = vst [vmem:[#allocation2 + $0x48] sm:$0xff] %v328_v9 }
  0x1b   : > { %331 = vst [vmem:[#allocation2 + $0x50] sm:$0xff] %v330_v10 }
  0x1c   : > { %339 = vsyncadd [#allocation4], 1408 }
  0x1d   : > { %16294 = dma.done.wait [#allocation4], 1408 }
  0x1e   : > { %16295 = vsyncadd [#allocation4], 4294965888  ;;  %v16316_v11 = vmov 0   ;;  %v857_v12 = vld [vmem:[#allocation2 + $0x8] sm:$0xff]  ;;  %v856_v13 = vld [vmem:[#allocation2] sm:$0xff]  ;;  %vm429_vm0 = vcmask 1043456  }
  0x1f   : > { %510 = vmatprep.mubr.bf16.mxu0 %v16316_v11  ;;  %551 = vmatprep.mubr.bf16.mxu1 %v16316_v11  ;;  %v16443_v14 = vcombine.low %v857_v12, %v857_v12  ;;  %v16445_v15 = vcombine.low %v856_v13, %v856_v13  ;;  %v16447_v16 = vcombine.high %v856_v13, %v856_v13  ;;  %v858_v17 = vld [vmem:[#allocation2 + $0x10] sm:$0xff]  ;;  %v859_v18 = vld [vmem:[#allocation2 + $0x18] sm:$0xff]  ;;  %s16317_s2 = smov 127   ;;  %v376_v26 = vld [vmem:[%s20299_s0] sm:$0xf]  ;;  %vm425_vm1 = vcmask 64512  }
  0x20   : > { %16126 = vset.pattern.permute.xlu0 %v16316_v11  ;;  %v16449_v19 = vcombine.high %v857_v12, %v857_v12  ;;  %v16457_v20 = vcombine.low %v858_v17, %v858_v17  ;;  %v16459_v21 = vcombine.low %v859_v18, %v859_v18  ;;  %v16467_v24 = vcombine.high %v858_v17, %v858_v17  ;;  %v860_v27 = vld [vmem:[#allocation2 + $0x20] sm:$0xff]  ;;  %v861_v28 = vld [vmem:[#allocation2 + $0x28] sm:$0xff]  ;;  %v862_v36 = vld [vmem:[#allocation2 + $0x30] sm:$0xff]  ;;  %s16318_s27 = smov 126   ;;  %s16319_s28 = smov 110  }
  0x21   : > { %912 = vrot.lane.b32.xlu1 %v16443_v14, %s16317_s2  ;;  %908 = vrot.lane.b32.xlu0 %v16445_v15, %s16317_s2  ;;  %v431_v22 = vsel %vm429_vm0, %v16445_v15, 0  ;;  %v437_v23 = vsel %vm429_vm0, %v16443_v14, 0  ;;  %v16469_v25 = vcombine.high %v859_v18, %v859_v18  ;;  %v16493_v31 = vcombine.high %v860_v27, %v860_v27  ;;  %v863_v37 = vld [vmem:[#allocation2 + $0x38] sm:$0xff]  ;;  %v16143_v45 = vld [vmem:[#allocation2 + $0x40] ss:$0 sps:$4 sm:$0xff]   ;;  %s16320_s29 = smov 109  }
  0x22   : > { %15137 = vmatprep.subr.msk.bf16.mxu0 %vm429_vm0, %v16447_v16  ;;  %15139 = vmatprep.subr.msk.bf16.mxu1 %vm429_vm0, %v16449_v19  ;;  %v443_v29 = vsel %vm429_vm0, %v16457_v20, 0  ;;  %v449_v30 = vsel %vm429_vm0, %v16459_v21, 0  ;;  %v16495_v32 = vcombine.high %v861_v28, %v861_v28  ;;  %v16498_v33 = vcombine.low %v860_v27, %v860_v27  ;;  %v16144_v46 = vld [vmem:[#allocation2 + $0x40] ss:$0 sps:$4 sm:$0xff]   ;;  %v16621_v58 = vld [vmem:[%s20299_s0 + $0x4] sm:$0xf] }
  0x23   : > { %493 = vmatpush1.bf16.msra.mxu0 %v431_v22  ;;  %534 = vmatpush1.bf16.msra.mxu1 %v437_v23  ;;  %v16508_v34 = vcombine.low %v861_v28, %v861_v28  ;;  %v16521_v39 = vcombine.high %v862_v36, %v862_v36  ;;  %v16523_v40 = vcombine.high %v863_v37, %v863_v37  ;;  %v16145_v47 = vld [vmem:[#allocation2 + $0x40] ss:$0 sps:$4 sm:$0xff]   ;;  %vm942_vm2 = vcmask 1039360   ;;  %s16321_s15 = smov 108   ;;  %s16322_s19 = smov 92  }
  0x24   : > { %15141 = vmatprep.subr.msk.bf16.mxu0 %vm429_vm0, %v16467_v24  ;;  %15143 = vmatprep.subr.msk.bf16.mxu1 %vm429_vm0, %v16469_v25  ;;  %v455_v35 = vsel %vm429_vm0, %v16498_v33, 0  ;;  %v16526_v41 = vcombine.low %v862_v36, %v862_v36  ;;  %v16536_v42 = vcombine.low %v863_v37, %v863_v37  ;;  %v16146_v1 = vld [vmem:[#allocation2 + $0x40] ss:$0 sps:$4 sm:$0xff]   ;;  %vm1474_vm3 = vcmask 1031168   ;;  %s16323_s9 = smov 91   ;;  %s16324_s13 = smov 90  }
  0x25   : > { %914 = vrot.lane.b32.xlu1 %v16449_v19, %s16317_s2  ;;  %910 = vrot.lane.b32.xlu0 %v16447_v16, %s16317_s2  ;;  %v461_v38 = vsel %vm429_vm0, %v16508_v34, 0  ;;  %vm2006_vm4 = vcmask 900096   ;;  %vm2538_vm5 = vcmask 891904   ;;  %vm3070_vm6 = vcmask 883712   ;;  %s16325_s24 = smov 60   ;;  %p16045_p7 = scmp.ne.s32.totalorder %s16298_s21, 0 }
  0x26   : > { %15138 = vmatmul.mubr.msk.bf16.vlgmr.msra.gmra.mxu0 %vm425_vm1, %v376_v26  ;;  %15140 = vmatmul.mubr.msk.bf16.vlgmr.msra.gmra.mxu1 %vm425_vm1, %v376_v26  ;;  %v467_v43 = vsel %vm429_vm0, %v16526_v41, 0  ;;  %v473_v44 = vsel %vm429_vm0, %v16536_v42, 0  ;;  %vm3602_vm7 = vcmask 752640   ;;  %vm4134_vm8 = vcmask 744448  }
  0x27   : > { %575 = vmatpush1.bf16.msra.mxu0 %v443_v29  ;;  %592 = vmatprep.mubr.bf16.mxu0 %v16316_v11  ;;  %vm4666_vm9 = vcmask 736256   ;;  %vm5198_vm10 = vcmask 490496   ;;  %vm5730_vm11 = vcmask 482304   ;;  %vm6262_vm12 = vcmask 474112  }
  0x28   : > { %616 = vmatpush1.bf16.msra.mxu1 %v449_v30  ;;  %633 = vmatprep.mubr.bf16.mxu1 %v16316_v11  ;;  %vm6794_vm13 = vcmask 343040   ;;  %vm7326_vm14 = vcmask 334848   ;;  %vm7858_vm15 = vcmask 326656  }
  0x29   : > { %918 = vrot.lane.b32.xlu1 %v16467_v24, %s16317_s2  ;;  %916 = vrot.lane.b32.xlu0 %v16457_v20, %s16317_s2 }
  0x2a   : > { %15145 = vmatprep.subr.msk.bf16.mxu0 %vm429_vm0, %v16493_v31  ;;  %15147 = vmatprep.subr.msk.bf16.mxu1 %vm429_vm0, %v16495_v32 }
  0x2d   : > { %922 = vrot.lane.b32.xlu1 %v16469_v25, %s16317_s2  ;;  %920 = vrot.lane.b32.xlu0 %v16459_v21, %s16317_s2 }
  0x2e   : > { %15142 = vmatmul.mubr.msk.bf16.vlgmr.msra.gmra.mxu0 %vm425_vm1, %v376_v26  ;;  %15144 = vmatmul.mubr.msk.bf16.vlgmr.msra.gmra.mxu1 %vm425_vm1, %v376_v26 }
  0x2f   : > { %657 = vmatpush1.bf16.msra.mxu0 %v455_v35  ;;  %674 = vmatprep.mubr.bf16.mxu0 %v16316_v11 }
  0x30   : > { %698 = vmatpush1.bf16.msra.mxu1 %v461_v38  ;;  %715 = vmatprep.mubr.bf16.mxu1 %v16316_v11 }
  0x31   : > { %926 = vrot.lane.b32.xlu1 %v16493_v31, %s16317_s2  ;;  %924 = vrot.lane.b32.xlu0 %v16498_v33, %s16317_s2 }
  0x32   : > { %15149 = vmatprep.subr.msk.bf16.mxu0 %vm429_vm0, %v16521_v39  ;;  %15151 = vmatprep.subr.msk.bf16.mxu1 %vm429_vm0, %v16523_v40 }
  0x35   : > { %930 = vrot.lane.b32.xlu1 %v16495_v32, %s16317_s2  ;;  %928 = vrot.lane.b32.xlu0 %v16508_v34, %s16317_s2 }
  0x36   : > { %15146 = vmatmul.mubr.msk.bf16.vlgmr.msra.gmra.mxu0 %vm425_vm1, %v376_v26  ;;  %15148 = vmatmul.mubr.msk.bf16.vlgmr.msra.gmra.mxu1 %vm425_vm1, %v376_v26 }
  0x37   : > { %739 = vmatpush1.bf16.msra.mxu0 %v467_v43  ;;  %756 = vmatprep.mubr.bf16.mxu0 %v16316_v11 }
  0x38   : > { %780 = vmatpush1.bf16.msra.mxu1 %v473_v44  ;;  %797 = vmatprep.mubr.bf16.mxu1 %v16316_v11 }
  0x39   : > { %934 = vrot.lane.b32.xlu1 %v16521_v39, %s16317_s2  ;;  %932 = vrot.lane.b32.xlu0 %v16526_v41, %s16317_s2 }
  0x3d   : > { %938 = vrot.lane.b32.xlu1 %v16523_v40, %s16317_s2  ;;  %936 = vrot.lane.b32.xlu0 %v16536_v42, %s16317_s2 }
  0x3e   : > { %15150 = vmatmul.mubr.msk.bf16.vlgmr.msra.gmra.mxu0 %vm425_vm1, %v376_v26  ;;  %15152 = vmatmul.mubr.msk.bf16.vlgmr.msra.gmra.mxu1 %vm425_vm1, %v376_v26 }
  0x3f   : > { %1042 = vmatprep.mubr.bf16.mxu0 %v16316_v11  ;;  %1083 = vmatprep.mubr.bf16.mxu1 %v16316_v11 }
  0x41   : > { %1440 = vrot.lane.b32.xlu1 %v16445_v15, %s16318_s27  ;;  %940 = vrot.lane.b32.xlu0 %v16143_v45, %s16317_s2 }
  0x45   : > { %1444 = vrot.lane.b32.xlu1 %v16443_v14, %s16318_s27  ;;  %1442 = vrot.lane.b32.xlu0 %v16447_v16, %s16318_s27 }
  0x49   : > { %1448 = vrot.lane.b32.xlu1 %v16457_v20, %s16318_s27  ;;  %1446 = vrot.lane.b32.xlu0 %v16449_v19, %s16318_s27 }
  0x4d   : > { %1452 = vrot.lane.b32.xlu1 %v16459_v21, %s16318_s27  ;;  %1450 = vrot.lane.b32.xlu0 %v16467_v24, %s16318_s27 }
  0x51   : > { %1456 = vrot.lane.b32.xlu1 %v16498_v33, %s16318_s27  ;;  %1454 = vrot.lane.b32.xlu0 %v16469_v25, %s16318_s27 }
  0x55   : > { %1460 = vrot.lane.b32.xlu1 %v16508_v34, %s16318_s27  ;;  %1458 = vrot.lane.b32.xlu0 %v16493_v31, %s16318_s27 }
  0x59   : > { %1464 = vrot.lane.b32.xlu1 %v16526_v41, %s16318_s27  ;;  %1462 = vrot.lane.b32.xlu0 %v16495_v32, %s16318_s27 }
  0x5d   : > { %1468 = vrot.lane.b32.xlu1 %v16536_v42, %s16318_s27  ;;  %1466 = vrot.lane.b32.xlu0 %v16521_v39, %s16318_s27 }
  0x61   : > { %1472 = vrot.lane.b32.xlu1 %v16144_v46, %s16318_s27  ;;  %1470 = vrot.lane.b32.xlu0 %v16523_v40, %s16318_s27 }
  0x65   : > { %1974 = vrot.lane.b32.xlu1 %v16447_v16, %s16319_s28  ;;  %1972 = vrot.lane.b32.xlu0 %v16445_v15, %s16319_s28 }
  0x69   : > { %1978 = vrot.lane.b32.xlu1 %v16449_v19, %s16319_s28  ;;  %1976 = vrot.lane.b32.xlu0 %v16443_v14, %s16319_s28 }
  0x6d   : > { %1982 = vrot.lane.b32.xlu1 %v16467_v24, %s16319_s28  ;;  %1980 = vrot.lane.b32.xlu0 %v16457_v20, %s16319_s28 }
  0x71   : > { %1986 = vrot.lane.b32.xlu1 %v16469_v25, %s16319_s28  ;;  %1984 = vrot.lane.b32.xlu0 %v16459_v21, %s16319_s28 }
  0x75   : > { %1990 = vrot.lane.b32.xlu1 %v16493_v31, %s16319_s28  ;;  %1988 = vrot.lane.b32.xlu0 %v16498_v33, %s16319_s28 }
  0x79   : > { %1994 = vrot.lane.b32.xlu1 %v16495_v32, %s16319_s28  ;;  %1992 = vrot.lane.b32.xlu0 %v16508_v34, %s16319_s28 }
  0x7d   : > { %1998 = vrot.lane.b32.xlu1 %v16521_v39, %s16319_s28  ;;  %1996 = vrot.lane.b32.xlu0 %v16526_v41, %s16319_s28 }
  0x81   : > { %2002 = vrot.lane.b32.xlu1 %v16523_v40, %s16319_s28  ;;  %2000 = vrot.lane.b32.xlu0 %v16536_v42, %s16319_s28 }
  0x85   : > { %2504 = vrot.lane.b32.xlu1 %v16445_v15, %s16320_s29  ;;  %2004 = vrot.lane.b32.xlu0 %v16145_v47, %s16319_s28 }
  0x89   : > { %2508 = vrot.lane.b32.xlu1 %v16443_v14, %s16320_s29  ;;  %2506 = vrot.lane.b32.xlu0 %v16447_v16, %s16320_s29 }
  0x8d   : > { %2512 = vrot.lane.b32.xlu1 %v16457_v20, %s16320_s29  ;;  %2510 = vrot.lane.b32.xlu0 %v16449_v19, %s16320_s29 }
  0x91   : > { %2516 = vrot.lane.b32.xlu1 %v16459_v21, %s16320_s29  ;;  %2514 = vrot.lane.b32.xlu0 %v16467_v24, %s16320_s29 }
  0x93   : > { %v913_v48 = vpop.permute.xlu1 %912  ;;  %v909_v49 = vpop.permute.xlu0 %908 }
  0x95   : > { %2520 = vrot.lane.b32.xlu1 %v16498_v33, %s16320_s29  ;;  %2518 = vrot.lane.b32.xlu0 %v16469_v25, %s16320_s29 }
  0x97   : > { %v915_v50 = vpop.permute.xlu1 %914  ;;  %v911_v51 = vpop.permute.xlu0 %910 }
  0x98   : > { %v943_v52 = vsel %vm942_vm2, %v909_v49, %v911_v51  ;;  %v944_v53 = vsel %vm942_vm2, %v911_v51, %v913_v48  ;;  %v945_v55 = vsel %vm942_vm2, %v913_v48, %v915_v50 }
  0x99   : > { %2524 = vrot.lane.b32.xlu1 %v16508_v34, %s16320_s29  ;;  %2522 = vrot.lane.b32.xlu0 %v16493_v31, %s16320_s29  ;;  %v963_v54 = vsel %vm429_vm0, %v943_v52, 0  ;;  %v969_v60 = vsel %vm429_vm0, %v945_v55, 0  ;;  %v16711_v52 = vld [vmem:[%s20299_s0 + $0x8] sm:$0xf] }
  0x9a   : > { %15171 = vmatprep.subr.msk.bf16.mxu0 %vm429_vm0, %v944_v53 }
  0x9b   : > { %1025 = vmatpush1.bf16.msra.mxu0 %v963_v54  ;;  %v919_v56 = vpop.permute.xlu1 %918  ;;  %v917_v57 = vpop.permute.xlu0 %916 }
  0x9c   : > { %v946_v59 = vsel %vm942_vm2, %v915_v50, %v917_v57  ;;  %v947_v61 = vsel %vm942_vm2, %v917_v57, %v919_v56 }
  0x9d   : > { %2528 = vrot.lane.b32.xlu1 %v16526_v41, %s16320_s29  ;;  %2526 = vrot.lane.b32.xlu0 %v16495_v32, %s16320_s29  ;;  %v975_v2 = vsel %vm429_vm0, %v947_v61, 0 }
  0x9e   : > { %15172 = vmatmul.mubr.msk.bf16.vlgmr.msra.gmra.mxu0 %vm425_vm1, %v16621_v58  ;;  %15173 = vmatprep.subr.msk.bf16.mxu1 %vm429_vm0, %v946_v59 }
  0x9f   : > { %1066 = vmatpush1.bf16.msra.mxu1 %v969_v60  ;;  %v923_v62 = vpop.permute.xlu1 %922  ;;  %v921_v63 = vpop.permute.xlu0 %920  ;;  %1124 = vmatprep.mubr.bf16.mxu0 %v16316_v11 }
  0xa0   : > { %v948_v0 = vsel %vm942_vm2, %v919_v56, %v921_v63  ;;  %v949_v3 = vsel %vm942_vm2, %v921_v63, %v923_v62 }
  0xa1   : > { %2532 = vrot.lane.b32.xlu1 %v16536_v42, %s16320_s29  ;;  %2530 = vrot.lane.b32.xlu0 %v16521_v39, %s16320_s29  ;;  %v981_v7 = vsel %vm429_vm0, %v949_v3, 0 }
  0xa2   : > { %15174 = vmatmul.mubr.msk.bf16.vlgmr.msra.gmra.mxu1 %vm425_vm1, %v16621_v58  ;;  %15175 = vmatprep.subr.msk.bf16.mxu0 %vm429_vm0, %v948_v0 }
  0xa3   : > { %1107 = vmatpush1.bf16.msra.mxu0 %v975_v2  ;;  %v927_v4 = vpop.permute.xlu1 %926  ;;  %v925_v5 = vpop.permute.xlu0 %924  ;;  %1165 = vmatprep.mubr.bf16.mxu1 %v16316_v11  ;;  %v16147_v2 = vld [vmem:[#allocation2 + $0x40] ss:$0 sps:$4 sm:$0xff]  }
  0xa4   : > { %v950_v6 = vsel %vm942_vm2, %v923_v62, %v925_v5  ;;  %v951_v8 = vsel %vm942_vm2, %v925_v5, %v927_v4 }
  0xa5   : > { %2536 = vrot.lane.b32.xlu1 %v16146_v1, %s16320_s29  ;;  %2534 = vrot.lane.b32.xlu0 %v16523_v40, %s16320_s29  ;;  %v987_v13 = vsel %vm429_vm0, %v951_v8, 0  ;;  %s16326_s29 = smov 59  }
  0xa6   : > { %15176 = vmatmul.mubr.msk.bf16.vlgmr.msra.gmra.mxu0 %vm425_vm1, %v16621_v58  ;;  %15177 = vmatprep.subr.msk.bf16.mxu1 %vm429_vm0, %v950_v6 }
  0xa7   : > { %1148 = vmatpush1.bf16.msra.mxu1 %v981_v7  ;;  %v931_v9 = vpop.permute.xlu1 %930  ;;  %v929_v10 = vpop.permute.xlu0 %928  ;;  %1206 = vmatprep.mubr.bf16.mxu0 %v16316_v11 }
  0xa8   : > { %v952_v12 = vsel %vm942_vm2, %v927_v4, %v929_v10  ;;  %v953_v17 = vsel %vm942_vm2, %v929_v10, %v931_v9 }
  0xa9   : > { %3038 = vrot.lane.b32.xlu1 %v16447_v16, %s16321_s15  ;;  %3036 = vrot.lane.b32.xlu0 %v16445_v15, %s16321_s15  ;;  %v993_v26 = vsel %vm429_vm0, %v953_v17, 0 }
  0xaa   : > { %15178 = vmatmul.mubr.msk.bf16.vlgmr.msra.gmra.mxu1 %vm425_vm1, %v16621_v58  ;;  %15179 = vmatprep.subr.msk.bf16.mxu0 %vm429_vm0, %v952_v12 }
  0xab   : > { %1189 = vmatpush1.bf16.msra.mxu0 %v987_v13  ;;  %v935_v18 = vpop.permute.xlu1 %934  ;;  %v933_v22 = vpop.permute.xlu0 %932  ;;  %1247 = vmatprep.mubr.bf16.mxu1 %v16316_v11 }
  0xac   : > { %v954_v23 = vsel %vm942_vm2, %v931_v9, %v933_v22  ;;  %v955_v27 = vsel %vm942_vm2, %v933_v22, %v935_v18 }
  0xad   : > { %3042 = vrot.lane.b32.xlu1 %v16449_v19, %s16321_s15  ;;  %3040 = vrot.lane.b32.xlu0 %v16443_v14, %s16321_s15  ;;  %v999_v35 = vsel %vm429_vm0, %v955_v27, 0 }
  0xae   : > { %15180 = vmatmul.mubr.msk.bf16.vlgmr.msra.gmra.mxu0 %vm425_vm1, %v16621_v58  ;;  %15181 = vmatprep.subr.msk.bf16.mxu1 %vm429_vm0, %v954_v23 }
  0xaf   : > { %1230 = vmatpush1.bf16.msra.mxu1 %v993_v26  ;;  %v939_v28 = vpop.permute.xlu1 %938  ;;  %v937_v29 = vpop.permute.xlu0 %936  ;;  %1288 = vmatprep.mubr.bf16.mxu0 %v16316_v11 }
  0xb0   : > { %v956_v30 = vsel %vm942_vm2, %v935_v18, %v937_v29  ;;  %v957_v36 = vsel %vm942_vm2, %v937_v29, %v939_v28 }
  0xb1   : > { %3046 = vrot.lane.b32.xlu1 %v16467_v24, %s16321_s15  ;;  %3044 = vrot.lane.b32.xlu0 %v16457_v20, %s16321_s15  ;;  %v1005_v44 = vsel %vm429_vm0, %v957_v36, 0 }
  0xb2   : > { %15182 = vmatmul.mubr.msk.bf16.vlgmr.msra.gmra.mxu1 %vm425_vm1, %v16621_v58  ;;  %15183 = vmatprep.subr.msk.bf16.mxu0 %vm429_vm0, %v956_v30 }
  0xb3   : > { %1271 = vmatpush1.bf16.msra.mxu0 %v999_v35  ;;  %v1441_v37 = vpop.permute.xlu1 %1440  ;;  %v941_v38 = vpop.permute.xlu0 %940  ;;  %1329 = vmatprep.mubr.bf16.mxu1 %v16316_v11 }
  0xb4   : > { %v958_v43 = vsel %vm942_vm2, %v939_v28, %v941_v38  ;;  %vm8390_vm2 = vcmask 195584  }
  0xb5   : > { %3050 = vrot.lane.b32.xlu1 %v16469_v25, %s16321_s15  ;;  %3048 = vrot.lane.b32.xlu0 %v16459_v21, %s16321_s15 }
  0xb6   : > { %15184 = vmatmul.mubr.msk.bf16.vlgmr.msra.gmra.mxu0 %vm425_vm1, %v16621_v58  ;;  %15185 = vmatprep.subr.msk.bf16.mxu1 %vm429_vm0, %v958_v43 }
  0xb7   : > { %1312 = vmatpush1.bf16.msra.mxu1 %v1005_v44  ;;  %v1445_v45 = vpop.permute.xlu1 %1444  ;;  %v1443_v46 = vpop.permute.xlu0 %1442  ;;  %1574 = vmatprep.mubr.bf16.mxu0 %v16316_v11 }
  0xb8   : > { %v1475_v47 = vsel %vm1474_vm3, %v1441_v37, %v1443_v46  ;;  %v1476_v48 = vsel %vm1474_vm3, %v1443_v46, %v1445_v45  ;;  %v16809_v37 = vld [vmem:[%s20299_s0 + $0xc] sm:$0xf]  ;;  %v4048_v46 = vld [vmem:[#allocation2] sm:$0xff] }
  0xb9   : > { %3054 = vrot.lane.b32.xlu1 %v16493_v31, %s16321_s15  ;;  %3052 = vrot.lane.b32.xlu0 %v16498_v33, %s16321_s15  ;;  %v1495_v49 = vsel %vm429_vm0, %v1475_v47, 0 }
  0xba   : > { %15186 = vmatmul.mubr.msk.bf16.vlgmr.msra.gmra.mxu1 %vm425_vm1, %v16621_v58  ;;  %15205 = vmatprep.subr.msk.bf16.mxu0 %vm429_vm0, %v1476_v48 }
  0xbb   : > { %1557 = vmatpush1.bf16.msra.mxu0 %v1495_v49  ;;  %v1449_v50 = vpop.permute.xlu1 %1448  ;;  %v1447_v51 = vpop.permute.xlu0 %1446  ;;  %1615 = vmatprep.mubr.bf16.mxu1 %v16316_v11 }
  0xbc   : > { %v1477_v53 = vsel %vm1474_vm3, %v1445_v45, %v1447_v51  ;;  %v1478_v54 = vsel %vm1474_vm3, %v1447_v51, %v1449_v50  ;;  %v16841_v51 = vcombine.high %v4048_v46, %v4048_v46 }
  0xbd   : > { %3058 = vrot.lane.b32.xlu1 %v16495_v32, %s16321_s15  ;;  %3056 = vrot.lane.b32.xlu0 %v16508_v34, %s16321_s15  ;;  %v1501_v55 = vsel %vm429_vm0, %v1477_v53, 0 }
  0xbe   : > { %15206 = vmatmul.mubr.msk.bf16.vlgmr.msra.gmra.mxu0 %vm425_vm1, %v16711_v52  ;;  %15207 = vmatprep.subr.msk.bf16.mxu1 %vm429_vm0, %v1478_v54  ;;  %v4049_v54 = vld [vmem:[#allocation2 + $0x8] sm:$0xff] }
  0xbf   : > { %1598 = vmatpush1.bf16.msra.mxu1 %v1501_v55  ;;  %v1453_v56 = vpop.permute.xlu1 %1452  ;;  %v1451_v57 = vpop.permute.xlu0 %1450  ;;  %1656 = vmatprep.mubr.bf16.mxu0 %v16316_v11 }
  0xc0   : > { %v1479_v58 = vsel %vm1474_vm3, %v1449_v50, %v1451_v57  ;;  %v1480_v59 = vsel %vm1474_vm3, %v1451_v57, %v1453_v56 }
  0xc1   : > { %3062 = vrot.lane.b32.xlu1 %v16521_v39, %s16321_s15  ;;  %3060 = vrot.lane.b32.xlu0 %v16526_v41, %s16321_s15  ;;  %v1507_v60 = vsel %vm429_vm0, %v1479_v58, 0 }
  0xc2   : > { %15208 = vmatmul.mubr.msk.bf16.vlgmr.msra.gmra.mxu1 %vm425_vm1, %v16711_v52  ;;  %15209 = vmatprep.subr.msk.bf16.mxu0 %vm429_vm0, %v1480_v59 }
  0xc3   : > { %1639 = vmatpush1.bf16.msra.mxu0 %v1507_v60  ;;  %v1457_v61 = vpop.permute.xlu1 %1456  ;;  %v1455_v62 = vpop.permute.xlu0 %1454  ;;  %1697 = vmatprep.mubr.bf16.mxu1 %v16316_v11 }
  0xc4   : > { %v1481_v63 = vsel %vm1474_vm3, %v1453_v56, %v1455_v62  ;;  %v1482_v0 = vsel %vm1474_vm3, %v1455_v62, %v1457_v61  ;;  %v16860_v62 = vcombine.high %v4049_v54, %v4049_v54 }
  0xc5   : > { %3066 = vrot.lane.b32.xlu1 %v16523_v40, %s16321_s15  ;;  %3064 = vrot.lane.b32.xlu0 %v16536_v42, %s16321_s15  ;;  %v1513_v1 = vsel %vm429_vm0, %v1481_v63, 0  ;;  %v16862_v63 = vcombine.low %v4049_v54, %v4049_v54 }
  0xc6   : > { %15210 = vmatmul.mubr.msk.bf16.vlgmr.msra.gmra.mxu0 %vm425_vm1, %v16711_v52  ;;  %15211 = vmatprep.subr.msk.bf16.mxu1 %vm429_vm0, %v1482_v0 }
  0xc7   : > { %1680 = vmatpush1.bf16.msra.mxu1 %v1513_v1  ;;  %v1461_v3 = vpop.permute.xlu1 %1460  ;;  %v1459_v4 = vpop.permute.xlu0 %1458  ;;  %1738 = vmatprep.mubr.bf16.mxu0 %v16316_v11  ;;  %v4050_v1 = vld [vmem:[#allocation2 + $0x10] sm:$0xff] }
  0xc8   : > { %v1483_v5 = vsel %vm1474_vm3, %v1457_v61, %v1459_v4  ;;  %v1484_v6 = vsel %vm1474_vm3, %v1459_v4, %v1461_v3 }
  0xc9   : > { %3568 = vrot.lane.b32.xlu1 %v16445_v15, %s16322_s19  ;;  %3068 = vrot.lane.b32.xlu0 %v16147_v2, %s16321_s15  ;;  %v1519_v7 = vsel %vm429_vm0, %v1483_v5, 0  ;;  %s16327_s15 = smov 58  }
  0xca   : > { %15212 = vmatmul.mubr.msk.bf16.vlgmr.msra.gmra.mxu1 %vm425_vm1, %v16711_v52  ;;  %15213 = vmatprep.subr.msk.bf16.mxu0 %vm429_vm0, %v1484_v6 }
  0xcb   : > { %1721 = vmatpush1.bf16.msra.mxu0 %v1519_v7  ;;  %v1465_v8 = vpop.permute.xlu1 %1464  ;;  %v1463_v9 = vpop.permute.xlu0 %1462  ;;  %1779 = vmatprep.mubr.bf16.mxu1 %v16316_v11 }
  0xcc   : > { %v1485_v10 = vsel %vm1474_vm3, %v1461_v3, %v1463_v9  ;;  %v1486_v12 = vsel %vm1474_vm3, %v1463_v9, %v1465_v8 }
  0xcd   : > { %3572 = vrot.lane.b32.xlu1 %v16443_v14, %s16322_s19  ;;  %3570 = vrot.lane.b32.xlu0 %v16447_v16, %s16322_s19  ;;  %v1525_v15 = vsel %vm429_vm0, %v1485_v10, 0  ;;  %v16879_v10 = vcombine.high %v4050_v1, %v4050_v1 }
  0xce   : > { %15214 = vmatmul.mubr.msk.bf16.vlgmr.msra.gmra.mxu0 %vm425_vm1, %v16711_v52  ;;  %15215 = vmatprep.subr.msk.bf16.mxu1 %vm429_vm0, %v1486_v12  ;;  %v16881_v12 = vcombine.low %v4050_v1, %v4050_v1 }
  0xcf   : > { %1762 = vmatpush1.bf16.msra.mxu1 %v1525_v15  ;;  %v1469_v13 = vpop.permute.xlu1 %1468  ;;  %v1467_v17 = vpop.permute.xlu0 %1466  ;;  %1820 = vmatprep.mubr.bf16.mxu0 %v16316_v11 }
  0xd0   : > { %v1487_v18 = vsel %vm1474_vm3, %v1465_v8, %v1467_v17  ;;  %v1488_v22 = vsel %vm1474_vm3, %v1467_v17, %v1469_v13 }
  0xd1   : > { %3576 = vrot.lane.b32.xlu1 %v16457_v20, %s16322_s19  ;;  %3574 = vrot.lane.b32.xlu0 %v16449_v19, %s16322_s19  ;;  %v1531_v14 = vsel %vm429_vm0, %v1487_v18, 0 }
  0xd2   : > { %15216 = vmatmul.mubr.msk.bf16.vlgmr.msra.gmra.mxu1 %vm425_vm1, %v16711_v52  ;;  %15217 = vmatprep.subr.msk.bf16.mxu0 %vm429_vm0, %v1488_v22 }
  0xd3   : > { %1803 = vmatpush1.bf16.msra.mxu0 %v1531_v14  ;;  %v1473_v16 = vpop.permute.xlu1 %1472  ;;  %v1471_v23 = vpop.permute.xlu0 %1470  ;;  %1861 = vmatprep.mubr.bf16.mxu1 %v16316_v11 }
  0xd4   : > { %v1489_v26 = vsel %vm1474_vm3, %v1469_v13, %v1471_v23  ;;  %v1490_v27 = vsel %vm1474_vm3, %v1471_v23, %v1473_v16  ;;  %v4051_v13 = vld [vmem:[#allocation2 + $0x18] sm:$0xff]  ;;  %vm8922_vm3 = vcmask 187392  }
  0xd5   : > { %3580 = vrot.lane.b32.xlu1 %v16459_v21, %s16322_s19  ;;  %3578 = vrot.lane.b32.xlu0 %v16467_v24, %s16322_s19  ;;  %v1537_v19 = vsel %vm429_vm0, %v1489_v26, 0 }
  0xd6   : > { %15218 = vmatmul.mubr.msk.bf16.vlgmr.msra.gmra.mxu0 %vm425_vm1, %v16711_v52  ;;  %15219 = vmatprep.subr.msk.bf16.mxu1 %vm429_vm0, %v1490_v27 }
  0xd7   : > { %1844 = vmatpush1.bf16.msra.mxu1 %v1537_v19  ;;  %v1975_v20 = vpop.permute.xlu1 %1974  ;;  %v1973_v28 = vpop.permute.xlu0 %1972  ;;  %2106 = vmatprep.mubr.bf16.mxu0 %v16316_v11  ;;  %v16898_v19 = vcombine.high %v4051_v13, %v4051_v13 }
  0xd8   : > { %v2007_v21 = vsel %vm2006_vm4, %v1973_v28, %v1975_v20 }
  0xd9   : > { %3584 = vrot.lane.b32.xlu1 %v16498_v33, %s16322_s19  ;;  %3582 = vrot.lane.b32.xlu0 %v16469_v25, %s16322_s19  ;;  %v2027_v33 = vsel %vm429_vm0, %v2007_v21, 0  ;;  %v4052_v21 = vld [vmem:[#allocation2 + $0x20] sm:$0xff] }
  0xda   : > { %15220 = vmatmul.mubr.msk.bf16.vlgmr.msra.gmra.mxu1 %vm425_vm1, %v16711_v52  ;;  %v16843_v52 = vcombine.low %v4048_v46, %v4048_v46 }
  0xdb   : > { %v1979_v24 = vpop.permute.xlu1 %1978  ;;  %v1977_v29 = vpop.permute.xlu0 %1976  ;;  %2147 = vmatprep.mubr.bf16.mxu1 %v16316_v11 }
  0xdc   : > { %v2008_v30 = vsel %vm2006_vm4, %v1975_v20, %v1977_v29  ;;  %v2009_v25 = vsel %vm2006_vm4, %v1977_v29, %v1979_v24  ;;  %v16900_v20 = vcombine.low %v4051_v13, %v4051_v13 }
  0xdd   : > { %3588 = vrot.lane.b32.xlu1 %v16508_v34, %s16322_s19  ;;  %3586 = vrot.lane.b32.xlu0 %v16493_v31, %s16322_s19  ;;  %v2033_v31 = vsel %vm429_vm0, %v2009_v25, 0 }
  0xde   : > { %15239 = vmatprep.subr.msk.bf16.mxu0 %vm429_vm0, %v2008_v30 }
  0xdf   : > { %2089 = vmatpush1.bf16.msra.mxu0 %v2027_v33  ;;  %v1983_v35 = vpop.permute.xlu1 %1982  ;;  %v1981_v36 = vpop.permute.xlu0 %1980 }
  0xe0   : > { %v2010_v38 = vsel %vm2006_vm4, %v1979_v24, %v1981_v36  ;;  %v2011_v34 = vsel %vm2006_vm4, %v1981_v36, %v1983_v35 }
  0xe1   : > { %3592 = vrot.lane.b32.xlu1 %v16526_v41, %s16322_s19  ;;  %3590 = vrot.lane.b32.xlu0 %v16495_v32, %s16322_s19  ;;  %v16148_v32 = vld [vmem:[#allocation2 + $0x40] ss:$0 sps:$4 sm:$0xff]   ;;  %v2039_v41 = vsel %vm429_vm0, %v2011_v34, 0  ;;  %v16919_v34 = vcombine.low %v4052_v21, %v4052_v21 }
  0xe2   : > { %15240 = vmatmul.mubr.msk.bf16.vlgmr.msra.gmra.mxu0 %vm425_vm1, %v16809_v37  ;;  %15241 = vmatprep.subr.msk.bf16.mxu1 %vm429_vm0, %v2010_v38 }
  0xe3   : > { %2130 = vmatpush1.bf16.msra.mxu1 %v2033_v31  ;;  %v1987_v43 = vpop.permute.xlu1 %1986  ;;  %v1985_v44 = vpop.permute.xlu0 %1984  ;;  %2188 = vmatprep.mubr.bf16.mxu0 %v16316_v11  ;;  %v16917_v31 = vcombine.high %v4052_v21, %v4052_v21 }
  0xe4   : > { %v2012_v45 = vsel %vm2006_vm4, %v1983_v35, %v1985_v44  ;;  %v2013_v47 = vsel %vm2006_vm4, %v1985_v44, %v1987_v43  ;;  %v4053_v44 = vld [vmem:[#allocation2 + $0x28] sm:$0xff] }
  0xe5   : > { %3596 = vrot.lane.b32.xlu1 %v16536_v42, %s16322_s19  ;;  %3594 = vrot.lane.b32.xlu0 %v16521_v39, %s16322_s19  ;;  %v2045_v53 = vsel %vm429_vm0, %v2013_v47, 0  ;;  %v16937_v54 = vcombine.high %v4053_v44, %v4053_v44 }
  0xe6   : > { %15242 = vmatmul.mubr.msk.bf16.vlgmr.msra.gmra.mxu1 %vm425_vm1, %v16809_v37  ;;  %15243 = vmatprep.subr.msk.bf16.mxu0 %vm429_vm0, %v2012_v45  ;;  %v16834_v50 = vpop.f32.mrf.mxu0  ;;  %v16836_v39 = vpop.f32.mrf.mxu1 }
  0xe7   : > { %2171 = vmatpush1.bf16.msra.mxu0 %v2039_v41  ;;  %v1991_v48 = vpop.permute.xlu1 %1990  ;;  %v1989_v49 = vpop.permute.xlu0 %1988  ;;  %2229 = vmatprep.mubr.bf16.mxu1 %v16316_v11 }
  0xe8   : > { %v2014_v42 = vsel %vm2006_vm4, %v1987_v43, %v1989_v49  ;;  %v16849_v55 = vpop.f32.mrf.mxu0  ;;  %v16851_v56 = vpop.f32.mrf.mxu1  ;;  %v2015_v57 = vsel %vm2006_vm4, %v1989_v49, %v1991_v48 }
  0xe9   : > { %3600 = vrot.lane.b32.xlu1 %v16148_v32, %s16322_s19  ;;  %3598 = vrot.lane.b32.xlu0 %v16523_v40, %s16322_s19  ;;  %v2051_v0 = vsel %vm429_vm0, %v2015_v57, 0  ;;  %v16939_v57 = vcombine.low %v4053_v44, %v4053_v44  ;;  %s16328_s19 = smov 42  }
  0xea   : > { %15244 = vmatmul.mubr.msk.bf16.vlgmr.msra.gmra.mxu0 %vm425_vm1, %v16809_v37  ;;  %15245 = vmatprep.subr.msk.bf16.mxu1 %vm429_vm0, %v2014_v42  ;;  %v516_v60 = vpop.f32.mrf.mxu0  ;;  %v557_v61 = vpop.f32.mrf.mxu1 }
  0xeb   : > { %2212 = vmatpush1.bf16.msra.mxu1 %v2045_v53  ;;  %v1995_v40 = vpop.permute.xlu1 %1994  ;;  %v1993_v58 = vpop.permute.xlu0 %1992  ;;  %2270 = vmatprep.mubr.bf16.mxu0 %v16316_v11 }
  0xec   : > { %v2016_v59 = vsel %vm2006_vm4, %v1991_v48, %v1993_v58  ;;  %v517_v2 = vpop.f32.mrf.mxu0  ;;  %v558_v3 = vpop.f32.mrf.mxu1  ;;  %v2017_v4 = vsel %vm2006_vm4, %v1993_v58, %v1995_v40 }
  0xed   : > { %4102 = vrot.lane.b32.xlu1 %v16841_v51, %s16323_s9  ;;  %4100 = vrot.lane.b32.xlu0 %v16843_v52, %s16323_s9  ;;  %v2057_v15 = vsel %vm429_vm0, %v2017_v4, 0 }
  0xee   : > { %15246 = vmatmul.mubr.msk.bf16.vlgmr.msra.gmra.mxu1 %vm425_vm1, %v16809_v37  ;;  %15247 = vmatprep.subr.msk.bf16.mxu0 %vm429_vm0, %v2016_v59  ;;  %v16871_v8 = vpop.f32.mrf.mxu0  ;;  %v16873_v9 = vpop.f32.mrf.mxu1 }
  0xef   : > { %2253 = vmatpush1.bf16.msra.mxu0 %v2051_v0  ;;  %v1999_v5 = vpop.permute.xlu1 %1998  ;;  %v1997_v6 = vpop.permute.xlu0 %1996  ;;  %2311 = vmatprep.mubr.bf16.mxu1 %v16316_v11  ;;  %v16947_v0 = vld [vmem:[%s20299_s0 + $0x10] sm:$0xf] }
  0xf0   : > { %v2018_v7 = vsel %vm2006_vm4, %v1995_v40, %v1997_v6  ;;  %v16887_v17 = vpop.f32.mrf.mxu0  ;;  %v16889_v18 = vpop.f32.mrf.mxu1  ;;  %v2019_v22 = vsel %vm2006_vm4, %v1997_v6, %v1999_v5  ;;  %v4054_v40 = vld [vmem:[#allocation2 + $0x30] sm:$0xff] }
  0xf1   : > { %4106 = vrot.lane.b32.xlu1 %v16860_v62, %s16323_s9  ;;  %4104 = vrot.lane.b32.xlu0 %v16862_v63, %s16323_s9  ;;  %v2063_v28 = vsel %vm429_vm0, %v2019_v22, 0  ;;  %v16963_v6 = vcombine.low %v4054_v40, %v4054_v40 }
  0xf2   : > { %15248 = vmatmul.mubr.msk.bf16.vlgmr.msra.gmra.mxu0 %vm425_vm1, %v16809_v37  ;;  %15249 = vmatprep.subr.msk.bf16.mxu1 %vm429_vm0, %v2018_v7  ;;  %v598_v26 = vpop.f32.mrf.mxu0  ;;  %v639_v27 = vpop.f32.mrf.mxu1  ;;  %v4055_v7 = vld [vmem:[#allocation2 + $0x38] sm:$0xff] }
  0xf3   : > { %2294 = vmatpush1.bf16.msra.mxu1 %v2057_v15  ;;  %v2003_v14 = vpop.permute.xlu1 %2002  ;;  %v2001_v16 = vpop.permute.xlu0 %2000  ;;  %2352 = vmatprep.mubr.bf16.mxu0 %v16316_v11  ;;  %v16980_v21 = vcombine.high %v4055_v7, %v4055_v7 }
  0xf4   : > { %v2020_v23 = vsel %vm2006_vm4, %v1999_v5, %v2001_v16  ;;  %v599_v24 = vpop.f32.mrf.mxu0  ;;  %v640_v29 = vpop.f32.mrf.mxu1  ;;  %v2021_v30 = vsel %vm2006_vm4, %v2001_v16, %v2003_v14  ;;  %v16961_v5 = vcombine.high %v4054_v40, %v4054_v40 }
  0xf5   : > { %4110 = vrot.lane.b32.xlu1 %v16879_v10, %s16323_s9  ;;  %4108 = vrot.lane.b32.xlu0 %v16881_v12, %s16323_s9  ;;  %v2069_v43 = vsel %vm429_vm0, %v2021_v30, 0  ;;  %v16982_v24 = vcombine.low %v4055_v7, %v4055_v7 }
  0xf6   : > { %15250 = vmatmul.mubr.msk.bf16.vlgmr.msra.gmra.mxu1 %vm425_vm1, %v16809_v37  ;;  %15251 = vmatprep.subr.msk.bf16.mxu0 %vm429_vm0, %v2020_v23  ;;  %v16909_v36 = vpop.f32.mrf.mxu0  ;;  %v16911_v38 = vpop.f32.mrf.mxu1 }
  0xf7   : > { %2335 = vmatpush1.bf16.msra.mxu0 %v2063_v28  ;;  %v2505_v33 = vpop.permute.xlu1 %2504  ;;  %v2005_v25 = vpop.permute.xlu0 %2004  ;;  %2393 = vmatprep.mubr.bf16.mxu1 %v16316_v11 }
  0xf8   : > { %v2022_v35 = vsel %vm2006_vm4, %v2003_v14, %v2005_v25  ;;  %v16925_v45 = vpop.f32.mrf.mxu0  ;;  %v16927_v32 = vpop.f32.mrf.mxu1  ;;  %vm9454_vm4 = vcmask 179200  }
  0xf9   : > { %4114 = vrot.lane.b32.xlu1 %v16898_v19, %s16323_s9  ;;  %4112 = vrot.lane.b32.xlu0 %v16900_v20, %s16323_s9 }
  0xfa   : > { %15252 = vmatmul.mubr.msk.bf16.vlgmr.msra.gmra.mxu0 %vm425_vm1, %v16809_v37  ;;  %15253 = vmatprep.subr.msk.bf16.mxu1 %vm429_vm0, %v2022_v35  ;;  %v680_v49 = vpop.f32.mrf.mxu0  ;;  %v721_v42 = vpop.f32.mrf.mxu1 }
  0xfb   : > { %2376 = vmatpush1.bf16.msra.mxu1 %v2069_v43  ;;  %v2509_v41 = vpop.permute.xlu1 %2508  ;;  %v2507_v46 = vpop.permute.xlu0 %2506  ;;  %2638 = vmatprep.mubr.bf16.mxu0 %v16316_v11 }
  0xfc   : > { %v2539_v47 = vsel %vm2538_vm5, %v2505_v33, %v2507_v46  ;;  %v2540_v48 = vsel %vm2538_vm5, %v2507_v46, %v2509_v41  ;;  %v681_v58 = vpop.f32.mrf.mxu0  ;;  %v722_v59 = vpop.f32.mrf.mxu1 }
  0xfd   : > { %4118 = vrot.lane.b32.xlu1 %v16917_v31, %s16323_s9  ;;  %4116 = vrot.lane.b32.xlu0 %v16919_v34, %s16323_s9  ;;  %v2559_v53 = vsel %vm429_vm0, %v2539_v47, 0 }
  0xfe   : > { %15254 = vmatmul.mubr.msk.bf16.vlgmr.msra.gmra.mxu1 %vm425_vm1, %v16809_v37  ;;  %15273 = vmatprep.subr.msk.bf16.mxu0 %vm429_vm0, %v2540_v48  ;;  %v16952_v37 = vpop.f32.mrf.mxu0  ;;  %v16954_v3 = vpop.f32.mrf.mxu1 }
  0xff   : > { %2621 = vmatpush1.bf16.msra.mxu0 %v2559_v53  ;;  %v2513_v60 = vpop.permute.xlu1 %2512  ;;  %v2511_v61 = vpop.permute.xlu0 %2510  ;;  %2679 = vmatprep.mubr.bf16.mxu1 %v16316_v11 }
 0x100   : > { %v2541_v1 = vsel %vm2538_vm5, %v2509_v41, %v2511_v61  ;;  %v2542_v2 = vsel %vm2538_vm5, %v2511_v61, %v2513_v60  ;;  %v16968_v15 = vpop.f32.mrf.mxu0  ;;  %v16970_v13 = vpop.f32.mrf.mxu1  ;;  %v16165_v41 = vld [vmem:[#allocation2 + $0x40] ss:$0 sps:$4 sm:$0xff]  }
 0x101   : > { %4122 = vrot.lane.b32.xlu1 %v16937_v54, %s16323_s9  ;;  %4120 = vrot.lane.b32.xlu0 %v16939_v57, %s16323_s9  ;;  %v2565_v4 = vsel %vm429_vm0, %v2541_v1, 0 }
 0x102   : > { %15274 = vmatmul.mubr.msk.bf16.vlgmr.msra.gmra.mxu0 %vm425_vm1, %v16947_v0  ;;  %15275 = vmatprep.subr.msk.bf16.mxu1 %vm429_vm0, %v2542_v2  ;;  %v762_v26 = vpop.f32.mrf.mxu0  ;;  %v803_v27 = vpop.f32.mrf.mxu1 }
 0x103   : > { %2662 = vmatpush1.bf16.msra.mxu1 %v2565_v4  ;;  %v2517_v22 = vpop.permute.xlu1 %2516  ;;  %v2515_v14 = vpop.permute.xlu0 %2514  ;;  %2720 = vmatprep.mubr.bf16.mxu0 %v16316_v11 }
 0x104   : > { %v2543_v16 = vsel %vm2538_vm5, %v2513_v60, %v2515_v14  ;;  %v2544_v23 = vsel %vm2538_vm5, %v2515_v14, %v2517_v22  ;;  %v763_v29 = vpop.f32.mrf.mxu0  ;;  %v804_v30 = vpop.f32.mrf.mxu1 }
 0x105   : > { %4126 = vrot.lane.b32.xlu1 %v16961_v5, %s16323_s9  ;;  %4124 = vrot.lane.b32.xlu0 %v16963_v6, %s16323_s9  ;;  %v2571_v28 = vsel %vm429_vm0, %v2543_v16, 0 }
 0x106   : > { %15276 = vmatmul.mubr.msk.bf16.vlgmr.msra.gmra.mxu1 %vm425_vm1, %v16947_v0  ;;  %15277 = vmatprep.subr.msk.bf16.mxu0 %vm429_vm0, %v2544_v23 }
 0x107   : > { %2703 = vmatpush1.bf16.msra.mxu0 %v2571_v28  ;;  %v2521_v33 = vpop.permute.xlu1 %2520  ;;  %v2519_v25 = vpop.permute.xlu0 %2518  ;;  %2761 = vmatprep.mubr.bf16.mxu1 %v16316_v11 }
 0x108   : > { %v2545_v35 = vsel %vm2538_vm5, %v2517_v22, %v2519_v25  ;;  %v2546_v43 = vsel %vm2538_vm5, %v2519_v25, %v2521_v33 }
 0x109   : > { %4130 = vrot.lane.b32.xlu1 %v16980_v21, %s16323_s9  ;;  %4128 = vrot.lane.b32.xlu0 %v16982_v24, %s16323_s9  ;;  %v2577_v44 = vsel %vm429_vm0, %v2545_v35, 0 }
 0x10a   : > { %15278 = vmatmul.mubr.msk.bf16.vlgmr.msra.gmra.mxu0 %vm425_vm1, %v16947_v0  ;;  %15279 = vmatprep.subr.msk.bf16.mxu1 %vm429_vm0, %v2546_v43  ;;  %v17061_v43 = vld [vmem:[%s20299_s0 + $0x14] sm:$0xf] }
 0x10b   : > { %2744 = vmatpush1.bf16.msra.mxu1 %v2577_v44  ;;  %v2525_v46 = vpop.permute.xlu1 %2524  ;;  %v2523_v47 = vpop.permute.xlu0 %2522  ;;  %2802 = vmatprep.mubr.bf16.mxu0 %v16316_v11 }
 0x10c   : > { %v2547_v48 = vsel %vm2538_vm5, %v2521_v33, %v2523_v47  ;;  %v2548_v49 = vsel %vm2538_vm5, %v2523_v47, %v2525_v46 }
 0x10d   : > { %4632 = vrot.lane.b32.xlu1 %v16843_v52, %s16324_s13  ;;  %4132 = vrot.lane.b32.xlu0 %v16165_v41, %s16323_s9  ;;  %v2583_v42 = vsel %vm429_vm0, %v2547_v48, 0  ;;  %s16329_s9 = smov 41  }
 0x10e   : > { %15280 = vmatmul.mubr.msk.bf16.vlgmr.msra.gmra.mxu1 %vm425_vm1, %v16947_v0  ;;  %15281 = vmatprep.subr.msk.bf16.mxu0 %vm429_vm0, %v2548_v49 }
 0x10f   : > { %2785 = vmatpush1.bf16.msra.mxu0 %v2583_v42  ;;  %v2529_v53 = vpop.permute.xlu1 %2528  ;;  %v2527_v40 = vpop.permute.xlu0 %2526  ;;  %2843 = vmatprep.mubr.bf16.mxu1 %v16316_v11  ;;  %v16166_v42 = vld [vmem:[#allocation2 + $0x40] ss:$0 sps:$4 sm:$0xff]  }
 0x110   : > { %v2549_v58 = vsel %vm2538_vm5, %v2525_v46, %v2527_v40  ;;  %v2550_v59 = vsel %vm2538_vm5, %v2527_v40, %v2529_v53 }
 0x111   : > { %4636 = vrot.lane.b32.xlu1 %v16862_v63, %s16324_s13  ;;  %4634 = vrot.lane.b32.xlu0 %v16841_v51, %s16324_s13  ;;  %v2589_v52 = vsel %vm429_vm0, %v2549_v58, 0 }
 0x112   : > { %15282 = vmatmul.mubr.msk.bf16.vlgmr.msra.gmra.mxu0 %vm425_vm1, %v16947_v0  ;;  %15283 = vmatprep.subr.msk.bf16.mxu1 %vm429_vm0, %v2550_v59 }
 0x113   : > { %2826 = vmatpush1.bf16.msra.mxu1 %v2589_v52  ;;  %v2533_v60 = vpop.permute.xlu1 %2532  ;;  %v2531_v61 = vpop.permute.xlu0 %2530  ;;  %2884 = vmatprep.mubr.bf16.mxu0 %v16316_v11 }
 0x114   : > { %v2551_v1 = vsel %vm2538_vm5, %v2529_v53, %v2531_v61  ;;  %v2552_v2 = vsel %vm2538_vm5, %v2531_v61, %v2533_v60 }
 0x115   : > { %4640 = vrot.lane.b32.xlu1 %v16881_v12, %s16324_s13  ;;  %4638 = vrot.lane.b32.xlu0 %v16860_v62, %s16324_s13  ;;  %v2595_v51 = vsel %vm429_vm0, %v2551_v1, 0 }
 0x116   : > { %15284 = vmatmul.mubr.msk.bf16.vlgmr.msra.gmra.mxu1 %vm425_vm1, %v16947_v0  ;;  %15285 = vmatprep.subr.msk.bf16.mxu0 %vm429_vm0, %v2552_v2 }
 0x117   : > { %2867 = vmatpush1.bf16.msra.mxu0 %v2595_v51  ;;  %v2537_v4 = vpop.permute.xlu1 %2536  ;;  %v2535_v7 = vpop.permute.xlu0 %2534  ;;  %2925 = vmatprep.mubr.bf16.mxu1 %v16316_v11 }
 0x118   : > { %v2553_v22 = vsel %vm2538_vm5, %v2533_v60, %v2535_v7  ;;  %v2554_v14 = vsel %vm2538_vm5, %v2535_v7, %v2537_v4  ;;  %vm9986_vm5 = vcmask 982016  }
 0x119   : > { %4644 = vrot.lane.b32.xlu1 %v16900_v20, %s16324_s13  ;;  %4642 = vrot.lane.b32.xlu0 %v16879_v10, %s16324_s13  ;;  %v2601_v16 = vsel %vm429_vm0, %v2553_v22, 0 }
 0x11a   : > { %15286 = vmatmul.mubr.msk.bf16.vlgmr.msra.gmra.mxu0 %vm425_vm1, %v16947_v0  ;;  %15287 = vmatprep.subr.msk.bf16.mxu1 %vm429_vm0, %v2554_v14 }
 0x11b   : > { %2908 = vmatpush1.bf16.msra.mxu1 %v2601_v16  ;;  %v3039_v23 = vpop.permute.xlu1 %3038  ;;  %v3037_v26 = vpop.permute.xlu0 %3036  ;;  %3170 = vmatprep.mubr.bf16.mxu0 %v16316_v11 }
 0x11c   : > { %v3071_v27 = vsel %vm3070_vm6, %v3037_v26, %v3039_v23 }
 0x11d   : > { %4648 = vrot.lane.b32.xlu1 %v16919_v34, %s16324_s13  ;;  %4646 = vrot.lane.b32.xlu0 %v16898_v19, %s16324_s13  ;;  %v3091_v33 = vsel %vm429_vm0, %v3071_v27, 0 }
 0x11e   : > { %15288 = vmatmul.mubr.msk.bf16.vlgmr.msra.gmra.mxu1 %vm425_vm1, %v16947_v0 }
 0x11f   : > { %v3043_v28 = vpop.permute.xlu1 %3042  ;;  %v3041_v29 = vpop.permute.xlu0 %3040  ;;  %3211 = vmatprep.mubr.bf16.mxu1 %v16316_v11 }
 0x120   : > { %v3072_v30 = vsel %vm3070_vm6, %v3039_v23, %v3041_v29  ;;  %v3073_v0 = vsel %vm3070_vm6, %v3041_v29, %v3043_v28 }
 0x121   : > { %4652 = vrot.lane.b32.xlu1 %v16939_v57, %s16324_s13  ;;  %4650 = vrot.lane.b32.xlu0 %v16917_v31, %s16324_s13  ;;  %v3097_v41 = vsel %vm429_vm0, %v3073_v0, 0 }
 0x122   : > { %15307 = vmatprep.subr.msk.bf16.mxu0 %vm429_vm0, %v3072_v30 }
 0x123   : > { %3153 = vmatpush1.bf16.msra.mxu0 %v3091_v33  ;;  %v3047_v25 = vpop.permute.xlu1 %3046  ;;  %v3045_v35 = vpop.permute.xlu0 %3044 }
 0x124   : > { %v3074_v44 = vsel %vm3070_vm6, %v3043_v28, %v3045_v35  ;;  %v3075_v46 = vsel %vm3070_vm6, %v3045_v35, %v3047_v25 }
 0x125   : > { %4656 = vrot.lane.b32.xlu1 %v16963_v6, %s16324_s13  ;;  %4654 = vrot.lane.b32.xlu0 %v16937_v54, %s16324_s13  ;;  %v3103_v53 = vsel %vm429_vm0, %v3075_v46, 0 }
 0x126   : > { %15308 = vmatmul.mubr.msk.bf16.vlgmr.msra.gmra.mxu0 %vm425_vm1, %v17061_v43  ;;  %15309 = vmatprep.subr.msk.bf16.mxu1 %vm429_vm0, %v3074_v44 }
 0x127   : > { %3194 = vmatpush1.bf16.msra.mxu1 %v3097_v41  ;;  %v3051_v47 = vpop.permute.xlu1 %3050  ;;  %v3049_v48 = vpop.permute.xlu0 %3048  ;;  %3252 = vmatprep.mubr.bf16.mxu0 %v16316_v11 }
 0x128   : > { %v3076_v49 = vsel %vm3070_vm6, %v3047_v25, %v3049_v48  ;;  %v3077_v40 = vsel %vm3070_vm6, %v3049_v48, %v3051_v47 }
 0x129   : > { %4660 = vrot.lane.b32.xlu1 %v16982_v24, %s16324_s13  ;;  %4658 = vrot.lane.b32.xlu0 %v16961_v5, %s16324_s13  ;;  %v3109_v60 = vsel %vm429_vm0, %v3077_v40, 0  ;;  %v17151_v40 = vld [vmem:[%s20299_s0 + $0x18] sm:$0xf] }
 0x12a   : > { %15310 = vmatmul.mubr.msk.bf16.vlgmr.msra.gmra.mxu1 %vm425_vm1, %v17061_v43  ;;  %15311 = vmatprep.subr.msk.bf16.mxu0 %vm429_vm0, %v3076_v49 }
 0x12b   : > { %3235 = vmatpush1.bf16.msra.mxu0 %v3103_v53  ;;  %v3055_v58 = vpop.permute.xlu1 %3054  ;;  %v3053_v59 = vpop.permute.xlu0 %3052  ;;  %3293 = vmatprep.mubr.bf16.mxu1 %v16316_v11 }
 0x12c   : > { %v3078_v52 = vsel %vm3070_vm6, %v3051_v47, %v3053_v59  ;;  %v3079_v61 = vsel %vm3070_vm6, %v3053_v59, %v3055_v58 }
 0x12d   : > { %4664 = vrot.lane.b32.xlu1 %v16166_v42, %s16324_s13  ;;  %4662 = vrot.lane.b32.xlu0 %v16980_v21, %s16324_s13  ;;  %v3115_v4 = vsel %vm429_vm0, %v3079_v61, 0  ;;  %s16330_s13 = smov 40  }
 0x12e   : > { %15312 = vmatmul.mubr.msk.bf16.vlgmr.msra.gmra.mxu0 %vm425_vm1, %v17061_v43  ;;  %15313 = vmatprep.subr.msk.bf16.mxu1 %vm429_vm0, %v3078_v52  ;;  %v5119_v52 = vld [vmem:[#allocation2 + $0x40] sm:$0xff] }
 0x12f   : > { %3276 = vmatpush1.bf16.msra.mxu1 %v3109_v60  ;;  %v3059_v1 = vpop.permute.xlu1 %3058  ;;  %v3057_v2 = vpop.permute.xlu0 %3056  ;;  %3334 = vmatprep.mubr.bf16.mxu0 %v16316_v11 }
 0x130   : > { %v3080_v51 = vsel %vm3070_vm6, %v3055_v58, %v3057_v2  ;;  %v3081_v7 = vsel %vm3070_vm6, %v3057_v2, %v3059_v1 }
 0x131   : > { %5166 = vrot.lane.b32.xlu1 %v16860_v62, %s16325_s24  ;;  %5164 = vrot.lane.b32.xlu0 %v16862_v63, %s16325_s24  ;;  %v3121_v23 = vsel %vm429_vm0, %v3081_v7, 0  ;;  %v17174_v7 = vcombine.low %v5119_v52, %v5119_v52 }
 0x132   : > { %15314 = vmatmul.mubr.msk.bf16.vlgmr.msra.gmra.mxu1 %vm425_vm1, %v17061_v43  ;;  %15315 = vmatprep.subr.msk.bf16.mxu0 %vm429_vm0, %v3080_v51 }
 0x133   : > { %3317 = vmatpush1.bf16.msra.mxu0 %v3115_v4  ;;  %v3063_v22 = vpop.permute.xlu1 %3062  ;;  %v3061_v14 = vpop.permute.xlu0 %3060  ;;  %3375 = vmatprep.mubr.bf16.mxu1 %v16316_v11  ;;  %v17172_v4 = vcombine.high %v5119_v52, %v5119_v52 }
 0x134   : > { %v3082_v16 = vsel %vm3070_vm6, %v3059_v1, %v3061_v14  ;;  %v3083_v26 = vsel %vm3070_vm6, %v3061_v14, %v3063_v22 }
 0x135   : > { %5170 = vrot.lane.b32.xlu1 %v16879_v10, %s16325_s24  ;;  %5168 = vrot.lane.b32.xlu0 %v16881_v12, %s16325_s24  ;;  %v3127_v30 = vsel %vm429_vm0, %v3083_v26, 0 }
 0x136   : > { %15316 = vmatmul.mubr.msk.bf16.vlgmr.msra.gmra.mxu0 %vm425_vm1, %v17061_v43  ;;  %15317 = vmatprep.subr.msk.bf16.mxu1 %vm429_vm0, %v3082_v16 }
 0x137   : > { %3358 = vmatpush1.bf16.msra.mxu1 %v3121_v23  ;;  %v3067_v27 = vpop.permute.xlu1 %3066  ;;  %v3065_v28 = vpop.permute.xlu0 %3064  ;;  %3416 = vmatprep.mubr.bf16.mxu0 %v16316_v11 }
 0x138   : > { %v3084_v29 = vsel %vm3070_vm6, %v3063_v22, %v3065_v28  ;;  %v3085_v33 = vsel %vm3070_vm6, %v3065_v28, %v3067_v27 }
 0x139   : > { %5174 = vrot.lane.b32.xlu1 %v16898_v19, %s16325_s24  ;;  %5172 = vrot.lane.b32.xlu0 %v16900_v20, %s16325_s24  ;;  %v3133_v44 = vsel %vm429_vm0, %v3085_v33, 0 }
 0x13a   : > { %15318 = vmatmul.mubr.msk.bf16.vlgmr.msra.gmra.mxu1 %vm425_vm1, %v17061_v43  ;;  %15319 = vmatprep.subr.msk.bf16.mxu0 %vm429_vm0, %v3084_v29 }
 0x13b   : > { %3399 = vmatpush1.bf16.msra.mxu0 %v3127_v30  ;;  %v3569_v0 = vpop.permute.xlu1 %3568  ;;  %v3069_v25 = vpop.permute.xlu0 %3068  ;;  %3457 = vmatprep.mubr.bf16.mxu1 %v16316_v11 }
 0x13c   : > { %v3086_v35 = vsel %vm3070_vm6, %v3067_v27, %v3069_v25  ;;  %v16169_v27 = vld [vmem:[#allocation2 + $0x48] ss:$0 sps:$4 sm:$0xff]   ;;  %vm10518_vm6 = vcmask 973824  }
 0x13d   : > { %5178 = vrot.lane.b32.xlu1 %v16917_v31, %s16325_s24  ;;  %5176 = vrot.lane.b32.xlu0 %v16919_v34, %s16325_s24 }
 0x13e   : > { %15320 = vmatmul.mubr.msk.bf16.vlgmr.msra.gmra.mxu0 %vm425_vm1, %v17061_v43  ;;  %15321 = vmatprep.subr.msk.bf16.mxu1 %vm429_vm0, %v3086_v35 }
 0x13f   : > { %3440 = vmatpush1.bf16.msra.mxu1 %v3133_v44  ;;  %v3573_v41 = vpop.permute.xlu1 %3572  ;;  %v3571_v46 = vpop.permute.xlu0 %3570  ;;  %3702 = vmatprep.mubr.bf16.mxu0 %v16316_v11 }
 0x140   : > { %v3603_v47 = vsel %vm3602_vm7, %v3569_v0, %v3571_v46  ;;  %v3604_v48 = vsel %vm3602_vm7, %v3571_v46, %v3573_v41 }
 0x141   : > { %5182 = vrot.lane.b32.xlu1 %v16937_v54, %s16325_s24  ;;  %5180 = vrot.lane.b32.xlu0 %v16939_v57, %s16325_s24  ;;  %v3623_v49 = vsel %vm429_vm0, %v3603_v47, 0 }
 0x142   : > { %15322 = vmatmul.mubr.msk.bf16.vlgmr.msra.gmra.mxu1 %vm425_vm1, %v17061_v43  ;;  %15341 = vmatprep.subr.msk.bf16.mxu0 %vm429_vm0, %v3604_v48 }
 0x143   : > { %3685 = vmatpush1.bf16.msra.mxu0 %v3623_v49  ;;  %v3577_v42 = vpop.permute.xlu1 %3576  ;;  %v3575_v53 = vpop.permute.xlu0 %3574  ;;  %3743 = vmatprep.mubr.bf16.mxu1 %v16316_v11 }
 0x144   : > { %v3605_v58 = vsel %vm3602_vm7, %v3573_v41, %v3575_v53  ;;  %v3606_v59 = vsel %vm3602_vm7, %v3575_v53, %v3577_v42 }
 0x145   : > { %5186 = vrot.lane.b32.xlu1 %v16961_v5, %s16325_s24  ;;  %5184 = vrot.lane.b32.xlu0 %v16963_v6, %s16325_s24  ;;  %v3629_v43 = vsel %vm429_vm0, %v3605_v58, 0 }
 0x146   : > { %15342 = vmatmul.mubr.msk.bf16.vlgmr.msra.gmra.mxu0 %vm425_vm1, %v17151_v40  ;;  %15343 = vmatprep.subr.msk.bf16.mxu1 %vm429_vm0, %v3606_v59 }
 0x147   : > { %3726 = vmatpush1.bf16.msra.mxu1 %v3629_v43  ;;  %v3581_v60 = vpop.permute.xlu1 %3580  ;;  %v3579_v61 = vpop.permute.xlu0 %3578  ;;  %3784 = vmatprep.mubr.bf16.mxu0 %v16316_v11 }
 0x148   : > { %v3607_v1 = vsel %vm3602_vm7, %v3577_v42, %v3579_v61  ;;  %v3608_v2 = vsel %vm3602_vm7, %v3579_v61, %v3581_v60 }
 0x149   : > { %5190 = vrot.lane.b32.xlu1 %v16980_v21, %s16325_s24  ;;  %5188 = vrot.lane.b32.xlu0 %v16982_v24, %s16325_s24  ;;  %v3635_v51 = vsel %vm429_vm0, %v3607_v1, 0 }
 0x14a   : > { %15344 = vmatmul.mubr.msk.bf16.vlgmr.msra.gmra.mxu1 %vm425_vm1, %v17151_v40  ;;  %15345 = vmatprep.subr.msk.bf16.mxu0 %vm429_vm0, %v3608_v2 }
 0x14b   : > { %3767 = vmatpush1.bf16.msra.mxu0 %v3635_v51  ;;  %v3585_v22 = vpop.permute.xlu1 %3584  ;;  %v3583_v14 = vpop.permute.xlu0 %3582  ;;  %3825 = vmatprep.mubr.bf16.mxu1 %v16316_v11 }
 0x14c   : > { %v3609_v16 = vsel %vm3602_vm7, %v3581_v60, %v3583_v14  ;;  %v3610_v23 = vsel %vm3602_vm7, %v3583_v14, %v3585_v22 }
 0x14d   : > { %5194 = vrot.lane.b32.xlu1 %v17172_v4, %s16325_s24  ;;  %5192 = vrot.lane.b32.xlu0 %v17174_v7, %s16325_s24  ;;  %v3641_v26 = vsel %vm429_vm0, %v3609_v16, 0 }
 0x14e   : > { %15346 = vmatmul.mubr.msk.bf16.vlgmr.msra.gmra.mxu0 %vm425_vm1, %v17151_v40  ;;  %15347 = vmatprep.subr.msk.bf16.mxu1 %vm429_vm0, %v3610_v23 }
 0x14f   : > { %3808 = vmatpush1.bf16.msra.mxu1 %v3641_v26  ;;  %v3589_v28 = vpop.permute.xlu1 %3588  ;;  %v3587_v29 = vpop.permute.xlu0 %3586  ;;  %3866 = vmatprep.mubr.bf16.mxu0 %v16316_v11  ;;  %v17263_v26 = vld [vmem:[%s20299_s0 + $0x1c] sm:$0xf] }
 0x150   : > { %v3611_v30 = vsel %vm3602_vm7, %v3585_v22, %v3587_v29  ;;  %v3612_v33 = vsel %vm3602_vm7, %v3587_v29, %v3589_v28 }
 0x151   : > { %5696 = vrot.lane.b32.xlu1 %v16862_v63, %s16326_s29  ;;  %5196 = vrot.lane.b32.xlu0 %v16169_v27, %s16325_s24  ;;  %v3647_v0 = vsel %vm429_vm0, %v3611_v30, 0  ;;  %s16331_s24 = smov 24  }
 0x152   : > { %15348 = vmatmul.mubr.msk.bf16.vlgmr.msra.gmra.mxu1 %vm425_vm1, %v17151_v40  ;;  %15349 = vmatprep.subr.msk.bf16.mxu0 %vm429_vm0, %v3612_v33 }
 0x153   : > { %3849 = vmatpush1.bf16.msra.mxu0 %v3647_v0  ;;  %v3593_v25 = vpop.permute.xlu1 %3592  ;;  %v3591_v35 = vpop.permute.xlu0 %3590  ;;  %3907 = vmatprep.mubr.bf16.mxu1 %v16316_v11 }
 0x154   : > { %v3613_v44 = vsel %vm3602_vm7, %v3589_v28, %v3591_v35  ;;  %v3614_v41 = vsel %vm3602_vm7, %v3591_v35, %v3593_v25 }
 0x155   : > { %5700 = vrot.lane.b32.xlu1 %v16881_v12, %s16326_s29  ;;  %5698 = vrot.lane.b32.xlu0 %v16860_v62, %s16326_s29  ;;  %v3653_v63 = vsel %vm429_vm0, %v3613_v44, 0  ;;  %v16170_v44 = vld [vmem:[#allocation2 + $0x48] ss:$0 sps:$4 sm:$0xff]  }
 0x156   : > { %15350 = vmatmul.mubr.msk.bf16.vlgmr.msra.gmra.mxu0 %vm425_vm1, %v17151_v40  ;;  %15351 = vmatprep.subr.msk.bf16.mxu1 %vm429_vm0, %v3614_v41 }
 0x157   : > { %3890 = vmatpush1.bf16.msra.mxu1 %v3653_v63  ;;  %v3597_v46 = vpop.permute.xlu1 %3596  ;;  %v3595_v47 = vpop.permute.xlu0 %3594  ;;  %3948 = vmatprep.mubr.bf16.mxu0 %v16316_v11 }
 0x158   : > { %v3615_v48 = vsel %vm3602_vm7, %v3593_v25, %v3595_v47  ;;  %v3616_v49 = vsel %vm3602_vm7, %v3595_v47, %v3597_v46  ;;  %v6176_v47 = vld [vmem:[#allocation2 + $0x8] sm:$0xff] }
 0x159   : > { %5704 = vrot.lane.b32.xlu1 %v16900_v20, %s16326_s29  ;;  %5702 = vrot.lane.b32.xlu0 %v16879_v10, %s16326_s29  ;;  %v3659_v62 = vsel %vm429_vm0, %v3615_v48, 0 }
 0x15a   : > { %15352 = vmatmul.mubr.msk.bf16.vlgmr.msra.gmra.mxu1 %vm425_vm1, %v17151_v40  ;;  %15353 = vmatprep.subr.msk.bf16.mxu0 %vm429_vm0, %v3616_v49 }
 0x15b   : > { %3931 = vmatpush1.bf16.msra.mxu0 %v3659_v62  ;;  %v3601_v12 = vpop.permute.xlu1 %3600  ;;  %v3599_v42 = vpop.permute.xlu0 %3598  ;;  %3989 = vmatprep.mubr.bf16.mxu1 %v16316_v11 }
 0x15c   : > { %v3617_v53 = vsel %vm3602_vm7, %v3597_v46, %v3599_v42  ;;  %v3618_v58 = vsel %vm3602_vm7, %v3599_v42, %v3601_v12  ;;  %vm11050_vm7 = vcmask 965632  }
 0x15d   : > { %5708 = vrot.lane.b32.xlu1 %v16919_v34, %s16326_s29  ;;  %5706 = vrot.lane.b32.xlu0 %v16898_v19, %s16326_s29  ;;  %v3665_v10 = vsel %vm429_vm0, %v3617_v53, 0  ;;  %v17301_v53 = vcombine.high %v6176_v47, %v6176_v47 }
 0x15e   : > { %v17230_v20 = vpop.f32.mrf.mxu0  ;;  %15354 = vmatmul.mubr.msk.bf16.vlgmr.msra.gmra.mxu0 %vm425_vm1, %v17151_v40  ;;  %15355 = vmatprep.subr.msk.bf16.mxu1 %vm429_vm0, %v3618_v58  ;;  %v17303_v58 = vcombine.low %v6176_v47, %v6176_v47 }
 0x15f   : > { %3972 = vmatpush1.bf16.msra.mxu1 %v3665_v10  ;;  %v4103_v59 = vpop.permute.xlu1 %4102  ;;  %v4101_v43 = vpop.permute.xlu0 %4100  ;;  %4234 = vmatprep.mubr.bf16.mxu0 %v16316_v11 }
 0x160   : > { %v17236_v52 = vpop.f32.mrf.mxu0  ;;  %v4135_v60 = vsel %vm4134_vm8, %v4101_v43, %v4103_v59 }
 0x161   : > { %5712 = vrot.lane.b32.xlu1 %v16939_v57, %s16326_s29  ;;  %5710 = vrot.lane.b32.xlu0 %v16917_v31, %s16326_s29  ;;  %v4155_v31 = vsel %vm429_vm0, %v4135_v60, 0 }
 0x162   : > { %v1048_v19 = vpop.f32.mrf.mxu0  ;;  %v17242_v34 = vpop.f32.mrf.mxu1  ;;  %15356 = vmatmul.mubr.msk.bf16.vlgmr.msra.gmra.mxu1 %vm425_vm1, %v17151_v40 }
 0x163   : > { %v4107_v61 = vpop.permute.xlu1 %4106  ;;  %v4105_v1 = vpop.permute.xlu0 %4104  ;;  %4275 = vmatprep.mubr.bf16.mxu1 %v16316_v11  ;;  %v6177_v19 = vld [vmem:[#allocation2 + $0x10] sm:$0xff] }
 0x164   : > { %v1049_v2 = vpop.f32.mrf.mxu0  ;;  %v17248_v51 = vpop.f32.mrf.mxu1  ;;  %v4136_v57 = vsel %vm4134_vm8, %v4103_v59, %v4105_v1  ;;  %v4137_v14 = vsel %vm4134_vm8, %v4105_v1, %v4107_v61 }
 0x165   : > { %5716 = vrot.lane.b32.xlu1 %v16963_v6, %s16326_s29  ;;  %5714 = vrot.lane.b32.xlu0 %v16937_v54, %s16326_s29  ;;  %v4161_v30 = vsel %vm429_vm0, %v4137_v14, 0  ;;  %v17322_v14 = vcombine.low %v6177_v19, %v6177_v19 }
 0x166   : > { %v1089_v40 = vpop.f32.mrf.mxu1  ;;  %v17256_v22 = vpop.f32.mrf.mxu0  ;;  %15375 = vmatprep.subr.msk.bf16.mxu0 %vm429_vm0, %v4136_v57 }
 0x167   : > { %4217 = vmatpush1.bf16.msra.mxu0 %v4155_v31  ;;  %v4111_v16 = vpop.permute.xlu1 %4110  ;;  %v4109_v23 = vpop.permute.xlu0 %4108  ;;  %v17320_v40 = vcombine.high %v6177_v19, %v6177_v19  ;;  %v1338_v19 = vadd.f32 %v17230_v20, %v16834_v50  ;;  %v1339_v20 = vadd.f32 %v17236_v52, %v16849_v55  ;;  %v6181_v52 = vld [vmem:[#allocation2 + $0x30] sm:$0xff] }
 0x168   : > { %v1090_v6 = vpop.f32.mrf.mxu1  ;;  %v17265_v27 = vpop.f32.mrf.mxu0  ;;  %v4138_v54 = vsel %vm4134_vm8, %v4107_v61, %v4109_v23  ;;  %v4139_v33 = vsel %vm4134_vm8, %v4109_v23, %v4111_v16 }
 0x169   : > { %5720 = vrot.lane.b32.xlu1 %v16982_v24, %s16326_s29  ;;  %5718 = vrot.lane.b32.xlu0 %v16961_v5, %s16326_s29  ;;  %v4167_v46 = vsel %vm429_vm0, %v4139_v33, 0 }
 0x16a   : > { %v1130_v28 = vpop.f32.mrf.mxu0  ;;  %v17272_v29 = vpop.f32.mrf.mxu1  ;;  %15376 = vmatmul.mubr.msk.bf16.vlgmr.msra.gmra.mxu0 %vm425_vm1, %v17263_v26  ;;  %15377 = vmatprep.subr.msk.bf16.mxu1 %vm429_vm0, %v4138_v54  ;;  %v6178_v54 = vld [vmem:[#allocation2 + $0x18] sm:$0xff] }
 0x16b   : > { %4258 = vmatpush1.bf16.msra.mxu1 %v4161_v30  ;;  %v4115_v0 = vpop.permute.xlu1 %4114  ;;  %v4113_v25 = vpop.permute.xlu0 %4112  ;;  %4316 = vmatprep.mubr.bf16.mxu0 %v16316_v11 }
 0x16c   : > { %v1131_v24 = vpop.f32.mrf.mxu0  ;;  %v17280_v35 = vpop.f32.mrf.mxu1  ;;  %v4140_v5 = vsel %vm4134_vm8, %v4111_v16, %v4113_v25  ;;  %v4141_v48 = vsel %vm4134_vm8, %v4113_v25, %v4115_v0 }
 0x16d   : > { %5724 = vrot.lane.b32.xlu1 %v17174_v7, %s16326_s29  ;;  %5722 = vrot.lane.b32.xlu0 %v16980_v21, %s16326_s29  ;;  %v4173_v43 = vsel %vm429_vm0, %v4141_v48, 0  ;;  %v6179_v48 = vld [vmem:[#allocation2 + $0x20] sm:$0xff] }
 0x16e   : > { %v1171_v41 = vpop.f32.mrf.mxu1  ;;  %v17287_v63 = vpop.f32.mrf.mxu0  ;;  %15378 = vmatmul.mubr.msk.bf16.vlgmr.msra.gmra.mxu1 %vm425_vm1, %v17263_v26  ;;  %15379 = vmatprep.subr.msk.bf16.mxu0 %vm429_vm0, %v4140_v5  ;;  %v17339_v5 = vcombine.high %v6178_v54, %v6178_v54 }
 0x16f   : > { %4299 = vmatpush1.bf16.msra.mxu0 %v4167_v46  ;;  %v4119_v49 = vpop.permute.xlu1 %4118  ;;  %v4117_v62 = vpop.permute.xlu0 %4116  ;;  %4357 = vmatprep.mubr.bf16.mxu1 %v16316_v11 }
 0x170   : > { %v1172_v21 = vpop.f32.mrf.mxu1  ;;  %v17295_v12 = vpop.f32.mrf.mxu0  ;;  %v4142_v42 = vsel %vm4134_vm8, %v4115_v0, %v4117_v62  ;;  %v4143_v60 = vsel %vm4134_vm8, %v4117_v62, %v4119_v49 }
 0x171   : > { %5728 = vrot.lane.b32.xlu1 %v16170_v44, %s16326_s29  ;;  %5726 = vrot.lane.b32.xlu0 %v17172_v4, %s16326_s29  ;;  %v4179_v6 = vsel %vm429_vm0, %v4143_v60, 0  ;;  %v17341_v44 = vcombine.low %v6178_v54, %v6178_v54  ;;  %v17360_v60 = vcombine.high %v6179_v48, %v6179_v48  ;;  %s16332_s29 = smov 23  }
 0x172   : > { %v1212_v10 = vpop.f32.mrf.mxu0  ;;  %v17305_v59 = vpop.f32.mrf.mxu1  ;;  %15380 = vmatmul.mubr.msk.bf16.vlgmr.msra.gmra.mxu0 %vm425_vm1, %v17263_v26  ;;  %15381 = vmatprep.subr.msk.bf16.mxu1 %vm429_vm0, %v4142_v42 }
 0x173   : > { %4340 = vmatpush1.bf16.msra.mxu1 %v4173_v43  ;;  %v4123_v61 = vpop.permute.xlu1 %4122  ;;  %v4121_v1 = vpop.permute.xlu0 %4120  ;;  %4398 = vmatprep.mubr.bf16.mxu0 %v16316_v11 }
 0x174   : > { %v1213_v2 = vpop.f32.mrf.mxu0  ;;  %v17313_v57 = vpop.f32.mrf.mxu1  ;;  %v4144_v31 = vsel %vm4134_vm8, %v4119_v49, %v4121_v1  ;;  %v4145_v28 = vsel %vm4134_vm8, %v4121_v1, %v4123_v61  ;;  %v6180_v1 = vld [vmem:[#allocation2 + $0x28] sm:$0xff] }
 0x175   : > { %6230 = vrot.lane.b32.xlu1 %v17301_v53, %s16327_s15  ;;  %6228 = vrot.lane.b32.xlu0 %v17303_v58, %s16327_s15  ;;  %v4185_v47 = vsel %vm429_vm0, %v4145_v28, 0  ;;  %v17385_v55 = vcombine.low %v6180_v1, %v6180_v1 }
 0x176   : > { %v1253_v16 = vpop.f32.mrf.mxu1  ;;  %v17324_v23 = vpop.f32.mrf.mxu0  ;;  %15382 = vmatmul.mubr.msk.bf16.vlgmr.msra.gmra.mxu1 %vm425_vm1, %v17263_v26  ;;  %15383 = vmatprep.subr.msk.bf16.mxu0 %vm429_vm0, %v4144_v31 }
 0x177   : > { %4381 = vmatpush1.bf16.msra.mxu0 %v4179_v6  ;;  %v4127_v30 = vpop.permute.xlu1 %4126  ;;  %v4125_v33 = vpop.permute.xlu0 %4124  ;;  %4439 = vmatprep.mubr.bf16.mxu1 %v16316_v11 }
 0x178   : > { %v1254_v0 = vpop.f32.mrf.mxu1  ;;  %v17332_v25 = vpop.f32.mrf.mxu0  ;;  %v4146_v24 = vsel %vm4134_vm8, %v4123_v61, %v4125_v33  ;;  %v4147_v49 = vsel %vm4134_vm8, %v4125_v33, %v4127_v30  ;;  %v17362_v61 = vcombine.low %v6179_v48, %v6179_v48 }
 0x179   : > { %6234 = vrot.lane.b32.xlu1 %v17320_v40, %s16327_s15  ;;  %6232 = vrot.lane.b32.xlu0 %v17322_v14, %s16327_s15  ;;  %v4191_v50 = vsel %vm429_vm0, %v4147_v49, 0 }
 0x17a   : > { %v1294_v41 = vpop.f32.mrf.mxu0  ;;  %v17343_v46 = vpop.f32.mrf.mxu1  ;;  %15384 = vmatmul.mubr.msk.bf16.vlgmr.msra.gmra.mxu0 %vm425_vm1, %v17263_v26  ;;  %15385 = vmatprep.subr.msk.bf16.mxu1 %vm429_vm0, %v4146_v24  ;;  %v17375_v24 = vcombine.high %v6180_v1, %v6180_v1 }
 0x17b   : > { %4422 = vmatpush1.bf16.msra.mxu1 %v4185_v47  ;;  %v4131_v62 = vpop.permute.xlu1 %4130  ;;  %v4129_v21 = vpop.permute.xlu0 %4128  ;;  %4480 = vmatprep.mubr.bf16.mxu0 %v16316_v11  ;;  %v1340_v41 = vadd.f32 %v17242_v34, %v16836_v39  ;;  %v1341_v34 = vadd.f32 %v17248_v51, %v16851_v56  ;;  %v17409_v51 = vcombine.low %v6181_v52, %v6181_v52 }
 0x17c   : > { %v1295_v42 = vpop.f32.mrf.mxu0  ;;  %v17351_v10 = vpop.f32.mrf.mxu1  ;;  %v4148_v43 = vsel %vm4134_vm8, %v4127_v30, %v4129_v21  ;;  %v4149_v16 = vsel %vm4134_vm8, %v4129_v21, %v4131_v62 }
 0x17d   : > { %6238 = vrot.lane.b32.xlu1 %v17339_v5, %s16327_s15  ;;  %6236 = vrot.lane.b32.xlu0 %v17341_v44, %s16327_s15  ;;  %v4197_v39 = vsel %vm429_vm0, %v4149_v16, 0  ;;  %v6182_v16 = vld [vmem:[#allocation2 + $0x38] sm:$0xff] }
 0x17e   : > { %v1335_v2 = vpop.f32.mrf.mxu1  ;;  %v1576_v31 = vpop.f32.mrf.mxu0  ;;  %15386 = vmatmul.mubr.msk.bf16.vlgmr.msra.gmra.mxu1 %vm425_vm1, %v17263_v26  ;;  %15387 = vmatprep.subr.msk.bf16.mxu0 %vm429_vm0, %v4148_v43 }
 0x17f   : > { %v17371_v6 = vadd.f32 %v1576_v31, %v1338_v19  ;;  %4463 = vmatpush1.bf16.msra.mxu0 %v4191_v50  ;;  %v4633_v54 = vpop.permute.xlu1 %4632  ;;  %v4133_v28 = vpop.permute.xlu0 %4132  ;;  %4521 = vmatprep.mubr.bf16.mxu1 %v16316_v11  ;;  %v17398_v31 = vcombine.high %v6181_v52, %v6181_v52  ;;  %v1342_v50 = vadd.f32 %v17256_v22, %v16871_v8 }
 0x180   : > { %v4150_v30 = vsel %vm4134_vm8, %v4131_v62, %v4133_v28  ;;  %v1336_v33 = vpop.f32.mrf.mxu1  ;;  %v1578_v0 = vpop.f32.mrf.mxu0  ;;  %v1343_v8 = vadd.f32 %v17265_v27, %v16887_v17  ;;  %v1344_v17 = vadd.f32 %v17272_v29, %v16873_v9  ;;  %v1345_v9 = vadd.f32 %v17280_v35, %v16889_v18 }
 0x181   : > { %v17379_v47 = vadd.f32 %v1578_v0, %v1339_v20  ;;  %6242 = vrot.lane.b32.xlu1 %v17360_v60, %s16327_s15  ;;  %6240 = vrot.lane.b32.xlu0 %v17362_v61, %s16327_s15  ;;  %v17421_v0 = vld [vmem:[%s20299_s0 + $0x20] sm:$0xf]  ;;  %vm11582_vm8 = vcmask 834560  }
 0x182   : > { %v1580_v48 = vpop.f32.mrf.mxu0  ;;  %v1617_v49 = vpop.f32.mrf.mxu1  ;;  %15388 = vmatmul.mubr.msk.bf16.vlgmr.msra.gmra.mxu0 %vm425_vm1, %v17263_v26  ;;  %15389 = vmatprep.subr.msk.bf16.mxu1 %vm429_vm0, %v4150_v30 }
 0x183   : > { %v17393_v62 = vadd.f32 %v1617_v49, %v1340_v41  ;;  %4504 = vmatpush1.bf16.msra.mxu1 %v4197_v39  ;;  %v4637_v21 = vpop.permute.xlu1 %4636  ;;  %v4635_v42 = vpop.permute.xlu0 %4634  ;;  %4766 = vmatprep.mubr.bf16.mxu0 %v16316_v11  ;;  %v17426_v49 = vcombine.high %v6182_v16, %v6182_v16 }
 0x184   : > { %v4667_v43 = vsel %vm4666_vm9, %v4633_v54, %v4635_v42  ;;  %v1581_v19 = vpop.f32.mrf.mxu0  ;;  %v1619_v1 = vpop.f32.mrf.mxu1  ;;  %v4668_v2 = vsel %vm4666_vm9, %v4635_v42, %v4637_v21 }
 0x185   : > { %v17402_v20 = vadd.f32 %v1619_v1, %v1341_v34  ;;  %6246 = vrot.lane.b32.xlu1 %v17375_v24, %s16327_s15  ;;  %6244 = vrot.lane.b32.xlu0 %v17385_v55, %s16327_s15  ;;  %v4687_v56 = vsel %vm429_vm0, %v4667_v43, 0  ;;  %v17437_v34 = vcombine.low %v6182_v16, %v6182_v16  ;;  %v1346_v16 = vadd.f32 %v17287_v63, %v16909_v36 }
 0x186   : > { %v1621_v54 = vpop.f32.mrf.mxu1  ;;  %v1658_v28 = vpop.f32.mrf.mxu0  ;;  %15390 = vmatmul.mubr.msk.bf16.vlgmr.msra.gmra.mxu1 %vm425_vm1, %v17263_v26  ;;  %15409 = vmatprep.subr.msk.bf16.mxu0 %vm429_vm0, %v4668_v2  ;;  %v1347_v36 = vadd.f32 %v17295_v12, %v16925_v45  ;;  %v16185_v12 = vld [vmem:[#allocation2 + $0x48] ss:$0 sps:$4 sm:$0xff]  }
 0x187   : > { %v17416_v22 = vadd.f32 %v1658_v28, %v1342_v50  ;;  %4749 = vmatpush1.bf16.msra.mxu0 %v4687_v56  ;;  %v4641_v30 = vpop.permute.xlu1 %4640  ;;  %v4639_v33 = vpop.permute.xlu0 %4638  ;;  %4807 = vmatprep.mubr.bf16.mxu1 %v16316_v11 }
 0x188   : > { %v4669_v41 = vsel %vm4666_vm9, %v4637_v21, %v4639_v33  ;;  %v1622_v26 = vpop.f32.mrf.mxu1  ;;  %v1660_v52 = vpop.f32.mrf.mxu0  ;;  %v4670_v48 = vsel %vm4666_vm9, %v4639_v33, %v4641_v30 }
 0x189   : > { %v17430_v27 = vadd.f32 %v1660_v52, %v1343_v8  ;;  %6250 = vrot.lane.b32.xlu1 %v17398_v31, %s16327_s15  ;;  %6248 = vrot.lane.b32.xlu0 %v17409_v51, %s16327_s15  ;;  %v4693_v39 = vsel %vm429_vm0, %v4669_v41, 0 }
 0x18a   : > { %v1662_v21 = vpop.f32.mrf.mxu0  ;;  %v1699_v42 = vpop.f32.mrf.mxu1  ;;  %15410 = vmatmul.mubr.msk.bf16.vlgmr.msra.gmra.mxu0 %vm425_vm1, %v17421_v0  ;;  %15411 = vmatprep.subr.msk.bf16.mxu1 %vm429_vm0, %v4670_v48  ;;  %v1348_v48 = vadd.f32 %v17305_v59, %v16911_v38  ;;  %v1349_v38 = vadd.f32 %v17313_v57, %v16927_v32 }
 0x18b   : > { %v17444_v29 = vadd.f32 %v1699_v42, %v1344_v17  ;;  %4790 = vmatpush1.bf16.msra.mxu1 %v4693_v39  ;;  %v4645_v43 = vpop.permute.xlu1 %4644  ;;  %v4643_v19 = vpop.permute.xlu0 %4642  ;;  %4848 = vmatprep.mubr.bf16.mxu0 %v16316_v11 }
 0x18c   : > { %v4671_v1 = vsel %vm4666_vm9, %v4641_v30, %v4643_v19  ;;  %v1663_v2 = vpop.f32.mrf.mxu0  ;;  %v1701_v50 = vpop.f32.mrf.mxu1  ;;  %v4672_v56 = vsel %vm4666_vm9, %v4643_v19, %v4645_v43 }
 0x18d   : > { %v17451_v54 = vadd.f32 %v1701_v50, %v1345_v9  ;;  %6254 = vrot.lane.b32.xlu1 %v17426_v49, %s16327_s15  ;;  %6252 = vrot.lane.b32.xlu0 %v17437_v34, %s16327_s15  ;;  %v4699_v18 = vsel %vm429_vm0, %v4671_v1, 0  ;;  %v1350_v50 = vadd.f32 %v17324_v23, %v16952_v37  ;;  %v1351_v37 = vadd.f32 %v17332_v25, %v16968_v15 }
 0x18e   : > { %v1703_v35 = vpop.f32.mrf.mxu1  ;;  %v1740_v28 = vpop.f32.mrf.mxu0  ;;  %15412 = vmatmul.mubr.msk.bf16.vlgmr.msra.gmra.mxu1 %vm425_vm1, %v17421_v0  ;;  %15413 = vmatprep.subr.msk.bf16.mxu0 %vm429_vm0, %v4672_v56 }
 0x18f   : > { %v17463_v63 = vadd.f32 %v1740_v28, %v1346_v16  ;;  %4831 = vmatpush1.bf16.msra.mxu0 %v4699_v18  ;;  %v4649_v8 = vpop.permute.xlu1 %4648  ;;  %v4647_v30 = vpop.permute.xlu0 %4646  ;;  %4889 = vmatprep.mubr.bf16.mxu1 %v16316_v11 }
 0x190   : > { %v4673_v33 = vsel %vm4666_vm9, %v4645_v43, %v4647_v30  ;;  %v1704_v41 = vpop.f32.mrf.mxu1  ;;  %v1742_v26 = vpop.f32.mrf.mxu0  ;;  %v4674_v52 = vsel %vm4666_vm9, %v4647_v30, %v4649_v8 }
 0x191   : > { %v17470_v17 = vadd.f32 %v1742_v26, %v1347_v36  ;;  %6258 = vrot.lane.b32.xlu1 %v17172_v4, %s16327_s15  ;;  %6256 = vrot.lane.b32.xlu0 %v17174_v7, %s16327_s15  ;;  %v4705_v45 = vsel %vm429_vm0, %v4673_v33, 0  ;;  %v1352_v33 = vadd.f32 %v17343_v46, %v16954_v3  ;;  %v1353_v3 = vadd.f32 %v17351_v10, %v16970_v13 }
 0x192   : > { %v1744_v39 = vpop.f32.mrf.mxu0  ;;  %v1781_v21 = vpop.f32.mrf.mxu1  ;;  %15414 = vmatmul.mubr.msk.bf16.vlgmr.msra.gmra.mxu0 %vm425_vm1, %v17421_v0  ;;  %15415 = vmatprep.subr.msk.bf16.mxu1 %vm429_vm0, %v4674_v52 }
 0x193   : > { %v17482_v59 = vadd.f32 %v1781_v21, %v1348_v48  ;;  %4872 = vmatpush1.bf16.msra.mxu1 %v4705_v45  ;;  %v4653_v42 = vpop.permute.xlu1 %4652  ;;  %v4651_v9 = vpop.permute.xlu0 %4650  ;;  %4930 = vmatprep.mubr.bf16.mxu0 %v16316_v11 }
 0x194   : > { %v4675_v43 = vsel %vm4666_vm9, %v4649_v8, %v4651_v9  ;;  %v1745_v19 = vpop.f32.mrf.mxu0  ;;  %v1783_v1 = vpop.f32.mrf.mxu1  ;;  %v4676_v2 = vsel %vm4666_vm9, %v4651_v9, %v4653_v42 }
 0x195   : > { %v17489_v56 = vadd.f32 %v1783_v1, %v1349_v38  ;;  %6760 = vrot.lane.b32.xlu1 %v17303_v58, %s16328_s19  ;;  %6260 = vrot.lane.b32.xlu0 %v16185_v12, %s16327_s15  ;;  %v4711_v32 = vsel %vm429_vm0, %v4675_v43, 0  ;;  %s16333_s15 = smov 22  }
 0x196   : > { %v1785_v57 = vpop.f32.mrf.mxu1  ;;  %v1822_v16 = vpop.f32.mrf.mxu0  ;;  %15416 = vmatmul.mubr.msk.bf16.vlgmr.msra.gmra.mxu1 %vm425_vm1, %v17421_v0  ;;  %15417 = vmatprep.subr.msk.bf16.mxu0 %vm429_vm0, %v4676_v2 }
 0x197   : > { %v17500_v23 = vadd.f32 %v1822_v16, %v1350_v50  ;;  %4913 = vmatpush1.bf16.msra.mxu0 %v4711_v32  ;;  %v4657_v18 = vpop.permute.xlu1 %4656  ;;  %v4655_v35 = vpop.permute.xlu0 %4654  ;;  %4971 = vmatprep.mubr.bf16.mxu1 %v16316_v11 }
 0x198   : > { %v4677_v28 = vsel %vm4666_vm9, %v4653_v42, %v4655_v35  ;;  %v1786_v36 = vpop.f32.mrf.mxu1  ;;  %v1824_v8 = vpop.f32.mrf.mxu0  ;;  %v4678_v30 = vsel %vm4666_vm9, %v4655_v35, %v4657_v18 }
 0x199   : > { %v17507_v41 = vadd.f32 %v1824_v8, %v1351_v37  ;;  %6764 = vrot.lane.b32.xlu1 %v17322_v14, %s16328_s19  ;;  %6762 = vrot.lane.b32.xlu0 %v17301_v53, %s16328_s19  ;;  %v4717_v15 = vsel %vm429_vm0, %v4677_v28, 0 }
 0x19a   : > { %v1863_v25 = vpop.f32.mrf.mxu1  ;;  %15418 = vmatmul.mubr.msk.bf16.vlgmr.msra.gmra.mxu0 %vm425_vm1, %v17421_v0  ;;  %15419 = vmatprep.subr.msk.bf16.mxu1 %vm429_vm0, %v4678_v30  ;;  %v1826_v26 = vpop.f32.mrf.mxu0 }
 0x19b   : > { %v17519_v46 = vadd.f32 %v1863_v25, %v1352_v33  ;;  %4954 = vmatpush1.bf16.msra.mxu1 %v4717_v15  ;;  %v4661_v52 = vpop.permute.xlu1 %4660  ;;  %v4659_v48 = vpop.permute.xlu0 %4658  ;;  %5012 = vmatprep.mubr.bf16.mxu0 %v16316_v11 }
 0x19c   : > { %v4679_v45 = vsel %vm4666_vm9, %v4657_v18, %v4659_v48  ;;  %v1865_v12 = vpop.f32.mrf.mxu1  ;;  %v4680_v39 = vsel %vm4666_vm9, %v4659_v48, %v4661_v52  ;;  %v1827_v21 = vpop.f32.mrf.mxu0 }
 0x19d   : > { %v17524_v38 = vadd.f32 %v1865_v12, %v1353_v3  ;;  %6768 = vrot.lane.b32.xlu1 %v17341_v44, %s16328_s19  ;;  %6766 = vrot.lane.b32.xlu0 %v17320_v40, %s16328_s19  ;;  %v4723_v13 = vsel %vm429_vm0, %v4679_v45, 0  ;;  %v17580_v45 = vld [vmem:[%s20299_s0 + $0x24] sm:$0xf] }
 0x19e   : > { %15420 = vmatmul.mubr.msk.bf16.vlgmr.msra.gmra.mxu1 %vm425_vm1, %v17421_v0  ;;  %15421 = vmatprep.subr.msk.bf16.mxu0 %vm429_vm0, %v4680_v39  ;;  %v1867_v10 = vpop.f32.mrf.mxu1 }
 0x19f   : > { %4995 = vmatpush1.bf16.msra.mxu0 %v4723_v13  ;;  %v4665_v42 = vpop.permute.xlu1 %4664  ;;  %v4663_v9 = vpop.permute.xlu0 %4662  ;;  %5053 = vmatprep.mubr.bf16.mxu1 %v16316_v11 }
 0x1a0   : > { %v4681_v43 = vsel %vm4666_vm9, %v4661_v52, %v4663_v9  ;;  %v4682_v19 = vsel %vm4666_vm9, %v4663_v9, %v4665_v42  ;;  %v1868_v1 = vpop.f32.mrf.mxu1  ;;  %vm12114_vm9 = vcmask 826368  }
 0x1a1   : > { %6772 = vrot.lane.b32.xlu1 %v17362_v61, %s16328_s19  ;;  %6770 = vrot.lane.b32.xlu0 %v17339_v5, %s16328_s19  ;;  %v4729_v2 = vsel %vm429_vm0, %v4681_v43, 0 }
 0x1a2   : > { %v2108_v50 = vpop.f32.mrf.mxu0  ;;  %15422 = vmatmul.mubr.msk.bf16.vlgmr.msra.gmra.mxu0 %vm425_vm1, %v17421_v0  ;;  %15423 = vmatprep.subr.msk.bf16.mxu1 %vm429_vm0, %v4682_v19 }
 0x1a3   : > { %v17546_v32 = vadd.f32 %v2108_v50, %v17371_v6  ;;  %5036 = vmatpush1.bf16.msra.mxu1 %v4729_v2  ;;  %v5167_v57 = vpop.permute.xlu1 %5166  ;;  %v5165_v16 = vpop.permute.xlu0 %5164  ;;  %5298 = vmatprep.mubr.bf16.mxu0 %v16316_v11 }
 0x1a4   : > { %v2110_v37 = vpop.f32.mrf.mxu0  ;;  %v5199_v6 = vsel %vm5198_vm10, %v5165_v16, %v5167_v57 }
 0x1a5   : > { %v17550_v18 = vadd.f32 %v2110_v37, %v17379_v47  ;;  %6776 = vrot.lane.b32.xlu1 %v17385_v55, %s16328_s19  ;;  %6774 = vrot.lane.b32.xlu0 %v17360_v60, %s16328_s19 }
 0x1a6   : > { %v2112_v35 = vpop.f32.mrf.mxu0  ;;  %v2149_v28 = vpop.f32.mrf.mxu1  ;;  %15424 = vmatmul.mubr.msk.bf16.vlgmr.msra.gmra.mxu1 %vm425_vm1, %v17421_v0 }
 0x1a7   : > { %v17560_v36 = vadd.f32 %v2149_v28, %v17393_v62  ;;  %v5171_v8 = vpop.permute.xlu1 %5170  ;;  %v5169_v30 = vpop.permute.xlu0 %5168  ;;  %5339 = vmatprep.mubr.bf16.mxu1 %v16316_v11  ;;  %v5219_v62 = vsel %vm429_vm0, %v5199_v6, 0 }
 0x1a8   : > { %v2113_v47 = vpop.f32.mrf.mxu0  ;;  %v2151_v33 = vpop.f32.mrf.mxu1  ;;  %v5200_v15 = vsel %vm5198_vm10, %v5167_v57, %v5169_v30  ;;  %v5201_v3 = vsel %vm5198_vm10, %v5169_v30, %v5171_v8 }
 0x1a9   : > { %v17565_v25 = vadd.f32 %v2151_v33, %v17402_v20  ;;  %6780 = vrot.lane.b32.xlu1 %v17409_v51, %s16328_s19  ;;  %6778 = vrot.lane.b32.xlu0 %v17375_v24, %s16328_s19  ;;  %v5225_v42 = vsel %vm429_vm0, %v5201_v3, 0 }
 0x1aa   : > { %v2153_v0 = vpop.f32.mrf.mxu1  ;;  %v2190_v26 = vpop.f32.mrf.mxu0  ;;  %15443 = vmatprep.subr.msk.bf16.mxu0 %vm429_vm0, %v5200_v15 }
 0x1ab   : > { %v17575_v52 = vadd.f32 %v2190_v26, %v17416_v22  ;;  %5281 = vmatpush1.bf16.msra.mxu0 %v5219_v62  ;;  %v5175_v20 = vpop.permute.xlu1 %5174  ;;  %v5173_v48 = vpop.permute.xlu0 %5172 }
 0x1ac   : > { %v2154_v12 = vpop.f32.mrf.mxu1  ;;  %v2192_v39 = vpop.f32.mrf.mxu0  ;;  %v5202_v21 = vsel %vm5198_vm10, %v5171_v8, %v5173_v48  ;;  %v5203_v9 = vsel %vm5198_vm10, %v5173_v48, %v5175_v20 }
 0x1ad   : > { %v17584_v13 = vadd.f32 %v2192_v39, %v17430_v27  ;;  %6784 = vrot.lane.b32.xlu1 %v17437_v34, %s16328_s19  ;;  %6782 = vrot.lane.b32.xlu0 %v17398_v31, %s16328_s19  ;;  %v5231_v35 = vsel %vm429_vm0, %v5203_v9, 0 }
 0x1ae   : > { %v2194_v22 = vpop.f32.mrf.mxu0  ;;  %v2231_v10 = vpop.f32.mrf.mxu1  ;;  %15444 = vmatmul.mubr.msk.bf16.vlgmr.msra.gmra.mxu0 %vm425_vm1, %v17580_v45  ;;  %15445 = vmatprep.subr.msk.bf16.mxu1 %vm429_vm0, %v5202_v21 }
 0x1af   : > { %v17596_v27 = vadd.f32 %v2231_v10, %v17444_v29  ;;  %5322 = vmatpush1.bf16.msra.mxu1 %v5225_v42  ;;  %v5179_v43 = vpop.permute.xlu1 %5178  ;;  %v5177_v19 = vpop.permute.xlu0 %5176  ;;  %5380 = vmatprep.mubr.bf16.mxu0 %v16316_v11  ;;  %v16186_v29 = vld [vmem:[#allocation2 + $0x48] ss:$0 sps:$4 sm:$0xff]  }
 0x1b0   : > { %v2195_v1 = vpop.f32.mrf.mxu0  ;;  %v2233_v2 = vpop.f32.mrf.mxu1  ;;  %v5204_v50 = vsel %vm5198_vm10, %v5175_v20, %v5177_v19  ;;  %v5205_v28 = vsel %vm5198_vm10, %v5177_v19, %v5179_v43 }
 0x1b1   : > { %v17601_v57 = vadd.f32 %v2233_v2, %v17451_v54  ;;  %6788 = vrot.lane.b32.xlu1 %v17174_v7, %s16328_s19  ;;  %6786 = vrot.lane.b32.xlu0 %v17426_v49, %s16328_s19  ;;  %v5237_v62 = vsel %vm429_vm0, %v5205_v28, 0 }
 0x1b2   : > { %v2235_v16 = vpop.f32.mrf.mxu1  ;;  %v2272_v37 = vpop.f32.mrf.mxu0  ;;  %15446 = vmatmul.mubr.msk.bf16.vlgmr.msra.gmra.mxu1 %vm425_vm1, %v17580_v45  ;;  %15447 = vmatprep.subr.msk.bf16.mxu0 %vm429_vm0, %v5204_v50 }
 0x1b3   : > { %v17613_v54 = vadd.f32 %v2272_v37, %v17463_v63  ;;  %5363 = vmatpush1.bf16.msra.mxu0 %v5231_v35  ;;  %v5183_v7 = vpop.permute.xlu1 %5182  ;;  %v5181_v6 = vpop.permute.xlu0 %5180  ;;  %5421 = vmatprep.mubr.bf16.mxu1 %v16316_v11 }
 0x1b4   : > { %v2236_v8 = vpop.f32.mrf.mxu1  ;;  %v2274_v30 = vpop.f32.mrf.mxu0  ;;  %v5206_v47 = vsel %vm5198_vm10, %v5179_v43, %v5181_v6  ;;  %v5207_v0 = vsel %vm5198_vm10, %v5181_v6, %v5183_v7 }
 0x1b5   : > { %v17618_v33 = vadd.f32 %v2274_v30, %v17470_v17  ;;  %6792 = vrot.lane.b32.xlu1 %v16186_v29, %s16328_s19  ;;  %6790 = vrot.lane.b32.xlu0 %v17172_v4, %s16328_s19  ;;  %v5243_v21 = vsel %vm429_vm0, %v5207_v0, 0  ;;  %s16334_s19 = smov 120  }
 0x1b6   : > { %v2276_v15 = vpop.f32.mrf.mxu0  ;;  %v2313_v63 = vpop.f32.mrf.mxu1  ;;  %15448 = vmatmul.mubr.msk.bf16.vlgmr.msra.gmra.mxu0 %vm425_vm1, %v17580_v45  ;;  %15449 = vmatprep.subr.msk.bf16.mxu1 %vm429_vm0, %v5206_v47 }
 0x1b7   : > { %v17629_v26 = vadd.f32 %v2313_v63, %v17482_v59  ;;  %5404 = vmatpush1.bf16.msra.mxu1 %v5237_v62  ;;  %v5187_v17 = vpop.permute.xlu1 %5186  ;;  %v5185_v3 = vpop.permute.xlu0 %5184  ;;  %5462 = vmatprep.mubr.bf16.mxu0 %v16316_v11 }
 0x1b8   : > { %v2277_v4 = vpop.f32.mrf.mxu0  ;;  %v2315_v20 = vpop.f32.mrf.mxu1  ;;  %v5208_v48 = vsel %vm5198_vm10, %v5183_v7, %v5185_v3  ;;  %v5209_v22 = vsel %vm5198_vm10, %v5185_v3, %v5187_v17 }
 0x1b9   : > { %v17634_v12 = vadd.f32 %v2315_v20, %v17489_v56  ;;  %7294 = vrot.lane.b32.xlu1 %v17301_v53, %s16329_s9  ;;  %7292 = vrot.lane.b32.xlu0 %v17303_v58, %s16329_s9  ;;  %v5249_v50 = vsel %vm429_vm0, %v5209_v22, 0 }
 0x1ba   : > { %v2317_v59 = vpop.f32.mrf.mxu1  ;;  %v2354_v39 = vpop.f32.mrf.mxu0  ;;  %15450 = vmatmul.mubr.msk.bf16.vlgmr.msra.gmra.mxu1 %vm425_vm1, %v17580_v45  ;;  %15451 = vmatprep.subr.msk.bf16.mxu0 %vm429_vm0, %v5208_v48 }
 0x1bb   : > { %v17646_v56 = vadd.f32 %v2354_v39, %v17500_v23  ;;  %5445 = vmatpush1.bf16.msra.mxu0 %v5243_v21  ;;  %v5191_v10 = vpop.permute.xlu1 %5190  ;;  %v5189_v42 = vpop.permute.xlu0 %5188  ;;  %5503 = vmatprep.mubr.bf16.mxu1 %v16316_v11 }
 0x1bc   : > { %v2318_v9 = vpop.f32.mrf.mxu1  ;;  %v2356_v43 = vpop.f32.mrf.mxu0  ;;  %v5210_v19 = vsel %vm5198_vm10, %v5187_v17, %v5189_v42  ;;  %v5211_v29 = vsel %vm5198_vm10, %v5189_v42, %v5191_v10 }
 0x1bd   : > { %v17651_v1 = vadd.f32 %v2356_v43, %v17507_v41  ;;  %7298 = vrot.lane.b32.xlu1 %v17320_v40, %s16329_s9  ;;  %7296 = vrot.lane.b32.xlu0 %v17322_v14, %s16329_s9  ;;  %v5255_v30 = vsel %vm429_vm0, %v5211_v29, 0 }
 0x1be   : > { %v2358_v23 = vpop.f32.mrf.mxu0  ;;  %v2395_v2 = vpop.f32.mrf.mxu1  ;;  %15452 = vmatmul.mubr.msk.bf16.vlgmr.msra.gmra.mxu0 %vm425_vm1, %v17580_v45  ;;  %15453 = vmatprep.subr.msk.bf16.mxu1 %vm429_vm0, %v5210_v19 }
 0x1bf   : > { %v17663_v41 = vadd.f32 %v2395_v2, %v17519_v46  ;;  %5486 = vmatpush1.bf16.msra.mxu1 %v5249_v50  ;;  %v5195_v16 = vpop.permute.xlu1 %5194  ;;  %v5193_v37 = vpop.permute.xlu0 %5192  ;;  %5544 = vmatprep.mubr.bf16.mxu0 %v16316_v11  ;;  %v17718_v2 = vld [vmem:[%s20299_s0 + $0x28] sm:$0xf] }
 0x1c0   : > { %v2359_v35 = vpop.f32.mrf.mxu0  ;;  %v2397_v28 = vpop.f32.mrf.mxu1  ;;  %v5212_v7 = vsel %vm5198_vm10, %v5191_v10, %v5193_v37  ;;  %v5213_v47 = vsel %vm5198_vm10, %v5193_v37, %v5195_v16 }
 0x1c1   : > { %v17668_v6 = vadd.f32 %v2397_v28, %v17524_v38  ;;  %7302 = vrot.lane.b32.xlu1 %v17339_v5, %s16329_s9  ;;  %7300 = vrot.lane.b32.xlu0 %v17341_v44, %s16329_s9  ;;  %v5261_v20 = vsel %vm429_vm0, %v5213_v47, 0 }
 0x1c2   : > { %v2399_v46 = vpop.f32.mrf.mxu1  ;;  %v2640_v8 = vpop.f32.mrf.mxu0  ;;  %15454 = vmatmul.mubr.msk.bf16.vlgmr.msra.gmra.mxu1 %vm425_vm1, %v17580_v45  ;;  %15455 = vmatprep.subr.msk.bf16.mxu0 %vm429_vm0, %v5212_v7  ;;  %v7247_v7 = vld [vmem:[#allocation2 + $0x40] sm:$0xff] }
 0x1c3   : > { %v17680_v38 = vadd.f32 %v2640_v8, %v17546_v32  ;;  %5527 = vmatpush1.bf16.msra.mxu0 %v5255_v30  ;;  %v5697_v15 = vpop.permute.xlu1 %5696  ;;  %v5197_v63 = vpop.permute.xlu0 %5196  ;;  %5585 = vmatprep.mubr.bf16.mxu1 %v16316_v11 }
 0x1c4   : > { %v5214_v62 = vsel %vm5198_vm10, %v5195_v16, %v5197_v63  ;;  %v2400_v0 = vpop.f32.mrf.mxu1  ;;  %v2642_v17 = vpop.f32.mrf.mxu0  ;;  %vm12646_vm10 = vcmask 818176  }
 0x1c5   : > { %v17685_v3 = vadd.f32 %v2642_v17, %v17550_v18  ;;  %7306 = vrot.lane.b32.xlu1 %v17360_v60, %s16329_s9  ;;  %7304 = vrot.lane.b32.xlu0 %v17362_v61, %s16329_s9  ;;  %v17748_v0 = vcombine.high %v7247_v7, %v7247_v7  ;;  %v17750_v17 = vcombine.low %v7247_v7, %v7247_v7 }
 0x1c6   : > { %v2644_v32 = vpop.f32.mrf.mxu0  ;;  %v2681_v4 = vpop.f32.mrf.mxu1  ;;  %15456 = vmatmul.mubr.msk.bf16.vlgmr.msra.gmra.mxu0 %vm425_vm1, %v17580_v45  ;;  %15457 = vmatprep.subr.msk.bf16.mxu1 %vm429_vm0, %v5214_v62 }
 0x1c7   : > { %v17696_v48 = vadd.f32 %v2681_v4, %v17560_v36  ;;  %5568 = vmatpush1.bf16.msra.mxu1 %v5261_v20  ;;  %v5701_v18 = vpop.permute.xlu1 %5700  ;;  %v5699_v59 = vpop.permute.xlu0 %5698  ;;  %5830 = vmatprep.mubr.bf16.mxu0 %v16316_v11 }
 0x1c8   : > { %v5731_v39 = vsel %vm5730_vm11, %v5697_v15, %v5699_v59  ;;  %v2645_v21 = vpop.f32.mrf.mxu0  ;;  %v2683_v22 = vpop.f32.mrf.mxu1  ;;  %v5732_v10 = vsel %vm5730_vm11, %v5699_v59, %v5701_v18 }
 0x1c9   : > { %v17702_v42 = vadd.f32 %v2683_v22, %v17565_v25  ;;  %7310 = vrot.lane.b32.xlu1 %v17375_v24, %s16329_s9  ;;  %7308 = vrot.lane.b32.xlu0 %v17385_v55, %s16329_s9  ;;  %v5751_v36 = vsel %vm429_vm0, %v5731_v39, 0 }
 0x1ca   : > { %v2685_v9 = vpop.f32.mrf.mxu1  ;;  %v2722_v43 = vpop.f32.mrf.mxu0  ;;  %15458 = vmatmul.mubr.msk.bf16.vlgmr.msra.gmra.mxu1 %vm425_vm1, %v17580_v45  ;;  %15477 = vmatprep.subr.msk.bf16.mxu0 %vm429_vm0, %v5732_v10 }
 0x1cb   : > { %v17713_v19 = vadd.f32 %v2722_v43, %v17575_v52  ;;  %5813 = vmatpush1.bf16.msra.mxu0 %v5751_v36  ;;  %v5705_v25 = vpop.permute.xlu1 %5704  ;;  %v5703_v23 = vpop.permute.xlu0 %5702  ;;  %5871 = vmatprep.mubr.bf16.mxu1 %v16316_v11  ;;  %v16189_v36 = vld [vmem:[#allocation2 + $0x48] ss:$0 sps:$4 sm:$0xff]  }
 0x1cc   : > { %v5733_v50 = vsel %vm5730_vm11, %v5701_v18, %v5703_v23  ;;  %v2686_v29 = vpop.f32.mrf.mxu1  ;;  %v2724_v16 = vpop.f32.mrf.mxu0  ;;  %v5734_v45 = vsel %vm5730_vm11, %v5703_v23, %v5705_v25 }
 0x1cd   : > { %v17724_v37 = vadd.f32 %v2724_v16, %v17584_v13  ;;  %7314 = vrot.lane.b32.xlu1 %v17398_v31, %s16329_s9  ;;  %7312 = vrot.lane.b32.xlu0 %v17409_v51, %s16329_s9  ;;  %v5757_v52 = vsel %vm429_vm0, %v5733_v50, 0 }
 0x1ce   : > { %v2726_v35 = vpop.f32.mrf.mxu0  ;;  %v2763_v28 = vpop.f32.mrf.mxu1  ;;  %15478 = vmatmul.mubr.msk.bf16.vlgmr.msra.gmra.mxu0 %vm425_vm1, %v17718_v2  ;;  %15479 = vmatprep.subr.msk.bf16.mxu1 %vm429_vm0, %v5734_v45 }
 0x1cf   : > { %v17735_v46 = vadd.f32 %v2763_v28, %v17596_v27  ;;  %5854 = vmatpush1.bf16.msra.mxu1 %v5757_v52  ;;  %v5709_v13 = vpop.permute.xlu1 %5708  ;;  %v5707_v8 = vpop.permute.xlu0 %5706  ;;  %5912 = vmatprep.mubr.bf16.mxu0 %v16316_v11 }
 0x1d0   : > { %v5735_v30 = vsel %vm5730_vm11, %v5705_v25, %v5707_v8  ;;  %v2727_v47 = vpop.f32.mrf.mxu0  ;;  %v2765_v15 = vpop.f32.mrf.mxu1  ;;  %v5736_v63 = vsel %vm5730_vm11, %v5707_v8, %v5709_v13 }
 0x1d1   : > { %v17741_v62 = vadd.f32 %v2765_v15, %v17601_v57  ;;  %7318 = vrot.lane.b32.xlu1 %v17426_v49, %s16329_s9  ;;  %7316 = vrot.lane.b32.xlu0 %v17437_v34, %s16329_s9  ;;  %v5763_v27 = vsel %vm429_vm0, %v5735_v30, 0 }
 0x1d2   : > { %v2767_v32 = vpop.f32.mrf.mxu1  ;;  %v2804_v4 = vpop.f32.mrf.mxu0  ;;  %15480 = vmatmul.mubr.msk.bf16.vlgmr.msra.gmra.mxu1 %vm425_vm1, %v17718_v2  ;;  %15481 = vmatprep.subr.msk.bf16.mxu0 %vm429_vm0, %v5736_v63 }
 0x1d3   : > { %v17756_v57 = vadd.f32 %v2804_v4, %v17613_v54  ;;  %5895 = vmatpush1.bf16.msra.mxu0 %v5763_v27  ;;  %v5713_v20 = vpop.permute.xlu1 %5712  ;;  %v5711_v18 = vpop.permute.xlu0 %5710  ;;  %5953 = vmatprep.mubr.bf16.mxu1 %v16316_v11 }
 0x1d4   : > { %v5737_v59 = vsel %vm5730_vm11, %v5709_v13, %v5711_v18  ;;  %v2768_v39 = vpop.f32.mrf.mxu1  ;;  %v2806_v21 = vpop.f32.mrf.mxu0  ;;  %v5738_v22 = vsel %vm5730_vm11, %v5711_v18, %v5713_v20 }
 0x1d5   : > { %v17762_v10 = vadd.f32 %v2806_v21, %v17618_v33  ;;  %7322 = vrot.lane.b32.xlu1 %v17748_v0, %s16329_s9  ;;  %7320 = vrot.lane.b32.xlu0 %v17750_v17, %s16329_s9  ;;  %v5769_v54 = vsel %vm429_vm0, %v5737_v59, 0 }
 0x1d6   : > { %v2808_v9 = vpop.f32.mrf.mxu0  ;;  %v2845_v43 = vpop.f32.mrf.mxu1  ;;  %15482 = vmatmul.mubr.msk.bf16.vlgmr.msra.gmra.mxu0 %vm425_vm1, %v17718_v2  ;;  %15483 = vmatprep.subr.msk.bf16.mxu1 %vm429_vm0, %v5738_v22 }
 0x1d7   : > { %v17773_v25 = vadd.f32 %v2845_v43, %v17629_v26  ;;  %5936 = vmatpush1.bf16.msra.mxu1 %v5769_v54  ;;  %v5717_v33 = vpop.permute.xlu1 %5716  ;;  %v5715_v23 = vpop.permute.xlu0 %5714  ;;  %5994 = vmatprep.mubr.bf16.mxu0 %v16316_v11 }
 0x1d8   : > { %v5739_v50 = vsel %vm5730_vm11, %v5713_v20, %v5715_v23  ;;  %v2809_v29 = vpop.f32.mrf.mxu0  ;;  %v2847_v16 = vpop.f32.mrf.mxu1  ;;  %v5740_v45 = vsel %vm5730_vm11, %v5715_v23, %v5717_v33 }
 0x1d9   : > { %v17779_v52 = vadd.f32 %v2847_v16, %v17634_v12  ;;  %7824 = vrot.lane.b32.xlu1 %v17303_v58, %s16330_s13  ;;  %7324 = vrot.lane.b32.xlu0 %v16189_v36, %s16329_s9  ;;  %v5775_v26 = vsel %vm429_vm0, %v5739_v50, 0  ;;  %s16335_s9 = smov 119  }
 0x1da   : > { %v2849_v35 = vpop.f32.mrf.mxu1  ;;  %v2886_v28 = vpop.f32.mrf.mxu0  ;;  %15484 = vmatmul.mubr.msk.bf16.vlgmr.msra.gmra.mxu1 %vm425_vm1, %v17718_v2  ;;  %15485 = vmatprep.subr.msk.bf16.mxu0 %vm429_vm0, %v5740_v45 }
 0x1db   : > { %v17789_v7 = vadd.f32 %v2886_v28, %v17646_v56  ;;  %5977 = vmatpush1.bf16.msra.mxu0 %v5775_v26  ;;  %v5721_v12 = vpop.permute.xlu1 %5720  ;;  %v5719_v13 = vpop.permute.xlu0 %5718  ;;  %6035 = vmatprep.mubr.bf16.mxu1 %v16316_v11 }
 0x1dc   : > { %v5741_v58 = vsel %vm5730_vm11, %v5717_v33, %v5719_v13  ;;  %v2850_v8 = vpop.f32.mrf.mxu1  ;;  %v2888_v30 = vpop.f32.mrf.mxu0  ;;  %v5742_v47 = vsel %vm5730_vm11, %v5719_v13, %v5721_v12 }
 0x1dd   : > { %v17795_v15 = vadd.f32 %v2888_v30, %v17651_v1  ;;  %7828 = vrot.lane.b32.xlu1 %v17322_v14, %s16330_s13  ;;  %7826 = vrot.lane.b32.xlu0 %v17301_v53, %s16330_s13  ;;  %v5781_v56 = vsel %vm429_vm0, %v5741_v58, 0 }
 0x1de   : > { %v2927_v63 = vpop.f32.mrf.mxu1  ;;  %15486 = vmatmul.mubr.msk.bf16.vlgmr.msra.gmra.mxu0 %vm425_vm1, %v17718_v2  ;;  %15487 = vmatprep.subr.msk.bf16.mxu1 %vm429_vm0, %v5742_v47  ;;  %v2890_v27 = vpop.f32.mrf.mxu0 }
 0x1df   : > { %v17806_v32 = vadd.f32 %v2927_v63, %v17663_v41  ;;  %6018 = vmatpush1.bf16.msra.mxu1 %v5781_v56  ;;  %v5725_v1 = vpop.permute.xlu1 %5724  ;;  %v5723_v4 = vpop.permute.xlu0 %5722  ;;  %6076 = vmatprep.mubr.bf16.mxu0 %v16316_v11 }
 0x1e0   : > { %v5743_v14 = vsel %vm5730_vm11, %v5721_v12, %v5723_v4  ;;  %v2929_v53 = vpop.f32.mrf.mxu1  ;;  %v5744_v20 = vsel %vm5730_vm11, %v5723_v4, %v5725_v1  ;;  %v2891_v18 = vpop.f32.mrf.mxu0 }
 0x1e1   : > { %v17812_v59 = vadd.f32 %v2929_v53, %v17668_v6  ;;  %7832 = vrot.lane.b32.xlu1 %v17341_v44, %s16330_s13  ;;  %7830 = vrot.lane.b32.xlu0 %v17320_v40, %s16330_s13  ;;  %v5787_v41 = vsel %vm429_vm0, %v5743_v14, 0 }
 0x1e2   : > { %15488 = vmatmul.mubr.msk.bf16.vlgmr.msra.gmra.mxu1 %vm425_vm1, %v17718_v2  ;;  %15489 = vmatprep.subr.msk.bf16.mxu0 %vm429_vm0, %v5744_v20  ;;  %v2931_v39 = vpop.f32.mrf.mxu1 }
 0x1e3   : > { %6059 = vmatpush1.bf16.msra.mxu0 %v5787_v41  ;;  %v5729_v21 = vpop.permute.xlu1 %5728  ;;  %v5727_v22 = vpop.permute.xlu0 %5726  ;;  %6117 = vmatprep.mubr.bf16.mxu1 %v16316_v11  ;;  %v8304_v41 = vld [vmem:[#allocation2 + $0x8] sm:$0xff] }
 0x1e4   : > { %v5745_v6 = vsel %vm5730_vm11, %v5725_v1, %v5727_v22  ;;  %v5746_v44 = vsel %vm5730_vm11, %v5727_v22, %v5729_v21  ;;  %v2932_v54 = vpop.f32.mrf.mxu1  ;;  %vm13178_vm11 = vcmask 687104  }
 0x1e5   : > { %7836 = vrot.lane.b32.xlu1 %v17362_v61, %s16330_s13  ;;  %7834 = vrot.lane.b32.xlu0 %v17339_v5, %s16330_s13  ;;  %v5793_v40 = vsel %vm429_vm0, %v5745_v6, 0 }
 0x1e6   : > { %v3172_v36 = vpop.f32.mrf.mxu0  ;;  %15490 = vmatmul.mubr.msk.bf16.vlgmr.msra.gmra.mxu0 %vm425_vm1, %v17718_v2  ;;  %15491 = vmatprep.subr.msk.bf16.mxu1 %vm429_vm0, %v5746_v44 }
 0x1e7   : > { %v17834_v9 = vadd.f32 %v3172_v36, %v17680_v38  ;;  %6100 = vmatpush1.bf16.msra.mxu1 %v5793_v40  ;;  %v6231_v43 = vpop.permute.xlu1 %6230  ;;  %v6229_v33 = vpop.permute.xlu0 %6228  ;;  %6362 = vmatprep.mubr.bf16.mxu0 %v16316_v11  ;;  %v17911_v40 = vcombine.high %v8304_v41, %v8304_v41 }
 0x1e8   : > { %v3174_v61 = vpop.f32.mrf.mxu0  ;;  %v6263_v38 = vsel %vm6262_vm12, %v6229_v33, %v6231_v43 }
 0x1e9   : > { %v17838_v5 = vadd.f32 %v3174_v61, %v17685_v3  ;;  %7840 = vrot.lane.b32.xlu1 %v17385_v55, %s16330_s13  ;;  %7838 = vrot.lane.b32.xlu0 %v17360_v60, %s16330_s13 }
 0x1ea   : > { %v3176_v23 = vpop.f32.mrf.mxu0  ;;  %v3213_v50 = vpop.f32.mrf.mxu1  ;;  %15492 = vmatmul.mubr.msk.bf16.vlgmr.msra.gmra.mxu1 %vm425_vm1, %v17718_v2 }
 0x1eb   : > { %v17848_v29 = vadd.f32 %v3213_v50, %v17696_v48  ;;  %v6235_v16 = vpop.permute.xlu1 %6234  ;;  %v6233_v45 = vpop.permute.xlu0 %6232  ;;  %6403 = vmatprep.mubr.bf16.mxu1 %v16316_v11  ;;  %v6283_v48 = vsel %vm429_vm0, %v6263_v38, 0 }
 0x1ec   : > { %v3177_v3 = vpop.f32.mrf.mxu0  ;;  %v3215_v26 = vpop.f32.mrf.mxu1  ;;  %v6264_v55 = vsel %vm6262_vm12, %v6231_v43, %v6233_v45  ;;  %v6265_v28 = vsel %vm6262_vm12, %v6233_v45, %v6235_v16 }
 0x1ed   : > { %v17853_v60 = vadd.f32 %v3215_v26, %v17702_v42  ;;  %7844 = vrot.lane.b32.xlu1 %v17409_v51, %s16330_s13  ;;  %7842 = vrot.lane.b32.xlu0 %v17375_v24, %s16330_s13  ;;  %v17868_v51 = vld [vmem:[%s20299_s0 + $0x2c] sm:$0xf]  ;;  %v6289_v56 = vsel %vm429_vm0, %v6265_v28, 0 }
 0x1ee   : > { %v3217_v2 = vpop.f32.mrf.mxu1  ;;  %v3254_v35 = vpop.f32.mrf.mxu0  ;;  %15511 = vmatprep.subr.msk.bf16.mxu0 %vm429_vm0, %v6264_v55 }
 0x1ef   : > { %v17863_v12 = vadd.f32 %v3254_v35, %v17713_v19  ;;  %6345 = vmatpush1.bf16.msra.mxu0 %v6283_v48  ;;  %v6239_v42 = vpop.permute.xlu1 %6238  ;;  %v6237_v13 = vpop.permute.xlu0 %6236  ;;  %v8306_v35 = vld [vmem:[#allocation2 + $0x18] sm:$0xff] }
 0x1f0   : > { %v3218_v24 = vpop.f32.mrf.mxu1  ;;  %v3256_v58 = vpop.f32.mrf.mxu0  ;;  %v6266_v8 = vsel %vm6262_vm12, %v6235_v16, %v6237_v13  ;;  %v6267_v63 = vsel %vm6262_vm12, %v6237_v13, %v6239_v42 }
 0x1f1   : > { %v17872_v30 = vadd.f32 %v3256_v58, %v17724_v37  ;;  %7848 = vrot.lane.b32.xlu1 %v17437_v34, %s16330_s13  ;;  %7846 = vrot.lane.b32.xlu0 %v17398_v31, %s16330_s13  ;;  %v6295_v18 = vsel %vm429_vm0, %v6267_v63, 0 }
 0x1f2   : > { %v3258_v19 = vpop.f32.mrf.mxu0  ;;  %v3295_v47 = vpop.f32.mrf.mxu1  ;;  %15512 = vmatmul.mubr.msk.bf16.vlgmr.msra.gmra.mxu0 %vm425_vm1, %v17868_v51  ;;  %15513 = vmatprep.subr.msk.bf16.mxu1 %vm429_vm0, %v6266_v8 }
 0x1f3   : > { %v17884_v37 = vadd.f32 %v3295_v47, %v17735_v46  ;;  %6386 = vmatpush1.bf16.msra.mxu1 %v6289_v56  ;;  %v6243_v27 = vpop.permute.xlu1 %6242  ;;  %v6241_v34 = vpop.permute.xlu0 %6240  ;;  %6444 = vmatprep.mubr.bf16.mxu0 %v16316_v11  ;;  %v16194_v46 = vld [vmem:[#allocation2 + $0x48] ss:$0 sps:$4 sm:$0xff]   ;;  %v17955_v56 = vcombine.low %v8306_v35, %v8306_v35 }
 0x1f4   : > { %v3259_v31 = vpop.f32.mrf.mxu0  ;;  %v3297_v1 = vpop.f32.mrf.mxu1  ;;  %v6268_v4 = vsel %vm6262_vm12, %v6239_v42, %v6241_v34 }
 0x1f5   : > { %v17889_v14 = vadd.f32 %v3297_v1, %v17741_v62  ;;  %7852 = vrot.lane.b32.xlu1 %v17750_v17, %s16330_s13  ;;  %7850 = vrot.lane.b32.xlu0 %v17426_v49, %s16330_s13  ;;  %v6269_v62 = vsel %vm6262_vm12, %v6241_v34, %v6243_v27  ;;  %v8307_v34 = vld [vmem:[#allocation2 + $0x20] sm:$0xff] }
 0x1f6   : > { %v3299_v53 = vpop.f32.mrf.mxu1  ;;  %v3336_v20 = vpop.f32.mrf.mxu0  ;;  %15514 = vmatmul.mubr.msk.bf16.vlgmr.msra.gmra.mxu1 %vm425_vm1, %v17868_v51  ;;  %15515 = vmatprep.subr.msk.bf16.mxu0 %vm429_vm0, %v6268_v4  ;;  %v6301_v33 = vsel %vm429_vm0, %v6269_v62, 0  ;;  %v17976_v62 = vcombine.low %v8307_v34, %v8307_v34 }
 0x1f7   : > { %v17901_v39 = vadd.f32 %v3336_v20, %v17756_v57  ;;  %6427 = vmatpush1.bf16.msra.mxu0 %v6295_v18  ;;  %v6247_v21 = vpop.permute.xlu1 %6246  ;;  %v6245_v22 = vpop.permute.xlu0 %6244  ;;  %6485 = vmatprep.mubr.bf16.mxu1 %v16316_v11  ;;  %v17913_v57 = vcombine.low %v8304_v41, %v8304_v41 }
 0x1f8   : > { %v3300_v49 = vpop.f32.mrf.mxu1  ;;  %v3338_v6 = vpop.f32.mrf.mxu0  ;;  %v6270_v44 = vsel %vm6262_vm12, %v6243_v27, %v6245_v22  ;;  %v6271_v61 = vsel %vm6262_vm12, %v6245_v22, %v6247_v21 }
 0x1f9   : > { %v17906_v54 = vadd.f32 %v3338_v6, %v17762_v10  ;;  %7856 = vrot.lane.b32.xlu1 %v16194_v46, %s16330_s13  ;;  %7854 = vrot.lane.b32.xlu0 %v17748_v0, %s16330_s13  ;;  %v8305_v10 = vld [vmem:[#allocation2 + $0x10] sm:$0xff]  ;;  %v8308_v49 = vld [vmem:[#allocation2 + $0x28] sm:$0xff]  ;;  %s16336_s13 = smov 118  }
 0x1fa   : > { %v3340_v36 = vpop.f32.mrf.mxu0  ;;  %v3377_v43 = vpop.f32.mrf.mxu1  ;;  %15516 = vmatmul.mubr.msk.bf16.vlgmr.msra.gmra.mxu0 %vm425_vm1, %v17868_v51  ;;  %15517 = vmatprep.subr.msk.bf16.mxu1 %vm429_vm0, %v6270_v44  ;;  %v17934_v55 = vcombine.low %v8305_v10, %v8305_v10 }
 0x1fb   : > { %v17921_v23 = vadd.f32 %v3377_v43, %v17773_v25  ;;  %6468 = vmatpush1.bf16.msra.mxu1 %v6301_v33  ;;  %v6251_v50 = vpop.permute.xlu1 %6250  ;;  %v6249_v38 = vpop.permute.xlu0 %6248  ;;  %6526 = vmatprep.mubr.bf16.mxu0 %v16316_v11  ;;  %v17932_v25 = vcombine.high %v8305_v10, %v8305_v10 }
 0x1fc   : > { %v3341_v16 = vpop.f32.mrf.mxu0  ;;  %v3379_v45 = vpop.f32.mrf.mxu1  ;;  %v6272_v3 = vsel %vm6262_vm12, %v6247_v21, %v6249_v38  ;;  %v6273_v28 = vsel %vm6262_vm12, %v6249_v38, %v6251_v50  ;;  %v17997_v38 = vcombine.low %v8308_v49, %v8308_v49 }
 0x1fd   : > { %v17926_v26 = vadd.f32 %v3379_v45, %v17779_v52  ;;  %8358 = vrot.lane.b32.xlu1 %v17911_v40, %s16331_s24  ;;  %8356 = vrot.lane.b32.xlu0 %v17913_v57, %s16331_s24  ;;  %v6307_v52 = vsel %vm429_vm0, %v6271_v61, 0 }
 0x1fe   : > { %v3381_v48 = vpop.f32.mrf.mxu1  ;;  %v3418_v2 = vpop.f32.mrf.mxu0  ;;  %15518 = vmatmul.mubr.msk.bf16.vlgmr.msra.gmra.mxu1 %vm425_vm1, %v17868_v51  ;;  %15519 = vmatprep.subr.msk.bf16.mxu0 %vm429_vm0, %v6272_v3  ;;  %v8309_v3 = vld [vmem:[#allocation2 + $0x30] sm:$0xff] }
 0x1ff   : > { %v17942_v42 = vadd.f32 %v3418_v2, %v17789_v7  ;;  %6509 = vmatpush1.bf16.msra.mxu0 %v6307_v52  ;;  %v6255_v13 = vpop.permute.xlu1 %6254  ;;  %v6253_v24 = vpop.permute.xlu0 %6252  ;;  %6567 = vmatprep.mubr.bf16.mxu1 %v16316_v11  ;;  %v17953_v7 = vcombine.high %v8306_v35, %v8306_v35 }
 0x200   : > { %v3382_v58 = vpop.f32.mrf.mxu1  ;;  %v3420_v8 = vpop.f32.mrf.mxu0  ;;  %v6274_v19 = vsel %vm6262_vm12, %v6251_v50, %v6253_v24  ;;  %v6275_v31 = vsel %vm6262_vm12, %v6253_v24, %v6255_v13 }
 0x201   : > { %v17947_v47 = vadd.f32 %v3420_v8, %v17795_v15  ;;  %8362 = vrot.lane.b32.xlu1 %v17932_v25, %s16331_s24  ;;  %8360 = vrot.lane.b32.xlu0 %v17934_v55, %s16331_s24  ;;  %v6313_v15 = vsel %vm429_vm0, %v6273_v28, 0  ;;  %v18017_v8 = vcombine.high %v8309_v3, %v8309_v3 }
 0x202   : > { %v3422_v63 = vpop.f32.mrf.mxu0  ;;  %v3459_v27 = vpop.f32.mrf.mxu1  ;;  %15520 = vmatmul.mubr.msk.bf16.vlgmr.msra.gmra.mxu0 %vm425_vm1, %v17868_v51  ;;  %15521 = vmatprep.subr.msk.bf16.mxu1 %vm429_vm0, %v6274_v19  ;;  %v18019_v19 = vcombine.low %v8309_v3, %v8309_v3 }
 0x203   : > { %v17963_v1 = vadd.f32 %v3459_v27, %v17806_v32  ;;  %6550 = vmatpush1.bf16.msra.mxu1 %v6313_v15  ;;  %v6259_v4 = vpop.permute.xlu1 %6258  ;;  %v6257_v46 = vpop.permute.xlu0 %6256  ;;  %6608 = vmatprep.mubr.bf16.mxu0 %v16316_v11  ;;  %v17974_v32 = vcombine.high %v8307_v34, %v8307_v34 }
 0x204   : > { %v3423_v53 = vpop.f32.mrf.mxu0  ;;  %v3461_v20 = vpop.f32.mrf.mxu1  ;;  %v6276_v18 = vsel %vm6262_vm12, %v6255_v13, %v6257_v46  ;;  %v6277_v6 = vsel %vm6262_vm12, %v6257_v46, %v6259_v4 }
 0x205   : > { %v17968_v41 = vadd.f32 %v3461_v20, %v17812_v59  ;;  %8366 = vrot.lane.b32.xlu1 %v17953_v7, %s16331_s24  ;;  %8364 = vrot.lane.b32.xlu0 %v17955_v56, %s16331_s24  ;;  %v6319_v59 = vsel %vm429_vm0, %v6275_v31, 0 }
 0x206   : > { %v3463_v21 = vpop.f32.mrf.mxu1  ;;  %v3704_v22 = vpop.f32.mrf.mxu0  ;;  %15522 = vmatmul.mubr.msk.bf16.vlgmr.msra.gmra.mxu1 %vm425_vm1, %v17868_v51  ;;  %15523 = vmatprep.subr.msk.bf16.mxu0 %vm429_vm0, %v6276_v18 }
 0x207   : > { %v17984_v44 = vadd.f32 %v3704_v22, %v17834_v9  ;;  %6591 = vmatpush1.bf16.msra.mxu0 %v6319_v59  ;;  %v6761_v36 = vpop.permute.xlu1 %6760  ;;  %v6261_v43 = vpop.permute.xlu0 %6260  ;;  %6649 = vmatprep.mubr.bf16.mxu1 %v16316_v11  ;;  %v17995_v9 = vcombine.high %v8308_v49, %v8308_v49 }
 0x208   : > { %v6278_v33 = vsel %vm6262_vm12, %v6259_v4, %v6261_v43  ;;  %v3464_v10 = vpop.f32.mrf.mxu1  ;;  %v3706_v61 = vpop.f32.mrf.mxu0  ;;  %v18030_v4 = vld [vmem:[%s20299_s0 + $0x30] sm:$0xf]  ;;  %vm13710_vm12 = vcmask 678912  }
 0x209   : > { %v17989_v50 = vadd.f32 %v3706_v61, %v17838_v5  ;;  %8370 = vrot.lane.b32.xlu1 %v17974_v32, %s16331_s24  ;;  %8368 = vrot.lane.b32.xlu0 %v17976_v62, %s16331_s24  ;;  %v6325_v5 = vsel %vm429_vm0, %v6277_v6, 0 }
 0x20a   : > { %v3708_v16 = vpop.f32.mrf.mxu0  ;;  %v3745_v45 = vpop.f32.mrf.mxu1  ;;  %15524 = vmatmul.mubr.msk.bf16.vlgmr.msra.gmra.mxu0 %vm425_vm1, %v17868_v51  ;;  %15525 = vmatprep.subr.msk.bf16.mxu1 %vm429_vm0, %v6278_v33 }
 0x20b   : > { %v18004_v48 = vadd.f32 %v3745_v45, %v17848_v29  ;;  %6632 = vmatpush1.bf16.msra.mxu1 %v6325_v5  ;;  %v6765_v2 = vpop.permute.xlu1 %6764  ;;  %v6763_v52 = vpop.permute.xlu0 %6762  ;;  %6894 = vmatprep.mubr.bf16.mxu0 %v16316_v11 }
 0x20c   : > { %v6795_v35 = vsel %vm6794_vm13, %v6761_v36, %v6763_v52  ;;  %v3709_v28 = vpop.f32.mrf.mxu0  ;;  %v3747_v13 = vpop.f32.mrf.mxu1  ;;  %v6796_v24 = vsel %vm6794_vm13, %v6763_v52, %v6765_v2 }
 0x20d   : > { %v18010_v58 = vadd.f32 %v3747_v13, %v17853_v60  ;;  %8374 = vrot.lane.b32.xlu1 %v17995_v9, %s16331_s24  ;;  %8372 = vrot.lane.b32.xlu0 %v17997_v38, %s16331_s24  ;;  %v6815_v29 = vsel %vm429_vm0, %v6795_v35, 0  ;;  %v8310_v60 = vld [vmem:[#allocation2 + $0x38] sm:$0xff] }
 0x20e   : > { %v3749_v63 = vpop.f32.mrf.mxu1  ;;  %v3786_v27 = vpop.f32.mrf.mxu0  ;;  %15526 = vmatmul.mubr.msk.bf16.vlgmr.msra.gmra.mxu1 %vm425_vm1, %v17868_v51  ;;  %15545 = vmatprep.subr.msk.bf16.mxu0 %vm429_vm0, %v6796_v24  ;;  %v18043_v21 = vcombine.high %v8310_v60, %v8310_v60  ;;  %v18045_v22 = vcombine.low %v8310_v60, %v8310_v60 }
 0x20f   : > { %v18025_v15 = vadd.f32 %v3786_v27, %v17863_v12  ;;  %6877 = vmatpush1.bf16.msra.mxu0 %v6815_v29  ;;  %v6769_v34 = vpop.permute.xlu1 %6768  ;;  %v6767_v31 = vpop.permute.xlu0 %6766  ;;  %6935 = vmatprep.mubr.bf16.mxu1 %v16316_v11  ;;  %v16209_v29 = vld [vmem:[#allocation2 + $0x48] ss:$0 sps:$4 sm:$0xff]  }
 0x210   : > { %v6797_v46 = vsel %vm6794_vm13, %v6765_v2, %v6767_v31  ;;  %v3750_v53 = vpop.f32.mrf.mxu1  ;;  %v3788_v51 = vpop.f32.mrf.mxu0  ;;  %v6798_v20 = vsel %vm6794_vm13, %v6767_v31, %v6769_v34 }
 0x211   : > { %v18036_v18 = vadd.f32 %v3788_v51, %v17872_v30  ;;  %8378 = vrot.lane.b32.xlu1 %v18017_v8, %s16331_s24  ;;  %8376 = vrot.lane.b32.xlu0 %v18019_v19, %s16331_s24  ;;  %v6821_v12 = vsel %vm429_vm0, %v6797_v46, 0 }
 0x212   : > { %v3790_v59 = vpop.f32.mrf.mxu0  ;;  %v3827_v49 = vpop.f32.mrf.mxu1  ;;  %15546 = vmatmul.mubr.msk.bf16.vlgmr.msra.gmra.mxu0 %vm425_vm1, %v18030_v4  ;;  %15547 = vmatprep.subr.msk.bf16.mxu1 %vm429_vm0, %v6798_v20 }
 0x213   : > { %v18051_v30 = vadd.f32 %v3827_v49, %v17884_v37  ;;  %6918 = vmatpush1.bf16.msra.mxu1 %v6821_v12  ;;  %v6773_v6 = vpop.permute.xlu1 %6772  ;;  %v6771_v36 = vpop.permute.xlu0 %6770  ;;  %6976 = vmatprep.mubr.bf16.mxu0 %v16316_v11 }
 0x214   : > { %v6799_v43 = vsel %vm6794_vm13, %v6769_v34, %v6771_v36  ;;  %v3791_v33 = vpop.f32.mrf.mxu0  ;;  %v3829_v10 = vpop.f32.mrf.mxu1  ;;  %v6800_v61 = vsel %vm6794_vm13, %v6771_v36, %v6773_v6 }
 0x215   : > { %v18057_v16 = vadd.f32 %v3829_v10, %v17889_v14  ;;  %8382 = vrot.lane.b32.xlu1 %v18043_v21, %s16331_s24  ;;  %8380 = vrot.lane.b32.xlu0 %v18045_v22, %s16331_s24  ;;  %v6827_v37 = vsel %vm429_vm0, %v6799_v43, 0 }
 0x216   : > { %v3831_v45 = vpop.f32.mrf.mxu1  ;;  %v3868_v5 = vpop.f32.mrf.mxu0  ;;  %15548 = vmatmul.mubr.msk.bf16.vlgmr.msra.gmra.mxu1 %vm425_vm1, %v18030_v4  ;;  %15549 = vmatprep.subr.msk.bf16.mxu0 %vm429_vm0, %v6800_v61 }
 0x217   : > { %v18068_v3 = vadd.f32 %v3868_v5, %v17901_v39  ;;  %6959 = vmatpush1.bf16.msra.mxu0 %v6827_v37  ;;  %v6777_v14 = vpop.permute.xlu1 %6776  ;;  %v6775_v2 = vpop.permute.xlu0 %6774  ;;  %7017 = vmatprep.mubr.bf16.mxu1 %v16316_v11 }
 0x218   : > { %v6801_v52 = vsel %vm6794_vm13, %v6773_v6, %v6775_v2  ;;  %v3832_v35 = vpop.f32.mrf.mxu1  ;;  %v3870_v28 = vpop.f32.mrf.mxu0  ;;  %v6802_v13 = vsel %vm6794_vm13, %v6775_v2, %v6777_v14 }
 0x219   : > { %v18074_v24 = vadd.f32 %v3870_v28, %v17906_v54  ;;  %8386 = vrot.lane.b32.xlu1 %v17748_v0, %s16331_s24  ;;  %8384 = vrot.lane.b32.xlu0 %v17750_v17, %s16331_s24  ;;  %v6833_v39 = vsel %vm429_vm0, %v6801_v52, 0 }
 0x21a   : > { %v3872_v63 = vpop.f32.mrf.mxu0  ;;  %v3909_v27 = vpop.f32.mrf.mxu1  ;;  %15550 = vmatmul.mubr.msk.bf16.vlgmr.msra.gmra.mxu0 %vm425_vm1, %v18030_v4  ;;  %15551 = vmatprep.subr.msk.bf16.mxu1 %vm429_vm0, %v6802_v13 }
 0x21b   : > { %v18085_v60 = vadd.f32 %v3909_v27, %v17921_v23  ;;  %7000 = vmatpush1.bf16.msra.mxu1 %v6833_v39  ;;  %v6781_v54 = vpop.permute.xlu1 %6780  ;;  %v6779_v34 = vpop.permute.xlu0 %6778  ;;  %7058 = vmatprep.mubr.bf16.mxu0 %v16316_v11 }
 0x21c   : > { %v6803_v31 = vsel %vm6794_vm13, %v6777_v14, %v6779_v34  ;;  %v3873_v46 = vpop.f32.mrf.mxu0  ;;  %v3911_v53 = vpop.f32.mrf.mxu1  ;;  %v6804_v51 = vsel %vm6794_vm13, %v6779_v34, %v6781_v54 }
 0x21d   : > { %v18091_v20 = vadd.f32 %v3911_v53, %v17926_v26  ;;  %8888 = vrot.lane.b32.xlu1 %v17913_v57, %s16332_s29  ;;  %8388 = vrot.lane.b32.xlu0 %v16209_v29, %s16331_s24  ;;  %v6839_v23 = vsel %vm429_vm0, %v6803_v31, 0  ;;  %s16337_s24 = smov 102  }
 0x21e   : > { %v3913_v12 = vpop.f32.mrf.mxu1  ;;  %v3950_v59 = vpop.f32.mrf.mxu0  ;;  %15552 = vmatmul.mubr.msk.bf16.vlgmr.msra.gmra.mxu1 %vm425_vm1, %v18030_v4  ;;  %15553 = vmatprep.subr.msk.bf16.mxu0 %vm429_vm0, %v6804_v51 }
 0x21f   : > { %v18101_v49 = vadd.f32 %v3950_v59, %v17942_v42  ;;  %7041 = vmatpush1.bf16.msra.mxu0 %v6839_v23  ;;  %v6785_v26 = vpop.permute.xlu1 %6784  ;;  %v6783_v6 = vpop.permute.xlu0 %6782  ;;  %7099 = vmatprep.mubr.bf16.mxu1 %v16316_v11 }
 0x220   : > { %v6805_v36 = vsel %vm6794_vm13, %v6781_v54, %v6783_v6  ;;  %v3914_v43 = vpop.f32.mrf.mxu1  ;;  %v3952_v33 = vpop.f32.mrf.mxu0  ;;  %v6806_v10 = vsel %vm6794_vm13, %v6783_v6, %v6785_v26 }
 0x221   : > { %v18107_v61 = vadd.f32 %v3952_v33, %v17947_v47  ;;  %8892 = vrot.lane.b32.xlu1 %v17934_v55, %s16332_s29  ;;  %8890 = vrot.lane.b32.xlu0 %v17911_v40, %s16332_s29  ;;  %v6845_v42 = vsel %vm429_vm0, %v6805_v36, 0 }
 0x222   : > { %v3991_v37 = vpop.f32.mrf.mxu1  ;;  %15554 = vmatmul.mubr.msk.bf16.vlgmr.msra.gmra.mxu0 %vm425_vm1, %v18030_v4  ;;  %15555 = vmatprep.subr.msk.bf16.mxu1 %vm429_vm0, %v6806_v10  ;;  %v3954_v45 = vpop.f32.mrf.mxu0 }
 0x223   : > { %v18118_v5 = vadd.f32 %v3991_v37, %v17963_v1  ;;  %7082 = vmatpush1.bf16.msra.mxu1 %v6845_v42  ;;  %v6789_v47 = vpop.permute.xlu1 %6788  ;;  %v6787_v14 = vpop.permute.xlu0 %6786  ;;  %7140 = vmatprep.mubr.bf16.mxu0 %v16316_v11 }
 0x224   : > { %v6807_v2 = vsel %vm6794_vm13, %v6785_v26, %v6787_v14  ;;  %v3993_v52 = vpop.f32.mrf.mxu1  ;;  %v6808_v35 = vsel %vm6794_vm13, %v6787_v14, %v6789_v47  ;;  %v3955_v28 = vpop.f32.mrf.mxu0 }
 0x225   : > { %v18124_v13 = vadd.f32 %v3993_v52, %v17968_v41  ;;  %8896 = vrot.lane.b32.xlu1 %v17955_v56, %s16332_s29  ;;  %8894 = vrot.lane.b32.xlu0 %v17932_v25, %s16332_s29  ;;  %v6851_v1 = vsel %vm429_vm0, %v6807_v2, 0  ;;  %v18180_v2 = vld [vmem:[%s20299_s0 + $0x34] sm:$0xf] }
 0x226   : > { %15556 = vmatmul.mubr.msk.bf16.vlgmr.msra.gmra.mxu1 %vm425_vm1, %v18030_v4  ;;  %15557 = vmatprep.subr.msk.bf16.mxu0 %vm429_vm0, %v6808_v35  ;;  %v3995_v39 = vpop.f32.mrf.mxu1 }
 0x227   : > { %7123 = vmatpush1.bf16.msra.mxu0 %v6851_v1  ;;  %v6793_v29 = vpop.permute.xlu1 %6792  ;;  %v6791_v63 = vpop.permute.xlu0 %6790  ;;  %7181 = vmatprep.mubr.bf16.mxu1 %v16316_v11 }
 0x228   : > { %v6809_v41 = vsel %vm6794_vm13, %v6789_v47, %v6791_v63  ;;  %v6810_v27 = vsel %vm6794_vm13, %v6791_v63, %v6793_v29  ;;  %v3996_v54 = vpop.f32.mrf.mxu1  ;;  %vm14242_vm13 = vcmask 670720  }
 0x229   : > { %8900 = vrot.lane.b32.xlu1 %v17976_v62, %s16332_s29  ;;  %8898 = vrot.lane.b32.xlu0 %v17953_v7, %s16332_s29  ;;  %v6857_v34 = vsel %vm429_vm0, %v6809_v41, 0 }
 0x22a   : > { %v4236_v31 = vpop.f32.mrf.mxu0  ;;  %15558 = vmatmul.mubr.msk.bf16.vlgmr.msra.gmra.mxu0 %vm425_vm1, %v18030_v4  ;;  %15559 = vmatprep.subr.msk.bf16.mxu1 %vm429_vm0, %v6810_v27 }
 0x22b   : > { %v18146_v46 = vadd.f32 %v4236_v31, %v17984_v44  ;;  %7164 = vmatpush1.bf16.msra.mxu1 %v6857_v34  ;;  %v7295_v53 = vpop.permute.xlu1 %7294  ;;  %v7293_v51 = vpop.permute.xlu0 %7292  ;;  %7426 = vmatprep.mubr.bf16.mxu0 %v16316_v11 }
 0x22c   : > { %v4238_v23 = vpop.f32.mrf.mxu0  ;;  %v7327_v44 = vsel %vm7326_vm14, %v7293_v51, %v7295_v53 }
 0x22d   : > { %v18150_v12 = vadd.f32 %v4238_v23, %v17989_v50  ;;  %8904 = vrot.lane.b32.xlu1 %v17997_v38, %s16332_s29  ;;  %8902 = vrot.lane.b32.xlu0 %v17974_v32, %s16332_s29 }
 0x22e   : > { %v4240_v59 = vpop.f32.mrf.mxu0  ;;  %v4277_v26 = vpop.f32.mrf.mxu1  ;;  %15560 = vmatmul.mubr.msk.bf16.vlgmr.msra.gmra.mxu1 %vm425_vm1, %v18030_v4 }
 0x22f   : > { %v18160_v6 = vadd.f32 %v4277_v26, %v18004_v48  ;;  %v7299_v36 = vpop.permute.xlu1 %7298  ;;  %v7297_v43 = vpop.permute.xlu0 %7296  ;;  %7467 = vmatprep.mubr.bf16.mxu1 %v16316_v11  ;;  %v7347_v48 = vsel %vm429_vm0, %v7327_v44, 0 }
 0x230   : > { %v4241_v50 = vpop.f32.mrf.mxu0  ;;  %v4279_v33 = vpop.f32.mrf.mxu1  ;;  %v7328_v10 = vsel %vm7326_vm14, %v7295_v53, %v7297_v43  ;;  %v7329_v45 = vsel %vm7326_vm14, %v7297_v43, %v7299_v36 }
 0x231   : > { %v18165_v42 = vadd.f32 %v4279_v33, %v18010_v58  ;;  %8908 = vrot.lane.b32.xlu1 %v18019_v19, %s16332_s29  ;;  %8906 = vrot.lane.b32.xlu0 %v17995_v9, %s16332_s29  ;;  %v7353_v29 = vsel %vm429_vm0, %v7329_v45, 0 }
 0x232   : > { %v4281_v4 = vpop.f32.mrf.mxu1  ;;  %v4318_v37 = vpop.f32.mrf.mxu0  ;;  %15579 = vmatprep.subr.msk.bf16.mxu0 %vm429_vm0, %v7328_v10 }
 0x233   : > { %v18175_v47 = vadd.f32 %v4318_v37, %v18025_v15  ;;  %7409 = vmatpush1.bf16.msra.mxu0 %v7347_v48  ;;  %v7303_v58 = vpop.permute.xlu1 %7302  ;;  %v7301_v14 = vpop.permute.xlu0 %7300 }
 0x234   : > { %v4282_v52 = vpop.f32.mrf.mxu1  ;;  %v4320_v35 = vpop.f32.mrf.mxu0  ;;  %v7330_v28 = vsel %vm7326_vm14, %v7299_v36, %v7301_v14  ;;  %v7331_v63 = vsel %vm7326_vm14, %v7301_v14, %v7303_v58 }
 0x235   : > { %v18184_v1 = vadd.f32 %v4320_v35, %v18036_v18  ;;  %8912 = vrot.lane.b32.xlu1 %v18045_v22, %s16332_s29  ;;  %8910 = vrot.lane.b32.xlu0 %v18017_v8, %s16332_s29  ;;  %v7359_v59 = vsel %vm429_vm0, %v7331_v63, 0 }
 0x236   : > { %v4322_v15 = vpop.f32.mrf.mxu0  ;;  %v4359_v39 = vpop.f32.mrf.mxu1  ;;  %15580 = vmatmul.mubr.msk.bf16.vlgmr.msra.gmra.mxu0 %vm425_vm1, %v18180_v2  ;;  %15581 = vmatprep.subr.msk.bf16.mxu1 %vm429_vm0, %v7330_v28 }
 0x237   : > { %v18196_v18 = vadd.f32 %v4359_v39, %v18051_v30  ;;  %7450 = vmatpush1.bf16.msra.mxu1 %v7353_v29  ;;  %v7307_v41 = vpop.permute.xlu1 %7306  ;;  %v7305_v27 = vpop.permute.xlu0 %7304  ;;  %7508 = vmatprep.mubr.bf16.mxu0 %v16316_v11  ;;  %v16210_v30 = vld [vmem:[#allocation2 + $0x48] ss:$0 sps:$4 sm:$0xff]  }
 0x238   : > { %v4323_v54 = vpop.f32.mrf.mxu0  ;;  %v4361_v34 = vpop.f32.mrf.mxu1  ;;  %v7332_v31 = vsel %vm7326_vm14, %v7303_v58, %v7305_v27  ;;  %v7333_v26 = vsel %vm7326_vm14, %v7305_v27, %v7307_v41 }
 0x239   : > { %v18201_v53 = vadd.f32 %v4361_v34, %v18057_v16  ;;  %8916 = vrot.lane.b32.xlu1 %v17750_v17, %s16332_s29  ;;  %8914 = vrot.lane.b32.xlu0 %v18043_v21, %s16332_s29  ;;  %v7365_v48 = vsel %vm429_vm0, %v7333_v26, 0 }
 0x23a   : > { %v4363_v51 = vpop.f32.mrf.mxu1  ;;  %v4400_v23 = vpop.f32.mrf.mxu0  ;;  %15582 = vmatmul.mubr.msk.bf16.vlgmr.msra.gmra.mxu1 %vm425_vm1, %v18180_v2  ;;  %15583 = vmatprep.subr.msk.bf16.mxu0 %vm429_vm0, %v7332_v31 }
 0x23b   : > { %v18213_v16 = vadd.f32 %v4400_v23, %v18068_v3  ;;  %7491 = vmatpush1.bf16.msra.mxu0 %v7359_v59  ;;  %v7311_v17 = vpop.permute.xlu1 %7310  ;;  %v7309_v44 = vpop.permute.xlu0 %7308  ;;  %7549 = vmatprep.mubr.bf16.mxu1 %v16316_v11 }
 0x23c   : > { %v4364_v36 = vpop.f32.mrf.mxu1  ;;  %v4402_v43 = vpop.f32.mrf.mxu0  ;;  %v7334_v50 = vsel %vm7326_vm14, %v7307_v41, %v7309_v44  ;;  %v7335_v4 = vsel %vm7326_vm14, %v7309_v44, %v7311_v17 }
 0x23d   : > { %v18218_v33 = vadd.f32 %v4402_v43, %v18074_v24  ;;  %8920 = vrot.lane.b32.xlu1 %v16210_v30, %s16332_s29  ;;  %8918 = vrot.lane.b32.xlu0 %v17748_v0, %s16332_s29  ;;  %v7371_v28 = vsel %vm429_vm0, %v7335_v4, 0  ;;  %s16338_s29 = smov 101  }
 0x23e   : > { %v4404_v10 = vpop.f32.mrf.mxu0  ;;  %v4441_v3 = vpop.f32.mrf.mxu1  ;;  %15584 = vmatmul.mubr.msk.bf16.vlgmr.msra.gmra.mxu0 %vm425_vm1, %v18180_v2  ;;  %15585 = vmatprep.subr.msk.bf16.mxu1 %vm429_vm0, %v7334_v50 }
 0x23f   : > { %v18229_v37 = vadd.f32 %v4441_v3, %v18085_v60  ;;  %7532 = vmatpush1.bf16.msra.mxu1 %v7365_v48  ;;  %v7315_v24 = vpop.permute.xlu1 %7314  ;;  %v7313_v45 = vpop.permute.xlu0 %7312  ;;  %7590 = vmatprep.mubr.bf16.mxu0 %v16316_v11 }
 0x240   : > { %v4405_v0 = vpop.f32.mrf.mxu0  ;;  %v4443_v58 = vpop.f32.mrf.mxu1  ;;  %v7336_v14 = vsel %vm7326_vm14, %v7311_v17, %v7313_v45  ;;  %v7337_v15 = vsel %vm7326_vm14, %v7313_v45, %v7315_v24 }
 0x241   : > { %v18234_v52 = vadd.f32 %v4443_v58, %v18091_v20  ;;  %9422 = vrot.lane.b32.xlu1 %v17911_v40, %s16333_s15  ;;  %9420 = vrot.lane.b32.xlu0 %v17913_v57, %s16333_s15  ;;  %v7377_v54 = vsel %vm429_vm0, %v7337_v15, 0 }
 0x242   : > { %v4445_v60 = vpop.f32.mrf.mxu1  ;;  %v4482_v35 = vpop.f32.mrf.mxu0  ;;  %15586 = vmatmul.mubr.msk.bf16.vlgmr.msra.gmra.mxu1 %vm425_vm1, %v18180_v2  ;;  %15587 = vmatprep.subr.msk.bf16.mxu0 %vm429_vm0, %v7336_v14 }
 0x243   : > { %v18246_v20 = vadd.f32 %v4482_v35, %v18101_v49  ;;  %7573 = vmatpush1.bf16.msra.mxu0 %v7371_v28  ;;  %v7319_v39 = vpop.permute.xlu1 %7318  ;;  %v7317_v40 = vpop.permute.xlu0 %7316  ;;  %7631 = vmatprep.mubr.bf16.mxu1 %v16316_v11 }
 0x244   : > { %v4446_v57 = vpop.f32.mrf.mxu1  ;;  %v4484_v29 = vpop.f32.mrf.mxu0  ;;  %v7338_v63 = vsel %vm7326_vm14, %v7315_v24, %v7317_v40  ;;  %v7339_v34 = vsel %vm7326_vm14, %v7317_v40, %v7319_v39 }
 0x245   : > { %v18251_v41 = vadd.f32 %v4484_v29, %v18107_v61  ;;  %9426 = vrot.lane.b32.xlu1 %v17932_v25, %s16333_s15  ;;  %9424 = vrot.lane.b32.xlu0 %v17934_v55, %s16333_s15  ;;  %v7383_v26 = vsel %vm429_vm0, %v7339_v34, 0  ;;  %v9375_v29 = vld [vmem:[#allocation2 + $0x40] sm:$0xff] }
 0x246   : > { %v4486_v49 = vpop.f32.mrf.mxu0  ;;  %v4523_v27 = vpop.f32.mrf.mxu1  ;;  %15588 = vmatmul.mubr.msk.bf16.vlgmr.msra.gmra.mxu0 %vm425_vm1, %v18180_v2  ;;  %15589 = vmatprep.subr.msk.bf16.mxu1 %vm429_vm0, %v7338_v63 }
 0x247   : > { %v18263_v61 = vadd.f32 %v4523_v27, %v18118_v5  ;;  %7614 = vmatpush1.bf16.msra.mxu1 %v7377_v54  ;;  %v7323_v31 = vpop.permute.xlu1 %7322  ;;  %v7321_v25 = vpop.permute.xlu0 %7320  ;;  %7672 = vmatprep.mubr.bf16.mxu0 %v16316_v11 }
 0x248   : > { %v4487_v55 = vpop.f32.mrf.mxu0  ;;  %v4525_v30 = vpop.f32.mrf.mxu1  ;;  %v7340_v51 = vsel %vm7326_vm14, %v7319_v39, %v7321_v25  ;;  %v7341_v17 = vsel %vm7326_vm14, %v7321_v25, %v7323_v31  ;;  %v15712_v25 = vcombine.low %v9375_v29, %v9375_v29 }
 0x249   : > { %v18268_v23 = vadd.f32 %v4525_v30, %v18124_v13  ;;  %9430 = vrot.lane.b32.xlu1 %v17953_v7, %s16333_s15  ;;  %9428 = vrot.lane.b32.xlu0 %v17955_v56, %s16333_s15  ;;  %v7389_v3 = vsel %vm429_vm0, %v7341_v17, 0 }
 0x24a   : > { %v4527_v5 = vpop.f32.mrf.mxu1  ;;  %v4768_v59 = vpop.f32.mrf.mxu0  ;;  %15590 = vmatmul.mubr.msk.bf16.vlgmr.msra.gmra.mxu1 %vm425_vm1, %v18180_v2  ;;  %15591 = vmatprep.subr.msk.bf16.mxu0 %vm429_vm0, %v7340_v51  ;;  %v9900_v51 = vld [vmem:[#allocation2 + $0x14] sm:$0xff] }
 0x24b   : > { %v18280_v13 = vadd.f32 %v4768_v59, %v18146_v46  ;;  %7655 = vmatpush1.bf16.msra.mxu0 %v7383_v26  ;;  %v7825_v44 = vpop.permute.xlu1 %7824  ;;  %v7325_v7 = vpop.permute.xlu0 %7324  ;;  %7713 = vmatprep.mubr.bf16.mxu1 %v16316_v11 }
 0x24c   : > { %v7342_v56 = vsel %vm7326_vm14, %v7323_v31, %v7325_v7  ;;  %v4528_v36 = vpop.f32.mrf.mxu1  ;;  %v4770_v43 = vpop.f32.mrf.mxu0  ;;  %v15713_v31 = vcombine.high %v9375_v29, %v9375_v29  ;;  %v18363_v7 = vcombine.low %v9900_v51, %v9900_v51 }
 0x24d   : > { %v18285_v50 = vadd.f32 %v4770_v43, %v18150_v12  ;;  %9434 = vrot.lane.b32.xlu1 %v17974_v32, %s16333_s15  ;;  %9432 = vrot.lane.b32.xlu0 %v17976_v62, %s16333_s15 }
 0x24e   : > { %v4772_v46 = vpop.f32.mrf.mxu0  ;;  %v4809_v10 = vpop.f32.mrf.mxu1  ;;  %15592 = vmatmul.mubr.msk.bf16.vlgmr.msra.gmra.mxu0 %vm425_vm1, %v18180_v2  ;;  %15593 = vmatprep.subr.msk.bf16.mxu1 %vm429_vm0, %v7342_v56  ;;  %v16214_v56 = vld [vmem:[#allocation2 + $0x48] ss:$0 sps:$4 sm:$0xff]  }
 0x24f   : > { %v18296_v48 = vadd.f32 %v4809_v10, %v18160_v6  ;;  %7696 = vmatpush1.bf16.msra.mxu1 %v7389_v3  ;;  %v7829_v12 = vpop.permute.xlu1 %7828  ;;  %v7827_v4 = vpop.permute.xlu0 %7826  ;;  %7958 = vmatprep.mubr.bf16.mxu0 %v16316_v11  ;;  %v9901_v46 = vld [vmem:[#allocation2 + $0x1c] sm:$0xff] }
 0x250   : > { %v7859_v32 = vsel %vm7858_vm15, %v7825_v44, %v7827_v4  ;;  %v4773_v62 = vpop.f32.mrf.mxu0  ;;  %v4811_v24 = vpop.f32.mrf.mxu1  ;;  %v7860_v45 = vsel %vm7858_vm15, %v7827_v4, %v7829_v12  ;;  %v18404_v29 = vcombine.high %v9901_v46, %v9901_v46 }
 0x251   : > { %v18302_v0 = vadd.f32 %v4811_v24, %v18165_v42  ;;  %9438 = vrot.lane.b32.xlu1 %v17995_v9, %s16333_s15  ;;  %9436 = vrot.lane.b32.xlu0 %v17997_v38, %s16333_s15  ;;  %v7879_v6 = vsel %vm429_vm0, %v7859_v32, 0  ;;  %v18318_v9 = vld [vmem:[%s20299_s0 + $0x38] sm:$0xf] }
 0x252   : > { %v4813_v58 = vpop.f32.mrf.mxu1  ;;  %v4850_v14 = vpop.f32.mrf.mxu0  ;;  %15594 = vmatmul.mubr.msk.bf16.vlgmr.msra.gmra.mxu1 %vm425_vm1, %v18180_v2  ;;  %15613 = vmatprep.subr.msk.bf16.mxu0 %vm429_vm0, %v7860_v45  ;;  %v18381_v45 = vcombine.low %v9901_v46, %v9901_v46  ;;  %v9905_v46 = vld [vmem:[#allocation2 + $0x3c] sm:$0xff] }
 0x253   : > { %v18313_v60 = vadd.f32 %v4850_v14, %v18175_v47  ;;  %7941 = vmatpush1.bf16.msra.mxu0 %v7879_v6  ;;  %v7833_v42 = vpop.permute.xlu1 %7832  ;;  %v7831_v35 = vpop.permute.xlu0 %7830  ;;  %7999 = vmatprep.mubr.bf16.mxu1 %v16316_v11  ;;  %v18383_v6 = vcombine.high %v9900_v51, %v9900_v51 }
 0x254   : > { %v7861_v38 = vsel %vm7858_vm15, %v7829_v12, %v7831_v35  ;;  %v4814_v28 = vpop.f32.mrf.mxu1  ;;  %v4852_v15 = vpop.f32.mrf.mxu0  ;;  %v7862_v2 = vsel %vm7858_vm15, %v7831_v35, %v7833_v42 }
 0x255   : > { %v18324_v39 = vadd.f32 %v4852_v15, %v18184_v1  ;;  %9442 = vrot.lane.b32.xlu1 %v18017_v8, %s16333_s15  ;;  %9440 = vrot.lane.b32.xlu0 %v18019_v19, %s16333_s15  ;;  %v7885_v47 = vsel %vm429_vm0, %v7861_v38, 0 }
 0x256   : > { %v4854_v40 = vpop.f32.mrf.mxu0  ;;  %v4891_v57 = vpop.f32.mrf.mxu1  ;;  %15614 = vmatmul.mubr.msk.bf16.vlgmr.msra.gmra.mxu0 %vm425_vm1, %v18318_v9  ;;  %15615 = vmatprep.subr.msk.bf16.mxu1 %vm429_vm0, %v7862_v2 }
 0x257   : > { %v18335_v63 = vadd.f32 %v4891_v57, %v18196_v18  ;;  %7982 = vmatpush1.bf16.msra.mxu1 %v7885_v47  ;;  %v7837_v1 = vpop.permute.xlu1 %7836  ;;  %v7835_v49 = vpop.permute.xlu0 %7834  ;;  %8040 = vmatprep.mubr.bf16.mxu0 %v16316_v11 }
 0x258   : > { %v7863_v8 = vsel %vm7858_vm15, %v7833_v42, %v7835_v49  ;;  %v4855_v19 = vpop.f32.mrf.mxu0  ;;  %v4893_v27 = vpop.f32.mrf.mxu1  ;;  %v7864_v54 = vsel %vm7858_vm15, %v7835_v49, %v7837_v1  ;;  %v9903_v49 = vld [vmem:[#allocation2 + $0x2c] sm:$0xff] }
 0x259   : > { %v18341_v34 = vadd.f32 %v4893_v27, %v18201_v53  ;;  %9446 = vrot.lane.b32.xlu1 %v18043_v21, %s16333_s15  ;;  %9444 = vrot.lane.b32.xlu0 %v18045_v22, %s16333_s15  ;;  %v7891_v18 = vsel %vm429_vm0, %v7863_v8, 0 }
 0x25a   : > { %v4895_v55 = vpop.f32.mrf.mxu1  ;;  %v4932_v30 = vpop.f32.mrf.mxu0  ;;  %15616 = vmatmul.mubr.msk.bf16.vlgmr.msra.gmra.mxu1 %vm425_vm1, %v18318_v9  ;;  %15617 = vmatprep.subr.msk.bf16.mxu0 %vm429_vm0, %v7864_v54 }
 0x25b   : > { %v18352_v53 = vadd.f32 %v4932_v30, %v18213_v16  ;;  %8023 = vmatpush1.bf16.msra.mxu0 %v7891_v18  ;;  %v7841_v21 = vpop.permute.xlu1 %7840  ;;  %v7839_v5 = vpop.permute.xlu0 %7838  ;;  %8081 = vmatprep.mubr.bf16.mxu1 %v16316_v11  ;;  %v18423_v30 = vcombine.low %v9903_v49, %v9903_v49 }
 0x25c   : > { %v7865_v22 = vsel %vm7858_vm15, %v7837_v1, %v7839_v5  ;;  %v4896_v59 = vpop.f32.mrf.mxu1  ;;  %v4934_v26 = vpop.f32.mrf.mxu0  ;;  %v7866_v17 = vsel %vm7858_vm15, %v7839_v5, %v7841_v21 }
 0x25d   : > { %v18358_v44 = vadd.f32 %v4934_v26, %v18218_v33  ;;  %9450 = vrot.lane.b32.xlu1 %v15713_v31, %s16333_s15  ;;  %9448 = vrot.lane.b32.xlu0 %v15712_v25, %s16333_s15  ;;  %v7897_v16 = vsel %vm429_vm0, %v7865_v22, 0 }
 0x25e   : > { %v4936_v36 = vpop.f32.mrf.mxu0  ;;  %v4973_v43 = vpop.f32.mrf.mxu1  ;;  %15618 = vmatmul.mubr.msk.bf16.vlgmr.msra.gmra.mxu0 %vm425_vm1, %v18318_v9  ;;  %15619 = vmatprep.subr.msk.bf16.mxu1 %vm429_vm0, %v7866_v17 }
 0x25f   : > { %v18369_v33 = vadd.f32 %v4973_v43, %v18229_v37  ;;  %8064 = vmatpush1.bf16.msra.mxu1 %v7897_v16  ;;  %v7845_v10 = vpop.permute.xlu1 %7844  ;;  %v7843_v3 = vpop.permute.xlu0 %7842  ;;  %8122 = vmatprep.mubr.bf16.mxu0 %v16316_v11  ;;  %v18440_v36 = vcombine.high %v9903_v49, %v9903_v49  ;;  %v9907_v49 = vld [vmem:[#allocation2 + $0x4c] sm:$0xff] }
 0x260   : > { %v7867_v12 = vsel %vm7858_vm15, %v7841_v21, %v7843_v3  ;;  %v4937_v4 = vpop.f32.mrf.mxu0  ;;  %v4975_v32 = vpop.f32.mrf.mxu1  ;;  %v7868_v62 = vsel %vm7858_vm15, %v7843_v3, %v7845_v10 }
 0x261   : > { %v18375_v24 = vadd.f32 %v4975_v32, %v18234_v52  ;;  %9952 = vrot.lane.b32.xlu1 %v18363_v7, %s16334_s19  ;;  %9452 = vrot.lane.b32.xlu0 %v16214_v56, %s16333_s15  ;;  %v7903_v37 = vsel %vm429_vm0, %v7867_v12, 0  ;;  %v9902_v52 = vld [vmem:[#allocation2 + $0x24] sm:$0xff]  ;;  %s16339_s15 = smov 100  }
 0x262   : > { %v4977_v58 = vpop.f32.mrf.mxu1  ;;  %v5014_v14 = vpop.f32.mrf.mxu0  ;;  %15620 = vmatmul.mubr.msk.bf16.vlgmr.msra.gmra.mxu1 %vm425_vm1, %v18318_v9  ;;  %15621 = vmatprep.subr.msk.bf16.mxu0 %vm429_vm0, %v7868_v62  ;;  %v18402_v57 = vcombine.low %v9902_v52, %v9902_v52  ;;  %v18425_v51 = vcombine.high %v9902_v52, %v9902_v52  ;;  %v18456_v62 = vcombine.low %v9905_v46, %v9905_v46 }
 0x263   : > { %v18389_v42 = vadd.f32 %v5014_v14, %v18246_v20  ;;  %8105 = vmatpush1.bf16.msra.mxu0 %v7903_v37  ;;  %v7849_v35 = vpop.permute.xlu1 %7848  ;;  %v7847_v38 = vpop.permute.xlu0 %7846  ;;  %8163 = vmatprep.mubr.bf16.mxu1 %v16316_v11  ;;  %v9906_v14 = vld [vmem:[#allocation2 + $0x44] sm:$0xff] }
 0x264   : > { %v7869_v28 = vsel %vm7858_vm15, %v7845_v10, %v7847_v38  ;;  %v4978_v15 = vpop.f32.mrf.mxu1  ;;  %v5016_v2 = vpop.f32.mrf.mxu0  ;;  %v7870_v47 = vsel %vm7858_vm15, %v7847_v38, %v7849_v35 }
 0x265   : > { %v18395_v40 = vadd.f32 %v5016_v2, %v18251_v41  ;;  %9956 = vrot.lane.b32.xlu1 %v18381_v45, %s16334_s19  ;;  %9954 = vrot.lane.b32.xlu0 %v18383_v6, %s16334_s19  ;;  %v7909_v20 = vsel %vm429_vm0, %v7869_v28, 0 }
 0x266   : > { %v5055_v1 = vpop.f32.mrf.mxu1  ;;  %15622 = vmatmul.mubr.msk.bf16.vlgmr.msra.gmra.mxu0 %vm425_vm1, %v18318_v9  ;;  %15623 = vmatprep.subr.msk.bf16.mxu1 %vm429_vm0, %v7870_v47  ;;  %v5018_v41 = vpop.f32.mrf.mxu0 }
 0x267   : > { %v18410_v8 = vadd.f32 %v5055_v1, %v18263_v61  ;;  %8146 = vmatpush1.bf16.msra.mxu1 %v7909_v20  ;;  %v7853_v19 = vpop.permute.xlu1 %7852  ;;  %v7851_v27 = vpop.permute.xlu0 %7850  ;;  %8204 = vmatprep.mubr.bf16.mxu0 %v16316_v11 }
 0x268   : > { %v7871_v54 = vsel %vm7858_vm15, %v7849_v35, %v7851_v27  ;;  %v5057_v18 = vpop.f32.mrf.mxu1  ;;  %v7872_v31 = vsel %vm7858_vm15, %v7851_v27, %v7853_v19  ;;  %v5019_v25 = vpop.f32.mrf.mxu0 }
 0x269   : > { %v18416_v55 = vadd.f32 %v5057_v18, %v18268_v23  ;;  %9960 = vrot.lane.b32.xlu1 %v18402_v57, %s16334_s19  ;;  %9958 = vrot.lane.b32.xlu0 %v18404_v29, %s16334_s19  ;;  %v7915_v61 = vsel %vm429_vm0, %v7871_v54, 0  ;;  %v9904_v23 = vld [vmem:[#allocation2 + $0x34] sm:$0xff]  ;;  %v18488_v18 = vld [vmem:[%s20299_s0 + $0x3c] sm:$0xf] }
 0x26a   : > { %15624 = vmatmul.mubr.msk.bf16.vlgmr.msra.gmra.mxu1 %vm425_vm1, %v18318_v9  ;;  %15625 = vmatprep.subr.msk.bf16.mxu0 %vm429_vm0, %v7872_v31  ;;  %v5059_v21 = vpop.f32.mrf.mxu1  ;;  %v18438_v56 = vcombine.low %v9904_v23, %v9904_v23 }
 0x26b   : > { %8187 = vmatpush1.bf16.msra.mxu0 %v7915_v61  ;;  %v7857_v5 = vpop.permute.xlu1 %7856  ;;  %v7855_v22 = vpop.permute.xlu0 %7854  ;;  %8245 = vmatprep.mubr.bf16.mxu1 %v16316_v11 }
 0x26c   : > { %v7873_v59 = vsel %vm7858_vm15, %v7853_v19, %v7855_v22  ;;  %v7874_v26 = vsel %vm7858_vm15, %v7855_v22, %v7857_v5  ;;  %v5060_v17 = vpop.f32.mrf.mxu1 }
 0x26d   : > { %9964 = vrot.lane.b32.xlu1 %v18423_v30, %s16334_s19  ;;  %9962 = vrot.lane.b32.xlu0 %v18425_v51, %s16334_s19  ;;  %v7921_v16 = vsel %vm429_vm0, %v7873_v59, 0 }
 0x26e   : > { %v5300_v43 = vpop.f32.mrf.mxu0  ;;  %15626 = vmatmul.mubr.msk.bf16.vlgmr.msra.gmra.mxu0 %vm425_vm1, %v18318_v9  ;;  %15627 = vmatprep.subr.msk.bf16.mxu1 %vm429_vm0, %v7874_v26 }
 0x26f   : > { %v18446_v10 = vadd.f32 %v5300_v43, %v18280_v13  ;;  %8228 = vmatpush1.bf16.msra.mxu1 %v7921_v16  ;;  %v8359_v3 = vpop.permute.xlu1 %8358  ;;  %v8357_v12 = vpop.permute.xlu0 %8356  ;;  %8490 = vmatprep.mubr.bf16.mxu0 %v16316_v11  ;;  %v18458_v13 = vcombine.high %v9904_v23, %v9904_v23  ;;  %v18500_v23 = vcombine.high %v9906_v14, %v9906_v14 }
 0x270   : > { %v5302_v4 = vpop.f32.mrf.mxu0  ;;  %v8391_v52 = vsel %vm8390_vm2, %v8357_v12, %v8359_v3 }
 0x271   : > { %v18450_v32 = vadd.f32 %v5302_v4, %v18285_v50  ;;  %9968 = vrot.lane.b32.xlu1 %v18438_v56, %s16334_s19  ;;  %9966 = vrot.lane.b32.xlu0 %v18440_v36, %s16334_s19  ;;  %v8411_v20 = vsel %vm429_vm0, %v8391_v52, 0  ;;  %v18519_v4 = vcombine.high %v9907_v49, %v9907_v49 }
 0x272   : > { %v5304_v37 = vpop.f32.mrf.mxu0  ;;  %v5341_v58 = vpop.f32.mrf.mxu1  ;;  %15628 = vmatmul.mubr.msk.bf16.vlgmr.msra.gmra.mxu1 %vm425_vm1, %v18318_v9  ;;  %v18475_v9 = vcombine.low %v9906_v14, %v9906_v14 }
 0x273   : > { %v18464_v50 = vadd.f32 %v5341_v58, %v18296_v48  ;;  %v8363_v35 = vpop.permute.xlu1 %8362  ;;  %v8361_v38 = vpop.permute.xlu0 %8360  ;;  %8531 = vmatprep.mubr.bf16.mxu1 %v16316_v11  ;;  %v18477_v48 = vcombine.high %v9905_v46, %v9905_v46 }
 0x274   : > { %v5305_v28 = vpop.f32.mrf.mxu0  ;;  %v5343_v15 = vpop.f32.mrf.mxu1  ;;  %v8392_v2 = vsel %vm8390_vm2, %v8359_v3, %v8361_v38 }
 0x275   : > { %v18469_v47 = vadd.f32 %v5343_v15, %v18302_v0  ;;  %9972 = vrot.lane.b32.xlu1 %v18456_v62, %s16334_s19  ;;  %9970 = vrot.lane.b32.xlu0 %v18458_v13, %s16334_s19  ;;  %v8393_v0 = vsel %vm8390_vm2, %v8361_v38, %v8363_v35 }
 0x276   : > { %v5345_v1 = vpop.f32.mrf.mxu1  ;;  %v5382_v41 = vpop.f32.mrf.mxu0  ;;  %15647 = vmatprep.subr.msk.bf16.mxu0 %vm429_vm0, %v8392_v2 }
 0x277   : > { %v18483_v19 = vadd.f32 %v5382_v41, %v18313_v60  ;;  %8473 = vmatpush1.bf16.msra.mxu0 %v8411_v20  ;;  %v8367_v27 = vpop.permute.xlu1 %8366  ;;  %v8365_v54 = vpop.permute.xlu0 %8364  ;;  %v18498_v60 = vcombine.low %v9907_v49, %v9907_v49 }
 0x278   : > { %v5346_v31 = vpop.f32.mrf.mxu1  ;;  %v5384_v25 = vpop.f32.mrf.mxu0  ;;  %v8394_v61 = vsel %vm8390_vm2, %v8363_v35, %v8365_v54  ;;  %v8395_v59 = vsel %vm8390_vm2, %v8365_v54, %v8367_v27 }
 0x279   : > { %v18492_v21 = vadd.f32 %v5384_v25, %v18324_v39  ;;  %9976 = vrot.lane.b32.xlu1 %v18475_v9, %s16334_s19  ;;  %9974 = vrot.lane.b32.xlu0 %v18477_v48, %s16334_s19  ;;  %v8417_v39 = vsel %vm429_vm0, %v8393_v0, 0  ;;  %v8423_v14 = vsel %vm429_vm0, %v8395_v59, 0 }
 0x27a   : > { %v5386_v5 = vpop.f32.mrf.mxu0  ;;  %v5423_v22 = vpop.f32.mrf.mxu1  ;;  %15648 = vmatmul.mubr.msk.bf16.vlgmr.msra.gmra.mxu0 %vm425_vm1, %v18488_v18  ;;  %15649 = vmatprep.subr.msk.bf16.mxu1 %vm429_vm0, %v8394_v61 }
 0x27b   : > { %v18508_v26 = vadd.f32 %v5423_v22, %v18335_v63  ;;  %8514 = vmatpush1.bf16.msra.mxu1 %v8417_v39  ;;  %v8371_v17 = vpop.permute.xlu1 %8370  ;;  %v8369_v16 = vpop.permute.xlu0 %8368  ;;  %8572 = vmatprep.mubr.bf16.mxu0 %v16316_v11  ;;  %v16229_v63 = vld [vmem:[#allocation2 + $0x54] ss:$0 sps:$4 sm:$0xff]  }
 0x27c   : > { %v5387_v43 = vpop.f32.mrf.mxu0  ;;  %v5425_v46 = vpop.f32.mrf.mxu1  ;;  %v8396_v3 = vsel %vm8390_vm2, %v8367_v27, %v8369_v16 }
 0x27d   : > { %v18513_v12 = vadd.f32 %v5425_v46, %v18341_v34  ;;  %9980 = vrot.lane.b32.xlu1 %v18498_v60, %s16334_s19  ;;  %9978 = vrot.lane.b32.xlu0 %v18500_v23, %s16334_s19  ;;  %v8397_v34 = vsel %vm8390_vm2, %v8369_v16, %v8371_v17 }
 0x27e   : > { %v5427_v37 = vpop.f32.mrf.mxu1  ;;  %v5464_v58 = vpop.f32.mrf.mxu0  ;;  %15650 = vmatmul.mubr.msk.bf16.vlgmr.msra.gmra.mxu1 %vm425_vm1, %v18488_v18  ;;  %15651 = vmatprep.subr.msk.bf16.mxu0 %vm429_vm0, %v8396_v3  ;;  %v8429_v41 = vsel %vm429_vm0, %v8397_v34, 0 }
 0x27f   : > { %v18527_v52 = vadd.f32 %v5464_v58, %v18352_v53  ;;  %8555 = vmatpush1.bf16.msra.mxu0 %v8423_v14  ;;  %v8375_v35 = vpop.permute.xlu1 %8374  ;;  %v8373_v38 = vpop.permute.xlu0 %8372  ;;  %8613 = vmatprep.mubr.bf16.mxu1 %v16316_v11 }
 0x280   : > { %v5428_v28 = vpop.f32.mrf.mxu1  ;;  %v5466_v15 = vpop.f32.mrf.mxu0  ;;  %v8398_v2 = vsel %vm8390_vm2, %v8371_v17, %v8373_v38  ;;  %v8399_v49 = vsel %vm8390_vm2, %v8373_v38, %v8375_v35 }
 0x281   : > { %v18532_v20 = vadd.f32 %v5466_v15, %v18358_v44  ;;  %9984 = vrot.lane.b32.xlu1 %v16229_v63, %s16334_s19  ;;  %9982 = vrot.lane.b32.xlu0 %v18519_v4, %s16334_s19  ;;  %v8435_v22 = vsel %vm429_vm0, %v8399_v49, 0  ;;  %s16340_s19 = smov 84  }
 0x282   : > { %v5468_v1 = vpop.f32.mrf.mxu0  ;;  %v5505_v53 = vpop.f32.mrf.mxu1  ;;  %15652 = vmatmul.mubr.msk.bf16.vlgmr.msra.gmra.mxu0 %vm425_vm1, %v18488_v18  ;;  %15653 = vmatprep.subr.msk.bf16.mxu1 %vm429_vm0, %v8398_v2 }
 0x283   : > { %v18543_v0 = vadd.f32 %v5505_v53, %v18369_v33  ;;  %8596 = vmatpush1.bf16.msra.mxu1 %v8429_v41  ;;  %v8379_v44 = vpop.permute.xlu1 %8378  ;;  %v8377_v27 = vpop.permute.xlu0 %8376  ;;  %8654 = vmatprep.mubr.bf16.mxu0 %v16316_v11 }
 0x284   : > { %v5469_v54 = vpop.f32.mrf.mxu0  ;;  %v5507_v31 = vpop.f32.mrf.mxu1  ;;  %v8400_v25 = vsel %vm8390_vm2, %v8375_v35, %v8377_v27  ;;  %v8401_v39 = vsel %vm8390_vm2, %v8377_v27, %v8379_v44 }
 0x285   : > { %v18548_v61 = vadd.f32 %v5507_v31, %v18375_v24  ;;  %10486 = vrot.lane.b32.xlu1 %v18383_v6, %s16335_s9  ;;  %10484 = vrot.lane.b32.xlu0 %v18363_v7, %s16335_s9  ;;  %v8441_v37 = vsel %vm429_vm0, %v8401_v39, 0 }
 0x286   : > { %v5509_v33 = vpop.f32.mrf.mxu1  ;;  %v5546_v5 = vpop.f32.mrf.mxu0  ;;  %15654 = vmatmul.mubr.msk.bf16.vlgmr.msra.gmra.mxu1 %vm425_vm1, %v18488_v18  ;;  %15655 = vmatprep.subr.msk.bf16.mxu0 %vm429_vm0, %v8400_v25 }
 0x287   : > { %v18560_v24 = vadd.f32 %v5546_v5, %v18389_v42  ;;  %8637 = vmatpush1.bf16.msra.mxu0 %v8435_v22  ;;  %v8383_v59 = vpop.permute.xlu1 %8382  ;;  %v8381_v17 = vpop.permute.xlu0 %8380  ;;  %8695 = vmatprep.mubr.bf16.mxu1 %v16316_v11 }
 0x288   : > { %v5510_v16 = vpop.f32.mrf.mxu1  ;;  %v5548_v43 = vpop.f32.mrf.mxu0  ;;  %v8402_v46 = vsel %vm8390_vm2, %v8379_v44, %v8381_v17  ;;  %v8403_v58 = vsel %vm8390_vm2, %v8381_v17, %v8383_v59 }
 0x289   : > { %v18565_v3 = vadd.f32 %v5548_v43, %v18395_v40  ;;  %10490 = vrot.lane.b32.xlu1 %v18404_v29, %s16335_s9  ;;  %10488 = vrot.lane.b32.xlu0 %v18381_v45, %s16335_s9  ;;  %v8447_v1 = vsel %vm429_vm0, %v8403_v58, 0  ;;  %v18632_v58 = vld [vmem:[%s20299_s0 + $0x40] sm:$0xf] }
 0x28a   : > { %v5550_v42 = vpop.f32.mrf.mxu0  ;;  %v5587_v63 = vpop.f32.mrf.mxu1  ;;  %15656 = vmatmul.mubr.msk.bf16.vlgmr.msra.gmra.mxu0 %vm425_vm1, %v18488_v18  ;;  %15657 = vmatprep.subr.msk.bf16.mxu1 %vm429_vm0, %v8402_v46 }
 0x28b   : > { %v18577_v40 = vadd.f32 %v5587_v63, %v18410_v8  ;;  %8678 = vmatpush1.bf16.msra.mxu1 %v8441_v37  ;;  %v8387_v14 = vpop.permute.xlu1 %8386  ;;  %v8385_v34 = vpop.permute.xlu0 %8384  ;;  %8736 = vmatprep.mubr.bf16.mxu0 %v16316_v11 }
 0x28c   : > { %v5551_v35 = vpop.f32.mrf.mxu0  ;;  %v5589_v38 = vpop.f32.mrf.mxu1  ;;  %v8404_v28 = vsel %vm8390_vm2, %v8383_v59, %v8385_v34  ;;  %v8405_v53 = vsel %vm8390_vm2, %v8385_v34, %v8387_v14 }
 0x28d   : > { %v18582_v15 = vadd.f32 %v5589_v38, %v18416_v55  ;;  %10494 = vrot.lane.b32.xlu1 %v18425_v51, %s16335_s9  ;;  %10492 = vrot.lane.b32.xlu0 %v18402_v57, %s16335_s9  ;;  %v8453_v33 = vsel %vm429_vm0, %v8405_v53, 0 }
 0x28e   : > { %v5591_v8 = vpop.f32.mrf.mxu1  ;;  %v5832_v2 = vpop.f32.mrf.mxu0  ;;  %15658 = vmatmul.mubr.msk.bf16.vlgmr.msra.gmra.mxu1 %vm425_vm1, %v18488_v18  ;;  %15659 = vmatprep.subr.msk.bf16.mxu0 %vm429_vm0, %v8404_v28 }
 0x28f   : > { %v18594_v55 = vadd.f32 %v5832_v2, %v18446_v10  ;;  %8719 = vmatpush1.bf16.msra.mxu0 %v8447_v1  ;;  %v8889_v41 = vpop.permute.xlu1 %8888  ;;  %v8389_v49 = vpop.permute.xlu0 %8388  ;;  %8777 = vmatprep.mubr.bf16.mxu1 %v16316_v11 }
 0x290   : > { %v8406_v44 = vsel %vm8390_vm2, %v8387_v14, %v8389_v49  ;;  %v5592_v27 = vpop.f32.mrf.mxu1  ;;  %v5834_v54 = vpop.f32.mrf.mxu0 }
 0x291   : > { %v18599_v31 = vadd.f32 %v5834_v54, %v18450_v32  ;;  %10498 = vrot.lane.b32.xlu1 %v18440_v36, %s16335_s9  ;;  %10496 = vrot.lane.b32.xlu0 %v18423_v30, %s16335_s9 }
 0x292   : > { %v5836_v10 = vpop.f32.mrf.mxu0  ;;  %v5873_v25 = vpop.f32.mrf.mxu1  ;;  %15660 = vmatmul.mubr.msk.bf16.vlgmr.msra.gmra.mxu0 %vm425_vm1, %v18488_v18  ;;  %15661 = vmatprep.subr.msk.bf16.mxu1 %vm429_vm0, %v8406_v44 }
 0x293   : > { %v18610_v5 = vadd.f32 %v5873_v25, %v18464_v50  ;;  %8760 = vmatpush1.bf16.msra.mxu1 %v8453_v33  ;;  %v8893_v32 = vpop.permute.xlu1 %8892  ;;  %v8891_v22 = vpop.permute.xlu0 %8890  ;;  %9022 = vmatprep.mubr.bf16.mxu0 %v16316_v11 }
 0x294   : > { %v8923_v39 = vsel %vm8922_vm3, %v8889_v41, %v8891_v22  ;;  %v5837_v59 = vpop.f32.mrf.mxu0  ;;  %v5875_v17 = vpop.f32.mrf.mxu1  ;;  %v8924_v16 = vsel %vm8922_vm3, %v8891_v22, %v8893_v32 }
 0x295   : > { %v18616_v43 = vadd.f32 %v5875_v17, %v18469_v47  ;;  %10502 = vrot.lane.b32.xlu1 %v18458_v13, %s16335_s9  ;;  %10500 = vrot.lane.b32.xlu0 %v18438_v56, %s16335_s9  ;;  %v8943_v50 = vsel %vm429_vm0, %v8923_v39, 0 }
 0x296   : > { %v5877_v46 = vpop.f32.mrf.mxu1  ;;  %v5914_v42 = vpop.f32.mrf.mxu0  ;;  %15662 = vmatmul.mubr.msk.bf16.vlgmr.msra.gmra.mxu1 %vm425_vm1, %v18488_v18  ;;  %15681 = vmatprep.subr.msk.bf16.mxu0 %vm429_vm0, %v8924_v16  ;;  %v16231_v16 = vld [vmem:[#allocation2 + $0x54] ss:$0 sps:$4 sm:$0xff]  }
 0x297   : > { %v18627_v63 = vadd.f32 %v5914_v42, %v18483_v19  ;;  %9005 = vmatpush1.bf16.msra.mxu0 %v8943_v50  ;;  %v8897_v47 = vpop.permute.xlu1 %8896  ;;  %v8895_v37 = vpop.permute.xlu0 %8894  ;;  %9063 = vmatprep.mubr.bf16.mxu1 %v16316_v11 }
 0x298   : > { %v8925_v14 = vsel %vm8922_vm3, %v8893_v32, %v8895_v37  ;;  %v5878_v34 = vpop.f32.mrf.mxu1  ;;  %v5916_v35 = vpop.f32.mrf.mxu0  ;;  %v8926_v18 = vsel %vm8922_vm3, %v8895_v37, %v8897_v47 }
 0x299   : > { %v18638_v38 = vadd.f32 %v5916_v35, %v18492_v21  ;;  %10506 = vrot.lane.b32.xlu1 %v18477_v48, %s16335_s9  ;;  %10504 = vrot.lane.b32.xlu0 %v18456_v62, %s16335_s9  ;;  %v8949_v19 = vsel %vm429_vm0, %v8925_v14, 0 }
 0x29a   : > { %v5918_v28 = vpop.f32.mrf.mxu0  ;;  %v5955_v8 = vpop.f32.mrf.mxu1  ;;  %15682 = vmatmul.mubr.msk.bf16.vlgmr.msra.gmra.mxu0 %vm425_vm1, %v18632_v58  ;;  %15683 = vmatprep.subr.msk.bf16.mxu1 %vm429_vm0, %v8926_v18 }
 0x29b   : > { %v18649_v2 = vadd.f32 %v5955_v8, %v18508_v26  ;;  %9046 = vmatpush1.bf16.msra.mxu1 %v8949_v19  ;;  %v8901_v21 = vpop.permute.xlu1 %8900  ;;  %v8899_v1 = vpop.permute.xlu0 %8898  ;;  %9104 = vmatprep.mubr.bf16.mxu0 %v16316_v11 }
 0x29c   : > { %v8927_v53 = vsel %vm8922_vm3, %v8897_v47, %v8899_v1  ;;  %v5919_v41 = vpop.f32.mrf.mxu0  ;;  %v5957_v49 = vpop.f32.mrf.mxu1  ;;  %v8928_v44 = vsel %vm8922_vm3, %v8899_v1, %v8901_v21 }
 0x29d   : > { %v18655_v27 = vadd.f32 %v5957_v49, %v18513_v12  ;;  %10510 = vrot.lane.b32.xlu1 %v18500_v23, %s16335_s9  ;;  %10508 = vrot.lane.b32.xlu0 %v18475_v9, %s16335_s9  ;;  %v8955_v26 = vsel %vm429_vm0, %v8927_v53, 0 }
 0x29e   : > { %v5959_v54 = vpop.f32.mrf.mxu1  ;;  %v5996_v10 = vpop.f32.mrf.mxu0  ;;  %15684 = vmatmul.mubr.msk.bf16.vlgmr.msra.gmra.mxu1 %vm425_vm1, %v18632_v58  ;;  %15685 = vmatprep.subr.msk.bf16.mxu0 %vm429_vm0, %v8928_v44 }
 0x29f   : > { %v18666_v25 = vadd.f32 %v5996_v10, %v18527_v52  ;;  %9087 = vmatpush1.bf16.msra.mxu0 %v8955_v26  ;;  %v8905_v12 = vpop.permute.xlu1 %8904  ;;  %v8903_v33 = vpop.permute.xlu0 %8902  ;;  %9145 = vmatprep.mubr.bf16.mxu1 %v16316_v11 }
 0x2a0   : > { %v8929_v32 = vsel %vm8922_vm3, %v8901_v21, %v8903_v33  ;;  %v5960_v22 = vpop.f32.mrf.mxu1  ;;  %v5998_v39 = vpop.f32.mrf.mxu0  ;;  %v8930_v59 = vsel %vm8922_vm3, %v8903_v33, %v8905_v12 }
 0x2a1   : > { %v18672_v17 = vadd.f32 %v5998_v39, %v18532_v20  ;;  %10514 = vrot.lane.b32.xlu1 %v18519_v4, %s16335_s9  ;;  %10512 = vrot.lane.b32.xlu0 %v18498_v60, %s16335_s9  ;;  %v8961_v52 = vsel %vm429_vm0, %v8929_v32, 0 }
 0x2a2   : > { %v6000_v50 = vpop.f32.mrf.mxu0  ;;  %v6037_v46 = vpop.f32.mrf.mxu1  ;;  %15686 = vmatmul.mubr.msk.bf16.vlgmr.msra.gmra.mxu0 %vm425_vm1, %v18632_v58  ;;  %15687 = vmatprep.subr.msk.bf16.mxu1 %vm429_vm0, %v8930_v59 }
 0x2a3   : > { %v18683_v42 = vadd.f32 %v6037_v46, %v18543_v0  ;;  %9128 = vmatpush1.bf16.msra.mxu1 %v8961_v52  ;;  %v8909_v20 = vpop.permute.xlu1 %8908  ;;  %v8907_v47 = vpop.permute.xlu0 %8906  ;;  %9186 = vmatprep.mubr.bf16.mxu0 %v16316_v11 }
 0x2a4   : > { %v8931_v37 = vsel %vm8922_vm3, %v8905_v12, %v8907_v47  ;;  %v6001_v14 = vpop.f32.mrf.mxu0  ;;  %v6039_v34 = vpop.f32.mrf.mxu1  ;;  %v8932_v35 = vsel %vm8922_vm3, %v8907_v47, %v8909_v20 }
 0x2a5   : > { %v18689_v18 = vadd.f32 %v6039_v34, %v18548_v61  ;;  %11016 = vrot.lane.b32.xlu1 %v18363_v7, %s16336_s13  ;;  %10516 = vrot.lane.b32.xlu0 %v16231_v16, %s16335_s9  ;;  %v8967_v0 = vsel %vm429_vm0, %v8931_v37, 0  ;;  %s16341_s9 = smov 83  }
 0x2a6   : > { %v6041_v19 = vpop.f32.mrf.mxu1  ;;  %v6078_v28 = vpop.f32.mrf.mxu0  ;;  %15688 = vmatmul.mubr.msk.bf16.vlgmr.msra.gmra.mxu1 %vm425_vm1, %v18632_v58  ;;  %15689 = vmatprep.subr.msk.bf16.mxu0 %vm429_vm0, %v8932_v35 }
 0x2a7   : > { %v18699_v8 = vadd.f32 %v6078_v28, %v18560_v24  ;;  %9169 = vmatpush1.bf16.msra.mxu0 %v8967_v0  ;;  %v8913_v61 = vpop.permute.xlu1 %8912  ;;  %v8911_v21 = vpop.permute.xlu0 %8910  ;;  %9227 = vmatprep.mubr.bf16.mxu1 %v16316_v11 }
 0x2a8   : > { %v8933_v1 = vsel %vm8922_vm3, %v8909_v20, %v8911_v21  ;;  %v6042_v53 = vpop.f32.mrf.mxu1  ;;  %v6080_v41 = vpop.f32.mrf.mxu0  ;;  %v8934_v49 = vsel %vm8922_vm3, %v8911_v21, %v8913_v61 }
 0x2a9   : > { %v18705_v44 = vadd.f32 %v6080_v41, %v18565_v3  ;;  %11020 = vrot.lane.b32.xlu1 %v18381_v45, %s16336_s13  ;;  %11018 = vrot.lane.b32.xlu0 %v18383_v6, %s16336_s13  ;;  %v8973_v24 = vsel %vm429_vm0, %v8933_v1, 0 }
 0x2aa   : > { %v6119_v26 = vpop.f32.mrf.mxu1  ;;  %15690 = vmatmul.mubr.msk.bf16.vlgmr.msra.gmra.mxu0 %vm425_vm1, %v18632_v58  ;;  %15691 = vmatprep.subr.msk.bf16.mxu1 %vm429_vm0, %v8934_v49  ;;  %v6082_v54 = vpop.f32.mrf.mxu0 }
 0x2ab   : > { %v18716_v10 = vadd.f32 %v6119_v26, %v18577_v40  ;;  %9210 = vmatpush1.bf16.msra.mxu1 %v8973_v24  ;;  %v8917_v3 = vpop.permute.xlu1 %8916  ;;  %v8915_v12 = vpop.permute.xlu0 %8914  ;;  %9268 = vmatprep.mubr.bf16.mxu0 %v16316_v11 }
 0x2ac   : > { %v8935_v33 = vsel %vm8922_vm3, %v8913_v61, %v8915_v12  ;;  %v6121_v32 = vpop.f32.mrf.mxu1  ;;  %v8936_v22 = vsel %vm8922_vm3, %v8915_v12, %v8917_v3  ;;  %v6083_v39 = vpop.f32.mrf.mxu0 }
 0x2ad   : > { %v18722_v59 = vadd.f32 %v6121_v32, %v18582_v15  ;;  %11024 = vrot.lane.b32.xlu1 %v18402_v57, %s16336_s13  ;;  %11022 = vrot.lane.b32.xlu0 %v18404_v29, %s16336_s13  ;;  %v8979_v40 = vsel %vm429_vm0, %v8935_v33, 0 }
 0x2ae   : > { %15692 = vmatmul.mubr.msk.bf16.vlgmr.msra.gmra.mxu1 %vm425_vm1, %v18632_v58  ;;  %15693 = vmatprep.subr.msk.bf16.mxu0 %vm429_vm0, %v8936_v22  ;;  %v6123_v52 = vpop.f32.mrf.mxu1 }
 0x2af   : > { %9251 = vmatpush1.bf16.msra.mxu0 %v8979_v40  ;;  %v8921_v16 = vpop.permute.xlu1 %8920  ;;  %v8919_v50 = vpop.permute.xlu0 %8918  ;;  %9309 = vmatprep.mubr.bf16.mxu1 %v16316_v11 }
 0x2b0   : > { %v8937_v15 = vsel %vm8922_vm3, %v8917_v3, %v8919_v50  ;;  %v8938_v46 = vsel %vm8922_vm3, %v8919_v50, %v8921_v16  ;;  %v6124_v20 = vpop.f32.mrf.mxu1 }
 0x2b1   : > { %11028 = vrot.lane.b32.xlu1 %v18423_v30, %s16336_s13  ;;  %11026 = vrot.lane.b32.xlu0 %v18425_v51, %s16336_s13  ;;  %v8985_v47 = vsel %vm429_vm0, %v8937_v15, 0 }
 0x2b2   : > { %v6364_v37 = vpop.f32.mrf.mxu0  ;;  %15694 = vmatmul.mubr.msk.bf16.vlgmr.msra.gmra.mxu0 %vm425_vm1, %v18632_v58  ;;  %15695 = vmatprep.subr.msk.bf16.mxu1 %vm429_vm0, %v8938_v46 }
 0x2b3   : > { %v18744_v14 = vadd.f32 %v6364_v37, %v18594_v55  ;;  %9292 = vmatpush1.bf16.msra.mxu1 %v8985_v47  ;;  %v9423_v34 = vpop.permute.xlu1 %9422  ;;  %v9421_v35 = vpop.permute.xlu0 %9420  ;;  %9554 = vmatprep.mubr.bf16.mxu0 %v16316_v11 }
 0x2b4   : > { %v6366_v0 = vpop.f32.mrf.mxu0  ;;  %v9455_v55 = vsel %vm9454_vm4, %v9421_v35, %v9423_v34 }
 0x2b5   : > { %v18748_v19 = vadd.f32 %v6366_v0, %v18599_v31  ;;  %11032 = vrot.lane.b32.xlu1 %v18438_v56, %s16336_s13  ;;  %11030 = vrot.lane.b32.xlu0 %v18440_v36, %s16336_s13 }
 0x2b6   : > { %v6368_v28 = vpop.f32.mrf.mxu0  ;;  %v6405_v61 = vpop.f32.mrf.mxu1  ;;  %15696 = vmatmul.mubr.msk.bf16.vlgmr.msra.gmra.mxu1 %vm425_vm1, %v18632_v58 }
 0x2b7   : > { %v18758_v21 = vadd.f32 %v6405_v61, %v18610_v5  ;;  %v9427_v1 = vpop.permute.xlu1 %9426  ;;  %v9425_v53 = vpop.permute.xlu0 %9424  ;;  %9595 = vmatprep.mubr.bf16.mxu1 %v16316_v11  ;;  %v9475_v5 = vsel %vm429_vm0, %v9455_v55, 0 }
 0x2b8   : > { %v6369_v31 = vpop.f32.mrf.mxu0  ;;  %v6407_v41 = vpop.f32.mrf.mxu1  ;;  %v9456_v49 = vsel %vm9454_vm4, %v9423_v34, %v9425_v53  ;;  %v9457_v54 = vsel %vm9454_vm4, %v9425_v53, %v9427_v1 }
 0x2b9   : > { %v18763_v24 = vadd.f32 %v6407_v41, %v18616_v43  ;;  %11036 = vrot.lane.b32.xlu1 %v18456_v62, %s16336_s13  ;;  %11034 = vrot.lane.b32.xlu0 %v18458_v13, %s16336_s13  ;;  %v18778_v62 = vld [vmem:[%s20299_s0 + $0x44] sm:$0xf]  ;;  %v9481_v52 = vsel %vm429_vm0, %v9457_v54, 0 }
 0x2ba   : > { %v6409_v58 = vpop.f32.mrf.mxu1  ;;  %v6446_v26 = vpop.f32.mrf.mxu0  ;;  %15715 = vmatprep.subr.msk.bf16.mxu0 %vm429_vm0, %v9456_v49 }
 0x2bb   : > { %v18773_v3 = vadd.f32 %v6446_v26, %v18627_v63  ;;  %9537 = vmatpush1.bf16.msra.mxu0 %v9475_v5  ;;  %v9431_v43 = vpop.permute.xlu1 %9430  ;;  %v9429_v12 = vpop.permute.xlu0 %9428 }
 0x2bc   : > { %v6410_v33 = vpop.f32.mrf.mxu1  ;;  %v6448_v32 = vpop.f32.mrf.mxu0  ;;  %v9458_v22 = vsel %vm9454_vm4, %v9427_v1, %v9429_v12  ;;  %v9459_v16 = vsel %vm9454_vm4, %v9429_v12, %v9431_v43 }
 0x2bd   : > { %v18782_v39 = vadd.f32 %v6448_v32, %v18638_v38  ;;  %11040 = vrot.lane.b32.xlu1 %v18475_v9, %s16336_s13  ;;  %11038 = vrot.lane.b32.xlu0 %v18477_v48, %s16336_s13  ;;  %v9487_v34 = vsel %vm429_vm0, %v9459_v16, 0 }
 0x2be   : > { %v6450_v63 = vpop.f32.mrf.mxu0  ;;  %v6487_v40 = vpop.f32.mrf.mxu1  ;;  %15716 = vmatmul.mubr.msk.bf16.vlgmr.msra.gmra.mxu0 %vm425_vm1, %v18778_v62  ;;  %15717 = vmatprep.subr.msk.bf16.mxu1 %vm429_vm0, %v9458_v22 }
 0x2bf   : > { %v18794_v38 = vadd.f32 %v6487_v40, %v18649_v2  ;;  %9578 = vmatpush1.bf16.msra.mxu1 %v9481_v52  ;;  %v9435_v50 = vpop.permute.xlu1 %9434  ;;  %v9433_v9 = vpop.permute.xlu0 %9432  ;;  %9636 = vmatprep.mubr.bf16.mxu0 %v16316_v11  ;;  %v16232_v2 = vld [vmem:[#allocation2 + $0x54] ss:$0 sps:$4 sm:$0xff]  }
 0x2c0   : > { %v6451_v48 = vpop.f32.mrf.mxu0  ;;  %v6489_v15 = vpop.f32.mrf.mxu1  ;;  %v9460_v46 = vsel %vm9454_vm4, %v9431_v43, %v9433_v9  ;;  %v9461_v35 = vsel %vm9454_vm4, %v9433_v9, %v9435_v50 }
 0x2c1   : > { %v18799_v20 = vadd.f32 %v6489_v15, %v18655_v27  ;;  %11044 = vrot.lane.b32.xlu1 %v18498_v60, %s16336_s13  ;;  %11042 = vrot.lane.b32.xlu0 %v18500_v23, %s16336_s13  ;;  %v9493_v53 = vsel %vm429_vm0, %v9461_v35, 0 }
 0x2c2   : > { %v6491_v47 = vpop.f32.mrf.mxu1  ;;  %v6528_v37 = vpop.f32.mrf.mxu0  ;;  %15718 = vmatmul.mubr.msk.bf16.vlgmr.msra.gmra.mxu1 %vm425_vm1, %v18778_v62  ;;  %15719 = vmatprep.subr.msk.bf16.mxu0 %vm429_vm0, %v9460_v46 }
 0x2c3   : > { %v18811_v27 = vadd.f32 %v6528_v37, %v18666_v25  ;;  %9619 = vmatpush1.bf16.msra.mxu0 %v9487_v34  ;;  %v9439_v60 = vpop.permute.xlu1 %9438  ;;  %v9437_v0 = vpop.permute.xlu0 %9436  ;;  %9677 = vmatprep.mubr.bf16.mxu1 %v16316_v11 }
 0x2c4   : > { %v6492_v23 = vpop.f32.mrf.mxu1  ;;  %v6530_v28 = vpop.f32.mrf.mxu0  ;;  %v9462_v61 = vsel %vm9454_vm4, %v9435_v50, %v9437_v0  ;;  %v9463_v31 = vsel %vm9454_vm4, %v9437_v0, %v9439_v60 }
 0x2c5   : > { %v18816_v55 = vadd.f32 %v6530_v28, %v18672_v17  ;;  %11048 = vrot.lane.b32.xlu1 %v16232_v2, %s16336_s13  ;;  %11046 = vrot.lane.b32.xlu0 %v18519_v4, %s16336_s13  ;;  %v9499_v43 = vsel %vm429_vm0, %v9463_v31, 0  ;;  %v11501_v28 = vld [vmem:[#allocation2 + $0x3c] sm:$0xff]  ;;  %s16342_s13 = smov 82  }
 0x2c6   : > { %v6532_v1 = vpop.f32.mrf.mxu0  ;;  %v6569_v25 = vpop.f32.mrf.mxu1  ;;  %15720 = vmatmul.mubr.msk.bf16.vlgmr.msra.gmra.mxu0 %vm425_vm1, %v18778_v62  ;;  %15721 = vmatprep.subr.msk.bf16.mxu1 %vm429_vm0, %v9462_v61 }
 0x2c7   : > { %v18827_v41 = vadd.f32 %v6569_v25, %v18683_v42  ;;  %9660 = vmatpush1.bf16.msra.mxu1 %v9493_v53  ;;  %v9443_v17 = vpop.permute.xlu1 %9442  ;;  %v9441_v49 = vpop.permute.xlu0 %9440  ;;  %9718 = vmatprep.mubr.bf16.mxu0 %v16316_v11 }
 0x2c8   : > { %v6533_v4 = vpop.f32.mrf.mxu0  ;;  %v6571_v5 = vpop.f32.mrf.mxu1  ;;  %v9464_v58 = vsel %vm9454_vm4, %v9439_v60, %v9441_v49  ;;  %v9465_v12 = vsel %vm9454_vm4, %v9441_v49, %v9443_v17  ;;  %v18909_v49 = vcombine.low %v11501_v28, %v11501_v28 }
 0x2c9   : > { %v18832_v26 = vadd.f32 %v6571_v5, %v18689_v18  ;;  %11550 = vrot.lane.b32.xlu1 %v18383_v6, %s16337_s24  ;;  %11548 = vrot.lane.b32.xlu0 %v18363_v7, %s16337_s24  ;;  %v9505_v52 = vsel %vm429_vm0, %v9465_v12, 0 }
 0x2ca   : > { %v6573_v42 = vpop.f32.mrf.mxu1  ;;  %v6610_v54 = vpop.f32.mrf.mxu0  ;;  %15722 = vmatmul.mubr.msk.bf16.vlgmr.msra.gmra.mxu1 %vm425_vm1, %v18778_v62  ;;  %15723 = vmatprep.subr.msk.bf16.mxu0 %vm429_vm0, %v9464_v58 }
 0x2cb   : > { %v18844_v18 = vadd.f32 %v6610_v54, %v18699_v8  ;;  %9701 = vmatpush1.bf16.msra.mxu0 %v9499_v43  ;;  %v9447_v33 = vpop.permute.xlu1 %9446  ;;  %v9445_v6 = vpop.permute.xlu0 %9444  ;;  %9759 = vmatprep.mubr.bf16.mxu1 %v16316_v11  ;;  %v18920_v42 = vld [vmem:[%s20299_s0 + $0x48] sm:$0xf] }
 0x2cc   : > { %v6574_v7 = vpop.f32.mrf.mxu1  ;;  %v6612_v32 = vpop.f32.mrf.mxu0  ;;  %v9466_v22 = vsel %vm9454_vm4, %v9443_v17, %v9445_v6  ;;  %v9467_v16 = vsel %vm9454_vm4, %v9445_v6, %v9447_v33  ;;  %v18907_v17 = vcombine.high %v11501_v28, %v11501_v28  ;;  %v16241_v28 = vld [vmem:[#allocation2 + $0x54] ss:$0 sps:$4 sm:$0xff]  }
 0x2cd   : > { %v18849_v63 = vadd.f32 %v6612_v32, %v18705_v44  ;;  %11554 = vrot.lane.b32.xlu1 %v18404_v29, %s16337_s24  ;;  %11552 = vrot.lane.b32.xlu0 %v18381_v45, %s16337_s24  ;;  %v9511_v2 = vsel %vm429_vm0, %v9467_v16, 0 }
 0x2ce   : > { %v6614_v8 = vpop.f32.mrf.mxu0  ;;  %v6651_v40 = vpop.f32.mrf.mxu1  ;;  %15724 = vmatmul.mubr.msk.bf16.vlgmr.msra.gmra.mxu0 %vm425_vm1, %v18778_v62  ;;  %15725 = vmatprep.subr.msk.bf16.mxu1 %vm429_vm0, %v9466_v22 }
 0x2cf   : > { %v18861_v44 = vadd.f32 %v6651_v40, %v18716_v10  ;;  %9742 = vmatpush1.bf16.msra.mxu1 %v9505_v52  ;;  %v9451_v50 = vpop.permute.xlu1 %9450  ;;  %v9449_v29 = vpop.permute.xlu0 %9448  ;;  %9800 = vmatprep.mubr.bf16.mxu0 %v16316_v11 }
 0x2d0   : > { %v6615_v45 = vpop.f32.mrf.mxu0  ;;  %v6653_v9 = vpop.f32.mrf.mxu1  ;;  %v9468_v48 = vsel %vm9454_vm4, %v9447_v33, %v9449_v29  ;;  %v9469_v47 = vsel %vm9454_vm4, %v9449_v29, %v9451_v50 }
 0x2d1   : > { %v18866_v15 = vadd.f32 %v6653_v9, %v18722_v59  ;;  %11558 = vrot.lane.b32.xlu1 %v18425_v51, %s16337_s24  ;;  %11556 = vrot.lane.b32.xlu0 %v18402_v57, %s16337_s24  ;;  %v9517_v23 = vsel %vm429_vm0, %v9469_v47, 0 }
 0x2d2   : > { %v6655_v10 = vpop.f32.mrf.mxu1  ;;  %v6896_v46 = vpop.f32.mrf.mxu0  ;;  %15726 = vmatmul.mubr.msk.bf16.vlgmr.msra.gmra.mxu1 %vm425_vm1, %v18778_v62  ;;  %15727 = vmatprep.subr.msk.bf16.mxu0 %vm429_vm0, %v9468_v48 }
 0x2d3   : > { %v18878_v59 = vadd.f32 %v6896_v46, %v18744_v14  ;;  %9783 = vmatpush1.bf16.msra.mxu0 %v9511_v2  ;;  %v9953_v37 = vpop.permute.xlu1 %9952  ;;  %v9453_v51 = vpop.permute.xlu0 %9452  ;;  %9841 = vmatprep.mubr.bf16.mxu1 %v16316_v11 }
 0x2d4   : > { %v9470_v57 = vsel %vm9454_vm4, %v9451_v50, %v9453_v51  ;;  %v6656_v34 = vpop.f32.mrf.mxu1  ;;  %v6898_v35 = vpop.f32.mrf.mxu0 }
 0x2d5   : > { %v18883_v60 = vadd.f32 %v6898_v35, %v18748_v19  ;;  %11562 = vrot.lane.b32.xlu1 %v18440_v36, %s16337_s24  ;;  %11560 = vrot.lane.b32.xlu0 %v18423_v30, %s16337_s24 }
 0x2d6   : > { %v6900_v14 = vpop.f32.mrf.mxu0  ;;  %v6937_v0 = vpop.f32.mrf.mxu1  ;;  %15728 = vmatmul.mubr.msk.bf16.vlgmr.msra.gmra.mxu0 %vm425_vm1, %v18778_v62  ;;  %15729 = vmatprep.subr.msk.bf16.mxu1 %vm429_vm0, %v9470_v57 }
 0x2d7   : > { %v18894_v19 = vadd.f32 %v6937_v0, %v18758_v21  ;;  %9824 = vmatpush1.bf16.msra.mxu1 %v9517_v23  ;;  %v9957_v61 = vpop.permute.xlu1 %9956  ;;  %v9955_v36 = vpop.permute.xlu0 %9954  ;;  %10086 = vmatprep.mubr.bf16.mxu0 %v16316_v11 }
 0x2d8   : > { %v9987_v30 = vsel %vm9986_vm5, %v9953_v37, %v9955_v36  ;;  %v6901_v1 = vpop.f32.mrf.mxu0  ;;  %v6939_v25 = vpop.f32.mrf.mxu1  ;;  %v9988_v53 = vsel %vm9986_vm5, %v9955_v36, %v9957_v61 }
 0x2d9   : > { %v18900_v31 = vadd.f32 %v6939_v25, %v18763_v24  ;;  %11566 = vrot.lane.b32.xlu1 %v18458_v13, %s16337_s24  ;;  %11564 = vrot.lane.b32.xlu0 %v18438_v56, %s16337_s24  ;;  %v10007_v21 = vsel %vm429_vm0, %v9987_v30, 0  ;;  %v11502_v24 = vld [vmem:[#allocation2 + $0x44] sm:$0xff] }
 0x2da   : > { %v6941_v4 = vpop.f32.mrf.mxu1  ;;  %v6978_v5 = vpop.f32.mrf.mxu0  ;;  %15730 = vmatmul.mubr.msk.bf16.vlgmr.msra.gmra.mxu1 %vm425_vm1, %v18778_v62  ;;  %15749 = vmatprep.subr.msk.bf16.mxu0 %vm429_vm0, %v9988_v53  ;;  %v18933_v6 = vcombine.high %v11502_v24, %v11502_v24  ;;  %v18935_v7 = vcombine.low %v11502_v24, %v11502_v24 }
 0x2db   : > { %v18915_v58 = vadd.f32 %v6978_v5, %v18773_v3  ;;  %10069 = vmatpush1.bf16.msra.mxu0 %v10007_v21  ;;  %v9961_v13 = vpop.permute.xlu1 %9960  ;;  %v9959_v56 = vpop.permute.xlu0 %9958  ;;  %10127 = vmatprep.mubr.bf16.mxu1 %v16316_v11 }
 0x2dc   : > { %v9989_v54 = vsel %vm9986_vm5, %v9957_v61, %v9959_v56  ;;  %v6942_v43 = vpop.f32.mrf.mxu1  ;;  %v6980_v62 = vpop.f32.mrf.mxu0  ;;  %v9990_v12 = vsel %vm9986_vm5, %v9959_v56, %v9961_v13 }
 0x2dd   : > { %v18926_v33 = vadd.f32 %v6980_v62, %v18782_v39  ;;  %11570 = vrot.lane.b32.xlu1 %v18907_v17, %s16337_s24  ;;  %11568 = vrot.lane.b32.xlu0 %v18909_v49, %s16337_s24  ;;  %v10013_v3 = vsel %vm429_vm0, %v9989_v54, 0  ;;  %v11503_v39 = vld [vmem:[#allocation2 + $0x4c] sm:$0xff] }
 0x2de   : > { %v6982_v32 = vpop.f32.mrf.mxu0  ;;  %v7019_v22 = vpop.f32.mrf.mxu1  ;;  %15750 = vmatmul.mubr.msk.bf16.vlgmr.msra.gmra.mxu0 %vm425_vm1, %v18920_v42  ;;  %15751 = vmatprep.subr.msk.bf16.mxu1 %vm429_vm0, %v9990_v12  ;;  %v18954_v48 = vcombine.high %v11503_v39, %v11503_v39  ;;  %v18956_v10 = vcombine.low %v11503_v39, %v11503_v39 }
 0x2df   : > { %v18941_v8 = vadd.f32 %v7019_v22, %v18794_v38  ;;  %10110 = vmatpush1.bf16.msra.mxu1 %v10013_v3  ;;  %v9965_v40 = vpop.permute.xlu1 %9964  ;;  %v9963_v52 = vpop.permute.xlu0 %9962  ;;  %10168 = vmatprep.mubr.bf16.mxu0 %v16316_v11 }
 0x2e0   : > { %v9991_v16 = vsel %vm9986_vm5, %v9961_v13, %v9963_v52  ;;  %v6983_v50 = vpop.f32.mrf.mxu0  ;;  %v7021_v29 = vpop.f32.mrf.mxu1  ;;  %v9992_v45 = vsel %vm9986_vm5, %v9963_v52, %v9965_v40 }
 0x2e1   : > { %v18947_v9 = vadd.f32 %v7021_v29, %v18799_v20  ;;  %11574 = vrot.lane.b32.xlu1 %v18933_v6, %s16337_s24  ;;  %11572 = vrot.lane.b32.xlu0 %v18935_v7, %s16337_s24  ;;  %v10019_v38 = vsel %vm429_vm0, %v9991_v16, 0  ;;  %v12028_v20 = vld [vmem:[#allocation2 + $0x14] sm:$0xff] }
 0x2e2   : > { %v7023_v46 = vpop.f32.mrf.mxu1  ;;  %v7060_v2 = vpop.f32.mrf.mxu0  ;;  %15752 = vmatmul.mubr.msk.bf16.vlgmr.msra.gmra.mxu1 %vm425_vm1, %v18920_v42  ;;  %15753 = vmatprep.subr.msk.bf16.mxu0 %vm429_vm0, %v9992_v45  ;;  %v18975_v23 = vcombine.low %v12028_v20, %v12028_v20  ;;  %v18995_v56 = vcombine.high %v12028_v20, %v12028_v20  ;;  %v12031_v45 = vld [vmem:[#allocation2 + $0x2c] sm:$0xff] }
 0x2e3   : > { %v18962_v47 = vadd.f32 %v7060_v2, %v18811_v27  ;;  %10151 = vmatpush1.bf16.msra.mxu0 %v10019_v38  ;;  %v9969_v37 = vpop.permute.xlu1 %9968  ;;  %v9967_v51 = vpop.permute.xlu0 %9966  ;;  %10209 = vmatprep.mubr.bf16.mxu1 %v16316_v11 }
 0x2e4   : > { %v9993_v57 = vsel %vm9986_vm5, %v9965_v40, %v9967_v51  ;;  %v7024_v34 = vpop.f32.mrf.mxu1  ;;  %v7062_v35 = vpop.f32.mrf.mxu0  ;;  %v9994_v14 = vsel %vm9986_vm5, %v9967_v51, %v9969_v37 }
 0x2e5   : > { %v18968_v0 = vadd.f32 %v7062_v35, %v18816_v55  ;;  %11578 = vrot.lane.b32.xlu1 %v18954_v48, %s16337_s24  ;;  %11576 = vrot.lane.b32.xlu0 %v18956_v10, %s16337_s24  ;;  %v10025_v27 = vsel %vm429_vm0, %v9993_v57, 0  ;;  %v12029_v55 = vld [vmem:[#allocation2 + $0x1c] sm:$0xff]  ;;  %v19035_v35 = vcombine.low %v12031_v45, %v12031_v45 }
 0x2e6   : > { %v7064_v61 = vpop.f32.mrf.mxu0  ;;  %v7101_v36 = vpop.f32.mrf.mxu1  ;;  %15754 = vmatmul.mubr.msk.bf16.vlgmr.msra.gmra.mxu0 %vm425_vm1, %v18920_v42  ;;  %15755 = vmatprep.subr.msk.bf16.mxu1 %vm429_vm0, %v9994_v14  ;;  %v18993_v13 = vcombine.low %v12029_v55, %v12029_v55  ;;  %v19016_v50 = vcombine.high %v12029_v55, %v12029_v55 }
 0x2e7   : > { %v18981_v30 = vadd.f32 %v7101_v36, %v18827_v41  ;;  %10192 = vmatpush1.bf16.msra.mxu1 %v10025_v27  ;;  %v9973_v1 = vpop.permute.xlu1 %9972  ;;  %v9971_v25 = vpop.permute.xlu0 %9970  ;;  %10250 = vmatprep.mubr.bf16.mxu0 %v16316_v11 }
 0x2e8   : > { %v9995_v53 = vsel %vm9986_vm5, %v9969_v37, %v9971_v25  ;;  %v7065_v21 = vpop.f32.mrf.mxu0  ;;  %v7103_v4 = vpop.f32.mrf.mxu1  ;;  %v9996_v5 = vsel %vm9986_vm5, %v9971_v25, %v9973_v1 }
 0x2e9   : > { %v18987_v24 = vadd.f32 %v7103_v4, %v18832_v26  ;;  %12080 = vrot.lane.b32.xlu1 %v18975_v23, %s16338_s29  ;;  %11580 = vrot.lane.b32.xlu0 %v16241_v28, %s16337_s24  ;;  %v10031_v41 = vsel %vm429_vm0, %v9995_v53, 0  ;;  %v12030_v26 = vld [vmem:[#allocation2 + $0x24] sm:$0xff]  ;;  %v19052_v21 = vcombine.high %v12031_v45, %v12031_v45 }
 0x2ea   : > { %v7105_v54 = vpop.f32.mrf.mxu1  ;;  %v7142_v43 = vpop.f32.mrf.mxu0  ;;  %15756 = vmatmul.mubr.msk.bf16.vlgmr.msra.gmra.mxu1 %vm425_vm1, %v18920_v42  ;;  %15757 = vmatprep.subr.msk.bf16.mxu0 %vm429_vm0, %v9996_v5  ;;  %v19014_v16 = vcombine.low %v12030_v26, %v12030_v26  ;;  %v19037_v14 = vcombine.high %v12030_v26, %v12030_v26 }
 0x2eb   : > { %v19001_v62 = vadd.f32 %v7142_v43, %v18844_v18  ;;  %10233 = vmatpush1.bf16.msra.mxu0 %v10031_v41  ;;  %v9977_v12 = vpop.permute.xlu1 %9976  ;;  %v9975_v3 = vpop.permute.xlu0 %9974  ;;  %10291 = vmatprep.mubr.bf16.mxu1 %v16316_v11 }
 0x2ec   : > { %v9997_v32 = vsel %vm9986_vm5, %v9973_v1, %v9975_v3  ;;  %v7106_v22 = vpop.f32.mrf.mxu1  ;;  %v7144_v39 = vpop.f32.mrf.mxu0  ;;  %v9998_v40 = vsel %vm9986_vm5, %v9975_v3, %v9977_v12 }
 0x2ed   : > { %v19007_v52 = vadd.f32 %v7144_v39, %v18849_v63  ;;  %12084 = vrot.lane.b32.xlu1 %v18993_v13, %s16338_s29  ;;  %12082 = vrot.lane.b32.xlu0 %v18995_v56, %s16338_s29  ;;  %v10037_v18 = vsel %vm429_vm0, %v9997_v32, 0 }
 0x2ee   : > { %v7183_v29 = vpop.f32.mrf.mxu1  ;;  %15758 = vmatmul.mubr.msk.bf16.vlgmr.msra.gmra.mxu0 %vm425_vm1, %v18920_v42  ;;  %15759 = vmatprep.subr.msk.bf16.mxu1 %vm429_vm0, %v9998_v40  ;;  %v7146_v63 = vpop.f32.mrf.mxu0 }
 0x2ef   : > { %v19022_v38 = vadd.f32 %v7183_v29, %v18861_v44  ;;  %10274 = vmatpush1.bf16.msra.mxu1 %v10037_v18  ;;  %v9981_v46 = vpop.permute.xlu1 %9980  ;;  %v9979_v2 = vpop.permute.xlu0 %9978  ;;  %10332 = vmatprep.mubr.bf16.mxu0 %v16316_v11 }
 0x2f0   : > { %v9999_v20 = vsel %vm9986_vm5, %v9977_v12, %v9979_v2  ;;  %v7185_v37 = vpop.f32.mrf.mxu1  ;;  %v10000_v51 = vsel %vm9986_vm5, %v9979_v2, %v9981_v46  ;;  %v7147_v57 = vpop.f32.mrf.mxu0 }
 0x2f1   : > { %v19028_v34 = vadd.f32 %v7185_v37, %v18866_v15  ;;  %12088 = vrot.lane.b32.xlu1 %v19014_v16, %s16338_s29  ;;  %12086 = vrot.lane.b32.xlu0 %v19016_v50, %s16338_s29  ;;  %v10043_v44 = vsel %vm429_vm0, %v9999_v20, 0  ;;  %v12032_v15 = vld [vmem:[#allocation2 + $0x34] sm:$0xff]  ;;  %v19094_v37 = vld [vmem:[%s20299_s0 + $0x4c] sm:$0xf] }
 0x2f2   : > { %15760 = vmatmul.mubr.msk.bf16.vlgmr.msra.gmra.mxu1 %vm425_vm1, %v18920_v42  ;;  %15761 = vmatprep.subr.msk.bf16.mxu0 %vm429_vm0, %v10000_v51  ;;  %v7187_v27 = vpop.f32.mrf.mxu1  ;;  %v19050_v53 = vcombine.low %v12032_v15, %v12032_v15  ;;  %v19068_v12 = vcombine.high %v12032_v15, %v12032_v15 }
 0x2f3   : > { %10315 = vmatpush1.bf16.msra.mxu0 %v10043_v44  ;;  %v9985_v28 = vpop.permute.xlu1 %9984  ;;  %v9983_v61 = vpop.permute.xlu0 %9982  ;;  %10373 = vmatprep.mubr.bf16.mxu1 %v16316_v11 }
 0x2f4   : > { %v10001_v36 = vsel %vm9986_vm5, %v9981_v46, %v9983_v61  ;;  %v10002_v55 = vsel %vm9986_vm5, %v9983_v61, %v9985_v28  ;;  %v7188_v1 = vpop.f32.mrf.mxu1 }
 0x2f5   : > { %12092 = vrot.lane.b32.xlu1 %v19035_v35, %s16338_s29  ;;  %12090 = vrot.lane.b32.xlu0 %v19037_v14, %s16338_s29  ;;  %v10049_v25 = vsel %vm429_vm0, %v10001_v36, 0 }
 0x2f6   : > { %v7428_v4 = vpop.f32.mrf.mxu0  ;;  %15762 = vmatmul.mubr.msk.bf16.vlgmr.msra.gmra.mxu0 %vm425_vm1, %v18920_v42  ;;  %15763 = vmatprep.subr.msk.bf16.mxu1 %vm429_vm0, %v10002_v55 }
 0x2f7   : > { %v19058_v5 = vadd.f32 %v7428_v4, %v18878_v59  ;;  %10356 = vmatpush1.bf16.msra.mxu1 %v10049_v25  ;;  %v10487_v41 = vpop.permute.xlu1 %10486  ;;  %v10485_v54 = vpop.permute.xlu0 %10484  ;;  %10618 = vmatprep.mubr.bf16.mxu0 %v16316_v11 }
 0x2f8   : > { %v7430_v43 = vpop.f32.mrf.mxu0  ;;  %v10519_v32 = vsel %vm10518_vm6, %v10485_v54, %v10487_v41 }
 0x2f9   : > { %v19062_v26 = vadd.f32 %v7430_v43, %v18883_v60  ;;  %12096 = vrot.lane.b32.xlu1 %v19050_v53, %s16338_s29  ;;  %12094 = vrot.lane.b32.xlu0 %v19052_v21, %s16338_s29 }
 0x2fa   : > { %v7432_v59 = vpop.f32.mrf.mxu0  ;;  %v7469_v3 = vpop.f32.mrf.mxu1  ;;  %15764 = vmatmul.mubr.msk.bf16.vlgmr.msra.gmra.mxu1 %vm425_vm1, %v18920_v42 }
 0x2fb   : > { %v19074_v22 = vadd.f32 %v7469_v3, %v18894_v19  ;;  %v10491_v60 = vpop.permute.xlu1 %10490  ;;  %v10489_v39 = vpop.permute.xlu0 %10488  ;;  %10659 = vmatprep.mubr.bf16.mxu1 %v16316_v11  ;;  %v10539_v19 = vsel %vm429_vm0, %v10519_v32, 0 }
 0x2fc   : > { %v7433_v40 = vpop.f32.mrf.mxu0  ;;  %v7471_v18 = vpop.f32.mrf.mxu1  ;;  %v10520_v29 = vsel %vm10518_vm6, %v10487_v41, %v10489_v39  ;;  %v10521_v46 = vsel %vm10518_vm6, %v10489_v39, %v10491_v60 }
 0x2fd   : > { %v19079_v63 = vadd.f32 %v7471_v18, %v18900_v31  ;;  %12100 = vrot.lane.b32.xlu1 %v18909_v49, %s16338_s29  ;;  %12098 = vrot.lane.b32.xlu0 %v19068_v12, %s16338_s29  ;;  %v10545_v28 = vsel %vm429_vm0, %v10521_v46, 0 }
 0x2fe   : > { %v7473_v42 = vpop.f32.mrf.mxu1  ;;  %v7510_v45 = vpop.f32.mrf.mxu0  ;;  %15783 = vmatprep.subr.msk.bf16.mxu0 %vm429_vm0, %v10520_v29 }
 0x2ff   : > { %v19089_v2 = vadd.f32 %v7510_v45, %v18915_v58  ;;  %10601 = vmatpush1.bf16.msra.mxu0 %v10539_v19  ;;  %v10495_v31 = vpop.permute.xlu1 %10494  ;;  %v10493_v20 = vpop.permute.xlu0 %10492 }
 0x300   : > { %v7474_v51 = vpop.f32.mrf.mxu1  ;;  %v7512_v57 = vpop.f32.mrf.mxu0  ;;  %v10522_v44 = vsel %vm10518_vm6, %v10491_v60, %v10493_v20  ;;  %v10523_v61 = vsel %vm10518_vm6, %v10493_v20, %v10495_v31 }
 0x301   : > { %v19098_v27 = vadd.f32 %v7512_v57, %v18926_v33  ;;  %12104 = vrot.lane.b32.xlu1 %v18935_v7, %s16338_s29  ;;  %12102 = vrot.lane.b32.xlu0 %v18907_v17, %s16338_s29  ;;  %v10551_v59 = vsel %vm429_vm0, %v10523_v61, 0 }
 0x302   : > { %v7514_v58 = vpop.f32.mrf.mxu0  ;;  %v7551_v15 = vpop.f32.mrf.mxu1  ;;  %15784 = vmatmul.mubr.msk.bf16.vlgmr.msra.gmra.mxu0 %vm425_vm1, %v19094_v37  ;;  %15785 = vmatprep.subr.msk.bf16.mxu1 %vm429_vm0, %v10522_v44 }
 0x303   : > { %v19110_v33 = vadd.f32 %v7551_v15, %v18941_v8  ;;  %10642 = vmatpush1.bf16.msra.mxu1 %v10545_v28  ;;  %v10499_v36 = vpop.permute.xlu1 %10498  ;;  %v10497_v55 = vpop.permute.xlu0 %10496  ;;  %10700 = vmatprep.mubr.bf16.mxu0 %v16316_v11  ;;  %v16251_v8 = vld [vmem:[#allocation2 + $0x54] ss:$0 sps:$4 sm:$0xff]  }
 0x304   : > { %v7515_v1 = vpop.f32.mrf.mxu0  ;;  %v7553_v25 = vpop.f32.mrf.mxu1  ;;  %v10524_v4 = vsel %vm10518_vm6, %v10495_v31, %v10497_v55  ;;  %v10525_v3 = vsel %vm10518_vm6, %v10497_v55, %v10499_v36 }
 0x305   : > { %v19115_v41 = vadd.f32 %v7553_v25, %v18947_v9  ;;  %12108 = vrot.lane.b32.xlu1 %v18956_v10, %s16338_s29  ;;  %12106 = vrot.lane.b32.xlu0 %v18933_v6, %s16338_s29  ;;  %v10557_v42 = vsel %vm429_vm0, %v10525_v3, 0 }
 0x306   : > { %v7555_v54 = vpop.f32.mrf.mxu1  ;;  %v7592_v43 = vpop.f32.mrf.mxu0  ;;  %15786 = vmatmul.mubr.msk.bf16.vlgmr.msra.gmra.mxu1 %vm425_vm1, %v19094_v37  ;;  %15787 = vmatprep.subr.msk.bf16.mxu0 %vm429_vm0, %v10524_v4 }
 0x307   : > { %v19127_v9 = vadd.f32 %v7592_v43, %v18962_v47  ;;  %10683 = vmatpush1.bf16.msra.mxu0 %v10551_v59  ;;  %v10503_v32 = vpop.permute.xlu1 %10502  ;;  %v10501_v60 = vpop.permute.xlu0 %10500  ;;  %10741 = vmatprep.mubr.bf16.mxu1 %v16316_v11 }
 0x308   : > { %v7556_v39 = vpop.f32.mrf.mxu1  ;;  %v7594_v40 = vpop.f32.mrf.mxu0  ;;  %v10526_v18 = vsel %vm10518_vm6, %v10499_v36, %v10501_v60  ;;  %v10527_v45 = vsel %vm10518_vm6, %v10501_v60, %v10503_v32 }
 0x309   : > { %v19132_v29 = vadd.f32 %v7594_v40, %v18968_v0  ;;  %12112 = vrot.lane.b32.xlu1 %v16251_v8, %s16338_s29  ;;  %12110 = vrot.lane.b32.xlu0 %v18954_v48, %s16338_s29  ;;  %v10563_v15 = vsel %vm429_vm0, %v10527_v45, 0 }
 0x30a   : > { %v7596_v19 = vpop.f32.mrf.mxu0  ;;  %v7633_v47 = vpop.f32.mrf.mxu1  ;;  %15788 = vmatmul.mubr.msk.bf16.vlgmr.msra.gmra.mxu0 %vm425_vm1, %v19094_v37  ;;  %15789 = vmatprep.subr.msk.bf16.mxu1 %vm429_vm0, %v10526_v18 }
 0x30b   : > { %v19143_v46 = vadd.f32 %v7633_v47, %v18981_v30  ;;  %10724 = vmatpush1.bf16.msra.mxu1 %v10557_v42  ;;  %v10507_v0 = vpop.permute.xlu1 %10506  ;;  %v10505_v31 = vpop.permute.xlu0 %10504  ;;  %10782 = vmatprep.mubr.bf16.mxu0 %v16316_v11 }
 0x30c   : > { %v7597_v20 = vpop.f32.mrf.mxu0  ;;  %v7635_v51 = vpop.f32.mrf.mxu1  ;;  %v10528_v57 = vsel %vm10518_vm6, %v10503_v32, %v10505_v31  ;;  %v10529_v28 = vsel %vm10518_vm6, %v10505_v31, %v10507_v0 }
 0x30d   : > { %v19148_v44 = vadd.f32 %v7635_v51, %v18987_v24  ;;  %12614 = vrot.lane.b32.xlu1 %v18995_v56, %s16339_s15  ;;  %12612 = vrot.lane.b32.xlu0 %v18975_v23, %s16339_s15  ;;  %v10569_v54 = vsel %vm429_vm0, %v10529_v28, 0 }
 0x30e   : > { %v7637_v30 = vpop.f32.mrf.mxu1  ;;  %v7674_v58 = vpop.f32.mrf.mxu0  ;;  %15790 = vmatmul.mubr.msk.bf16.vlgmr.msra.gmra.mxu1 %vm425_vm1, %v19094_v37  ;;  %15791 = vmatprep.subr.msk.bf16.mxu0 %vm429_vm0, %v10528_v57 }
 0x30f   : > { %v19160_v24 = vadd.f32 %v7674_v58, %v19001_v62  ;;  %10765 = vmatpush1.bf16.msra.mxu0 %v10563_v15  ;;  %v10511_v61 = vpop.permute.xlu1 %10510  ;;  %v10509_v36 = vpop.permute.xlu0 %10508  ;;  %10823 = vmatprep.mubr.bf16.mxu1 %v16316_v11 }
 0x310   : > { %v7638_v55 = vpop.f32.mrf.mxu1  ;;  %v7676_v1 = vpop.f32.mrf.mxu0  ;;  %v10530_v25 = vsel %vm10518_vm6, %v10507_v0, %v10509_v36  ;;  %v10531_v43 = vsel %vm10518_vm6, %v10509_v36, %v10511_v61 }
 0x311   : > { %v19165_v4 = vadd.f32 %v7676_v1, %v19007_v52  ;;  %12618 = vrot.lane.b32.xlu1 %v19016_v50, %s16339_s15  ;;  %12616 = vrot.lane.b32.xlu0 %v18993_v13, %s16339_s15  ;;  %v10575_v19 = vsel %vm429_vm0, %v10531_v43, 0  ;;  %v19232_v43 = vld [vmem:[%s20299_s0 + $0x50] sm:$0xf] }
 0x312   : > { %v7678_v62 = vpop.f32.mrf.mxu0  ;;  %v7715_v8 = vpop.f32.mrf.mxu1  ;;  %15792 = vmatmul.mubr.msk.bf16.vlgmr.msra.gmra.mxu0 %vm425_vm1, %v19094_v37  ;;  %15793 = vmatprep.subr.msk.bf16.mxu1 %vm429_vm0, %v10530_v25 }
 0x313   : > { %v19177_v52 = vadd.f32 %v7715_v8, %v19022_v38  ;;  %10806 = vmatpush1.bf16.msra.mxu1 %v10569_v54  ;;  %v10515_v59 = vpop.permute.xlu1 %10514  ;;  %v10513_v3 = vpop.permute.xlu0 %10512  ;;  %10864 = vmatprep.mubr.bf16.mxu0 %v16316_v11 }
 0x314   : > { %v7679_v32 = vpop.f32.mrf.mxu0  ;;  %v7717_v60 = vpop.f32.mrf.mxu1  ;;  %v10532_v39 = vsel %vm10518_vm6, %v10511_v61, %v10513_v3  ;;  %v10533_v47 = vsel %vm10518_vm6, %v10513_v3, %v10515_v59 }
 0x315   : > { %v19182_v40 = vadd.f32 %v7717_v60, %v19028_v34  ;;  %12622 = vrot.lane.b32.xlu1 %v19037_v14, %s16339_s15  ;;  %12620 = vrot.lane.b32.xlu0 %v19014_v16, %s16339_s15  ;;  %v10581_v30 = vsel %vm429_vm0, %v10533_v47, 0 }
 0x316   : > { %v7719_v38 = vpop.f32.mrf.mxu1  ;;  %v7960_v18 = vpop.f32.mrf.mxu0  ;;  %15794 = vmatmul.mubr.msk.bf16.vlgmr.msra.gmra.mxu1 %vm425_vm1, %v19094_v37  ;;  %15795 = vmatprep.subr.msk.bf16.mxu0 %vm429_vm0, %v10532_v39 }
 0x317   : > { %v19194_v34 = vadd.f32 %v7960_v18, %v19058_v5  ;;  %10847 = vmatpush1.bf16.msra.mxu0 %v10575_v19  ;;  %v11017_v42 = vpop.permute.xlu1 %11016  ;;  %v10517_v45 = vpop.permute.xlu0 %10516  ;;  %10905 = vmatprep.mubr.bf16.mxu1 %v16316_v11 }
 0x318   : > { %v10534_v0 = vsel %vm10518_vm6, %v10515_v59, %v10517_v45  ;;  %v7720_v31 = vpop.f32.mrf.mxu1  ;;  %v7962_v20 = vpop.f32.mrf.mxu0 }
 0x319   : > { %v19199_v51 = vadd.f32 %v7962_v20, %v19062_v26  ;;  %12626 = vrot.lane.b32.xlu1 %v19052_v21, %s16339_s15  ;;  %12624 = vrot.lane.b32.xlu0 %v19035_v35, %s16339_s15 }
 0x31a   : > { %v7964_v5 = vpop.f32.mrf.mxu0  ;;  %v8001_v57 = vpop.f32.mrf.mxu1  ;;  %15796 = vmatmul.mubr.msk.bf16.vlgmr.msra.gmra.mxu0 %vm425_vm1, %v19094_v37  ;;  %15797 = vmatprep.subr.msk.bf16.mxu1 %vm429_vm0, %v10534_v0 }
 0x31b   : > { %v19210_v58 = vadd.f32 %v8001_v57, %v19074_v22  ;;  %10888 = vmatpush1.bf16.msra.mxu1 %v10581_v30  ;;  %v11021_v26 = vpop.permute.xlu1 %11020  ;;  %v11019_v15 = vpop.permute.xlu0 %11018  ;;  %11150 = vmatprep.mubr.bf16.mxu0 %v16316_v11 }
 0x31c   : > { %v11051_v28 = vsel %vm11050_vm7, %v11017_v42, %v11019_v15  ;;  %v7965_v61 = vpop.f32.mrf.mxu0  ;;  %v8003_v36 = vpop.f32.mrf.mxu1  ;;  %v11052_v55 = vsel %vm11050_vm7, %v11019_v15, %v11021_v26 }
 0x31d   : > { %v19216_v1 = vadd.f32 %v8003_v36, %v19079_v63  ;;  %12630 = vrot.lane.b32.xlu1 %v19068_v12, %s16339_s15  ;;  %12628 = vrot.lane.b32.xlu0 %v19050_v53, %s16339_s15  ;;  %v11071_v22 = vsel %vm429_vm0, %v11051_v28, 0 }
 0x31e   : > { %v8005_v25 = vpop.f32.mrf.mxu1  ;;  %v8042_v62 = vpop.f32.mrf.mxu0  ;;  %15798 = vmatmul.mubr.msk.bf16.vlgmr.msra.gmra.mxu1 %vm425_vm1, %v19094_v37  ;;  %15817 = vmatprep.subr.msk.bf16.mxu0 %vm429_vm0, %v11052_v55  ;;  %v16252_v55 = vld [vmem:[#allocation2 + $0x54] ss:$0 sps:$4 sm:$0xff]  }
 0x31f   : > { %v19227_v8 = vadd.f32 %v8042_v62, %v19089_v2  ;;  %11133 = vmatpush1.bf16.msra.mxu0 %v11071_v22  ;;  %v11025_v63 = vpop.permute.xlu1 %11024  ;;  %v11023_v54 = vpop.permute.xlu0 %11022  ;;  %11191 = vmatprep.mubr.bf16.mxu1 %v16316_v11 }
 0x320   : > { %v11053_v59 = vsel %vm11050_vm7, %v11021_v26, %v11023_v54  ;;  %v8006_v3 = vpop.f32.mrf.mxu1  ;;  %v8044_v32 = vpop.f32.mrf.mxu0  ;;  %v11054_v37 = vsel %vm11050_vm7, %v11023_v54, %v11025_v63 }
 0x321   : > { %v19238_v60 = vadd.f32 %v8044_v32, %v19098_v27  ;;  %12634 = vrot.lane.b32.xlu1 %v18907_v17, %s16339_s15  ;;  %12632 = vrot.lane.b32.xlu0 %v18909_v49, %s16339_s15  ;;  %v11077_v2 = vsel %vm429_vm0, %v11053_v59, 0 }
 0x322   : > { %v8046_v39 = vpop.f32.mrf.mxu0  ;;  %v8083_v38 = vpop.f32.mrf.mxu1  ;;  %15818 = vmatmul.mubr.msk.bf16.vlgmr.msra.gmra.mxu0 %vm425_vm1, %v19232_v43  ;;  %15819 = vmatprep.subr.msk.bf16.mxu1 %vm429_vm0, %v11054_v37 }
 0x323   : > { %v19249_v18 = vadd.f32 %v8083_v38, %v19110_v33  ;;  %11174 = vmatpush1.bf16.msra.mxu1 %v11077_v2  ;;  %v11029_v27 = vpop.permute.xlu1 %11028  ;;  %v11027_v19 = vpop.permute.xlu0 %11026  ;;  %11232 = vmatprep.mubr.bf16.mxu0 %v16316_v11 }
 0x324   : > { %v11055_v47 = vsel %vm11050_vm7, %v11025_v63, %v11027_v19  ;;  %v8047_v42 = vpop.f32.mrf.mxu0  ;;  %v8085_v45 = vpop.f32.mrf.mxu1  ;;  %v11056_v0 = vsel %vm11050_vm7, %v11027_v19, %v11029_v27 }
 0x325   : > { %v19255_v31 = vadd.f32 %v8085_v45, %v19115_v41  ;;  %12638 = vrot.lane.b32.xlu1 %v18933_v6, %s16339_s15  ;;  %12636 = vrot.lane.b32.xlu0 %v18935_v7, %s16339_s15  ;;  %v11083_v33 = vsel %vm429_vm0, %v11055_v47, 0 }
 0x326   : > { %v8087_v20 = vpop.f32.mrf.mxu1  ;;  %v8124_v5 = vpop.f32.mrf.mxu0  ;;  %15820 = vmatmul.mubr.msk.bf16.vlgmr.msra.gmra.mxu1 %vm425_vm1, %v19232_v43  ;;  %15821 = vmatprep.subr.msk.bf16.mxu0 %vm429_vm0, %v11056_v0 }
 0x327   : > { %v19266_v57 = vadd.f32 %v8124_v5, %v19127_v9  ;;  %11215 = vmatpush1.bf16.msra.mxu0 %v11083_v33  ;;  %v11033_v41 = vpop.permute.xlu1 %11032  ;;  %v11031_v30 = vpop.permute.xlu0 %11030  ;;  %11273 = vmatprep.mubr.bf16.mxu1 %v16316_v11 }
 0x328   : > { %v11057_v26 = vsel %vm11050_vm7, %v11029_v27, %v11031_v30  ;;  %v8088_v15 = vpop.f32.mrf.mxu1  ;;  %v8126_v28 = vpop.f32.mrf.mxu0  ;;  %v11058_v61 = vsel %vm11050_vm7, %v11031_v30, %v11033_v41 }
 0x329   : > { %v19272_v36 = vadd.f32 %v8126_v28, %v19132_v29  ;;  %12642 = vrot.lane.b32.xlu1 %v18954_v48, %s16339_s15  ;;  %12640 = vrot.lane.b32.xlu0 %v18956_v10, %s16339_s15  ;;  %v11089_v9 = vsel %vm429_vm0, %v11057_v26, 0 }
 0x32a   : > { %v8128_v22 = vpop.f32.mrf.mxu0  ;;  %v8165_v25 = vpop.f32.mrf.mxu1  ;;  %15822 = vmatmul.mubr.msk.bf16.vlgmr.msra.gmra.mxu0 %vm425_vm1, %v19232_v43  ;;  %15823 = vmatprep.subr.msk.bf16.mxu1 %vm429_vm0, %v11058_v61 }
 0x32b   : > { %v19283_v62 = vadd.f32 %v8165_v25, %v19143_v46  ;;  %11256 = vmatpush1.bf16.msra.mxu1 %v11089_v9  ;;  %v11037_v29 = vpop.permute.xlu1 %11036  ;;  %v11035_v63 = vpop.permute.xlu0 %11034  ;;  %11314 = vmatprep.mubr.bf16.mxu0 %v16316_v11 }
 0x32c   : > { %v11059_v54 = vsel %vm11050_vm7, %v11033_v41, %v11035_v63  ;;  %v8129_v59 = vpop.f32.mrf.mxu0  ;;  %v8167_v3 = vpop.f32.mrf.mxu1  ;;  %v11060_v32 = vsel %vm11050_vm7, %v11035_v63, %v11037_v29 }
 0x32d   : > { %v19289_v37 = vadd.f32 %v8167_v3, %v19148_v44  ;;  %13144 = vrot.lane.b32.xlu1 %v18975_v23, %s16340_s19  ;;  %12644 = vrot.lane.b32.xlu0 %v16252_v55, %s16339_s15  ;;  %v11095_v46 = vsel %vm429_vm0, %v11059_v54, 0 }
 0x32e   : > { %v8169_v2 = vpop.f32.mrf.mxu1  ;;  %v8206_v39 = vpop.f32.mrf.mxu0  ;;  %15824 = vmatmul.mubr.msk.bf16.vlgmr.msra.gmra.mxu1 %vm425_vm1, %v19232_v43  ;;  %15825 = vmatprep.subr.msk.bf16.mxu0 %vm429_vm0, %v11060_v32 }
 0x32f   : > { %v19299_v38 = vadd.f32 %v8206_v39, %v19160_v24  ;;  %11297 = vmatpush1.bf16.msra.mxu0 %v11095_v46  ;;  %v11041_v44 = vpop.permute.xlu1 %11040  ;;  %v11039_v27 = vpop.permute.xlu0 %11038  ;;  %11355 = vmatprep.mubr.bf16.mxu1 %v16316_v11 }
 0x330   : > { %v11061_v19 = vsel %vm11050_vm7, %v11037_v29, %v11039_v27  ;;  %v8170_v47 = vpop.f32.mrf.mxu1  ;;  %v8208_v42 = vpop.f32.mrf.mxu0  ;;  %v11062_v45 = vsel %vm11050_vm7, %v11039_v27, %v11041_v44 }
 0x331   : > { %v19305_v0 = vadd.f32 %v8208_v42, %v19165_v4  ;;  %13148 = vrot.lane.b32.xlu1 %v18993_v13, %s16340_s19  ;;  %13146 = vrot.lane.b32.xlu0 %v18995_v56, %s16340_s19  ;;  %v11101_v24 = vsel %vm429_vm0, %v11061_v19, 0 }
 0x332   : > { %v8247_v33 = vpop.f32.mrf.mxu1  ;;  %15826 = vmatmul.mubr.msk.bf16.vlgmr.msra.gmra.mxu0 %vm425_vm1, %v19232_v43  ;;  %15827 = vmatprep.subr.msk.bf16.mxu1 %vm429_vm0, %v11062_v45  ;;  %v8210_v20 = vpop.f32.mrf.mxu0 }
 0x333   : > { %v19316_v5 = vadd.f32 %v8247_v33, %v19177_v52  ;;  %11338 = vmatpush1.bf16.msra.mxu1 %v11101_v24  ;;  %v11045_v4 = vpop.permute.xlu1 %11044  ;;  %v11043_v41 = vpop.permute.xlu0 %11042  ;;  %11396 = vmatprep.mubr.bf16.mxu0 %v16316_v11 }
 0x334   : > { %v11063_v30 = vsel %vm11050_vm7, %v11041_v44, %v11043_v41  ;;  %v8249_v26 = vpop.f32.mrf.mxu1  ;;  %v11064_v15 = vsel %vm11050_vm7, %v11043_v41, %v11045_v4  ;;  %v8211_v28 = vpop.f32.mrf.mxu0 }
 0x335   : > { %v19322_v61 = vadd.f32 %v8249_v26, %v19182_v40  ;;  %13152 = vrot.lane.b32.xlu1 %v19014_v16, %s16340_s19  ;;  %13150 = vrot.lane.b32.xlu0 %v19016_v50, %s16340_s19  ;;  %v11107_v52 = vsel %vm429_vm0, %v11063_v30, 0 }
 0x336   : > { %15828 = vmatmul.mubr.msk.bf16.vlgmr.msra.gmra.mxu1 %vm425_vm1, %v19232_v43  ;;  %15829 = vmatprep.subr.msk.bf16.mxu0 %vm429_vm0, %v11064_v15  ;;  %v8251_v9 = vpop.f32.mrf.mxu1 }
 0x337   : > { %11379 = vmatpush1.bf16.msra.mxu0 %v11107_v52  ;;  %v11049_v55 = vpop.permute.xlu1 %11048  ;;  %v11047_v22 = vpop.permute.xlu0 %11046  ;;  %11437 = vmatprep.mubr.bf16.mxu1 %v16316_v11 }
 0x338   : > { %v11065_v40 = vsel %vm11050_vm7, %v11045_v4, %v11047_v22  ;;  %v11066_v25 = vsel %vm11050_vm7, %v11047_v22, %v11049_v55  ;;  %v8252_v29 = vpop.f32.mrf.mxu1 }
 0x339   : > { %13156 = vrot.lane.b32.xlu1 %v19035_v35, %s16340_s19  ;;  %13154 = vrot.lane.b32.xlu0 %v19037_v14, %s16340_s19  ;;  %v11113_v63 = vsel %vm429_vm0, %v11065_v40, 0 }
 0x33a   : > { %v8492_v54 = vpop.f32.mrf.mxu0  ;;  %15830 = vmatmul.mubr.msk.bf16.vlgmr.msra.gmra.mxu0 %vm425_vm1, %v19232_v43  ;;  %15831 = vmatprep.subr.msk.bf16.mxu1 %vm429_vm0, %v11066_v25 }
 0x33b   : > { %v19344_v59 = vadd.f32 %v8492_v54, %v19194_v34  ;;  %11420 = vmatpush1.bf16.msra.mxu1 %v11113_v63  ;;  %v11551_v3 = vpop.permute.xlu1 %11550  ;;  %v11549_v32 = vpop.permute.xlu0 %11548  ;;  %11682 = vmatprep.mubr.bf16.mxu0 %v16316_v11 }
 0x33c   : > { %v8494_v46 = vpop.f32.mrf.mxu0  ;;  %v11583_v34 = vsel %vm11582_vm8, %v11549_v32, %v11551_v3 }
 0x33d   : > { %v19348_v2 = vadd.f32 %v8494_v46, %v19199_v51  ;;  %13160 = vrot.lane.b32.xlu1 %v19050_v53, %s16340_s19  ;;  %13158 = vrot.lane.b32.xlu0 %v19052_v21, %s16340_s19 }
 0x33e   : > { %v8496_v39 = vpop.f32.mrf.mxu0  ;;  %v8533_v44 = vpop.f32.mrf.mxu1  ;;  %15832 = vmatmul.mubr.msk.bf16.vlgmr.msra.gmra.mxu1 %vm425_vm1, %v19232_v43 }
 0x33f   : > { %v19358_v27 = vadd.f32 %v8533_v44, %v19210_v58  ;;  %v11555_v19 = vpop.permute.xlu1 %11554  ;;  %v11553_v47 = vpop.permute.xlu0 %11552  ;;  %11723 = vmatprep.mubr.bf16.mxu1 %v16316_v11  ;;  %v11603_v58 = vsel %vm429_vm0, %v11583_v34, 0 }
 0x340   : > { %v8497_v51 = vpop.f32.mrf.mxu0  ;;  %v8535_v42 = vpop.f32.mrf.mxu1  ;;  %v11584_v45 = vsel %vm11582_vm8, %v11551_v3, %v11553_v47  ;;  %v11585_v20 = vsel %vm11582_vm8, %v11553_v47, %v11555_v19 }
 0x341   : > { %v19363_v24 = vadd.f32 %v8535_v42, %v19216_v1  ;;  %13164 = vrot.lane.b32.xlu1 %v18909_v49, %s16340_s19  ;;  %13162 = vrot.lane.b32.xlu0 %v19068_v12, %s16340_s19  ;;  %v19378_v49 = vld [vmem:[%s20299_s0 + $0x54] sm:$0xf]  ;;  %v11609_v9 = vsel %vm429_vm0, %v11585_v20, 0 }
 0x342   : > { %v8537_v43 = vpop.f32.mrf.mxu1  ;;  %v8574_v33 = vpop.f32.mrf.mxu0  ;;  %15851 = vmatprep.subr.msk.bf16.mxu0 %vm429_vm0, %v11584_v45 }
 0x343   : > { %v19373_v4 = vadd.f32 %v8574_v33, %v19227_v8  ;;  %11665 = vmatpush1.bf16.msra.mxu0 %v11603_v58  ;;  %v11559_v1 = vpop.permute.xlu1 %11558  ;;  %v11557_v41 = vpop.permute.xlu0 %11556 }
 0x344   : > { %v8538_v30 = vpop.f32.mrf.mxu1  ;;  %v8576_v26 = vpop.f32.mrf.mxu0  ;;  %v11586_v15 = vsel %vm11582_vm8, %v11555_v19, %v11557_v41  ;;  %v11587_v55 = vsel %vm11582_vm8, %v11557_v41, %v11559_v1 }
 0x345   : > { %v19382_v28 = vadd.f32 %v8576_v26, %v19238_v60  ;;  %13168 = vrot.lane.b32.xlu1 %v18935_v7, %s16340_s19  ;;  %13166 = vrot.lane.b32.xlu0 %v18907_v17, %s16340_s19  ;;  %v11615_v3 = vsel %vm429_vm0, %v11587_v55, 0 }
 0x346   : > { %v8578_v8 = vpop.f32.mrf.mxu0  ;;  %v8615_v52 = vpop.f32.mrf.mxu1  ;;  %15852 = vmatmul.mubr.msk.bf16.vlgmr.msra.gmra.mxu0 %vm425_vm1, %v19378_v49  ;;  %15853 = vmatprep.subr.msk.bf16.mxu1 %vm429_vm0, %v11586_v15 }
 0x347   : > { %v19394_v60 = vadd.f32 %v8615_v52, %v19249_v18  ;;  %11706 = vmatpush1.bf16.msra.mxu1 %v11609_v9  ;;  %v11563_v22 = vpop.permute.xlu1 %11562  ;;  %v11561_v7 = vpop.permute.xlu0 %11560  ;;  %11764 = vmatprep.mubr.bf16.mxu0 %v16316_v11  ;;  %v16253_v18 = vld [vmem:[#allocation2 + $0x54] ss:$0 sps:$4 sm:$0xff]  }
 0x348   : > { %v8579_v17 = vpop.f32.mrf.mxu0  ;;  %v8617_v40 = vpop.f32.mrf.mxu1  ;;  %v11588_v25 = vsel %vm11582_vm8, %v11559_v1, %v11561_v7  ;;  %v11589_v32 = vsel %vm11582_vm8, %v11561_v7, %v11563_v22 }
 0x349   : > { %v19399_v29 = vadd.f32 %v8617_v40, %v19255_v31  ;;  %13172 = vrot.lane.b32.xlu1 %v18956_v10, %s16340_s19  ;;  %13170 = vrot.lane.b32.xlu0 %v18933_v6, %s16340_s19  ;;  %v11621_v47 = vsel %vm429_vm0, %v11589_v32, 0 }
 0x34a   : > { %v8619_v63 = vpop.f32.mrf.mxu1  ;;  %v8656_v54 = vpop.f32.mrf.mxu0  ;;  %15854 = vmatmul.mubr.msk.bf16.vlgmr.msra.gmra.mxu1 %vm425_vm1, %v19378_v49  ;;  %15855 = vmatprep.subr.msk.bf16.mxu0 %vm429_vm0, %v11588_v25 }
 0x34b   : > { %v19411_v31 = vadd.f32 %v8656_v54, %v19266_v57  ;;  %11747 = vmatpush1.bf16.msra.mxu0 %v11615_v3  ;;  %v11567_v10 = vpop.permute.xlu1 %11566  ;;  %v11565_v46 = vpop.permute.xlu0 %11564  ;;  %11805 = vmatprep.mubr.bf16.mxu1 %v16316_v11 }
 0x34c   : > { %v11590_v6 = vsel %vm11582_vm8, %v11563_v22, %v11565_v46  ;;  %v8620_v39 = vpop.f32.mrf.mxu1  ;;  %v8658_v44 = vpop.f32.mrf.mxu0  ;;  %v11591_v51 = vsel %vm11582_vm8, %v11565_v46, %v11567_v10 }
 0x34d   : > { %v19416_v34 = vadd.f32 %v8658_v44, %v19272_v36  ;;  %13176 = vrot.lane.b32.xlu1 %v16253_v18, %s16340_s19  ;;  %13174 = vrot.lane.b32.xlu0 %v18954_v48, %s16340_s19  ;;  %v13629_v39 = vld [vmem:[#allocation2 + $0x3c] sm:$0xff] }
 0x34e   : > { %v8660_v19 = vpop.f32.mrf.mxu0  ;;  %v8697_v57 = vpop.f32.mrf.mxu1  ;;  %15856 = vmatmul.mubr.msk.bf16.vlgmr.msra.gmra.mxu0 %vm425_vm1, %v19378_v49  ;;  %15857 = vmatprep.subr.msk.bf16.mxu1 %vm429_vm0, %v11590_v6 }
 0x34f   : > { %v19427_v42 = vadd.f32 %v8697_v57, %v19283_v62  ;;  %11788 = vmatpush1.bf16.msra.mxu1 %v11621_v47  ;;  %v11571_v36 = vpop.permute.xlu1 %11570  ;;  %v11569_v45 = vpop.permute.xlu0 %11568  ;;  %11846 = vmatprep.mubr.bf16.mxu0 %v16316_v11  ;;  %v11627_v62 = vsel %vm429_vm0, %v11591_v51, 0 }
 0x350   : > { %v11592_v48 = vsel %vm11582_vm8, %v11567_v10, %v11569_v45  ;;  %v8661_v58 = vpop.f32.mrf.mxu0  ;;  %v8699_v43 = vpop.f32.mrf.mxu1  ;;  %v11593_v41 = vsel %vm11582_vm8, %v11569_v45, %v11571_v36  ;;  %v19509_v45 = vcombine.low %v13629_v39, %v13629_v39 }
 0x351   : > { %v19432_v33 = vadd.f32 %v8699_v43, %v19289_v37  ;;  %13678 = vrot.lane.b32.xlu1 %v18995_v56, %s16341_s9  ;;  %13676 = vrot.lane.b32.xlu0 %v18975_v23, %s16341_s9  ;;  %v13630_v43 = vld [vmem:[#allocation2 + $0x44] sm:$0xff] }
 0x352   : > { %v8701_v20 = vpop.f32.mrf.mxu1  ;;  %v8738_v1 = vpop.f32.mrf.mxu0  ;;  %15858 = vmatmul.mubr.msk.bf16.vlgmr.msra.gmra.mxu1 %vm425_vm1, %v19378_v49  ;;  %15859 = vmatprep.subr.msk.bf16.mxu0 %vm429_vm0, %v11592_v48 }
 0x353   : > { %v19444_v37 = vadd.f32 %v8738_v1, %v19299_v38  ;;  %11829 = vmatpush1.bf16.msra.mxu0 %v11627_v62  ;;  %v11575_v30 = vpop.permute.xlu1 %11574  ;;  %v11573_v56 = vpop.permute.xlu0 %11572  ;;  %11887 = vmatprep.mubr.bf16.mxu1 %v16316_v11  ;;  %v11633_v38 = vsel %vm429_vm0, %v11593_v41, 0 }
 0x354   : > { %v11594_v23 = vsel %vm11582_vm8, %v11571_v36, %v11573_v56  ;;  %v8702_v26 = vpop.f32.mrf.mxu1  ;;  %v8740_v15 = vpop.f32.mrf.mxu0  ;;  %v11595_v55 = vsel %vm11582_vm8, %v11573_v56, %v11575_v30  ;;  %v19533_v56 = vcombine.high %v13630_v43, %v13630_v43 }
 0x355   : > { %v19449_v8 = vadd.f32 %v8740_v15, %v19305_v0  ;;  %13682 = vrot.lane.b32.xlu1 %v19016_v50, %s16341_s9  ;;  %13680 = vrot.lane.b32.xlu0 %v18993_v13, %s16341_s9 }
 0x356   : > { %v8742_v52 = vpop.f32.mrf.mxu0  ;;  %v8779_v9 = vpop.f32.mrf.mxu1  ;;  %15860 = vmatmul.mubr.msk.bf16.vlgmr.msra.gmra.mxu0 %vm425_vm1, %v19378_v49  ;;  %15861 = vmatprep.subr.msk.bf16.mxu1 %vm429_vm0, %v11594_v23  ;;  %v19535_v23 = vcombine.low %v13630_v43, %v13630_v43 }
 0x357   : > { %v19461_v0 = vadd.f32 %v8779_v9, %v19316_v5  ;;  %11870 = vmatpush1.bf16.msra.mxu1 %v11633_v38  ;;  %v11579_v22 = vpop.permute.xlu1 %11578  ;;  %v11577_v50 = vpop.permute.xlu0 %11576  ;;  %11928 = vmatprep.mubr.bf16.mxu0 %v16316_v11  ;;  %v11639_v5 = vsel %vm429_vm0, %v11595_v55, 0  ;;  %v13631_v38 = vld [vmem:[#allocation2 + $0x4c] sm:$0xff] }
 0x358   : > { %v11596_v13 = vsel %vm11582_vm8, %v11575_v30, %v11577_v50  ;;  %v8743_v7 = vpop.f32.mrf.mxu0  ;;  %v8781_v17 = vpop.f32.mrf.mxu1  ;;  %v11597_v63 = vsel %vm11582_vm8, %v11577_v50, %v11579_v22 }
 0x359   : > { %v19466_v40 = vadd.f32 %v8781_v17, %v19322_v61  ;;  %13686 = vrot.lane.b32.xlu1 %v19037_v14, %s16341_s9  ;;  %13684 = vrot.lane.b32.xlu0 %v19014_v16, %s16341_s9 }
 0x35a   : > { %v8783_v25 = vpop.f32.mrf.mxu1  ;;  %v9024_v18 = vpop.f32.mrf.mxu0  ;;  %15862 = vmatmul.mubr.msk.bf16.vlgmr.msra.gmra.mxu1 %vm425_vm1, %v19378_v49  ;;  %15863 = vmatprep.subr.msk.bf16.mxu0 %vm429_vm0, %v11596_v13 }
 0x35b   : > { %v19478_v61 = vadd.f32 %v9024_v18, %v19344_v59  ;;  %11911 = vmatpush1.bf16.msra.mxu0 %v11639_v5  ;;  %v12081_v54 = vpop.permute.xlu1 %12080  ;;  %v11581_v14 = vpop.permute.xlu0 %11580  ;;  %11969 = vmatprep.mubr.bf16.mxu1 %v16316_v11  ;;  %v11645_v59 = vsel %vm429_vm0, %v11597_v63, 0  ;;  %v19556_v5 = vcombine.low %v13631_v38, %v13631_v38  ;;  %v14156_v63 = vld [vmem:[#allocation2 + $0x14] sm:$0xff] }
 0x35c   : > { %v11598_v16 = vsel %vm11582_vm8, %v11579_v22, %v11581_v14  ;;  %v8784_v3 = vpop.f32.mrf.mxu1  ;;  %v9026_v32 = vpop.f32.mrf.mxu0 }
 0x35d   : > { %v19483_v10 = vadd.f32 %v9026_v32, %v19348_v2  ;;  %13690 = vrot.lane.b32.xlu1 %v19052_v21, %s16341_s9  ;;  %13688 = vrot.lane.b32.xlu0 %v19035_v35, %s16341_s9 }
 0x35e   : > { %v9028_v46 = vpop.f32.mrf.mxu0  ;;  %v9065_v6 = vpop.f32.mrf.mxu1  ;;  %15864 = vmatmul.mubr.msk.bf16.vlgmr.msra.gmra.mxu0 %vm425_vm1, %v19378_v49  ;;  %15865 = vmatprep.subr.msk.bf16.mxu1 %vm429_vm0, %v11598_v16 }
 0x35f   : > { %v19494_v2 = vadd.f32 %v9065_v6, %v19358_v27  ;;  %11952 = vmatpush1.bf16.msra.mxu1 %v11645_v59  ;;  %v12085_v44 = vpop.permute.xlu1 %12084  ;;  %v12083_v21 = vpop.permute.xlu0 %12082  ;;  %12214 = vmatprep.mubr.bf16.mxu0 %v16316_v11  ;;  %v19507_v27 = vcombine.high %v13629_v39, %v13629_v39  ;;  %v16263_v39 = vld [vmem:[#allocation2 + $0x54] ss:$0 sps:$4 sm:$0xff]  }
 0x360   : > { %v12115_v35 = vsel %vm12114_vm9, %v12081_v54, %v12083_v21  ;;  %v12116_v19 = vsel %vm12114_vm9, %v12083_v21, %v12085_v44  ;;  %v9029_v57 = vpop.f32.mrf.mxu0  ;;  %v9067_v47 = vpop.f32.mrf.mxu1 }
 0x361   : > { %v12135_v51 = vsel %vm429_vm0, %v12115_v35, 0  ;;  %v19501_v36 = vadd.f32 %v9067_v47, %v19363_v24  ;;  %13694 = vrot.lane.b32.xlu1 %v19068_v12, %s16341_s9  ;;  %13692 = vrot.lane.b32.xlu0 %v19050_v53, %s16341_s9  ;;  %v19520_v53 = vld [vmem:[%s20299_s0 + $0x58] sm:$0xf]  ;;  %v14157_v35 = vld [vmem:[#allocation2 + $0x1c] sm:$0xff] }
 0x362   : > { %v9069_v48 = vpop.f32.mrf.mxu1  ;;  %v9106_v58 = vpop.f32.mrf.mxu0  ;;  %15866 = vmatmul.mubr.msk.bf16.vlgmr.msra.gmra.mxu1 %vm425_vm1, %v19378_v49  ;;  %15885 = vmatprep.subr.msk.bf16.mxu0 %vm429_vm0, %v12116_v19 }
 0x363   : > { %v19515_v24 = vadd.f32 %v9106_v58, %v19373_v4  ;;  %12197 = vmatpush1.bf16.msra.mxu0 %v12135_v51  ;;  %v12089_v12 = vpop.permute.xlu1 %12088  ;;  %v12087_v62 = vpop.permute.xlu0 %12086  ;;  %12255 = vmatprep.mubr.bf16.mxu1 %v16316_v11 }
 0x364   : > { %v12117_v20 = vsel %vm12114_vm9, %v12085_v44, %v12087_v62  ;;  %v12118_v49 = vsel %vm12114_vm9, %v12087_v62, %v12089_v12  ;;  %v9070_v1 = vpop.f32.mrf.mxu1  ;;  %v9108_v41 = vpop.f32.mrf.mxu0  ;;  %v16005_v62 = vcombine.high %v14156_v63, %v14156_v63 }
 0x365   : > { %v12141_v30 = vsel %vm429_vm0, %v12117_v20, 0  ;;  %v19527_v4 = vadd.f32 %v9108_v41, %v19382_v28  ;;  %13698 = vrot.lane.b32.xlu1 %v19507_v27, %s16341_s9  ;;  %13696 = vrot.lane.b32.xlu0 %v19509_v45, %s16341_s9  ;;  %v14158_v1 = vld [vmem:[#allocation2 + $0x24] sm:$0xff] }
 0x366   : > { %v9110_v26 = vpop.f32.mrf.mxu0  ;;  %v9147_v15 = vpop.f32.mrf.mxu1  ;;  %15886 = vmatmul.mubr.msk.bf16.vlgmr.msra.gmra.mxu0 %vm425_vm1, %v19520_v53  ;;  %15887 = vmatprep.subr.msk.bf16.mxu1 %vm429_vm0, %v12118_v49 }
 0x367   : > { %v19541_v28 = vadd.f32 %v9147_v15, %v19394_v60  ;;  %12238 = vmatpush1.bf16.msra.mxu1 %v12141_v30  ;;  %v12093_v52 = vpop.permute.xlu1 %12092  ;;  %v12091_v9 = vpop.permute.xlu0 %12090  ;;  %12296 = vmatprep.mubr.bf16.mxu0 %v16316_v11  ;;  %v19554_v60 = vcombine.high %v13631_v38, %v13631_v38 }
 0x368   : > { %v12119_v55 = vsel %vm12114_vm9, %v12089_v12, %v12091_v9  ;;  %v12120_v22 = vsel %vm12114_vm9, %v12091_v9, %v12093_v52  ;;  %v9111_v50 = vpop.f32.mrf.mxu0  ;;  %v9149_v13 = vpop.f32.mrf.mxu1 }
 0x369   : > { %v12147_v7 = vsel %vm429_vm0, %v12119_v55, 0  ;;  %v19548_v17 = vadd.f32 %v9149_v13, %v19399_v29  ;;  %13702 = vrot.lane.b32.xlu1 %v19533_v56, %s16341_s9  ;;  %13700 = vrot.lane.b32.xlu0 %v19535_v23, %s16341_s9 }
 0x36a   : > { %v9151_v25 = vpop.f32.mrf.mxu1  ;;  %v9188_v18 = vpop.f32.mrf.mxu0  ;;  %15888 = vmatmul.mubr.msk.bf16.vlgmr.msra.gmra.mxu1 %vm425_vm1, %v19520_v53  ;;  %15889 = vmatprep.subr.msk.bf16.mxu0 %vm429_vm0, %v12120_v22  ;;  %v16007_v22 = vcombine.high %v14157_v35, %v14157_v35 }
 0x36b   : > { %v19562_v29 = vadd.f32 %v9188_v18, %v19411_v31  ;;  %12279 = vmatpush1.bf16.msra.mxu0 %v12147_v7  ;;  %v12097_v54 = vpop.permute.xlu1 %12096  ;;  %v12095_v14 = vpop.permute.xlu0 %12094  ;;  %12337 = vmatprep.mubr.bf16.mxu1 %v16316_v11  ;;  %v16004_v31 = vcombine.low %v14156_v63, %v14156_v63  ;;  %v14159_v7 = vld [vmem:[#allocation2 + $0x2c] sm:$0xff] }
 0x36c   : > { %v12121_v16 = vsel %vm12114_vm9, %v12093_v52, %v12095_v14  ;;  %v12122_v3 = vsel %vm12114_vm9, %v12095_v14, %v12097_v54  ;;  %v9152_v32 = vpop.f32.mrf.mxu1  ;;  %v9190_v59 = vpop.f32.mrf.mxu0 }
 0x36d   : > { %v12153_v46 = vsel %vm429_vm0, %v12121_v16, 0  ;;  %v19569_v6 = vadd.f32 %v9190_v59, %v19416_v34  ;;  %13706 = vrot.lane.b32.xlu1 %v19554_v60, %s16341_s9  ;;  %13704 = vrot.lane.b32.xlu0 %v19556_v5, %s16341_s9  ;;  %v16009_v59 = vcombine.high %v14158_v1, %v14158_v1 }
 0x36e   : > { %v9192_v44 = vpop.f32.mrf.mxu0  ;;  %v9229_v21 = vpop.f32.mrf.mxu1  ;;  %15890 = vmatmul.mubr.msk.bf16.vlgmr.msra.gmra.mxu0 %vm425_vm1, %v19520_v53  ;;  %15891 = vmatprep.subr.msk.bf16.mxu1 %vm429_vm0, %v12122_v3 }
 0x36f   : > { %v19579_v19 = vadd.f32 %v9229_v21, %v19427_v42  ;;  %12320 = vmatpush1.bf16.msra.mxu1 %v12153_v46  ;;  %v12101_v34 = vpop.permute.xlu1 %12100  ;;  %v12099_v57 = vpop.permute.xlu0 %12098  ;;  %12378 = vmatprep.mubr.bf16.mxu0 %v16316_v11  ;;  %v16006_v42 = vcombine.low %v14157_v35, %v14157_v35 }
 0x370   : > { %v12123_v47 = vsel %vm12114_vm9, %v12097_v54, %v12099_v57  ;;  %v12124_v51 = vsel %vm12114_vm9, %v12099_v57, %v12101_v34  ;;  %v9193_v48 = vpop.f32.mrf.mxu0  ;;  %v9231_v58 = vpop.f32.mrf.mxu1 }
 0x371   : > { %v12159_v43 = vsel %vm429_vm0, %v12123_v47, 0  ;;  %v19586_v12 = vadd.f32 %v9231_v58, %v19432_v33  ;;  %14208 = vrot.lane.b32.xlu1 %v16004_v31, %s16342_s13  ;;  %13708 = vrot.lane.b32.xlu0 %v16263_v39, %s16341_s9  ;;  %v14160_v31 = vld [vmem:[#allocation2 + $0x34] sm:$0xff]  ;;  %v16011_v47 = vcombine.high %v14159_v7, %v14159_v7 }
 0x372   : > { %v9233_v20 = vpop.f32.mrf.mxu1  ;;  %v9270_v49 = vpop.f32.mrf.mxu0  ;;  %15892 = vmatmul.mubr.msk.bf16.vlgmr.msra.gmra.mxu1 %vm425_vm1, %v19520_v53  ;;  %15893 = vmatprep.subr.msk.bf16.mxu0 %vm429_vm0, %v12124_v51  ;;  %v16012_v57 = vcombine.low %v14160_v31, %v14160_v31 }
 0x373   : > { %v19594_v41 = vadd.f32 %v9270_v49, %v19444_v37  ;;  %12361 = vmatpush1.bf16.msra.mxu0 %v12159_v43  ;;  %v12105_v33 = vpop.permute.xlu1 %12104  ;;  %v12103_v30 = vpop.permute.xlu0 %12102  ;;  %12419 = vmatprep.mubr.bf16.mxu1 %v16316_v11  ;;  %v16008_v37 = vcombine.low %v14158_v1, %v14158_v1  ;;  %v16013_v20 = vcombine.high %v14160_v31, %v14160_v31 }
 0x374   : > { %v12125_v26 = vsel %vm12114_vm9, %v12101_v34, %v12103_v30  ;;  %v12126_v15 = vsel %vm12114_vm9, %v12103_v30, %v12105_v33  ;;  %v9234_v38 = vpop.f32.mrf.mxu1  ;;  %v9272_v52 = vpop.f32.mrf.mxu0 }
 0x375   : > { %v12165_v9 = vsel %vm429_vm0, %v12125_v26, 0  ;;  %v19601_v55 = vadd.f32 %v9272_v52, %v19449_v8  ;;  %14212 = vrot.lane.b32.xlu1 %v16006_v42, %s16342_s13  ;;  %14210 = vrot.lane.b32.xlu0 %v16005_v62, %s16342_s13 }
 0x376   : > { %v9311_v50 = vpop.f32.mrf.mxu1  ;;  %15894 = vmatmul.mubr.msk.bf16.vlgmr.msra.gmra.mxu0 %vm425_vm1, %v19520_v53  ;;  %15895 = vmatprep.subr.msk.bf16.mxu1 %vm429_vm0, %v12126_v15  ;;  %v9274_v13 = vpop.f32.mrf.mxu0 }
 0x377   : > { %v19609_v25 = vadd.f32 %v9311_v50, %v19461_v0  ;;  %12402 = vmatpush1.bf16.msra.mxu1 %v12165_v9  ;;  %v12109_v8 = vpop.permute.xlu1 %12108  ;;  %v12107_v18 = vpop.permute.xlu0 %12106  ;;  %12460 = vmatprep.mubr.bf16.mxu0 %v16316_v11  ;;  %v16010_v0 = vcombine.low %v14159_v7, %v14159_v7 }
 0x378   : > { %v12127_v63 = vsel %vm12114_vm9, %v12105_v33, %v12107_v18  ;;  %v12128_v54 = vsel %vm12114_vm9, %v12107_v18, %v12109_v8  ;;  %v9313_v14 = vpop.f32.mrf.mxu1  ;;  %v9275_v16 = vpop.f32.mrf.mxu0 }
 0x379   : > { %v12171_v3 = vsel %vm429_vm0, %v12127_v63, 0  ;;  %v19616_v32 = vadd.f32 %v9313_v14, %v19466_v40  ;;  %14216 = vrot.lane.b32.xlu1 %v16008_v37, %s16342_s13  ;;  %14214 = vrot.lane.b32.xlu0 %v16007_v22, %s16342_s13 }
 0x37a   : > { %15896 = vmatmul.mubr.msk.bf16.vlgmr.msra.gmra.mxu1 %vm425_vm1, %v19520_v53  ;;  %15897 = vmatprep.subr.msk.bf16.mxu0 %vm429_vm0, %v12128_v54  ;;  %v9315_v46 = vpop.f32.mrf.mxu1 }
 0x37b   : > { %12443 = vmatpush1.bf16.msra.mxu0 %v12171_v3  ;;  %v12113_v39 = vpop.permute.xlu1 %12112  ;;  %v12111_v44 = vpop.permute.xlu0 %12110  ;;  %12501 = vmatprep.mubr.bf16.mxu1 %v16316_v11 }
 0x37c   : > { %v12129_v40 = vsel %vm12114_vm9, %v12109_v8, %v12111_v44  ;;  %v12130_v21 = vsel %vm12114_vm9, %v12111_v44, %v12113_v39  ;;  %v9316_v35 = vpop.f32.mrf.mxu1 }
 0x37d   : > { %v12177_v34 = vsel %vm429_vm0, %v12129_v40, 0  ;;  %14220 = vrot.lane.b32.xlu1 %v16010_v0, %s16342_s13  ;;  %14218 = vrot.lane.b32.xlu0 %v16009_v59, %s16342_s13 }
 0x37e   : > { %v9556_v51 = vpop.f32.mrf.mxu0  ;;  %15898 = vmatmul.mubr.msk.bf16.vlgmr.msra.gmra.mxu0 %vm425_vm1, %v19520_v53  ;;  %15899 = vmatprep.subr.msk.bf16.mxu1 %vm429_vm0, %v12130_v21 }
 0x37f   : > { %v19633_v48 = vadd.f32 %v9556_v51, %v19478_v61  ;;  %12484 = vmatpush1.bf16.msra.mxu1 %v12177_v34  ;;  %v12615_v58 = vpop.permute.xlu1 %12614  ;;  %v12613_v43 = vpop.permute.xlu0 %12612  ;;  %12746 = vmatprep.mubr.bf16.mxu0 %v16316_v11 }
 0x380   : > { %v9558_v42 = vpop.f32.mrf.mxu0  ;;  %v12647_v61 = vsel %vm12646_vm10, %v12613_v43, %v12615_v58 }
 0x381   : > { %v19637_v62 = vadd.f32 %v9558_v42, %v19483_v10  ;;  %14224 = vrot.lane.b32.xlu1 %v16012_v57, %s16342_s13  ;;  %14222 = vrot.lane.b32.xlu0 %v16011_v47, %s16342_s13 }
 0x382   : > { %v9560_v49 = vpop.f32.mrf.mxu0  ;;  %v9597_v1 = vpop.f32.mrf.mxu1  ;;  %15900 = vmatmul.mubr.msk.bf16.vlgmr.msra.gmra.mxu1 %vm425_vm1, %v19520_v53  ;;  %v12667_v53 = vsel %vm429_vm0, %v12647_v61, 0 }
 0x383   : > { %v19645_v33 = vadd.f32 %v9597_v1, %v19494_v2  ;;  %v12619_v30 = vpop.permute.xlu1 %12618  ;;  %v12617_v26 = vpop.permute.xlu0 %12616  ;;  %12787 = vmatprep.mubr.bf16.mxu1 %v16316_v11 }
 0x384   : > { %v12648_v10 = vsel %vm12646_vm10, %v12615_v58, %v12617_v26  ;;  %v9561_v15 = vpop.f32.mrf.mxu0  ;;  %v9599_v38 = vpop.f32.mrf.mxu1  ;;  %v12649_v37 = vsel %vm12646_vm10, %v12617_v26, %v12619_v30 }
 0x385   : > { %v19650_v52 = vadd.f32 %v9599_v38, %v19501_v36  ;;  %14228 = vrot.lane.b32.xlu1 %v19509_v45, %s16342_s13  ;;  %14226 = vrot.lane.b32.xlu0 %v16013_v20, %s16342_s13  ;;  %v19664_v45 = vld [vmem:[%s20299_s0 + $0x5c] sm:$0xf] }
 0x386   : > { %v9601_v2 = vpop.f32.mrf.mxu1  ;;  %v9638_v9 = vpop.f32.mrf.mxu0  ;;  %15919 = vmatprep.subr.msk.bf16.mxu0 %vm429_vm0, %v12648_v10 }
 0x387   : > { %v19659_v22 = vadd.f32 %v9638_v9, %v19515_v24  ;;  %12729 = vmatpush1.bf16.msra.mxu0 %v12667_v53  ;;  %v12623_v50 = vpop.permute.xlu1 %12622  ;;  %v12621_v36 = vpop.permute.xlu0 %12620  ;;  %v12673_v24 = vsel %vm429_vm0, %v12649_v37, 0 }
 0x388   : > { %v12650_v13 = vsel %vm12646_vm10, %v12619_v30, %v12621_v36  ;;  %v9602_v7 = vpop.f32.mrf.mxu1  ;;  %v9640_v8 = vpop.f32.mrf.mxu0  ;;  %v12651_v14 = vsel %vm12646_vm10, %v12621_v36, %v12623_v50 }
 0x389   : > { %v19668_v18 = vadd.f32 %v9640_v8, %v19527_v4  ;;  %14232 = vrot.lane.b32.xlu1 %v19535_v23, %s16342_s13  ;;  %14230 = vrot.lane.b32.xlu0 %v19507_v27, %s16342_s13  ;;  %v12679_v46 = vsel %vm429_vm0, %v12651_v14, 0 }
 0x38a   : > { %v9642_v63 = vpop.f32.mrf.mxu0  ;;  %v9679_v54 = vpop.f32.mrf.mxu1  ;;  %15920 = vmatmul.mubr.msk.bf16.vlgmr.msra.gmra.mxu0 %vm425_vm1, %v19664_v45  ;;  %15921 = vmatprep.subr.msk.bf16.mxu1 %vm429_vm0, %v12650_v13 }
 0x38b   : > { %v19680_v4 = vadd.f32 %v9679_v54, %v19541_v28  ;;  %12770 = vmatpush1.bf16.msra.mxu1 %v12673_v24  ;;  %v12627_v16 = vpop.permute.xlu1 %12626  ;;  %v12625_v23 = vpop.permute.xlu0 %12624  ;;  %12828 = vmatprep.mubr.bf16.mxu0 %v16316_v11  ;;  %v16273_v28 = vld [vmem:[#allocation2 + $0x54] ss:$0 sps:$4 sm:$0xff]  }
 0x38c   : > { %v12652_v27 = vsel %vm12646_vm10, %v12623_v50, %v12625_v23  ;;  %v9643_v3 = vpop.f32.mrf.mxu0  ;;  %v9681_v0 = vpop.f32.mrf.mxu1  ;;  %v12653_v44 = vsel %vm12646_vm10, %v12625_v23, %v12627_v16 }
 0x38d   : > { %v19685_v59 = vadd.f32 %v9681_v0, %v19548_v17  ;;  %14236 = vrot.lane.b32.xlu1 %v19556_v5, %s16342_s13  ;;  %14234 = vrot.lane.b32.xlu0 %v19533_v56, %s16342_s13 }
 0x38e   : > { %v9683_v31 = vpop.f32.mrf.mxu1  ;;  %v9720_v39 = vpop.f32.mrf.mxu0  ;;  %15922 = vmatmul.mubr.msk.bf16.vlgmr.msra.gmra.mxu1 %vm425_vm1, %v19664_v45  ;;  %15923 = vmatprep.subr.msk.bf16.mxu0 %vm429_vm0, %v12652_v27 }
 0x38f   : > { %v19697_v17 = vadd.f32 %v9720_v39, %v19562_v29  ;;  %12811 = vmatpush1.bf16.msra.mxu0 %v12679_v46  ;;  %v12631_v5 = vpop.permute.xlu1 %12630  ;;  %v12629_v40 = vpop.permute.xlu0 %12628  ;;  %12869 = vmatprep.mubr.bf16.mxu1 %v16316_v11  ;;  %v12685_v29 = vsel %vm429_vm0, %v12653_v44, 0 }
 0x390   : > { %v12654_v56 = vsel %vm12646_vm10, %v12627_v16, %v12629_v40  ;;  %v9684_v21 = vpop.f32.mrf.mxu1  ;;  %v9722_v35 = vpop.f32.mrf.mxu0  ;;  %v12655_v57 = vsel %vm12646_vm10, %v12629_v40, %v12631_v5 }
 0x391   : > { %v19702_v34 = vadd.f32 %v9722_v35, %v19569_v6  ;;  %14240 = vrot.lane.b32.xlu1 %v16273_v28, %s16342_s13  ;;  %14238 = vrot.lane.b32.xlu0 %v19554_v60, %s16342_s13  ;;  %v12691_v49 = vsel %vm429_vm0, %v12655_v57, 0 }
 0x392   : > { %v9724_v47 = vpop.f32.mrf.mxu0  ;;  %v9761_v51 = vpop.f32.mrf.mxu1  ;;  %15924 = vmatmul.mubr.msk.bf16.vlgmr.msra.gmra.mxu0 %vm425_vm1, %v19664_v45  ;;  %15925 = vmatprep.subr.msk.bf16.mxu1 %vm429_vm0, %v12654_v56 }
 0x393   : > { %v19713_v58 = vadd.f32 %v9761_v51, %v19579_v19  ;;  %12852 = vmatpush1.bf16.msra.mxu1 %v12685_v29  ;;  %v12635_v6 = vpop.permute.xlu1 %12634  ;;  %v12633_v43 = vpop.permute.xlu0 %12632  ;;  %12910 = vmatprep.mubr.bf16.mxu0 %v16316_v11 }
 0x394   : > { %v12656_v60 = vsel %vm12646_vm10, %v12631_v5, %v12633_v43  ;;  %v9725_v42 = vpop.f32.mrf.mxu0  ;;  %v9763_v20 = vpop.f32.mrf.mxu1  ;;  %v12657_v61 = vsel %vm12646_vm10, %v12633_v43, %v12635_v6 }
 0x395   : > { %v19719_v1 = vadd.f32 %v9763_v20, %v19586_v12  ;;  %15927 = vmatprep.subr.msk.bf16.mxu0 %vm429_vm0, %v12656_v60  ;;  %v12697_v2 = vsel %vm429_vm0, %v12657_v61, 0  ;;  %v19782_v60 = vld [vmem:[%s20299_s0 + $0x60] sm:$0xf] }
 0x396   : > { %v9765_v19 = vpop.f32.mrf.mxu1  ;;  %v9802_v30 = vpop.f32.mrf.mxu0  ;;  %15926 = vmatmul.mubr.msk.bf16.vlgmr.msra.gmra.mxu1 %vm425_vm1, %v19664_v45  ;;  %12893 = vmatpush1.bf16.msra.mxu0 %v12691_v49 }
 0x397   : > { %v19726_v26 = vadd.f32 %v9802_v30, %v19594_v41  ;;  %v12639_v10 = vpop.permute.xlu1 %12638  ;;  %v12637_v15 = vpop.permute.xlu0 %12636  ;;  %12951 = vmatprep.mubr.bf16.mxu1 %v16316_v11 }
 0x398   : > { %v12658_v12 = vsel %vm12646_vm10, %v12635_v6, %v12637_v15  ;;  %v9766_v38 = vpop.f32.mrf.mxu1  ;;  %v9804_v53 = vpop.f32.mrf.mxu0  ;;  %v12659_v37 = vsel %vm12646_vm10, %v12637_v15, %v12639_v10 }
 0x399   : > { %v19732_v9 = vadd.f32 %v9804_v53, %v19601_v55  ;;  %15929 = vmatprep.subr.msk.bf16.mxu1 %vm429_vm0, %v12658_v12  ;;  %v12703_v63 = vsel %vm429_vm0, %v12659_v37, 0 }
 0x39a   : > { %v9806_v50 = vpop.f32.mrf.mxu0  ;;  %v9843_v41 = vpop.f32.mrf.mxu1  ;;  %15928 = vmatmul.mubr.msk.bf16.vlgmr.msra.gmra.mxu0 %vm425_vm1, %v19664_v45  ;;  %12934 = vmatpush1.bf16.msra.mxu1 %v12697_v2 }
 0x39b   : > { %v19739_v36 = vadd.f32 %v9843_v41, %v19609_v25  ;;  %v12643_v13 = vpop.permute.xlu1 %12642  ;;  %v12641_v7 = vpop.permute.xlu0 %12640  ;;  %12992 = vmatprep.mubr.bf16.mxu0 %v16316_v11 }
 0x39c   : > { %v12660_v55 = vsel %vm12646_vm10, %v12639_v10, %v12641_v7  ;;  %v9807_v8 = vpop.f32.mrf.mxu0  ;;  %v9845_v24 = vpop.f32.mrf.mxu1  ;;  %v12661_v14 = vsel %vm12646_vm10, %v12641_v7, %v12643_v13 }
 0x39d   : > { %v19745_v54 = vadd.f32 %v9845_v24, %v19616_v32  ;;  %15931 = vmatprep.subr.msk.bf16.mxu0 %vm429_vm0, %v12660_v55  ;;  %v12709_v46 = vsel %vm429_vm0, %v12661_v14, 0 }
 0x39e   : > { %v9847_v16 = vpop.f32.mrf.mxu1  ;;  %v10088_v25 = vpop.f32.mrf.mxu0  ;;  %15930 = vmatmul.mubr.msk.bf16.vlgmr.msra.gmra.mxu1 %vm425_vm1, %v19664_v45  ;;  %12975 = vmatpush1.bf16.msra.mxu0 %v12703_v63 }
 0x39f   : > { %v19752_v23 = vadd.f32 %v10088_v25, %v19633_v48  ;;  %v13145_v27 = vpop.permute.xlu1 %13144  ;;  %v12645_v3 = vpop.permute.xlu0 %12644  ;;  %13033 = vmatprep.mubr.bf16.mxu1 %v16316_v11 }
 0x3a0   : > { %v12662_v32 = vsel %vm12646_vm10, %v12643_v13, %v12645_v3  ;;  %v9848_v0 = vpop.f32.mrf.mxu1  ;;  %v10090_v28 = vpop.f32.mrf.mxu0 }
 0x3a1   : > { %v19758_v31 = vadd.f32 %v10090_v28, %v19637_v62  ;;  %15933 = vmatprep.subr.msk.bf16.mxu1 %vm429_vm0, %v12662_v32 }
 0x3a2   : > { %v10092_v39 = vpop.f32.mrf.mxu0  ;;  %v10129_v44 = vpop.f32.mrf.mxu1  ;;  %15932 = vmatmul.mubr.msk.bf16.vlgmr.msra.gmra.mxu0 %vm425_vm1, %v19664_v45  ;;  %13016 = vmatpush1.bf16.msra.mxu1 %v12709_v46  ;;  %v14686_v46 = vld [vmem:[%s20300_s1] sm:$0xff] }
 0x3a3   : > { %v19764_v48 = vadd.f32 %v10129_v44, %v19645_v33  ;;  %v13149_v5 = vpop.permute.xlu1 %13148  ;;  %v13147_v40 = vpop.permute.xlu0 %13146  ;;  %13278 = vmatprep.mubr.bf16.mxu0 %v16316_v11  ;;  %14689 = vperm.xlu0 %16126, %v14686_v46  }
 0x3a4   : > { %v13179_v56 = vsel %vm13178_vm11, %v13145_v27, %v13147_v40  ;;  %v13180_v62 = vsel %vm13178_vm11, %v13147_v40, %v13149_v5  ;;  %v10093_v21 = vpop.f32.mrf.mxu0  ;;  %v10131_v35 = vpop.f32.mrf.mxu1 }
 0x3a5   : > { %v13199_v29 = vsel %vm429_vm0, %v13179_v56, 0  ;;  %v19771_v57 = vadd.f32 %v10131_v35, %v19650_v52  ;;  %15953 = vmatprep.subr.msk.bf16.mxu0 %vm429_vm0, %v13180_v62 }
 0x3a6   : > { %v10133_v47 = vpop.f32.mrf.mxu1  ;;  %v10170_v33 = vpop.f32.mrf.mxu0  ;;  %15934 = vmatmul.mubr.msk.bf16.vlgmr.msra.gmra.mxu1 %vm425_vm1, %v19664_v45  ;;  %13261 = vmatpush1.bf16.msra.mxu0 %v13199_v29 }
 0x3a7   : > { %v19777_v51 = vadd.f32 %v10170_v33, %v19659_v22  ;;  %v13153_v6 = vpop.permute.xlu1 %13152  ;;  %v13151_v43 = vpop.permute.xlu0 %13150  ;;  %13319 = vmatprep.mubr.bf16.mxu1 %v16316_v11 }
 0x3a8   : > { %v13181_v52 = vsel %vm13178_vm11, %v13149_v5, %v13151_v43  ;;  %v13182_v42 = vsel %vm13178_vm11, %v13151_v43, %v13153_v6  ;;  %v10134_v20 = vpop.f32.mrf.mxu1  ;;  %v10172_v49 = vpop.f32.mrf.mxu0 }
 0x3a9   : > { %v13205_v45 = vsel %vm429_vm0, %v13181_v52, 0  ;;  %v19789_v22 = vadd.f32 %v10172_v49, %v19668_v18  ;;  %15955 = vmatprep.subr.msk.bf16.mxu1 %vm429_vm0, %v13182_v42 }
 0x3aa   : > { %v10174_v61 = vpop.f32.mrf.mxu0  ;;  %v10211_v19 = vpop.f32.mrf.mxu1  ;;  %15954 = vmatmul.mubr.msk.bf16.vlgmr.msra.gmra.mxu0 %vm425_vm1, %v19782_v60  ;;  %13302 = vmatpush1.bf16.msra.mxu1 %v13205_v45 }
 0x3ab   : > { %v19795_v30 = vadd.f32 %v10211_v19, %v19680_v4  ;;  %v13157_v10 = vpop.permute.xlu1 %13156  ;;  %v13155_v15 = vpop.permute.xlu0 %13154  ;;  %13360 = vmatprep.mubr.bf16.mxu0 %v16316_v11 }
 0x3ac   : > { %v13183_v12 = vsel %vm13178_vm11, %v13153_v6, %v13155_v15  ;;  %v13184_v18 = vsel %vm13178_vm11, %v13155_v15, %v13157_v10  ;;  %v10175_v38 = vpop.f32.mrf.mxu0  ;;  %v10213_v53 = vpop.f32.mrf.mxu1 }
 0x3ad   : > { %v13211_v2 = vsel %vm429_vm0, %v13183_v12, 0  ;;  %v19802_v37 = vadd.f32 %v10213_v53, %v19685_v59  ;;  %15957 = vmatprep.subr.msk.bf16.mxu0 %vm429_vm0, %v13184_v18 }
 0x3ae   : > { %v10215_v50 = vpop.f32.mrf.mxu1  ;;  %v10252_v4 = vpop.f32.mrf.mxu0  ;;  %15956 = vmatmul.mubr.msk.bf16.vlgmr.msra.gmra.mxu1 %vm425_vm1, %v19782_v60  ;;  %13343 = vmatpush1.bf16.msra.mxu0 %v13211_v2 }
 0x3af   : > { %v19808_v41 = vadd.f32 %v10252_v4, %v19697_v17  ;;  %v13161_v13 = vpop.permute.xlu1 %13160  ;;  %v13159_v7 = vpop.permute.xlu0 %13158  ;;  %13401 = vmatprep.mubr.bf16.mxu1 %v16316_v11 }
 0x3b0   : > { %v13185_v55 = vsel %vm13178_vm11, %v13157_v10, %v13159_v7  ;;  %v13186_v59 = vsel %vm13178_vm11, %v13159_v7, %v13161_v13  ;;  %v10216_v8 = vpop.f32.mrf.mxu1  ;;  %v10254_v24 = vpop.f32.mrf.mxu0 }
 0x3b1   : > { %v13217_v63 = vsel %vm429_vm0, %v13185_v55, 0  ;;  %v19815_v14 = vadd.f32 %v10254_v24, %v19702_v34  ;;  %15959 = vmatprep.subr.msk.bf16.mxu1 %vm429_vm0, %v13186_v59 }
 0x3b2   : > { %v10256_v16 = vpop.f32.mrf.mxu0  ;;  %v10293_v17 = vpop.f32.mrf.mxu1  ;;  %15958 = vmatmul.mubr.msk.bf16.vlgmr.msra.gmra.mxu0 %vm425_vm1, %v19782_v60  ;;  %13384 = vmatpush1.bf16.msra.mxu1 %v13217_v63 }
 0x3b3   : > { %v19821_v25 = vadd.f32 %v10293_v17, %v19713_v58  ;;  %v13165_v27 = vpop.permute.xlu1 %13164  ;;  %v13163_v3 = vpop.permute.xlu0 %13162  ;;  %13442 = vmatprep.mubr.bf16.mxu0 %v16316_v11 }
 0x3b4   : > { %v13187_v32 = vsel %vm13178_vm11, %v13161_v13, %v13163_v3  ;;  %v13188_v34 = vsel %vm13178_vm11, %v13163_v3, %v13165_v27  ;;  %v10257_v0 = vpop.f32.mrf.mxu0  ;;  %v10295_v28 = vpop.f32.mrf.mxu1 }
 0x3b5   : > { %v13223_v39 = vsel %vm429_vm0, %v13187_v32, 0  ;;  %v19831_v44 = vadd.f32 %v10295_v28, %v19719_v1  ;;  %15961 = vmatprep.subr.msk.bf16.mxu0 %vm429_vm0, %v13188_v34  ;;  %v19893_v34 = vld [vmem:[%s20299_s0 + $0x64] sm:$0xf] }
 0x3b6   : > { %v10297_v58 = vpop.f32.mrf.mxu1  ;;  %v10334_v5 = vpop.f32.mrf.mxu0  ;;  %15960 = vmatmul.mubr.msk.bf16.vlgmr.msra.gmra.mxu1 %vm425_vm1, %v19782_v60  ;;  %13425 = vmatpush1.bf16.msra.mxu0 %v13223_v39 }
 0x3b7   : > { %v19837_v40 = vadd.f32 %v10334_v5, %v19726_v26  ;;  %v13169_v56 = vpop.permute.xlu1 %13168  ;;  %v13167_v62 = vpop.permute.xlu0 %13166  ;;  %13483 = vmatprep.mubr.bf16.mxu1 %v16316_v11 }
 0x3b8   : > { %v13189_v21 = vsel %vm13178_vm11, %v13165_v27, %v13167_v62  ;;  %v13190_v1 = vsel %vm13178_vm11, %v13167_v62, %v13169_v56  ;;  %v10298_v35 = vpop.f32.mrf.mxu1  ;;  %v10336_v29 = vpop.f32.mrf.mxu0 }
 0x3b9   : > { %v13229_v47 = vsel %vm429_vm0, %v13189_v21, 0  ;;  %v19844_v33 = vadd.f32 %v10336_v29, %v19732_v9  ;;  %15963 = vmatprep.subr.msk.bf16.mxu1 %vm429_vm0, %v13190_v1 }
 0x3ba   : > { %v10375_v6 = vpop.f32.mrf.mxu1  ;;  %15962 = vmatmul.mubr.msk.bf16.vlgmr.msra.gmra.mxu0 %vm425_vm1, %v19782_v60  ;;  %13466 = vmatpush1.bf16.msra.mxu1 %v13229_v47  ;;  %v10338_v26 = vpop.f32.mrf.mxu0 }
 0x3bb   : > { %v19850_v43 = vadd.f32 %v10375_v6, %v19739_v36  ;;  %v13173_v52 = vpop.permute.xlu1 %13172  ;;  %v13171_v42 = vpop.permute.xlu0 %13170  ;;  %13524 = vmatprep.mubr.bf16.mxu0 %v16316_v11 }
 0x3bc   : > { %v13191_v20 = vsel %vm13178_vm11, %v13169_v56, %v13171_v42  ;;  %v13192_v9 = vsel %vm13178_vm11, %v13171_v42, %v13173_v52  ;;  %v10377_v49 = vpop.f32.mrf.mxu1  ;;  %v10339_v45 = vpop.f32.mrf.mxu0 }
 0x3bd   : > { %v13235_v61 = vsel %vm429_vm0, %v13191_v20, 0  ;;  %v19857_v19 = vadd.f32 %v10377_v49, %v19745_v54  ;;  %15965 = vmatprep.subr.msk.bf16.mxu0 %vm429_vm0, %v13192_v9 }
 0x3be   : > { %15964 = vmatmul.mubr.msk.bf16.vlgmr.msra.gmra.mxu1 %vm425_vm1, %v19782_v60  ;;  %13507 = vmatpush1.bf16.msra.mxu0 %v13235_v61  ;;  %v10379_v36 = vpop.f32.mrf.mxu1 }
 0x3bf   : > { %v13177_v10 = vpop.permute.xlu1 %13176  ;;  %v13175_v15 = vpop.permute.xlu0 %13174  ;;  %13565 = vmatprep.mubr.bf16.mxu1 %v16316_v11 }
 0x3c0   : > { %v13193_v12 = vsel %vm13178_vm11, %v13173_v52, %v13175_v15  ;;  %v13194_v18 = vsel %vm13178_vm11, %v13175_v15, %v13177_v10  ;;  %v10380_v38 = vpop.f32.mrf.mxu1 }
 0x3c1   : > { %v13241_v53 = vsel %vm429_vm0, %v13193_v12, 0  ;;  %15967 = vmatprep.subr.msk.bf16.mxu1 %vm429_vm0, %v13194_v18 }
 0x3c2   : > { %v10620_v54 = vpop.f32.mrf.mxu0  ;;  %15966 = vmatmul.mubr.msk.bf16.vlgmr.msra.gmra.mxu0 %vm425_vm1, %v19782_v60  ;;  %13548 = vmatpush1.bf16.msra.mxu1 %v13241_v53 }
 0x3c3   : > { %v19870_v2 = vadd.f32 %v10620_v54, %v19752_v23  ;;  %v13679_v50 = vpop.permute.xlu1 %13678  ;;  %v13677_v4 = vpop.permute.xlu0 %13676  ;;  %13810 = vmatprep.mubr.bf16.mxu0 %v16316_v11 }
 0x3c4   : > { %v10622_v13 = vpop.f32.mrf.mxu0  ;;  %v13711_v55 = vsel %vm13710_vm12, %v13677_v4, %v13679_v50 }
 0x3c5   : > { %v19874_v7 = vadd.f32 %v10622_v13, %v19758_v31  ;;  %v13731_v31 = vsel %vm429_vm0, %v13711_v55, 0 }
 0x3c6   : > { %v10624_v59 = vpop.f32.mrf.mxu0  ;;  %v10661_v8 = vpop.f32.mrf.mxu1  ;;  %15968 = vmatmul.mubr.msk.bf16.vlgmr.msra.gmra.mxu1 %vm425_vm1, %v19782_v60 }
 0x3c7   : > { %v19880_v24 = vadd.f32 %v10661_v8, %v19764_v48  ;;  %v13683_v23 = vpop.permute.xlu1 %13682  ;;  %v13681_v63 = vpop.permute.xlu0 %13680  ;;  %13851 = vmatprep.mubr.bf16.mxu1 %v16316_v11 }
 0x3c8   : > { %v13712_v16 = vsel %vm13710_vm12, %v13679_v50, %v13681_v63  ;;  %v10625_v17 = vpop.f32.mrf.mxu0  ;;  %v10663_v27 = vpop.f32.mrf.mxu1  ;;  %v13713_v60 = vsel %vm13710_vm12, %v13681_v63, %v13683_v23 }
 0x3c9   : > { %v19886_v3 = vadd.f32 %v10663_v27, %v19771_v57  ;;  %15987 = vmatprep.subr.msk.bf16.mxu0 %vm429_vm0, %v13712_v16  ;;  %v13737_v5 = vsel %vm429_vm0, %v13713_v60, 0 }
 0x3ca   : > { %v10665_v32 = vpop.f32.mrf.mxu1  ;;  %v10702_v48 = vpop.f32.mrf.mxu0  ;;  %13793 = vmatpush1.bf16.msra.mxu0 %v13731_v31 }
 0x3cb   : > { %v19896_v0 = vadd.f32 %v10702_v48, %v19777_v51  ;;  %v13687_v28 = vpop.permute.xlu1 %13686  ;;  %v13685_v46 = vpop.permute.xlu0 %13684 }
 0x3cc   : > { %v13714_v57 = vsel %vm13710_vm12, %v13683_v23, %v13685_v46  ;;  %v10666_v39 = vpop.f32.mrf.mxu1  ;;  %v10704_v58 = vpop.f32.mrf.mxu0  ;;  %v13715_v62 = vsel %vm13710_vm12, %v13685_v46, %v13687_v28 }
 0x3cd   : > { %v19901_v56 = vadd.f32 %v10704_v58, %v19789_v22  ;;  %15988 = vmatmul.mubr.msk.bf16.vlgmr.msra.gmra.mxu0 %vm425_vm1, %v19893_v34  ;;  %15989 = vmatprep.subr.msk.bf16.mxu1 %vm429_vm0, %v13714_v57  ;;  %v13743_v26 = vsel %vm429_vm0, %v13715_v62, 0 }
 0x3ce   : > { %v10706_v51 = vpop.f32.mrf.mxu0  ;;  %v10743_v21 = vpop.f32.mrf.mxu1  ;;  %13834 = vmatpush1.bf16.msra.mxu1 %v13737_v5  ;;  %13892 = vmatprep.mubr.bf16.mxu0 %v16316_v11 }
 0x3cf   : > { %v19909_v1 = vadd.f32 %v10743_v21, %v19795_v30  ;;  %v13691_v35 = vpop.permute.xlu1 %13690  ;;  %v13689_v29 = vpop.permute.xlu0 %13688 }
 0x3d0   : > { %v13716_v22 = vsel %vm13710_vm12, %v13687_v28, %v13689_v29  ;;  %v10707_v47 = vpop.f32.mrf.mxu0  ;;  %v10745_v6 = vpop.f32.mrf.mxu1  ;;  %v13717_v42 = vsel %vm13710_vm12, %v13689_v29, %v13691_v35 }
 0x3d1   : > { %v19914_v52 = vadd.f32 %v10745_v6, %v19802_v37  ;;  %15990 = vmatmul.mubr.msk.bf16.vlgmr.msra.gmra.mxu1 %vm425_vm1, %v19893_v34  ;;  %15991 = vmatprep.subr.msk.bf16.mxu0 %vm429_vm0, %v13716_v22  ;;  %v13749_v10 = vsel %vm429_vm0, %v13717_v42, 0 }
 0x3d2   : > { %v10747_v30 = vpop.f32.mrf.mxu1  ;;  %v10784_v20 = vpop.f32.mrf.mxu0  ;;  %13875 = vmatpush1.bf16.msra.mxu0 %v13743_v26  ;;  %13933 = vmatprep.mubr.bf16.mxu1 %v16316_v11 }
 0x3d3   : > { %v19922_v9 = vadd.f32 %v10784_v20, %v19808_v41  ;;  %v13695_v49 = vpop.permute.xlu1 %13694  ;;  %v13693_v45 = vpop.permute.xlu0 %13692 }
 0x3d4   : > { %v13718_v37 = vsel %vm13710_vm12, %v13691_v35, %v13693_v45  ;;  %v10748_v61 = vpop.f32.mrf.mxu1  ;;  %v10786_v36 = vpop.f32.mrf.mxu0  ;;  %v13719_v12 = vsel %vm13710_vm12, %v13693_v45, %v13695_v49 }
 0x3d5   : > { %v19927_v15 = vadd.f32 %v10786_v36, %v19815_v14  ;;  %15992 = vmatmul.mubr.msk.bf16.vlgmr.msra.gmra.mxu0 %vm425_vm1, %v19893_v34  ;;  %15993 = vmatprep.subr.msk.bf16.mxu1 %vm429_vm0, %v13718_v37  ;;  %v13755_v13 = vsel %vm429_vm0, %v13719_v12, 0 }
 0x3d6   : > { %v10788_v41 = vpop.f32.mrf.mxu0  ;;  %v10825_v18 = vpop.f32.mrf.mxu1  ;;  %13916 = vmatpush1.bf16.msra.mxu1 %v13749_v10  ;;  %13974 = vmatprep.mubr.bf16.mxu0 %v16316_v11 }
 0x3d7   : > { %v19935_v38 = vadd.f32 %v10825_v18, %v19821_v25  ;;  %v13699_v53 = vpop.permute.xlu1 %13698  ;;  %v13697_v54 = vpop.permute.xlu0 %13696  ;;  %v20000_v18 = vld [vmem:[%s20299_s0 + $0x68] sm:$0xf] }
 0x3d8   : > { %v13720_v14 = vsel %vm13710_vm12, %v13695_v49, %v13697_v54  ;;  %v10789_v50 = vpop.f32.mrf.mxu0  ;;  %v10827_v4 = vpop.f32.mrf.mxu1  ;;  %v13721_v59 = vsel %vm13710_vm12, %v13697_v54, %v13699_v53 }
 0x3d9   : > { %v19940_v55 = vadd.f32 %v10827_v4, %v19831_v44  ;;  %15994 = vmatmul.mubr.msk.bf16.vlgmr.msra.gmra.mxu1 %vm425_vm1, %v19893_v34  ;;  %15995 = vmatprep.subr.msk.bf16.mxu0 %vm429_vm0, %v13720_v14  ;;  %v13761_v31 = vsel %vm429_vm0, %v13721_v59, 0 }
 0x3da   : > { %v10829_v25 = vpop.f32.mrf.mxu1  ;;  %v10866_v8 = vpop.f32.mrf.mxu0  ;;  %13957 = vmatpush1.bf16.msra.mxu0 %v13755_v13  ;;  %14015 = vmatprep.mubr.bf16.mxu1 %v16316_v11 }
 0x3db   : > { %v19948_v23 = vadd.f32 %v10866_v8, %v19837_v40  ;;  %v13703_v63 = vpop.permute.xlu1 %13702  ;;  %v13701_v16 = vpop.permute.xlu0 %13700 }
 0x3dc   : > { %v13722_v44 = vsel %vm13710_vm12, %v13699_v53, %v13701_v16  ;;  %v10830_v17 = vpop.f32.mrf.mxu1  ;;  %v10868_v27 = vpop.f32.mrf.mxu0  ;;  %v13723_v32 = vsel %vm13710_vm12, %v13701_v16, %v13703_v63 }
 0x3dd   : > { %v19953_v60 = vadd.f32 %v10868_v27, %v19844_v33  ;;  %15996 = vmatmul.mubr.msk.bf16.vlgmr.msra.gmra.mxu0 %vm425_vm1, %v19893_v34  ;;  %15997 = vmatprep.subr.msk.bf16.mxu1 %vm429_vm0, %v13722_v44  ;;  %v13767_v5 = vsel %vm429_vm0, %v13723_v32, 0 }
 0x3de   : > { %v10870_v40 = vpop.f32.mrf.mxu0  ;;  %v10907_v48 = vpop.f32.mrf.mxu1  ;;  %13998 = vmatpush1.bf16.msra.mxu1 %v13761_v31  ;;  %14056 = vmatprep.mubr.bf16.mxu0 %v16316_v11 }
 0x3df   : > { %v19961_v28 = vadd.f32 %v10907_v48, %v19850_v43  ;;  %v13707_v46 = vpop.permute.xlu1 %13706  ;;  %v13705_v57 = vpop.permute.xlu0 %13704 }
 0x3e0   : > { %v13724_v33 = vsel %vm13710_vm12, %v13703_v63, %v13705_v57  ;;  %v10871_v39 = vpop.f32.mrf.mxu0  ;;  %v10909_v58 = vpop.f32.mrf.mxu1  ;;  %v13725_v51 = vsel %vm13710_vm12, %v13705_v57, %v13707_v46 }
 0x3e1   : > { %v19966_v62 = vadd.f32 %v10909_v58, %v19857_v19  ;;  %15998 = vmatmul.mubr.msk.bf16.vlgmr.msra.gmra.mxu1 %vm425_vm1, %v19893_v34  ;;  %15999 = vmatprep.subr.msk.bf16.mxu0 %vm429_vm0, %v13724_v33  ;;  %v13773_v26 = vsel %vm429_vm0, %v13725_v51, 0 }
 0x3e2   : > { %v10911_v43 = vpop.f32.mrf.mxu1  ;;  %v11152_v21 = vpop.f32.mrf.mxu0  ;;  %14039 = vmatpush1.bf16.msra.mxu0 %v13767_v5  ;;  %14097 = vmatprep.mubr.bf16.mxu1 %v16316_v11 }
 0x3e3   : > { %v19974_v35 = vadd.f32 %v11152_v21, %v19870_v2  ;;  %v14209_v29 = vpop.permute.xlu1 %14208  ;;  %v13709_v22 = vpop.permute.xlu0 %13708 }
 0x3e4   : > { %v13726_v19 = vsel %vm13710_vm12, %v13707_v46, %v13709_v22  ;;  %v10912_v47 = vpop.f32.mrf.mxu1  ;;  %v11154_v6 = vpop.f32.mrf.mxu0 }
 0x3e5   : > { %v19979_v42 = vadd.f32 %v11154_v6, %v19874_v7  ;;  %16000 = vmatmul.mubr.msk.bf16.vlgmr.msra.gmra.mxu0 %vm425_vm1, %v19893_v34  ;;  %16001 = vmatprep.subr.msk.bf16.mxu1 %vm429_vm0, %v13726_v19 }
 0x3e6   : > { %v11156_v30 = vpop.f32.mrf.mxu0  ;;  %v11193_v2 = vpop.f32.mrf.mxu1  ;;  %14080 = vmatpush1.bf16.msra.mxu1 %v13773_v26  ;;  %14342 = vmatprep.mubr.bf16.mxu0 %v16316_v11 }
 0x3e7   : > { %v19986_v20 = vadd.f32 %v11193_v2, %v19880_v24  ;;  %v14213_v49 = vpop.permute.xlu1 %14212  ;;  %v14211_v45 = vpop.permute.xlu0 %14210 }
 0x3e8   : > { %v14243_v37 = vsel %vm14242_vm13, %v14209_v29, %v14211_v45  ;;  %v14244_v7 = vsel %vm14242_vm13, %v14211_v45, %v14213_v49  ;;  %v11157_v61 = vpop.f32.mrf.mxu0  ;;  %v11195_v36 = vpop.f32.mrf.mxu1 }
 0x3e9   : > { %v14263_v10 = vsel %vm429_vm0, %v14243_v37, 0  ;;  %v19992_v12 = vadd.f32 %v11195_v36, %v19886_v3  ;;  %16002 = vmatmul.mubr.msk.bf16.vlgmr.msra.gmra.mxu1 %vm425_vm1, %v19893_v34  ;;  %16021 = vmatprep.subr.msk.bf16.mxu0 %vm429_vm0, %v14244_v7 }
 0x3ea   : > { %v11197_v24 = vpop.f32.mrf.mxu1  ;;  %v11234_v41 = vpop.f32.mrf.mxu0  ;;  %14325 = vmatpush1.bf16.msra.mxu0 %v14263_v10  ;;  %14383 = vmatprep.mubr.bf16.mxu1 %v16316_v11 }
 0x3eb   : > { %v20004_v53 = vadd.f32 %v11234_v41, %v19896_v0  ;;  %v14217_v3 = vpop.permute.xlu1 %14216  ;;  %v14215_v54 = vpop.permute.xlu0 %14214 }
 0x3ec   : > { %v14245_v14 = vsel %vm14242_vm13, %v14213_v49, %v14215_v54  ;;  %v14246_v34 = vsel %vm14242_vm13, %v14215_v54, %v14217_v3  ;;  %v11198_v50 = vpop.f32.mrf.mxu1  ;;  %v11236_v4 = vpop.f32.mrf.mxu0 }
 0x3ed   : > { %v14269_v13 = vsel %vm429_vm0, %v14245_v14, 0  ;;  %v20010_v59 = vadd.f32 %v11236_v4, %v19901_v56  ;;  %16022 = vmatmul.mubr.msk.bf16.vlgmr.msra.gmra.mxu0 %vm425_vm1, %v20000_v18  ;;  %16023 = vmatprep.subr.msk.bf16.mxu1 %vm429_vm0, %v14246_v34 }
 0x3ee   : > { %v11238_v0 = vpop.f32.mrf.mxu0  ;;  %v11275_v25 = vpop.f32.mrf.mxu1  ;;  %14366 = vmatpush1.bf16.msra.mxu1 %v14269_v13  ;;  %14424 = vmatprep.mubr.bf16.mxu0 %v16316_v11 }
 0x3ef   : > { %v20017_v8 = vadd.f32 %v11275_v25, %v19909_v1  ;;  %v14221_v63 = vpop.permute.xlu1 %14220  ;;  %v14219_v16 = vpop.permute.xlu0 %14218 }
 0x3f0   : > { %v14247_v44 = vsel %vm14242_vm13, %v14217_v3, %v14219_v16  ;;  %v14248_v56 = vsel %vm14242_vm13, %v14219_v16, %v14221_v63  ;;  %v11239_v17 = vpop.f32.mrf.mxu0  ;;  %v11277_v27 = vpop.f32.mrf.mxu1 }
 0x3f1   : > { %v14275_v31 = vsel %vm429_vm0, %v14247_v44, 0  ;;  %v20023_v32 = vadd.f32 %v11277_v27, %v19914_v52  ;;  %16024 = vmatmul.mubr.msk.bf16.vlgmr.msra.gmra.mxu1 %vm425_vm1, %v20000_v18  ;;  %16025 = vmatprep.subr.msk.bf16.mxu0 %vm429_vm0, %v14248_v56 }
 0x3f2   : > { %v11279_v1 = vpop.f32.mrf.mxu1  ;;  %v11316_v40 = vpop.f32.mrf.mxu0  ;;  %14407 = vmatpush1.bf16.msra.mxu0 %v14275_v31  ;;  %14465 = vmatprep.mubr.bf16.mxu1 %v16316_v11 }
 0x3f3   : > { %v20030_v48 = vadd.f32 %v11316_v40, %v19922_v9  ;;  %v14225_v46 = vpop.permute.xlu1 %14224  ;;  %v14223_v57 = vpop.permute.xlu0 %14222 }
 0x3f4   : > { %v14249_v33 = vsel %vm14242_vm13, %v14221_v63, %v14223_v57  ;;  %v14250_v52 = vsel %vm14242_vm13, %v14223_v57, %v14225_v46  ;;  %v11280_v39 = vpop.f32.mrf.mxu1  ;;  %v11318_v58 = vpop.f32.mrf.mxu0 }
 0x3f5   : > { %v14281_v5 = vsel %vm429_vm0, %v14249_v33, 0  ;;  %v20036_v51 = vadd.f32 %v11318_v58, %v19927_v15  ;;  %16026 = vmatmul.mubr.msk.bf16.vlgmr.msra.gmra.mxu0 %vm425_vm1, %v20000_v18  ;;  %16027 = vmatprep.subr.msk.bf16.mxu1 %vm429_vm0, %v14250_v52 }
 0x3f6   : > { %v11320_v9 = vpop.f32.mrf.mxu0  ;;  %v11357_v43 = vpop.f32.mrf.mxu1  ;;  %14448 = vmatpush1.bf16.msra.mxu1 %v14281_v5  ;;  %14506 = vmatprep.mubr.bf16.mxu0 %v16316_v11 }
 0x3f7   : > { %v20043_v21 = vadd.f32 %v11357_v43, %v19935_v38  ;;  %v14229_v29 = vpop.permute.xlu1 %14228  ;;  %v14227_v22 = vpop.permute.xlu0 %14226 }
 0x3f8   : > { %v14251_v19 = vsel %vm14242_vm13, %v14225_v46, %v14227_v22  ;;  %v14252_v15 = vsel %vm14242_vm13, %v14227_v22, %v14229_v29  ;;  %v11321_v47 = vpop.f32.mrf.mxu0  ;;  %v11359_v6 = vpop.f32.mrf.mxu1 }
 0x3f9   : > { %v14287_v26 = vsel %vm429_vm0, %v14251_v19, 0  ;;  %v20049_v30 = vadd.f32 %v11359_v6, %v19940_v55  ;;  %16028 = vmatmul.mubr.msk.bf16.vlgmr.msra.gmra.mxu1 %vm425_vm1, %v20000_v18  ;;  %16029 = vmatprep.subr.msk.bf16.mxu0 %vm429_vm0, %v14252_v15 }
 0x3fa   : > { %v11361_v38 = vpop.f32.mrf.mxu1  ;;  %v11398_v2 = vpop.f32.mrf.mxu0  ;;  %14489 = vmatpush1.bf16.msra.mxu0 %v14287_v26  ;;  %14547 = vmatprep.mubr.bf16.mxu1 %v16316_v11 }
 0x3fb   : > { %v20056_v49 = vadd.f32 %v11398_v2, %v19948_v23  ;;  %v14233_v45 = vpop.permute.xlu1 %14232  ;;  %v14231_v37 = vpop.permute.xlu0 %14230 }
 0x3fc   : > { %v14253_v7 = vsel %vm14242_vm13, %v14229_v29, %v14231_v37  ;;  %v14254_v55 = vsel %vm14242_vm13, %v14231_v37, %v14233_v45  ;;  %v11362_v61 = vpop.f32.mrf.mxu1  ;;  %v11400_v36 = vpop.f32.mrf.mxu0 }
 0x3fd   : > { %v14293_v10 = vsel %vm429_vm0, %v14253_v7, 0  ;;  %v20062_v24 = vadd.f32 %v11400_v36, %v19953_v60  ;;  %16030 = vmatmul.mubr.msk.bf16.vlgmr.msra.gmra.mxu0 %vm425_vm1, %v20000_v18  ;;  %16031 = vmatprep.subr.msk.bf16.mxu1 %vm429_vm0, %v14254_v55 }
 0x3fe   : > { %v11439_v23 = vpop.f32.mrf.mxu1  ;;  %14530 = vmatpush1.bf16.msra.mxu1 %v14293_v10  ;;  %v11402_v41 = vpop.f32.mrf.mxu0  ;;  %14588 = vmatprep.mubr.bf16.mxu0 %v16316_v11 }
 0x3ff   : > { %v20069_v3 = vadd.f32 %v11439_v23, %v19961_v28  ;;  %v14237_v54 = vpop.permute.xlu1 %14236  ;;  %v14235_v14 = vpop.permute.xlu0 %14234 }
 0x400   : > { %v14255_v34 = vsel %vm14242_vm13, %v14233_v45, %v14235_v14  ;;  %v14256_v60 = vsel %vm14242_vm13, %v14235_v14, %v14237_v54  ;;  %v11441_v50 = vpop.f32.mrf.mxu1  ;;  %v11403_v4 = vpop.f32.mrf.mxu0 }
 0x401   : > { %v14299_v13 = vsel %vm429_vm0, %v14255_v34, 0  ;;  %v11461_v0 = vadd.f32 %v11441_v50, %v19966_v62  ;;  %16032 = vmatmul.mubr.msk.bf16.vlgmr.msra.gmra.mxu1 %vm425_vm1, %v20000_v18  ;;  %16033 = vmatprep.subr.msk.bf16.mxu0 %vm429_vm0, %v14256_v60 }
 0x402   : > { %14571 = vmatpush1.bf16.msra.mxu0 %v14299_v13  ;;  %v11443_v28 = vpop.f32.mrf.mxu1  ;;  %14629 = vmatprep.mubr.bf16.mxu1 %v16316_v11 }
 0x403   : > { %v14241_v25 = vpop.permute.xlu1 %14240  ;;  %v14239_v63 = vpop.permute.xlu0 %14238 }
 0x404   : > { %v14257_v16 = vsel %vm14242_vm13, %v14237_v54, %v14239_v63  ;;  %v14258_v44 = vsel %vm14242_vm13, %v14239_v63, %v14241_v25  ;;  %v11444_v56 = vpop.f32.mrf.mxu1 }
 0x405   : > { %v14305_v17 = vsel %vm429_vm0, %v14257_v16, 0  ;;  %16034 = vmatmul.mubr.msk.bf16.vlgmr.msra.gmra.mxu0 %vm425_vm1, %v20000_v18  ;;  %16035 = vmatprep.subr.msk.bf16.mxu1 %vm429_vm0, %v14258_v44 }
 0x406   : > { %v11684_v62 = vpop.f32.mrf.mxu0  ;;  %14612 = vmatpush1.bf16.msra.mxu1 %v14305_v17 }
 0x407   : > { %v11978_v27 = vadd.f32 %v11684_v62, %v19974_v35 }
 0x408   : > { %v11686_v31 = vpop.f32.mrf.mxu0 }
 0x409   : > { %v11979_v11 = vadd.f32 %v11686_v31, %v19979_v42  ;;  %16036 = vmatmul.mubr.msk.bf16.vlgmr.msra.gmra.mxu1 %vm425_vm1, %v20000_v18 }
 0x40a   : > { %v11688_v1 = vpop.f32.mrf.mxu0  ;;  %v11725_v40 = vpop.f32.mrf.mxu1 }
 0x40b   : > { %v11980_v46 = vadd.f32 %v11725_v40, %v19986_v20 }
 0x40c   : > { %v11689_v57 = vpop.f32.mrf.mxu0  ;;  %v11727_v33 = vpop.f32.mrf.mxu1 }
 0x40d   : > { %v11981_v52 = vadd.f32 %v11727_v33, %v19992_v12 }
 0x40e   : > { %v11729_v39 = vpop.f32.mrf.mxu1  ;;  %v11766_v58 = vpop.f32.mrf.mxu0 }
 0x40f   : > { %v11982_v5 = vadd.f32 %v11766_v58, %v20004_v53 }
 0x410   : > { %v11730_v9 = vpop.f32.mrf.mxu1  ;;  %v11768_v35 = vpop.f32.mrf.mxu0 }
 0x411   : > { %v11983_v43 = vadd.f32 %v11768_v35, %v20010_v59 }
 0x412   : > { %v11770_v42 = vpop.f32.mrf.mxu0  ;;  %v11807_v29 = vpop.f32.mrf.mxu1 }
 0x413   : > { %v11984_v18 = vadd.f32 %v11807_v29, %v20017_v8 }
 0x414   : > { %v11771_v22 = vpop.f32.mrf.mxu0  ;;  %v11809_v19 = vpop.f32.mrf.mxu1 }
 0x415   : > { %v11985_v20 = vadd.f32 %v11809_v19, %v20023_v32 }
 0x416   : > { %v11811_v15 = vpop.f32.mrf.mxu1  ;;  %v11848_v47 = vpop.f32.mrf.mxu0 }
 0x417   : > { %v11986_v12 = vadd.f32 %v11848_v47, %v20030_v48 }
 0x418   : > { %v11812_v6 = vpop.f32.mrf.mxu1  ;;  %v11850_v26 = vpop.f32.mrf.mxu0 }
 0x419   : > { %v11987_v53 = vadd.f32 %v11850_v26, %v20036_v51 }
 0x41a   : > { %v11852_v38 = vpop.f32.mrf.mxu0  ;;  %v11889_v2 = vpop.f32.mrf.mxu1 }
 0x41b   : > { %v11988_v59 = vadd.f32 %v11889_v2, %v20043_v21 }
 0x41c   : > { %v11853_v45 = vpop.f32.mrf.mxu0  ;;  %v11891_v37 = vpop.f32.mrf.mxu1 }
 0x41d   : > { %v11989_v8 = vadd.f32 %v11891_v37, %v20049_v30 }
 0x41e   : > { %v11893_v7 = vpop.f32.mrf.mxu1  ;;  %v11930_v55 = vpop.f32.mrf.mxu0 }
 0x41f   : > { %v11990_v32 = vadd.f32 %v11930_v55, %v20056_v49 }
 0x420   : > { %v11894_v61 = vpop.f32.mrf.mxu1  ;;  %v11932_v36 = vpop.f32.mrf.mxu0 }
 0x421   : > { %v11991_v48 = vadd.f32 %v11932_v36, %v20062_v24 }
 0x422   : > { %v11934_v10 = vpop.f32.mrf.mxu0  ;;  %v11971_v23 = vpop.f32.mrf.mxu1 }
 0x423   : > { %v11992_v51 = vadd.f32 %v11971_v23, %v20069_v3 }
 0x424   : > { %v11935_v41 = vpop.f32.mrf.mxu0  ;;  %v11973_v54 = vpop.f32.mrf.mxu1 }
 0x425   : > { %v11993_v14 = vadd.f32 %v11973_v54, %v11461_v0 }
 0x426   : > { %v11975_v21 = vpop.f32.mrf.mxu1  ;;  %v12216_v34 = vpop.f32.mrf.mxu0 }
 0x427   : > { %v12510_v60 = vadd.f32 %v12216_v34, %v11978_v27 }
 0x428   : > { %v11976_v50 = vpop.f32.mrf.mxu1  ;;  %v12218_v30 = vpop.f32.mrf.mxu0 }
 0x429   : > { %v12511_v4 = vadd.f32 %v12218_v30, %v11979_v11 }
 0x42a   : > { %v12220_v13 = vpop.f32.mrf.mxu0  ;;  %v12257_v28 = vpop.f32.mrf.mxu1 }
 0x42b   : > { %v12512_v49 = vadd.f32 %v12257_v28, %v11980_v46 }
 0x42c   : > { %v12221_v25 = vpop.f32.mrf.mxu0  ;;  %v12259_v63 = vpop.f32.mrf.mxu1 }
 0x42d   : > { %v12513_v16 = vadd.f32 %v12259_v63, %v11981_v52 }
 0x42e   : > { %v12261_v24 = vpop.f32.mrf.mxu1  ;;  %v12298_v44 = vpop.f32.mrf.mxu0 }
 0x42f   : > { %v12514_v56 = vadd.f32 %v12298_v44, %v11982_v5 }
 0x430   : > { %v12262_v17 = vpop.f32.mrf.mxu1  ;;  %v12300_v3 = vpop.f32.mrf.mxu0 }
 0x431   : > { %v12515_v62 = vadd.f32 %v12300_v3, %v11983_v43 }
 0x432   : > { %v12302_v31 = vpop.f32.mrf.mxu0  ;;  %v12339_v0 = vpop.f32.mrf.mxu1 }
 0x433   : > { %v12516_v1 = vadd.f32 %v12339_v0, %v11984_v18 }
 0x434   : > { %v12303_v40 = vpop.f32.mrf.mxu0  ;;  %v12341_v27 = vpop.f32.mrf.mxu1 }
 0x435   : > { %v12517_v57 = vadd.f32 %v12341_v27, %v11985_v20 }
 0x436   : > { %v12343_v33 = vpop.f32.mrf.mxu1  ;;  %v12380_v11 = vpop.f32.mrf.mxu0 }
 0x437   : > { %v12518_v39 = vadd.f32 %v12380_v11, %v11986_v12 }
 0x438   : > { %v12344_v58 = vpop.f32.mrf.mxu1  ;;  %v12382_v46 = vpop.f32.mrf.mxu0 }
 0x439   : > { %v12519_v9 = vadd.f32 %v12382_v46, %v11987_v53 }
 0x43a   : > { %v12384_v35 = vpop.f32.mrf.mxu0  ;;  %v12421_v52 = vpop.f32.mrf.mxu1 }
 0x43b   : > { %v12520_v42 = vadd.f32 %v12421_v52, %v11988_v59 }
 0x43c   : > { %v12385_v29 = vpop.f32.mrf.mxu0  ;;  %v12423_v5 = vpop.f32.mrf.mxu1 }
 0x43d   : > { %v12521_v22 = vadd.f32 %v12423_v5, %v11989_v8 }
 0x43e   : > { %v12425_v19 = vpop.f32.mrf.mxu1  ;;  %v12462_v43 = vpop.f32.mrf.mxu0 }
 0x43f   : > { %v12522_v15 = vadd.f32 %v12462_v43, %v11990_v32 }
 0x440   : > { %v12426_v47 = vpop.f32.mrf.mxu1  ;;  %v12464_v18 = vpop.f32.mrf.mxu0 }
 0x441   : > { %v12523_v6 = vadd.f32 %v12464_v18, %v11991_v48 }
 0x442   : > { %v12503_v26 = vpop.f32.mrf.mxu1  ;;  %v12466_v20 = vpop.f32.mrf.mxu0 }
 0x443   : > { %v12524_v38 = vadd.f32 %v12503_v26, %v11992_v51 }
 0x444   : > { %v12505_v2 = vpop.f32.mrf.mxu1  ;;  %v12467_v12 = vpop.f32.mrf.mxu0 }
 0x445   : > { %v12525_v45 = vadd.f32 %v12505_v2, %v11993_v14 }
 0x446   : > { %v12507_v37 = vpop.f32.mrf.mxu1 }
 0x448   : > { %v12508_v53 = vpop.f32.mrf.mxu1 }
 0x44a   : > { %v12748_v7 = vpop.f32.mrf.mxu0 }
 0x44b   : > { %v13042_v55 = vadd.f32 %v12748_v7, %v12510_v60 }
 0x44c   : > { %v12750_v59 = vpop.f32.mrf.mxu0 }
 0x44d   : > { %v20102_v61 = vadd.f32 %v12750_v59, %v12511_v4 }
 0x44e   : > { %v12752_v8 = vpop.f32.mrf.mxu0  ;;  %v12789_v36 = vpop.f32.mrf.mxu1 }
 0x44f   : > { %v13044_v10 = vadd.f32 %v12789_v36, %v12512_v49 }
 0x450   : > { %v12753_v32 = vpop.f32.mrf.mxu0  ;;  %v12791_v23 = vpop.f32.mrf.mxu1 }
 0x451   : > { %v13045_v41 = vadd.f32 %v12791_v23, %v12513_v16 }
 0x452   : > { %v12793_v48 = vpop.f32.mrf.mxu1  ;;  %v12830_v54 = vpop.f32.mrf.mxu0 }
 0x453   : > { %v13046_v21 = vadd.f32 %v12830_v54, %v12514_v56 }
 0x454   : > { %v12794_v51 = vpop.f32.mrf.mxu1  ;;  %v12832_v34 = vpop.f32.mrf.mxu0 }
 0x455   : > { %v13047_v50 = vadd.f32 %v12832_v34, %v12515_v62 }
 0x456   : > { %v12834_v14 = vpop.f32.mrf.mxu0  ;;  %v12871_v30 = vpop.f32.mrf.mxu1 }
 0x457   : > { %v13048_v13 = vadd.f32 %v12871_v30, %v12516_v1 }
 0x458   : > { %v12835_v28 = vpop.f32.mrf.mxu0  ;;  %v12873_v60 = vpop.f32.mrf.mxu1 }
 0x459   : > { %v20104_v25 = vadd.f32 %v12873_v60, %v12517_v57 }
 0x45a   : > { %v12875_v4 = vpop.f32.mrf.mxu1  ;;  %v12912_v63 = vpop.f32.mrf.mxu0 }
 0x45b   : > { %v13050_v24 = vadd.f32 %v12912_v63, %v12518_v39 }
 0x45c   : > { %v12876_v49 = vpop.f32.mrf.mxu1  ;;  %v12914_v44 = vpop.f32.mrf.mxu0 }
 0x45d   : > { %v13051_v17 = vadd.f32 %v12914_v44, %v12519_v9 }
 0x45e   : > { %v12916_v16 = vpop.f32.mrf.mxu0  ;;  %v12953_v3 = vpop.f32.mrf.mxu1 }
 0x45f   : > { %v13052_v31 = vadd.f32 %v12953_v3, %v12520_v42 }
 0x460   : > { %v12917_v56 = vpop.f32.mrf.mxu0  ;;  %v12955_v0 = vpop.f32.mrf.mxu1 }
 0x461   : > { %v20106_v40 = vadd.f32 %v12955_v0, %v12521_v22 }
 0x462   : > { %v12957_v62 = vpop.f32.mrf.mxu1  ;;  %v12994_v27 = vpop.f32.mrf.mxu0 }
 0x463   : > { %v13054_v1 = vadd.f32 %v12994_v27, %v12522_v15 }
 0x464   : > { %v12958_v33 = vpop.f32.mrf.mxu1  ;;  %v12996_v11 = vpop.f32.mrf.mxu0 }
 0x465   : > { %v13055_v57 = vadd.f32 %v12996_v11, %v12523_v6 }
 0x466   : > { %v12998_v58 = vpop.f32.mrf.mxu0  ;;  %v13035_v46 = vpop.f32.mrf.mxu1 }
 0x467   : > { %v13056_v35 = vadd.f32 %v13035_v46, %v12524_v38 }
 0x468   : > { %v12999_v39 = vpop.f32.mrf.mxu0  ;;  %v13037_v52 = vpop.f32.mrf.mxu1 }
 0x469   : > { %v20108_v29 = vadd.f32 %v13037_v52, %v12525_v45 }
 0x46a   : > { %v13039_v9 = vpop.f32.mrf.mxu1  ;;  %v13280_v5 = vpop.f32.mrf.mxu0 }
 0x46b   : > { %v20110_v42 = vadd.f32 %v13280_v5, %v13042_v55 }
 0x46c   : > { %v13040_v19 = vpop.f32.mrf.mxu1  ;;  %v20112_v22 = vpop.f32.mrf.mxu0 }
 0x46e   : > { %v13284_v43 = vpop.f32.mrf.mxu0  ;;  %v13321_v47 = vpop.f32.mrf.mxu1 }
 0x46f   : > { %v20114_v15 = vadd.f32 %v13321_v47, %v13044_v10 }
 0x470   : > { %v13285_v18 = vpop.f32.mrf.mxu0  ;;  %v13323_v6 = vpop.f32.mrf.mxu1 }
 0x471   : > { %v20116_v26 = vadd.f32 %v13323_v6, %v13045_v41  ;;  %v14784_v6 = vlaneseq }
 0x472   : > { %v13325_v20 = vpop.f32.mrf.mxu1  ;;  %v13362_v38 = vpop.f32.mrf.mxu0 }
 0x473   : > { %v20118_v2 = vadd.f32 %v13362_v38, %v13046_v21 }
 0x474   : > { %v13326_v12 = vpop.f32.mrf.mxu1  ;;  %v13364_v45 = vpop.f32.mrf.mxu0 }
 0x475   : > { %v20120_v37 = vadd.f32 %v13364_v45, %v13047_v50 }
 0x476   : > { %v13366_v53 = vpop.f32.mrf.mxu0  ;;  %v13403_v7 = vpop.f32.mrf.mxu1 }
 0x477   : > { %v20122_v55 = vadd.f32 %v13403_v7, %v13048_v13  ;;  %v20160_v53 = vshrl.u32 %v14784_v6, 7 }
 0x478   : > { %v13367_v59 = vpop.f32.mrf.mxu0  ;;  %v20124_v8 = vpop.f32.mrf.mxu1 }
 0x47a   : > { %v13407_v36 = vpop.f32.mrf.mxu1  ;;  %v13444_v10 = vpop.f32.mrf.mxu0 }
 0x47b   : > { %v20126_v32 = vadd.f32 %v13444_v10, %v13050_v24 }
 0x47c   : > { %v13408_v23 = vpop.f32.mrf.mxu1  ;;  %v13446_v41 = vpop.f32.mrf.mxu0 }
 0x47d   : > { %v20128_v48 = vadd.f32 %v13446_v41, %v13051_v17  ;;  %v14786_v23 = vsub.s32 0, %v20160_v53 }
 0x47e   : > { %v13448_v54 = vpop.f32.mrf.mxu0  ;;  %v13485_v21 = vpop.f32.mrf.mxu1 }
 0x47f   : > { %v20130_v51 = vadd.f32 %v13485_v21, %v13052_v31  ;;  %v14780_v21 = vld [vmem:[%s16419_s11] sm:$0xff] }
 0x480   : > { %v13449_v34 = vpop.f32.mrf.mxu0  ;;  %v20132_v50 = vpop.f32.mrf.mxu1 }
 0x481   : > { %v13575_v34 = vadd.f32 %v20112_v22, %v20102_v61  ;;  %v14787_v61 = vrot.slane %v14780_v21, %v14786_v23 }
 0x482   : > { %v13489_v14 = vpop.f32.mrf.mxu1  ;;  %v13526_v30 = vpop.f32.mrf.mxu0 }
 0x483   : > { %v20134_v13 = vadd.f32 %v13526_v30, %v13054_v1  ;;  %v20173_v30 = vpop.permute.xlu0 %14689 }
 0x484   : > { %v13490_v28 = vpop.f32.mrf.mxu1  ;;  %v13528_v60 = vpop.f32.mrf.mxu0 }
 0x485   : > { %v20136_v4 = vadd.f32 %v13528_v60, %v13055_v57  ;;  %v14790_v28 = vsub.s32 1, %v20160_v53 }
 0x486   : > { %v13567_v63 = vpop.f32.mrf.mxu1  ;;  %v13530_v24 = vpop.f32.mrf.mxu0 }
 0x487   : > { %v20138_v49 = vadd.f32 %v13567_v63, %v13056_v35  ;;  %v14794_v24 = vsub.s32 2, %v20160_v53 }
 0x488   : > { %v20140_v44 = vpop.f32.mrf.mxu1  ;;  %v13531_v17 = vpop.f32.mrf.mxu0 }
 0x489   : > { %v14798_v17 = vsub.s32 3, %v20160_v53 }
 0x48a   : > { %v13571_v16 = vpop.f32.mrf.mxu1 }
 0x48b   : > { %v14802_v16 = vsub.s32 4, %v20160_v53 }
 0x48c   : > { %v13572_v3 = vpop.f32.mrf.mxu1 }
 0x48d   : > { %v13812_v31 = vpop.f32.mrf.mxu0  ;;  %v14806_v3 = vsub.s32 5, %v20160_v53 }
 0x48e   : > { %v14106_v14 = vadd.f32 %v13812_v31, %v20110_v42  ;;  %v14810_v42 = vsub.s32 6, %v20160_v53 }
 0x48f   : > { %v13814_v56 = vpop.f32.mrf.mxu0 }
 0x491   : > { %v13816_v0 = vpop.f32.mrf.mxu0  ;;  %v13853_v62 = vpop.f32.mrf.mxu1 }
 0x492   : > { %v14107_v0 = vadd.f32 %v13814_v56, %v13575_v34  ;;  %v14799_v56 = vrot.slane %v14780_v21, %v14798_v17 }
 0x493   : > { %v13817_v27 = vpop.f32.mrf.mxu0  ;;  %v13855_v1 = vpop.f32.mrf.mxu1 }
 0x495   : > { %v13857_v33 = vpop.f32.mrf.mxu1  ;;  %v20142_v11 = vpop.f32.mrf.mxu0 }
 0x496   : > { %v20307_v33 = vsub.s32 7, %v20160_v53 }
 0x497   : > { %v13858_v57 = vpop.f32.mrf.mxu1  ;;  %v20144_v58 = vpop.f32.mrf.mxu0 }
 0x498   : > { %v14108_v57 = vadd.f32 %v13853_v62, %v20114_v15  ;;  %v14811_v15 = vrot.slane %v14780_v21, %v14810_v42  ;;  %v14109_v62 = vadd.f32 %v13855_v1, %v20116_v26 }
 0x499   : > { %v13898_v46 = vpop.f32.mrf.mxu0  ;;  %v20146_v35 = vpop.f32.mrf.mxu1 }
 0x49b   : > { %v13899_v39 = vpop.f32.mrf.mxu0  ;;  %v20148_v52 = vpop.f32.mrf.mxu1 }
 0x49d   : > { %v13939_v9 = vpop.f32.mrf.mxu1  ;;  %v20150_v5 = vpop.f32.mrf.mxu0 }
 0x49e   : > { %v14791_v9 = vrot.slane %v14780_v21, %v14790_v28 }
 0x49f   : > { %v13940_v19 = vpop.f32.mrf.mxu1  ;;  %v20152_v43 = vpop.f32.mrf.mxu0 }
 0x4a0   : > { %v20185_v19 = vld [vmem:[%s16419_s11 + $0x8] sm:$0xff] }
 0x4a1   : > { %v13980_v47 = vpop.f32.mrf.mxu0  ;;  %v20154_v18 = vpop.f32.mrf.mxu1 }
 0x4a3   : > { %v13981_v20 = vpop.f32.mrf.mxu0  ;;  %v20156_v38 = vpop.f32.mrf.mxu1 }
 0x4a4   : > { %v14795_v20 = vrot.slane %v14780_v21, %v14794_v24 }
 0x4a5   : > { %v14021_v12 = vpop.f32.mrf.mxu1  ;;  %v20158_v45 = vpop.f32.mrf.mxu0 }
 0x4a6   : > { %v14803_v12 = vrot.slane %v14780_v21, %v14802_v16 }
 0x4a7   : > { %v14022_v7 = vpop.f32.mrf.mxu1  ;;  %v20162_v59 = vpop.f32.mrf.mxu0 }
 0x4a8   : > { %v14807_v7 = vrot.slane %v14780_v21, %v14806_v3 }
 0x4a9   : > { %v14062_v36 = vpop.f32.mrf.mxu0  ;;  %v20164_v10 = vpop.f32.mrf.mxu1 }
 0x4ab   : > { %v14063_v41 = vpop.f32.mrf.mxu0  ;;  %v20167_v54 = vpop.f32.mrf.mxu1 }
 0x4ad   : > { %v14103_v60 = vpop.f32.mrf.mxu1  ;;  %v14344_v63 = vpop.f32.mrf.mxu0 }
 0x4ae   : > { %v14638_v27 = vadd.f32 %v14344_v63, %v14106_v14  ;;  %v20195_v63 = vrot.slane %v14780_v21, %v20307_v33  ;;  %v20207_v21 = vrot.slane %v20185_v19, %v14794_v24 }
 0x4af   : > { %v14104_v22 = vpop.f32.mrf.mxu1  ;;  %v14346_v31 = vpop.f32.mrf.mxu0 }
 0x4b0   : > { %v14639_v46 = vadd.f32 %v14346_v31, %v14107_v0  ;;  %v14692_v39 = vadd.f32 %v20173_v30, %v14638_v27  ;;  %v20198_v0 = vrot.slane %v20185_v19, %v14786_v23  ;;  %v20201_v27 = vrot.slane %v20185_v19, %v14790_v28 }
 0x4b1   : > { %v14348_v47 = vpop.f32.mrf.mxu0  ;;  %v14385_v6 = vpop.f32.mrf.mxu1  ;;  %v20210_v23 = vrot.slane %v20185_v19, %v14798_v17 }
 0x4b2   : > { %v14693_v36 = vadd.f32 %v20173_v30, %v14639_v46  ;;  %v14864_v41 = vmul.f32 %v14787_v61, %v14692_v39  ;;  %v14640_v34 = vadd.f32 %v14385_v6, %v14108_v57  ;;  %v14110_v61 = vadd.f32 %v20142_v11, %v20118_v2 }
 0x4b3   : > { %v14349_v14 = vpop.f32.mrf.mxu0  ;;  %v14387_v60 = vpop.f32.mrf.mxu1  ;;  %v13581_v2 = vadd.f32 %v20124_v8, %v20104_v25  ;;  %v14111_v11 = vadd.f32 %v20144_v58, %v20120_v37  ;;  %v20222_v37 = vrot.slane %v20185_v19, %v14802_v16 }
 0x4b4   : > { %v16050_v22 = vpack.c.bf16 %v14693_v36, %v14692_v39  ;;  %v14865_v31 = vmul.f32 %v14791_v9, %v14693_v36  ;;  %v14694_v26 = vadd.f32 %v20173_v30, %v14640_v34  ;;  %v14897_v1 = vmul.f32 %v14864_v41, %v14692_v39 }
 0x4b5   : > { %v14641_v57 = vadd.f32 %v14387_v60, %v14109_v62  ;;  %v14389_v46 = vpop.f32.mrf.mxu1  ;;  %v14426_v47 = vpop.f32.mrf.mxu0  ;;  %v14112_v39 = vadd.f32 %v20146_v35, %v20122_v55  ;;  %v14113_v55 = vadd.f32 %v20148_v52, %v13581_v2  ;;  %v14115_v2 = vadd.f32 %v20152_v43, %v20128_v48 }
 0x4b6   : > { %14772 = vst [vmem:[%s16434_s26] sm:$0xff] %v16050_v22  ;;  %v14880_v28 = vadd.f32 %v14865_v31, %v14864_v41  ;;  %v14898_v6 = vmul.f32 %v14865_v31, %v14693_v36  ;;  %v14866_v14 = vmul.f32 %v14795_v20, %v14694_v26  ;;  %v14642_v33 = vadd.f32 %v14426_v47, %v14110_v61 }
 0x4b7   : > { %v14695_v24 = vadd.f32 %v20173_v30, %v14641_v57  ;;  %v14390_v9 = vpop.f32.mrf.mxu1  ;;  %v14428_v34 = vpop.f32.mrf.mxu0  ;;  %v13585_v31 = vadd.f32 %v20132_v50, %v20106_v40  ;;  %v14114_v46 = vadd.f32 %v20150_v5, %v20126_v32  ;;  %v14116_v32 = vadd.f32 %v20154_v18, %v20130_v51 }
 0x4b8   : > { %v14913_v17 = vadd.f32 %v14898_v6, %v14897_v1  ;;  %v14881_v62 = vadd.f32 %v14880_v28, %v14866_v14  ;;  %v14899_v41 = vmul.f32 %v14866_v14, %v14694_v26  ;;  %v14696_v20 = vadd.f32 %v20173_v30, %v14642_v33 }
 0x4b9   : > { %v16051_v36 = vpack.c.bf16 %v14695_v24, %v14694_v26  ;;  %v14867_v60 = vmul.f32 %v14799_v56, %v14695_v24  ;;  %v14643_v61 = vadd.f32 %v14428_v34, %v14111_v11  ;;  %v14430_v25 = vpop.f32.mrf.mxu0  ;;  %v14467_v8 = vpop.f32.mrf.mxu1  ;;  %v14839_v51 = vrot.slane %v20185_v19, %v14806_v3 }
 0x4ba   : > { %v14914_v58 = vadd.f32 %v14913_v17, %v14899_v41  ;;  %v14868_v35 = vmul.f32 %v14803_v12, %v14696_v20  ;;  %v14644_v22 = vadd.f32 %v14467_v8, %v14112_v39  ;;  %v14117_v18 = vadd.f32 %v20156_v38, %v13585_v31 }
 0x4bb   : > { %14773 = vst [vmem:[%s16434_s26 + $0x8] sm:$0xff] %v16051_v36  ;;  %v14882_v1 = vadd.f32 %v14881_v62, %v14867_v60  ;;  %v14900_v57 = vmul.f32 %v14867_v60, %v14695_v24  ;;  %v14697_v33 = vadd.f32 %v20173_v30, %v14643_v61  ;;  %v14431_v56 = vpop.f32.mrf.mxu0  ;;  %v14469_v26 = vpop.f32.mrf.mxu1 }
 0x4bc   : > { %v14901_v16 = vmul.f32 %v14868_v35, %v14696_v20  ;;  %v14698_v52 = vadd.f32 %v20173_v30, %v14644_v22  ;;  %v14645_v47 = vadd.f32 %v14469_v26, %v14113_v55 }
 0x4bd   : > { %v14915_v12 = vadd.f32 %v14914_v58, %v14900_v57  ;;  %v14883_v28 = vadd.f32 %v14882_v1, %v14868_v35  ;;  %v16052_v6 = vpack.c.bf16 %v14697_v33, %v14696_v20  ;;  %v14869_v14 = vmul.f32 %v14807_v7, %v14697_v33  ;;  %v14471_v40 = vpop.f32.mrf.mxu1  ;;  %v14508_v50 = vpop.f32.mrf.mxu0 }
 0x4be   : > { %v14870_v11 = vmul.f32 %v14811_v15, %v14698_v52  ;;  %v14699_v39 = vadd.f32 %v20173_v30, %v14645_v47  ;;  %v14646_v24 = vadd.f32 %v14508_v50, %v14114_v46 }
 0x4bf   : > { %v14916_v5 = vadd.f32 %v14915_v12, %v14901_v16  ;;  %14774 = vst [vmem:[%s16434_s26 + $0x10] sm:$0xff] %v16052_v6  ;;  %v14884_v9 = vadd.f32 %v14883_v28, %v14869_v14  ;;  %v14902_v34 = vmul.f32 %v14869_v14, %v14697_v33  ;;  %v14472_v17 = vpop.f32.mrf.mxu1  ;;  %v14510_v62 = vpop.f32.mrf.mxu0  ;;  %v14118_v33 = vadd.f32 %v20158_v45, %v20134_v13 }
 0x4c0   : > { %v14903_v7 = vmul.f32 %v14870_v11, %v14698_v52  ;;  %v16053_v41 = vpack.c.bf16 %v14699_v39, %v14698_v52  ;;  %v14871_v20 = vmul.f32 %v20195_v63, %v14699_v39  ;;  %v14700_v48 = vadd.f32 %v20173_v30, %v14646_v24 }
 0x4c1   : > { %v14917_v43 = vadd.f32 %v14916_v5, %v14902_v34  ;;  %v14885_v15 = vadd.f32 %v14884_v9, %v14870_v11  ;;  %v14647_v36 = vadd.f32 %v14510_v62, %v14115_v2  ;;  %v14512_v60 = vpop.f32.mrf.mxu0  ;;  %v14549_v61 = vpop.f32.mrf.mxu1  ;;  %v13589_v63 = vadd.f32 %v20140_v44, %v20108_v29 }
 0x4c2   : > { %14775 = vst [vmem:[%s16434_s26 + $0x18] sm:$0xff] %v16053_v41  ;;  %v14904_v25 = vmul.f32 %v14871_v20, %v14699_v39  ;;  %v14872_v8 = vmul.f32 %v20198_v0, %v14700_v48  ;;  %v14648_v55 = vadd.f32 %v14549_v61, %v14116_v32  ;;  %v14119_v16 = vadd.f32 %v20162_v59, %v20136_v4 }
 0x4c3   : > { %v14918_v58 = vadd.f32 %v14917_v43, %v14903_v7  ;;  %v14886_v35 = vadd.f32 %v14885_v15, %v14871_v20  ;;  %v14701_v22 = vadd.f32 %v20173_v30, %v14647_v36  ;;  %v14513_v1 = vpop.f32.mrf.mxu0  ;;  %v14551_v57 = vpop.f32.mrf.mxu1  ;;  %v14120_v45 = vadd.f32 %v20164_v10, %v20138_v49 }
 0x4c4   : > { %v14905_v3 = vmul.f32 %v14872_v8, %v14700_v48  ;;  %v14702_v38 = vadd.f32 %v20173_v30, %v14648_v55  ;;  %v14649_v31 = vadd.f32 %v14551_v57, %v14117_v18  ;;  %v14843_v49 = vrot.slane %v20185_v19, %v14810_v42 }
 0x4c5   : > { %v14919_v56 = vadd.f32 %v14918_v58, %v14904_v25  ;;  %v14887_v0 = vadd.f32 %v14886_v35, %v14872_v8  ;;  %v16054_v26 = vpack.c.bf16 %v14701_v22, %v14700_v48  ;;  %v14873_v46 = vmul.f32 %v20201_v27, %v14701_v22  ;;  %v14553_v29 = vpop.f32.mrf.mxu1  ;;  %v14590_v44 = vpop.f32.mrf.mxu0 }
 0x4c6   : > { %v14874_v52 = vmul.f32 %v20207_v21, %v14702_v38  ;;  %v14703_v47 = vadd.f32 %v20173_v30, %v14649_v31  ;;  %v14650_v13 = vadd.f32 %v14590_v44, %v14118_v33  ;;  %v14121_v10 = vadd.f32 %v20167_v54, %v13589_v63 }
 0x4c7   : > { %v14920_v12 = vadd.f32 %v14919_v56, %v14905_v3  ;;  %14776 = vst [vmem:[%s16434_s26 + $0x20] sm:$0xff] %v16054_v26  ;;  %v14888_v28 = vadd.f32 %v14887_v0, %v14873_v46  ;;  %v14906_v6 = vmul.f32 %v14873_v46, %v14701_v22  ;;  %v14554_v14 = vpop.f32.mrf.mxu1  ;;  %v14592_v27 = vpop.f32.mrf.mxu0  ;;  %v20313_v42 = vsub.s32 7, %v20160_v53 }
 0x4c8   : > { %v14907_v40 = vmul.f32 %v14874_v52, %v14702_v38  ;;  %v16055_v50 = vpack.c.bf16 %v14703_v47, %v14702_v38  ;;  %v14875_v2 = vmul.f32 %v20210_v23, %v14703_v47  ;;  %v14704_v4 = vadd.f32 %v20173_v30, %v14650_v13 }
 0x4c9   : > { %v14921_v59 = vadd.f32 %v14920_v12, %v14906_v6  ;;  %v14889_v21 = vadd.f32 %v14888_v28, %v14874_v52  ;;  %v14651_v11 = vadd.f32 %v14592_v27, %v14119_v16  ;;  %v14594_v39 = vpop.f32.mrf.mxu0  ;;  %v14631_v24 = vpop.f32.mrf.mxu1  ;;  %v14847_v54 = vrot.slane %v20185_v19, %v20313_v42 }
 0x4ca   : > { %14777 = vst [vmem:[%s16434_s26 + $0x28] sm:$0xff] %v16055_v50  ;;  %v14908_v32 = vmul.f32 %v14875_v2, %v14703_v47  ;;  %v14876_v5 = vmul.f32 %v20222_v37, %v14704_v4  ;;  %v14652_v9 = vadd.f32 %v14631_v24, %v14120_v45 }
 0x4cb   : > { %v14922_v34 = vadd.f32 %v14921_v59, %v14907_v40  ;;  %v14890_v23 = vadd.f32 %v14889_v21, %v14875_v2  ;;  %v14705_v17 = vadd.f32 %v20173_v30, %v14651_v11  ;;  %v14595_v62 = vpop.f32.mrf.mxu0  ;;  %v14633_v7 = vpop.f32.mrf.mxu1 }
 0x4cc   : > { %v14909_v41 = vmul.f32 %v14876_v5, %v14704_v4  ;;  %v14706_v20 = vadd.f32 %v20173_v30, %v14652_v9  ;;  %v14653_v48 = vadd.f32 %v14633_v7, %v14121_v10 }
 0x4cd   : > { %v14923_v43 = vadd.f32 %v14922_v34, %v14908_v32  ;;  %v14891_v15 = vadd.f32 %v14890_v23, %v14876_v5  ;;  %v16056_v37 = vpack.c.bf16 %v14705_v17, %v14704_v4  ;;  %v14877_v36 = vmul.f32 %v14839_v51, %v14705_v17  ;;  %v14635_v60 = vpop.f32.mrf.mxu1 }
 0x4ce   : > { %v14878_v61 = vmul.f32 %v14843_v49, %v14706_v20  ;;  %v14707_v18 = vadd.f32 %v20173_v30, %v14653_v48 }
 0x4cf   : > { %v14924_v25 = vadd.f32 %v14923_v43, %v14909_v41  ;;  %14778 = vst [vmem:[%s16434_s26 + $0x30] sm:$0xff] %v16056_v37  ;;  %v14910_v8 = vmul.f32 %v14877_v36, %v14705_v17  ;;  %v14636_v55 = vpop.f32.mrf.mxu1  ;;  %v14892_v63 = vadd.f32 %v14891_v15, %v14877_v36 }
 0x4d0   : > { %v14911_v58 = vmul.f32 %v14878_v61, %v14706_v20  ;;  %v16057_v35 = vpack.c.bf16 %v14707_v18, %v14706_v20  ;;  %v14879_v22 = vmul.f32 %v14847_v54, %v14707_v18 }
 0x4d1   : > { %v14893_v53 = vadd.f32 %v14892_v63, %v14878_v61  ;;  %v14925_v1 = vadd.f32 %v14924_v25, %v14910_v8 }
 0x4d2   : > { %14779 = vst [vmem:[%s16434_s26 + $0x38] sm:$0xff] %v16057_v35  ;;  %v14912_v19 = vmul.f32 %v14879_v22, %v14707_v18 }
 0x4d3   : > { %v14894_v57 = vadd.f32 %v14893_v53, %v14879_v22  ;;  %v14926_v33 = vadd.f32 %v14925_v1, %v14911_v58 }
 0x4d5   : > { %14895 = vadd.xlane.f32.xlu1 %v14894_v57  ;;  %v14927_v51 = vadd.f32 %v14926_v33, %v14912_v19 }
 0x4d7   : > { %14928 = vadd.xlane.f32.xlu0 %v14927_v51 }
 0x55c   : > { %14933 = sbr.rel (%p16045_p7) target bundleno = 1379 (0x563), region = 70 }
 0x55e   : > { %v14896_v3 = vpop.xlane.xlu1 %14895 }
 0x560   : > { %v14929_v38 = vpop.xlane.xlu0 %14928 }
 0x561   : > { %vm14934_vm0 = vcmask 7168  }
 0x562   : > { %14935 = vst.msk [vmem:[%s16424_s14] sm:$0xff] %vm14934_vm0, %v14896_v3  ;;  %14936 = vst.msk [vmem:[%s16429_s18] sm:$0xff] %vm14934_vm0, %v14929_v38 }
 0x563 PF: > { %p16046_p8 = scmp.le.s32.totalorder %s16298_s21, 0 }
 0x565   : > { %14940 = sbr.rel (%p16046_p8) target bundleno = 1391 (0x56f), region = 74 }
 0x56a   : > { %v14941_v30 = vld [vmem:[%s16424_s14] sm:$0xff]  ;;  %vm14943_vm1 = vcmask 7168  }
 0x56b   : > { %v14945_v31 = vld [vmem:[%s16429_s18] sm:$0xff]  ;;  %v14942_v56 = vadd.f32 %v14941_v30, %v14896_v3 }
 0x56c   : > { %v14946_v0 = vadd.f32 %v14945_v31, %v14929_v38 }
 0x56d   : > { %14944 = vst.msk [vmem:[%s16424_s14] sm:$0xff] %vm14943_vm1, %v14942_v56 }
 0x56e   : > { %14947 = vst.msk [vmem:[%s16429_s18] sm:$0xff] %vm14943_vm1, %v14946_v0 }
 0x56f PF: > { %s17_s25 = sadd.s32 1, %s16314_s25   ;;  %s20314_s22 = sld [smem:[#allocation7_spill]] }
 0x570   : > { %p14_p9 = scmp.ge.s32.totalorder %s17_s25, 8   ;;  %s20315_s26 = sld [smem:[#allocation8_spill]] }
 0x571   : > { %s20316_s24 = sld [smem:[#allocation9_spill]]  ;;  %s20317_s21 = smov %s16306_s23 }
 0x572   :  { %16 = sbr.rel (!%p14_p9) target bundleno = 3 (0x3), region = 163 }
 0x576   : > { %s20318_s23 = smov %s20315_s26 }
 0x577   :  { %15006 = vsyncmov [#allocation4] }
 0x57a   :  { %s15007_s11 = vpop.sfrf %15006 }
 0x57b   :  { %p16049_p10 = scmp.ne.s32.totalorder %s15007_s11, 0 }
 0x57d   :  { %15011 = shalt.err (%p16049_p10)  }

</bundles_post_ra>
